<compile_context>
chip_gen: v5e
topology: v5e:2x2
jax: 0.10.0
libtpu: 0.0.40
codegen_flags: <defaults>
</compile_context>

<pallas_src>
import jax
import jax.numpy as jnp
import numpy as np
from jax.experimental import pallas as pl
from jax.experimental.pallas import tpu as pltpu


# --------------------------------------------------------------------------
# In-kernel helpers
# --------------------------------------------------------------------------
def _zero_border(pad_ref):
    """Zero only the 1-pixel border strips of a (h+2, w+2, C) halo scratch."""
    h2, w2, c = pad_ref.shape
    pad_ref[0:1, :, :] = jnp.zeros((1, w2, c), pad_ref.dtype)
    pad_ref[h2 - 1:h2, :, :] = jnp.zeros((1, w2, c), pad_ref.dtype)
    pad_ref[:, 0:1, :] = jnp.zeros((h2, 1, c), pad_ref.dtype)
    pad_ref[:, w2 - 1:w2, :] = jnp.zeros((h2, 1, c), pad_ref.dtype)


def _conv3x3_relu(pad_ref, w_ref, b_ref, hout, wout):
    """3x3 'same' conv + bias + ReLU, reading from a zero-halo'd VMEM scratch.

    pad_ref: (hout+2, wout+2, Cin) f32 scratch with zero 1-pixel border.
    w_ref:   (9*Cin, Cout) bf16; rows [(3*ky+kx)*Cin : +Cin] hold w[ky, kx].
    b_ref:   (1, Cout) f32.
    Returns  (hout, wout, Cout) f32.

    Nine accumulated K=Cin matmuls (no im2col concat): keeps the MXU well fed
    for Cin >= 128 while avoiding the 9x-activation-sized concat temp in VMEM.
    Taps are cast to bf16 only at the MXU boundary; accumulation stays f32.
    """
    cin = pad_ref.shape[-1]
    cout = w_ref.shape[-1]
    acc = None
    for ky in range(3):
        for kx in range(3):
            tap = pad_ref[ky:ky + hout, kx:kx + wout, :]
            tap = tap.reshape(hout * wout, cin).astype(jnp.bfloat16)
            wk = w_ref[(3 * ky + kx) * cin:(3 * ky + kx + 1) * cin, :]
            d = jnp.dot(tap, wk, preferred_element_type=jnp.float32)
            acc = d if acc is None else acc + d
    acc = acc + b_ref[...]                        # bias, broadcast (1, Cout)
    return jnp.maximum(acc, 0.0).reshape(hout, wout, cout)   # norm_layer=ReLU


# --------------------------------------------------------------------------
# Fused SCConv kernel (one batch element per grid step)
# --------------------------------------------------------------------------
def _scconv_kernel(x_ref, w2_ref, b2_ref, w3_ref, b3_ref, w4_ref, b4_ref,
                   o_ref, xpad_ref, ppad_ref):
    # x_ref:    (1, H, W, C)         o_ref: (1, H, W, C)
    # w*_ref:   (9*C, C) bf16        b*_ref: (1, C) f32
    # xpad_ref: (H+2, W+2, C) f32    ppad_ref: (Hp+2, Wp+2, C) f32
    H, W, C = x_ref.shape[1], x_ref.shape[2], x_ref.shape[3]
    Hp = ppad_ref.shape[0] - 2
    Wp = ppad_ref.shape[1] - 2
    r = H // Hp                                   # pooling_r (static)

    # Border-only zeroing (interiors are fully overwritten below).  Re-done
    # every step so results stay correct when the "parallel" batch axis is
    # split across TensorCores (each core has its own scratch instance).
    _zero_border(xpad_ref)
    _zero_border(ppad_ref)

    # Stage x once into the full-res halo scratch; later consumers re-read it
    # from VMEM with short live ranges (no second full-res copy held live).
    xpad_ref[1:H + 1, 1:W + 1, :] = x_ref[0].astype(jnp.float32)

    # ---- k2 branch: AvgPool(r, r) fused in VMEM, then conv3x3 + ReLU -------
    # H-pooling first via a leading-axis split (minor dims stay (W, C) ->
    # full sublane/lane density); the (r, C)-minor reshape is deferred to the
    # r-times-smaller W-pooling step.
    xv = xpad_ref[1:H + 1, 1:W + 1, :]                       # (H, W, C) f32
    x4 = xv.reshape(Hp, r, W, C)
    hsum = x4[:, 0]
    for dy in range(1, r):
        hsum = hsum + x4[:, dy]                              # (Hp, W, C)
    h4 = hsum.reshape(Hp, Wp, r, C)
    pooled = h4[:, :, 0]
    for dx in range(1, r):
        pooled = pooled + h4[:, :, dx]                       # (Hp, Wp, C)
    pooled = pooled * (1.0 / (r * r))
    ppad_ref[1:Hp + 1, 1:Wp + 1, :] = pooled
    k2 = _conv3x3_relu(ppad_ref, w2_ref, b2_ref, Hp, Wp)     # (Hp, Wp, C) f32

    # ---- k3 branch: conv3x3 + ReLU at full resolution -----------------------
    k3 = _conv3x3_relu(xpad_ref, w3_ref, b3_ref, H, W)       # (H, W, C) f32

    # ---- gate: sigmoid(x + nearest_upsample(k2) + 1e-8), fused in VMEM ------
    # k2 is repeated along W once (one small relayout), then broadcast over the
    # r-axis of x viewed as (Hp, r, W, C): all full-resolution elementwise ops
    # keep (W, C) as their minor dims (dense vregs, no 5-D (r, C) views).
    k2w = jnp.broadcast_to(k2[:, :, None, :], (Hp, Wp, r, C)).reshape(Hp, W, C)
    xg = xpad_ref[1:H + 1, 1:W + 1, :]                       # short-lived re-read
    z = xg.reshape(Hp, r, W, C) + k2w[:, None, :, :] + 1e-8
    gate = pl.reciprocal(1.0 + jnp.exp(-z), approx=True)     # exp + rcp on EUP
    gated = (k3.reshape(Hp, r, W, C) * gate).reshape(H, W, C)

    # ---- k4: conv3x3 + ReLU on the gated tensor -----------------------------
    # Reuse the full-res halo scratch: its border is still zero, only the
    # interior is overwritten.
    xpad_ref[1:H + 1, 1:W + 1, :] = gated
    out = _conv3x3_relu(xpad_ref, w4_ref, b4_ref, H, W)      # (H, W, C) f32
    o_ref[0] = out.astype(o_ref.dtype)


# --------------------------------------------------------------------------
# Scoped-VMEM request derived from the actual per-step working set
# --------------------------------------------------------------------------
def _vmem_limit_bytes(io_itemsize, H, W, C, Hp, Wp):
    io_blocks = 2 * 2 * H * W * C * io_itemsize              # x + out, double-buffered
    weights = 2 * 3 * (9 * C * C * 2 + C * 4)                # bf16 W + f32 b, x2 bufs
    scratch = ((H + 2) * (W + 2) + (Hp + 2) * (Wp + 2)) * C * 4
    temps = 8 * H * W * C * 4                                # in-kernel f32 temporaries
    est = io_blocks + weights + scratch + temps
    try:
        cap = int(pltpu.get_tpu_info().vmem_capacity_bytes)
    except Exception:
        cap = 64 * 1024 * 1024                               # conservative (v7x)
    return int(min(int(cap * 0.9), max(32 * 1024 * 1024, 2 * est)))


# --------------------------------------------------------------------------
# SCConv forward (PyTorch-compatible: NCHW in / NCHW out)
# --------------------------------------------------------------------------
def scconv_forward(x_nchw, params, pooling_r):
    x = jnp.transpose(x_nchw, (0, 2, 3, 1))                  # NCHW -> NHWC
    N, H, W, C = x.shape
    r = pooling_r
    # Same divisibility assumption as the original eval / PyTorch test config.
    assert H % r == 0 and W % r == 0, "assumes H, W divisible by pooling_r"
    Hp, Wp = H // r, W // r

    def prep_w(w):   # HWIO (3,3,Cin,Cout) -> tap-major (9*Cin, Cout), bf16 for the MXU
        assert w.shape == (3, 3, C, C)
        return w.reshape(9 * C, C).astype(jnp.bfloat16)

    def prep_b(b):
        return b.reshape(1, C).astype(jnp.float32)

    w2, b2 = prep_w(params["w2"]), prep_b(params["b2"])
    w3, b3 = prep_w(params["w3"]), prep_b(params["b3"])
    w4, b4 = prep_w(params["w4"]), prep_b(params["b4"])

    # Constant index_maps -> weights/biases stay VMEM-resident across steps.
    wspec = pl.BlockSpec((9 * C, C), lambda n: (0, 0))
    bspec = pl.BlockSpec((1, C), lambda n: (0, 0))

    out = pl.pallas_call(
        _scconv_kernel,
        out_shape=jax.ShapeDtypeStruct((N, H, W, C), x.dtype),
        grid=(N,),
        in_specs=[
            pl.BlockSpec((1, H, W, C), lambda n: (n, 0, 0, 0)),   # x
            wspec, bspec,                                          # k2
            wspec, bspec,                                          # k3
            wspec, bspec,                                          # k4
        ],
        out_specs=pl.BlockSpec((1, H, W, C), lambda n: (n, 0, 0, 0)),
        scratch_shapes=[
            pltpu.VMEM((H + 2, W + 2, C), jnp.float32),      # full-res halo buf
            pltpu.VMEM((Hp + 2, Wp + 2, C), jnp.float32),    # pooled-res halo buf
        ],
        compiler_params=pltpu.CompilerParams(
            dimension_semantics=("parallel",),
            vmem_limit_bytes=_vmem_limit_bytes(x.dtype.itemsize, H, W, C, Hp, Wp),
        ),
    )(x, w2, b2, w3, b3, w4, b4)
    return jnp.transpose(out, (0, 3, 1, 2))                  # NHWC -> NCHW


# --------------------------------------------------------------------------
# Pure-JAX reference (matches the PyTorch module, f32 everywhere)
# --------------------------------------------------------------------------
def _conv_ref(x, w, b):
    y = jax.lax.conv_general_dilated(
        x, w, window_strides=(1, 1), padding="SAME",
        dimension_numbers=("NHWC", "HWIO", "NHWC"))
    return jnp.maximum(y + b, 0.0)


def scconv_ref(x_nchw, params, pooling_r):
    x = jnp.transpose(x_nchw, (0, 2, 3, 1))
    N, H, W, C = x.shape
    r = pooling_r
    x_pool = x.reshape(N, H // r, r, W // r, r, C).mean(axis=(2, 4))
    k2 = _conv_ref(x_pool, params["w2"], params["b2"])
    up = jnp.repeat(jnp.repeat(k2, r, axis=1), r, axis=2)    # nearest upsample
    gate = jax.nn.sigmoid(x + up + 1e-8)
    k3 = _conv_ref(x, params["w3"], params["b3"])
    out = _conv_ref(k3 * gate, params["w4"], params["b4"])
    return jnp.transpose(out, (0, 3, 1, 2))


if __name__ == "__main__":
    # input_channels == output_channels (required: gate adds k2(x) to x and
    # multiplies k3(x) elementwise).
    N, C, H, W = 2, 8, 16, 16
    pooling_r = 2

    key = jax.random.PRNGKey(0)
    kx, k2w, k3w, k4w = jax.random.split(key, 4)
    x = jax.random.normal(kx, (N, C, H, W), jnp.float32)

    params = {
        "w2": 0.1 * jax.random.normal(k2w, (3, 3, C, C), jnp.float32),
        "b2": jnp.linspace(-0.1, 0.1, C, dtype=jnp.float32),
        "w3": 0.1 * jax.random.normal(k3w, (3, 3, C, C), jnp.float32),
        "b3": jnp.linspace(0.1, -0.1, C, dtype=jnp.float32),
        "w4": 0.1 * jax.random.normal(k4w, (3, 3, C, C), jnp.float32),
        "b4": jnp.linspace(-0.05, 0.05, C, dtype=jnp.float32),
    }

    out = jax.block_until_ready(scconv_forward(x, params, pooling_r))
    ref = jax.block_until_ready(scconv_ref(x, params, pooling_r))

    assert out.shape == (N, C, H, W), out.shape
    # bf16 MXU path in the kernel vs f32 reference -> looser tolerance.
    np.testing.assert_allclose(np.asarray(out), np.asarray(ref),
                               rtol=2e-2, atol=2e-2)
    print("KERNEL_OK")
</pallas_src>

<mosaic_0001>
module attributes {stable_mosaic.version = 11 : i64} {
  func.func @_scconv_kernel(%arg0: i32, %arg1: memref<1x16x16x8xf32, #tpu.memory_space<vmem>>, %arg2: memref<72x8xbf16, #tpu.memory_space<vmem>>, %arg3: memref<1x8xf32, #tpu.memory_space<vmem>>, %arg4: memref<72x8xbf16, #tpu.memory_space<vmem>>, %arg5: memref<1x8xf32, #tpu.memory_space<vmem>>, %arg6: memref<72x8xbf16, #tpu.memory_space<vmem>>, %arg7: memref<1x8xf32, #tpu.memory_space<vmem>>, %arg8: memref<1x16x16x8xf32, #tpu.memory_space<vmem>>, %arg9: memref<18x18x8xf32, #tpu.memory_space<vmem>>, %arg10: memref<10x10x8xf32, #tpu.memory_space<vmem>>) attributes {dimension_semantics = [#tpu.dimension_semantics<parallel>], iteration_bounds = array<i64: 2>, scalar_prefetch = 0 : i64, scratch_operands = 2 : i64, tpu.core_type = #tpu.core_type<tc>, window_params = [{transform_indices = @transform_0, window_bounds = array<i64: 1, 16, 16, 8>}, {pipeline_mode = #tpu.pipeline_mode<synchronous>, transform_indices = @transform_1, window_bounds = array<i64: 72, 8>}, {pipeline_mode = #tpu.pipeline_mode<synchronous>, transform_indices = @transform_2, window_bounds = array<i64: 1, 8>}, {pipeline_mode = #tpu.pipeline_mode<synchronous>, transform_indices = @transform_3, window_bounds = array<i64: 72, 8>}, {pipeline_mode = #tpu.pipeline_mode<synchronous>, transform_indices = @transform_4, window_bounds = array<i64: 1, 8>}, {pipeline_mode = #tpu.pipeline_mode<synchronous>, transform_indices = @transform_5, window_bounds = array<i64: 72, 8>}, {pipeline_mode = #tpu.pipeline_mode<synchronous>, transform_indices = @transform_6, window_bounds = array<i64: 1, 8>}, {transform_indices = @transform_7, window_bounds = array<i64: 1, 16, 16, 8>}]} {
    %cst = arith.constant 0.000000e+00 : f32
    %0 = vector.broadcast %cst : f32 to vector<1x18x8xf32>
    %c0 = arith.constant 0 : index
    %c0_0 = arith.constant 0 : index
    %c0_1 = arith.constant 0 : index
    %1 = vector.load %arg9[%c0, %c0_0, %c0_1] : memref<18x18x8xf32, #tpu.memory_space<vmem>>, vector<1x18x8xf32>
    tpu.vector_store %arg9[%c0, %c0_0, %c0_1], %0 {strides = array<i32>} : memref<18x18x8xf32, #tpu.memory_space<vmem>>, vector<1x18x8xf32>,
    %cst_2 = arith.constant 0.000000e+00 : f32
    %2 = vector.broadcast %cst_2 : f32 to vector<1x18x8xf32>
    %c17 = arith.constant 17 : index
    %c0_3 = arith.constant 0 : index
    %c0_4 = arith.constant 0 : index
    %3 = vector.load %arg9[%c17, %c0_3, %c0_4] : memref<18x18x8xf32, #tpu.memory_space<vmem>>, vector<1x18x8xf32>
    tpu.vector_store %arg9[%c17, %c0_3, %c0_4], %2 {strides = array<i32>} : memref<18x18x8xf32, #tpu.memory_space<vmem>>, vector<1x18x8xf32>,
    %cst_5 = arith.constant 0.000000e+00 : f32
    %4 = vector.broadcast %cst_5 : f32 to vector<18x1x8xf32>
    %c0_6 = arith.constant 0 : index
    %c0_7 = arith.constant 0 : index
    %c0_8 = arith.constant 0 : index
    %5 = vector.load %arg9[%c0_6, %c0_7, %c0_8] : memref<18x18x8xf32, #tpu.memory_space<vmem>>, vector<18x1x8xf32>
    tpu.vector_store %arg9[%c0_6, %c0_7, %c0_8], %4 {strides = array<i32>} : memref<18x18x8xf32, #tpu.memory_space<vmem>>, vector<18x1x8xf32>,
    %cst_9 = arith.constant 0.000000e+00 : f32
    %6 = vector.broadcast %cst_9 : f32 to vector<18x1x8xf32>
    %c0_10 = arith.constant 0 : index
    %c17_11 = arith.constant 17 : index
    %c0_12 = arith.constant 0 : index
    %7 = vector.load %arg9[%c0_10, %c17_11, %c0_12] : memref<18x18x8xf32, #tpu.memory_space<vmem>>, vector<18x1x8xf32>
    tpu.vector_store %arg9[%c0_10, %c17_11, %c0_12], %6 {strides = array<i32>} : memref<18x18x8xf32, #tpu.memory_space<vmem>>, vector<18x1x8xf32>,
    %cst_13 = arith.constant 0.000000e+00 : f32
    %8 = vector.broadcast %cst_13 : f32 to vector<1x10x8xf32>
    %c0_14 = arith.constant 0 : index
    %c0_15 = arith.constant 0 : index
    %c0_16 = arith.constant 0 : index
    %9 = vector.load %arg10[%c0_14, %c0_15, %c0_16] : memref<10x10x8xf32, #tpu.memory_space<vmem>>, vector<1x10x8xf32>
    tpu.vector_store %arg10[%c0_14, %c0_15, %c0_16], %8 {strides = array<i32>} : memref<10x10x8xf32, #tpu.memory_space<vmem>>, vector<1x10x8xf32>,
    %cst_17 = arith.constant 0.000000e+00 : f32
    %10 = vector.broadcast %cst_17 : f32 to vector<1x10x8xf32>
    %c9 = arith.constant 9 : index
    %c0_18 = arith.constant 0 : index
    %c0_19 = arith.constant 0 : index
    %11 = vector.load %arg10[%c9, %c0_18, %c0_19] : memref<10x10x8xf32, #tpu.memory_space<vmem>>, vector<1x10x8xf32>
    tpu.vector_store %arg10[%c9, %c0_18, %c0_19], %10 {strides = array<i32>} : memref<10x10x8xf32, #tpu.memory_space<vmem>>, vector<1x10x8xf32>,
    %cst_20 = arith.constant 0.000000e+00 : f32
    %12 = vector.broadcast %cst_20 : f32 to vector<10x1x8xf32>
    %c0_21 = arith.constant 0 : index
    %c0_22 = arith.constant 0 : index
    %c0_23 = arith.constant 0 : index
    %13 = vector.load %arg10[%c0_21, %c0_22, %c0_23] : memref<10x10x8xf32, #tpu.memory_space<vmem>>, vector<10x1x8xf32>
    tpu.vector_store %arg10[%c0_21, %c0_22, %c0_23], %12 {strides = array<i32>} : memref<10x10x8xf32, #tpu.memory_space<vmem>>, vector<10x1x8xf32>,
    %cst_24 = arith.constant 0.000000e+00 : f32
    %14 = vector.broadcast %cst_24 : f32 to vector<10x1x8xf32>
    %c0_25 = arith.constant 0 : index
    %c9_26 = arith.constant 9 : index
    %c0_27 = arith.constant 0 : index
    %15 = vector.load %arg10[%c0_25, %c9_26, %c0_27] : memref<10x10x8xf32, #tpu.memory_space<vmem>>, vector<10x1x8xf32>
    tpu.vector_store %arg10[%c0_25, %c9_26, %c0_27], %14 {strides = array<i32>} : memref<10x10x8xf32, #tpu.memory_space<vmem>>, vector<10x1x8xf32>,
    %c0_28 = arith.constant 0 : index
    %c0_29 = arith.constant 0 : index
    %c0_30 = arith.constant 0 : index
    %c0_31 = arith.constant 0 : index
    %16 = vector.load %arg1[%c0_28, %c0_29, %c0_30, %c0_31] : memref<1x16x16x8xf32, #tpu.memory_space<vmem>>, vector<1x16x16x8xf32>
    %17 = vector.shape_cast %16 : vector<1x16x16x8xf32> to vector<16x16x8xf32>
    %c1 = arith.constant 1 : index
    %c1_32 = arith.constant 1 : index
    %c0_33 = arith.constant 0 : index
    %18 = vector.load %arg9[%c1, %c1_32, %c0_33] : memref<18x18x8xf32, #tpu.memory_space<vmem>>, vector<16x16x8xf32>
    tpu.vector_store %arg9[%c1, %c1_32, %c0_33], %17 {strides = array<i32>} : memref<18x18x8xf32, #tpu.memory_space<vmem>>, vector<16x16x8xf32>,
    %c1_34 = arith.constant 1 : index
    %c1_35 = arith.constant 1 : index
    %c0_36 = arith.constant 0 : index
    %19 = vector.load %arg9[%c1_34, %c1_35, %c0_36] : memref<18x18x8xf32, #tpu.memory_space<vmem>>, vector<16x16x8xf32>
    %20 = vector.shape_cast %19 : vector<16x16x8xf32> to vector<8x2x16x8xf32>
    %21 = vector.extract_strided_slice %20 {offsets = [0, 0, 0, 0], sizes = [8, 1, 16, 8], strides = [1, 1, 1, 1]} : vector<8x2x16x8xf32> to vector<8x1x16x8xf32>
    %22 = vector.shape_cast %21 : vector<8x1x16x8xf32> to vector<8x16x8xf32>
    %23 = vector.extract_strided_slice %20 {offsets = [0, 1, 0, 0], sizes = [8, 1, 16, 8], strides = [1, 1, 1, 1]} : vector<8x2x16x8xf32> to vector<8x1x16x8xf32>
    %24 = vector.shape_cast %23 : vector<8x1x16x8xf32> to vector<8x16x8xf32>
    %25 = arith.addf %22, %24 : vector<8x16x8xf32>
    %26 = vector.shape_cast %25 : vector<8x16x8xf32> to vector<8x8x2x8xf32>
    %27 = vector.extract_strided_slice %26 {offsets = [0, 0, 0, 0], sizes = [8, 8, 1, 8], strides = [1, 1, 1, 1]} : vector<8x8x2x8xf32> to vector<8x8x1x8xf32>
    %28 = vector.shape_cast %27 : vector<8x8x1x8xf32> to vector<8x8x8xf32>
    %29 = vector.extract_strided_slice %26 {offsets = [0, 0, 1, 0], sizes = [8, 8, 1, 8], strides = [1, 1, 1, 1]} : vector<8x8x2x8xf32> to vector<8x8x1x8xf32>
    %30 = vector.shape_cast %29 : vector<8x8x1x8xf32> to vector<8x8x8xf32>
    %31 = arith.addf %28, %30 : vector<8x8x8xf32>
    %cst_37 = arith.constant 2.500000e-01 : f32
    %32 = vector.broadcast %cst_37 : f32 to vector<8x8x8xf32>
    %33 = arith.mulf %31, %32 : vector<8x8x8xf32>
    %c1_38 = arith.constant 1 : index
    %c1_39 = arith.constant 1 : index
    %c0_40 = arith.constant 0 : index
    %34 = vector.load %arg10[%c1_38, %c1_39, %c0_40] : memref<10x10x8xf32, #tpu.memory_space<vmem>>, vector<8x8x8xf32>
    tpu.vector_store %arg10[%c1_38, %c1_39, %c0_40], %33 {strides = array<i32>} : memref<10x10x8xf32, #tpu.memory_space<vmem>>, vector<8x8x8xf32>,
    %c0_41 = arith.constant 0 : index
    %c0_42 = arith.constant 0 : index
    %c0_43 = arith.constant 0 : index
    %35 = vector.load %arg10[%c0_41, %c0_42, %c0_43] : memref<10x10x8xf32, #tpu.memory_space<vmem>>, vector<8x8x8xf32>
    %36 = vector.shape_cast %35 : vector<8x8x8xf32> to vector<64x8xf32>
    %37 = arith.truncf %36 : vector<64x8xf32> to vector<64x8xbf16>
    %c0_44 = arith.constant 0 : index
    %c0_45 = arith.constant 0 : index
    %38 = vector.load %arg2[%c0_44, %c0_45] : memref<72x8xbf16, #tpu.memory_space<vmem>>, vector<8x8xbf16>
    %cst_46 = arith.constant dense<0.000000e+00> : vector<64x8xf32>
    %39 = tpu.matmul %37, %38, %cst_46 {dimension_numbers = #tpu.dot_dimension_numbers<[1], [0], [0], [1], [0, 0, 1, 1], [], []>} : vector<64x8xbf16>, vector<8x8xbf16>, vector<64x8xf32> -> vector<64x8xf32>
    %c0_47 = arith.constant 0 : index
    %c1_48 = arith.constant 1 : index
    %c0_49 = arith.constant 0 : index
    %40 = vector.load %arg10[%c0_47, %c1_48, %c0_49] : memref<10x10x8xf32, #tpu.memory_space<vmem>>, vector<8x8x8xf32>
    %41 = vector.shape_cast %40 : vector<8x8x8xf32> to vector<64x8xf32>
    %42 = arith.truncf %41 : vector<64x8xf32> to vector<64x8xbf16>
    %c8 = arith.constant 8 : index
    %c0_50 = arith.constant 0 : index
    %43 = vector.load %arg2[%c8, %c0_50] : memref<72x8xbf16, #tpu.memory_space<vmem>>, vector<8x8xbf16>
    %cst_51 = arith.constant dense<0.000000e+00> : vector<64x8xf32>
    %44 = tpu.matmul %42, %43, %cst_51 {dimension_numbers = #tpu.dot_dimension_numbers<[1], [0], [0], [1], [0, 0, 1, 1], [], []>} : vector<64x8xbf16>, vector<8x8xbf16>, vector<64x8xf32> -> vector<64x8xf32>
    %45 = arith.addf %39, %44 : vector<64x8xf32>
    %c0_52 = arith.constant 0 : index
    %c2 = arith.constant 2 : index
    %c0_53 = arith.constant 0 : index
    %46 = vector.load %arg10[%c0_52, %c2, %c0_53] : memref<10x10x8xf32, #tpu.memory_space<vmem>>, vector<8x8x8xf32>
    %47 = vector.shape_cast %46 : vector<8x8x8xf32> to vector<64x8xf32>
    %48 = arith.truncf %47 : vector<64x8xf32> to vector<64x8xbf16>
    %c16 = arith.constant 16 : index
    %c0_54 = arith.constant 0 : index
    %49 = vector.load %arg2[%c16, %c0_54] : memref<72x8xbf16, #tpu.memory_space<vmem>>, vector<8x8xbf16>
    %cst_55 = arith.constant dense<0.000000e+00> : vector<64x8xf32>
    %50 = tpu.matmul %48, %49, %cst_55 {dimension_numbers = #tpu.dot_dimension_numbers<[1], [0], [0], [1], [0, 0, 1, 1], [], []>} : vector<64x8xbf16>, vector<8x8xbf16>, vector<64x8xf32> -> vector<64x8xf32>
    %51 = arith.addf %45, %50 : vector<64x8xf32>
    %c1_56 = arith.constant 1 : index
    %c0_57 = arith.constant 0 : index
    %c0_58 = arith.constant 0 : index
    %52 = vector.load %arg10[%c1_56, %c0_57, %c0_58] : memref<10x10x8xf32, #tpu.memory_space<vmem>>, vector<8x8x8xf32>
    %53 = vector.shape_cast %52 : vector<8x8x8xf32> to vector<64x8xf32>
    %54 = arith.truncf %53 : vector<64x8xf32> to vector<64x8xbf16>
    %c24 = arith.constant 24 : index
    %c0_59 = arith.constant 0 : index
    %55 = vector.load %arg2[%c24, %c0_59] : memref<72x8xbf16, #tpu.memory_space<vmem>>, vector<8x8xbf16>
    %cst_60 = arith.constant dense<0.000000e+00> : vector<64x8xf32>
    %56 = tpu.matmul %54, %55, %cst_60 {dimension_numbers = #tpu.dot_dimension_numbers<[1], [0], [0], [1], [0, 0, 1, 1], [], []>} : vector<64x8xbf16>, vector<8x8xbf16>, vector<64x8xf32> -> vector<64x8xf32>
    %57 = arith.addf %51, %56 : vector<64x8xf32>
    %c1_61 = arith.constant 1 : index
    %c1_62 = arith.constant 1 : index
    %c0_63 = arith.constant 0 : index
    %58 = vector.load %arg10[%c1_61, %c1_62, %c0_63] : memref<10x10x8xf32, #tpu.memory_space<vmem>>, vector<8x8x8xf32>
    %59 = vector.shape_cast %58 : vector<8x8x8xf32> to vector<64x8xf32>
    %60 = arith.truncf %59 : vector<64x8xf32> to vector<64x8xbf16>
    %c32 = arith.constant 32 : index
    %c0_64 = arith.constant 0 : index
    %61 = vector.load %arg2[%c32, %c0_64] : memref<72x8xbf16, #tpu.memory_space<vmem>>, vector<8x8xbf16>
    %cst_65 = arith.constant dense<0.000000e+00> : vector<64x8xf32>
    %62 = tpu.matmul %60, %61, %cst_65 {dimension_numbers = #tpu.dot_dimension_numbers<[1], [0], [0], [1], [0, 0, 1, 1], [], []>} : vector<64x8xbf16>, vector<8x8xbf16>, vector<64x8xf32> -> vector<64x8xf32>
    %63 = arith.addf %57, %62 : vector<64x8xf32>
    %c1_66 = arith.constant 1 : index
    %c2_67 = arith.constant 2 : index
    %c0_68 = arith.constant 0 : index
    %64 = vector.load %arg10[%c1_66, %c2_67, %c0_68] : memref<10x10x8xf32, #tpu.memory_space<vmem>>, vector<8x8x8xf32>
    %65 = vector.shape_cast %64 : vector<8x8x8xf32> to vector<64x8xf32>
    %66 = arith.truncf %65 : vector<64x8xf32> to vector<64x8xbf16>
    %c40 = arith.constant 40 : index
    %c0_69 = arith.constant 0 : index
    %67 = vector.load %arg2[%c40, %c0_69] : memref<72x8xbf16, #tpu.memory_space<vmem>>, vector<8x8xbf16>
    %cst_70 = arith.constant dense<0.000000e+00> : vector<64x8xf32>
    %68 = tpu.matmul %66, %67, %cst_70 {dimension_numbers = #tpu.dot_dimension_numbers<[1], [0], [0], [1], [0, 0, 1, 1], [], []>} : vector<64x8xbf16>, vector<8x8xbf16>, vector<64x8xf32> -> vector<64x8xf32>
    %69 = arith.addf %63, %68 : vector<64x8xf32>
    %c2_71 = arith.constant 2 : index
    %c0_72 = arith.constant 0 : index
    %c0_73 = arith.constant 0 : index
    %70 = vector.load %arg10[%c2_71, %c0_72, %c0_73] : memref<10x10x8xf32, #tpu.memory_space<vmem>>, vector<8x8x8xf32>
    %71 = vector.shape_cast %70 : vector<8x8x8xf32> to vector<64x8xf32>
    %72 = arith.truncf %71 : vector<64x8xf32> to vector<64x8xbf16>
    %c48 = arith.constant 48 : index
    %c0_74 = arith.constant 0 : index
    %73 = vector.load %arg2[%c48, %c0_74] : memref<72x8xbf16, #tpu.memory_space<vmem>>, vector<8x8xbf16>
    %cst_75 = arith.constant dense<0.000000e+00> : vector<64x8xf32>
    %74 = tpu.matmul %72, %73, %cst_75 {dimension_numbers = #tpu.dot_dimension_numbers<[1], [0], [0], [1], [0, 0, 1, 1], [], []>} : vector<64x8xbf16>, vector<8x8xbf16>, vector<64x8xf32> -> vector<64x8xf32>
    %75 = arith.addf %69, %74 : vector<64x8xf32>
    %c2_76 = arith.constant 2 : index
    %c1_77 = arith.constant 1 : index
    %c0_78 = arith.constant 0 : index
    %76 = vector.load %arg10[%c2_76, %c1_77, %c0_78] : memref<10x10x8xf32, #tpu.memory_space<vmem>>, vector<8x8x8xf32>
    %77 = vector.shape_cast %76 : vector<8x8x8xf32> to vector<64x8xf32>
    %78 = arith.truncf %77 : vector<64x8xf32> to vector<64x8xbf16>
    %c56 = arith.constant 56 : index
    %c0_79 = arith.constant 0 : index
    %79 = vector.load %arg2[%c56, %c0_79] : memref<72x8xbf16, #tpu.memory_space<vmem>>, vector<8x8xbf16>
    %cst_80 = arith.constant dense<0.000000e+00> : vector<64x8xf32>
    %80 = tpu.matmul %78, %79, %cst_80 {dimension_numbers = #tpu.dot_dimension_numbers<[1], [0], [0], [1], [0, 0, 1, 1], [], []>} : vector<64x8xbf16>, vector<8x8xbf16>, vector<64x8xf32> -> vector<64x8xf32>
    %81 = arith.addf %75, %80 : vector<64x8xf32>
    %c2_81 = arith.constant 2 : index
    %c2_82 = arith.constant 2 : index
    %c0_83 = arith.constant 0 : index
    %82 = vector.load %arg10[%c2_81, %c2_82, %c0_83] : memref<10x10x8xf32, #tpu.memory_space<vmem>>, vector<8x8x8xf32>
    %83 = vector.shape_cast %82 : vector<8x8x8xf32> to vector<64x8xf32>
    %84 = arith.truncf %83 : vector<64x8xf32> to vector<64x8xbf16>
    %c64 = arith.constant 64 : index
    %c0_84 = arith.constant 0 : index
    %85 = vector.load %arg2[%c64, %c0_84] : memref<72x8xbf16, #tpu.memory_space<vmem>>, vector<8x8xbf16>
    %cst_85 = arith.constant dense<0.000000e+00> : vector<64x8xf32>
    %86 = tpu.matmul %84, %85, %cst_85 {dimension_numbers = #tpu.dot_dimension_numbers<[1], [0], [0], [1], [0, 0, 1, 1], [], []>} : vector<64x8xbf16>, vector<8x8xbf16>, vector<64x8xf32> -> vector<64x8xf32>
    %87 = arith.addf %81, %86 : vector<64x8xf32>
    %c0_86 = arith.constant 0 : index
    %c0_87 = arith.constant 0 : index
    %88 = vector.load %arg3[%c0_86, %c0_87] : memref<1x8xf32, #tpu.memory_space<vmem>>, vector<1x8xf32>
    %89 = vector.broadcast %88 : vector<1x8xf32> to vector<64x8xf32>
    %90 = arith.addf %87, %89 : vector<64x8xf32>
    %cst_88 = arith.constant 0.000000e+00 : f32
    %91 = vector.broadcast %cst_88 : f32 to vector<64x8xf32>
    %92 = arith.maximumf %90, %91 : vector<64x8xf32>
    %93 = vector.shape_cast %92 : vector<64x8xf32> to vector<8x8x8xf32>
    %c0_89 = arith.constant 0 : index
    %c0_90 = arith.constant 0 : index
    %c0_91 = arith.constant 0 : index
    %94 = vector.load %arg9[%c0_89, %c0_90, %c0_91] : memref<18x18x8xf32, #tpu.memory_space<vmem>>, vector<16x16x8xf32>
    %95 = vector.shape_cast %94 : vector<16x16x8xf32> to vector<256x8xf32>
    %96 = arith.truncf %95 : vector<256x8xf32> to vector<256x8xbf16>
    %c0_92 = arith.constant 0 : index
    %c0_93 = arith.constant 0 : index
    %97 = vector.load %arg4[%c0_92, %c0_93] : memref<72x8xbf16, #tpu.memory_space<vmem>>, vector<8x8xbf16>
    %cst_94 = arith.constant dense<0.000000e+00> : vector<256x8xf32>
    %98 = tpu.matmul %96, %97, %cst_94 {dimension_numbers = #tpu.dot_dimension_numbers<[1], [0], [0], [1], [0, 0, 1, 1], [], []>} : vector<256x8xbf16>, vector<8x8xbf16>, vector<256x8xf32> -> vector<256x8xf32>
    %c0_95 = arith.constant 0 : index
    %c1_96 = arith.constant 1 : index
    %c0_97 = arith.constant 0 : index
    %99 = vector.load %arg9[%c0_95, %c1_96, %c0_97] : memref<18x18x8xf32, #tpu.memory_space<vmem>>, vector<16x16x8xf32>
    %100 = vector.shape_cast %99 : vector<16x16x8xf32> to vector<256x8xf32>
    %101 = arith.truncf %100 : vector<256x8xf32> to vector<256x8xbf16>
    %c8_98 = arith.constant 8 : index
    %c0_99 = arith.constant 0 : index
    %102 = vector.load %arg4[%c8_98, %c0_99] : memref<72x8xbf16, #tpu.memory_space<vmem>>, vector<8x8xbf16>
    %cst_100 = arith.constant dense<0.000000e+00> : vector<256x8xf32>
    %103 = tpu.matmul %101, %102, %cst_100 {dimension_numbers = #tpu.dot_dimension_numbers<[1], [0], [0], [1], [0, 0, 1, 1], [], []>} : vector<256x8xbf16>, vector<8x8xbf16>, vector<256x8xf32> -> vector<256x8xf32>
    %104 = arith.addf %98, %103 : vector<256x8xf32>
    %c0_101 = arith.constant 0 : index
    %c2_102 = arith.constant 2 : index
    %c0_103 = arith.constant 0 : index
    %105 = vector.load %arg9[%c0_101, %c2_102, %c0_103] : memref<18x18x8xf32, #tpu.memory_space<vmem>>, vector<16x16x8xf32>
    %106 = vector.shape_cast %105 : vector<16x16x8xf32> to vector<256x8xf32>
    %107 = arith.truncf %106 : vector<256x8xf32> to vector<256x8xbf16>
    %c16_104 = arith.constant 16 : index
    %c0_105 = arith.constant 0 : index
    %108 = vector.load %arg4[%c16_104, %c0_105] : memref<72x8xbf16, #tpu.memory_space<vmem>>, vector<8x8xbf16>
    %cst_106 = arith.constant dense<0.000000e+00> : vector<256x8xf32>
    %109 = tpu.matmul %107, %108, %cst_106 {dimension_numbers = #tpu.dot_dimension_numbers<[1], [0], [0], [1], [0, 0, 1, 1], [], []>} : vector<256x8xbf16>, vector<8x8xbf16>, vector<256x8xf32> -> vector<256x8xf32>
    %110 = arith.addf %104, %109 : vector<256x8xf32>
    %c1_107 = arith.constant 1 : index
    %c0_108 = arith.constant 0 : index
    %c0_109 = arith.constant 0 : index
    %111 = vector.load %arg9[%c1_107, %c0_108, %c0_109] : memref<18x18x8xf32, #tpu.memory_space<vmem>>, vector<16x16x8xf32>
    %112 = vector.shape_cast %111 : vector<16x16x8xf32> to vector<256x8xf32>
    %113 = arith.truncf %112 : vector<256x8xf32> to vector<256x8xbf16>
    %c24_110 = arith.constant 24 : index
    %c0_111 = arith.constant 0 : index
    %114 = vector.load %arg4[%c24_110, %c0_111] : memref<72x8xbf16, #tpu.memory_space<vmem>>, vector<8x8xbf16>
    %cst_112 = arith.constant dense<0.000000e+00> : vector<256x8xf32>
    %115 = tpu.matmul %113, %114, %cst_112 {dimension_numbers = #tpu.dot_dimension_numbers<[1], [0], [0], [1], [0, 0, 1, 1], [], []>} : vector<256x8xbf16>, vector<8x8xbf16>, vector<256x8xf32> -> vector<256x8xf32>
    %116 = arith.addf %110, %115 : vector<256x8xf32>
    %c1_113 = arith.constant 1 : index
    %c1_114 = arith.constant 1 : index
    %c0_115 = arith.constant 0 : index
    %117 = vector.load %arg9[%c1_113, %c1_114, %c0_115] : memref<18x18x8xf32, #tpu.memory_space<vmem>>, vector<16x16x8xf32>
    %118 = vector.shape_cast %117 : vector<16x16x8xf32> to vector<256x8xf32>
    %119 = arith.truncf %118 : vector<256x8xf32> to vector<256x8xbf16>
    %c32_116 = arith.constant 32 : index
    %c0_117 = arith.constant 0 : index
    %120 = vector.load %arg4[%c32_116, %c0_117] : memref<72x8xbf16, #tpu.memory_space<vmem>>, vector<8x8xbf16>
    %cst_118 = arith.constant dense<0.000000e+00> : vector<256x8xf32>
    %121 = tpu.matmul %119, %120, %cst_118 {dimension_numbers = #tpu.dot_dimension_numbers<[1], [0], [0], [1], [0, 0, 1, 1], [], []>} : vector<256x8xbf16>, vector<8x8xbf16>, vector<256x8xf32> -> vector<256x8xf32>
    %122 = arith.addf %116, %121 : vector<256x8xf32>
    %c1_119 = arith.constant 1 : index
    %c2_120 = arith.constant 2 : index
    %c0_121 = arith.constant 0 : index
    %123 = vector.load %arg9[%c1_119, %c2_120, %c0_121] : memref<18x18x8xf32, #tpu.memory_space<vmem>>, vector<16x16x8xf32>
    %124 = vector.shape_cast %123 : vector<16x16x8xf32> to vector<256x8xf32>
    %125 = arith.truncf %124 : vector<256x8xf32> to vector<256x8xbf16>
    %c40_122 = arith.constant 40 : index
    %c0_123 = arith.constant 0 : index
    %126 = vector.load %arg4[%c40_122, %c0_123] : memref<72x8xbf16, #tpu.memory_space<vmem>>, vector<8x8xbf16>
    %cst_124 = arith.constant dense<0.000000e+00> : vector<256x8xf32>
    %127 = tpu.matmul %125, %126, %cst_124 {dimension_numbers = #tpu.dot_dimension_numbers<[1], [0], [0], [1], [0, 0, 1, 1], [], []>} : vector<256x8xbf16>, vector<8x8xbf16>, vector<256x8xf32> -> vector<256x8xf32>
    %128 = arith.addf %122, %127 : vector<256x8xf32>
    %c2_125 = arith.constant 2 : index
    %c0_126 = arith.constant 0 : index
    %c0_127 = arith.constant 0 : index
    %129 = vector.load %arg9[%c2_125, %c0_126, %c0_127] : memref<18x18x8xf32, #tpu.memory_space<vmem>>, vector<16x16x8xf32>
    %130 = vector.shape_cast %129 : vector<16x16x8xf32> to vector<256x8xf32>
    %131 = arith.truncf %130 : vector<256x8xf32> to vector<256x8xbf16>
    %c48_128 = arith.constant 48 : index
    %c0_129 = arith.constant 0 : index
    %132 = vector.load %arg4[%c48_128, %c0_129] : memref<72x8xbf16, #tpu.memory_space<vmem>>, vector<8x8xbf16>
    %cst_130 = arith.constant dense<0.000000e+00> : vector<256x8xf32>
    %133 = tpu.matmul %131, %132, %cst_130 {dimension_numbers = #tpu.dot_dimension_numbers<[1], [0], [0], [1], [0, 0, 1, 1], [], []>} : vector<256x8xbf16>, vector<8x8xbf16>, vector<256x8xf32> -> vector<256x8xf32>
    %134 = arith.addf %128, %133 : vector<256x8xf32>
    %c2_131 = arith.constant 2 : index
    %c1_132 = arith.constant 1 : index
    %c0_133 = arith.constant 0 : index
    %135 = vector.load %arg9[%c2_131, %c1_132, %c0_133] : memref<18x18x8xf32, #tpu.memory_space<vmem>>, vector<16x16x8xf32>
    %136 = vector.shape_cast %135 : vector<16x16x8xf32> to vector<256x8xf32>
    %137 = arith.truncf %136 : vector<256x8xf32> to vector<256x8xbf16>
    %c56_134 = arith.constant 56 : index
    %c0_135 = arith.constant 0 : index
    %138 = vector.load %arg4[%c56_134, %c0_135] : memref<72x8xbf16, #tpu.memory_space<vmem>>, vector<8x8xbf16>
    %cst_136 = arith.constant dense<0.000000e+00> : vector<256x8xf32>
    %139 = tpu.matmul %137, %138, %cst_136 {dimension_numbers = #tpu.dot_dimension_numbers<[1], [0], [0], [1], [0, 0, 1, 1], [], []>} : vector<256x8xbf16>, vector<8x8xbf16>, vector<256x8xf32> -> vector<256x8xf32>
    %140 = arith.addf %134, %139 : vector<256x8xf32>
    %c2_137 = arith.constant 2 : index
    %c2_138 = arith.constant 2 : index
    %c0_139 = arith.constant 0 : index
    %141 = vector.load %arg9[%c2_137, %c2_138, %c0_139] : memref<18x18x8xf32, #tpu.memory_space<vmem>>, vector<16x16x8xf32>
    %142 = vector.shape_cast %141 : vector<16x16x8xf32> to vector<256x8xf32>
    %143 = arith.truncf %142 : vector<256x8xf32> to vector<256x8xbf16>
    %c64_140 = arith.constant 64 : index
    %c0_141 = arith.constant 0 : index
    %144 = vector.load %arg4[%c64_140, %c0_141] : memref<72x8xbf16, #tpu.memory_space<vmem>>, vector<8x8xbf16>
    %cst_142 = arith.constant dense<0.000000e+00> : vector<256x8xf32>
    %145 = tpu.matmul %143, %144, %cst_142 {dimension_numbers = #tpu.dot_dimension_numbers<[1], [0], [0], [1], [0, 0, 1, 1], [], []>} : vector<256x8xbf16>, vector<8x8xbf16>, vector<256x8xf32> -> vector<256x8xf32>
    %146 = arith.addf %140, %145 : vector<256x8xf32>
    %c0_143 = arith.constant 0 : index
    %c0_144 = arith.constant 0 : index
    %147 = vector.load %arg5[%c0_143, %c0_144] : memref<1x8xf32, #tpu.memory_space<vmem>>, vector<1x8xf32>
    %148 = vector.broadcast %147 : vector<1x8xf32> to vector<256x8xf32>
    %149 = arith.addf %146, %148 : vector<256x8xf32>
    %cst_145 = arith.constant 0.000000e+00 : f32
    %150 = vector.broadcast %cst_145 : f32 to vector<256x8xf32>
    %151 = arith.maximumf %149, %150 : vector<256x8xf32>
    %152 = vector.shape_cast %151 : vector<256x8xf32> to vector<16x16x8xf32>
    %153 = vector.shape_cast %93 : vector<8x8x8xf32> to vector<8x8x1x8xf32>
    %154 = vector.shape_cast %153 : vector<8x8x1x8xf32> to vector<8x8x1x8xf32>
    %155 = vector.broadcast %154 : vector<8x8x1x8xf32> to vector<8x8x2x8xf32>
    %156 = vector.shape_cast %155 : vector<8x8x2x8xf32> to vector<8x16x8xf32>
    %c1_146 = arith.constant 1 : index
    %c1_147 = arith.constant 1 : index
    %c0_148 = arith.constant 0 : index
    %157 = vector.load %arg9[%c1_146, %c1_147, %c0_148] : memref<18x18x8xf32, #tpu.memory_space<vmem>>, vector<16x16x8xf32>
    %158 = vector.shape_cast %157 : vector<16x16x8xf32> to vector<8x2x16x8xf32>
    %159 = vector.shape_cast %156 : vector<8x16x8xf32> to vector<8x1x16x8xf32>
    %160 = vector.broadcast %159 : vector<8x1x16x8xf32> to vector<8x2x16x8xf32>
    %161 = arith.addf %158, %160 : vector<8x2x16x8xf32>
    %cst_149 = arith.constant 9.99999993E-9 : f32
    %162 = vector.broadcast %cst_149 : f32 to vector<8x2x16x8xf32>
    %163 = arith.addf %161, %162 : vector<8x2x16x8xf32>
    %cst_150 = arith.constant 0.000000e+00 : f32
    %164 = vector.broadcast %cst_150 : f32 to vector<8x2x16x8xf32>
    %165 = arith.subf %164, %163 : vector<8x2x16x8xf32>
    %166 = math.exp %165 : vector<8x2x16x8xf32>
    %cst_151 = arith.constant 1.000000e+00 : f32
    %167 = vector.broadcast %cst_151 : f32 to vector<8x2x16x8xf32>
    %168 = arith.addf %167, %166 : vector<8x2x16x8xf32>
    %169 = tpu.reciprocal %168 {approx = true} : vector<8x2x16x8xf32> -> vector<8x2x16x8xf32>
    %170 = vector.shape_cast %152 : vector<16x16x8xf32> to vector<8x2x16x8xf32>
    %171 = arith.mulf %170, %169 : vector<8x2x16x8xf32>
    %172 = vector.shape_cast %171 : vector<8x2x16x8xf32> to vector<16x16x8xf32>
    %c1_152 = arith.constant 1 : index
    %c1_153 = arith.constant 1 : index
    %c0_154 = arith.constant 0 : index
    %173 = vector.load %arg9[%c1_152, %c1_153, %c0_154] : memref<18x18x8xf32, #tpu.memory_space<vmem>>, vector<16x16x8xf32>
    tpu.vector_store %arg9[%c1_152, %c1_153, %c0_154], %172 {strides = array<i32>} : memref<18x18x8xf32, #tpu.memory_space<vmem>>, vector<16x16x8xf32>,
    %c0_155 = arith.constant 0 : index
    %c0_156 = arith.constant 0 : index
    %c0_157 = arith.constant 0 : index
    %174 = vector.load %arg9[%c0_155, %c0_156, %c0_157] : memref<18x18x8xf32, #tpu.memory_space<vmem>>, vector<16x16x8xf32>
    %175 = vector.shape_cast %174 : vector<16x16x8xf32> to vector<256x8xf32>
    %176 = arith.truncf %175 : vector<256x8xf32> to vector<256x8xbf16>
    %c0_158 = arith.constant 0 : index
    %c0_159 = arith.constant 0 : index
    %177 = vector.load %arg6[%c0_158, %c0_159] : memref<72x8xbf16, #tpu.memory_space<vmem>>, vector<8x8xbf16>
    %cst_160 = arith.constant dense<0.000000e+00> : vector<256x8xf32>
    %178 = tpu.matmul %176, %177, %cst_160 {dimension_numbers = #tpu.dot_dimension_numbers<[1], [0], [0], [1], [0, 0, 1, 1], [], []>} : vector<256x8xbf16>, vector<8x8xbf16>, vector<256x8xf32> -> vector<256x8xf32>
    %c0_161 = arith.constant 0 : index
    %c1_162 = arith.constant 1 : index
    %c0_163 = arith.constant 0 : index
    %179 = vector.load %arg9[%c0_161, %c1_162, %c0_163] : memref<18x18x8xf32, #tpu.memory_space<vmem>>, vector<16x16x8xf32>
    %180 = vector.shape_cast %179 : vector<16x16x8xf32> to vector<256x8xf32>
    %181 = arith.truncf %180 : vector<256x8xf32> to vector<256x8xbf16>
    %c8_164 = arith.constant 8 : index
    %c0_165 = arith.constant 0 : index
    %182 = vector.load %arg6[%c8_164, %c0_165] : memref<72x8xbf16, #tpu.memory_space<vmem>>, vector<8x8xbf16>
    %cst_166 = arith.constant dense<0.000000e+00> : vector<256x8xf32>
    %183 = tpu.matmul %181, %182, %cst_166 {dimension_numbers = #tpu.dot_dimension_numbers<[1], [0], [0], [1], [0, 0, 1, 1], [], []>} : vector<256x8xbf16>, vector<8x8xbf16>, vector<256x8xf32> -> vector<256x8xf32>
    %184 = arith.addf %178, %183 : vector<256x8xf32>
    %c0_167 = arith.constant 0 : index
    %c2_168 = arith.constant 2 : index
    %c0_169 = arith.constant 0 : index
    %185 = vector.load %arg9[%c0_167, %c2_168, %c0_169] : memref<18x18x8xf32, #tpu.memory_space<vmem>>, vector<16x16x8xf32>
    %186 = vector.shape_cast %185 : vector<16x16x8xf32> to vector<256x8xf32>
    %187 = arith.truncf %186 : vector<256x8xf32> to vector<256x8xbf16>
    %c16_170 = arith.constant 16 : index
    %c0_171 = arith.constant 0 : index
    %188 = vector.load %arg6[%c16_170, %c0_171] : memref<72x8xbf16, #tpu.memory_space<vmem>>, vector<8x8xbf16>
    %cst_172 = arith.constant dense<0.000000e+00> : vector<256x8xf32>
    %189 = tpu.matmul %187, %188, %cst_172 {dimension_numbers = #tpu.dot_dimension_numbers<[1], [0], [0], [1], [0, 0, 1, 1], [], []>} : vector<256x8xbf16>, vector<8x8xbf16>, vector<256x8xf32> -> vector<256x8xf32>
    %190 = arith.addf %184, %189 : vector<256x8xf32>
    %c1_173 = arith.constant 1 : index
    %c0_174 = arith.constant 0 : index
    %c0_175 = arith.constant 0 : index
    %191 = vector.load %arg9[%c1_173, %c0_174, %c0_175] : memref<18x18x8xf32, #tpu.memory_space<vmem>>, vector<16x16x8xf32>
    %192 = vector.shape_cast %191 : vector<16x16x8xf32> to vector<256x8xf32>
    %193 = arith.truncf %192 : vector<256x8xf32> to vector<256x8xbf16>
    %c24_176 = arith.constant 24 : index
    %c0_177 = arith.constant 0 : index
    %194 = vector.load %arg6[%c24_176, %c0_177] : memref<72x8xbf16, #tpu.memory_space<vmem>>, vector<8x8xbf16>
    %cst_178 = arith.constant dense<0.000000e+00> : vector<256x8xf32>
    %195 = tpu.matmul %193, %194, %cst_178 {dimension_numbers = #tpu.dot_dimension_numbers<[1], [0], [0], [1], [0, 0, 1, 1], [], []>} : vector<256x8xbf16>, vector<8x8xbf16>, vector<256x8xf32> -> vector<256x8xf32>
    %196 = arith.addf %190, %195 : vector<256x8xf32>
    %c1_179 = arith.constant 1 : index
    %c1_180 = arith.constant 1 : index
    %c0_181 = arith.constant 0 : index
    %197 = vector.load %arg9[%c1_179, %c1_180, %c0_181] : memref<18x18x8xf32, #tpu.memory_space<vmem>>, vector<16x16x8xf32>
    %198 = vector.shape_cast %197 : vector<16x16x8xf32> to vector<256x8xf32>
    %199 = arith.truncf %198 : vector<256x8xf32> to vector<256x8xbf16>
    %c32_182 = arith.constant 32 : index
    %c0_183 = arith.constant 0 : index
    %200 = vector.load %arg6[%c32_182, %c0_183] : memref<72x8xbf16, #tpu.memory_space<vmem>>, vector<8x8xbf16>
    %cst_184 = arith.constant dense<0.000000e+00> : vector<256x8xf32>
    %201 = tpu.matmul %199, %200, %cst_184 {dimension_numbers = #tpu.dot_dimension_numbers<[1], [0], [0], [1], [0, 0, 1, 1], [], []>} : vector<256x8xbf16>, vector<8x8xbf16>, vector<256x8xf32> -> vector<256x8xf32>
    %202 = arith.addf %196, %201 : vector<256x8xf32>
    %c1_185 = arith.constant 1 : index
    %c2_186 = arith.constant 2 : index
    %c0_187 = arith.constant 0 : index
    %203 = vector.load %arg9[%c1_185, %c2_186, %c0_187] : memref<18x18x8xf32, #tpu.memory_space<vmem>>, vector<16x16x8xf32>
    %204 = vector.shape_cast %203 : vector<16x16x8xf32> to vector<256x8xf32>
    %205 = arith.truncf %204 : vector<256x8xf32> to vector<256x8xbf16>
    %c40_188 = arith.constant 40 : index
    %c0_189 = arith.constant 0 : index
    %206 = vector.load %arg6[%c40_188, %c0_189] : memref<72x8xbf16, #tpu.memory_space<vmem>>, vector<8x8xbf16>
    %cst_190 = arith.constant dense<0.000000e+00> : vector<256x8xf32>
    %207 = tpu.matmul %205, %206, %cst_190 {dimension_numbers = #tpu.dot_dimension_numbers<[1], [0], [0], [1], [0, 0, 1, 1], [], []>} : vector<256x8xbf16>, vector<8x8xbf16>, vector<256x8xf32> -> vector<256x8xf32>
    %208 = arith.addf %202, %207 : vector<256x8xf32>
    %c2_191 = arith.constant 2 : index
    %c0_192 = arith.constant 0 : index
    %c0_193 = arith.constant 0 : index
    %209 = vector.load %arg9[%c2_191, %c0_192, %c0_193] : memref<18x18x8xf32, #tpu.memory_space<vmem>>, vector<16x16x8xf32>
    %210 = vector.shape_cast %209 : vector<16x16x8xf32> to vector<256x8xf32>
    %211 = arith.truncf %210 : vector<256x8xf32> to vector<256x8xbf16>
    %c48_194 = arith.constant 48 : index
    %c0_195 = arith.constant 0 : index
    %212 = vector.load %arg6[%c48_194, %c0_195] : memref<72x8xbf16, #tpu.memory_space<vmem>>, vector<8x8xbf16>
    %cst_196 = arith.constant dense<0.000000e+00> : vector<256x8xf32>
    %213 = tpu.matmul %211, %212, %cst_196 {dimension_numbers = #tpu.dot_dimension_numbers<[1], [0], [0], [1], [0, 0, 1, 1], [], []>} : vector<256x8xbf16>, vector<8x8xbf16>, vector<256x8xf32> -> vector<256x8xf32>
    %214 = arith.addf %208, %213 : vector<256x8xf32>
    %c2_197 = arith.constant 2 : index
    %c1_198 = arith.constant 1 : index
    %c0_199 = arith.constant 0 : index
    %215 = vector.load %arg9[%c2_197, %c1_198, %c0_199] : memref<18x18x8xf32, #tpu.memory_space<vmem>>, vector<16x16x8xf32>
    %216 = vector.shape_cast %215 : vector<16x16x8xf32> to vector<256x8xf32>
    %217 = arith.truncf %216 : vector<256x8xf32> to vector<256x8xbf16>
    %c56_200 = arith.constant 56 : index
    %c0_201 = arith.constant 0 : index
    %218 = vector.load %arg6[%c56_200, %c0_201] : memref<72x8xbf16, #tpu.memory_space<vmem>>, vector<8x8xbf16>
    %cst_202 = arith.constant dense<0.000000e+00> : vector<256x8xf32>
    %219 = tpu.matmul %217, %218, %cst_202 {dimension_numbers = #tpu.dot_dimension_numbers<[1], [0], [0], [1], [0, 0, 1, 1], [], []>} : vector<256x8xbf16>, vector<8x8xbf16>, vector<256x8xf32> -> vector<256x8xf32>
    %220 = arith.addf %214, %219 : vector<256x8xf32>
    %c2_203 = arith.constant 2 : index
    %c2_204 = arith.constant 2 : index
    %c0_205 = arith.constant 0 : index
    %221 = vector.load %arg9[%c2_203, %c2_204, %c0_205] : memref<18x18x8xf32, #tpu.memory_space<vmem>>, vector<16x16x8xf32>
    %222 = vector.shape_cast %221 : vector<16x16x8xf32> to vector<256x8xf32>
    %223 = arith.truncf %222 : vector<256x8xf32> to vector<256x8xbf16>
    %c64_206 = arith.constant 64 : index
    %c0_207 = arith.constant 0 : index
    %224 = vector.load %arg6[%c64_206, %c0_207] : memref<72x8xbf16, #tpu.memory_space<vmem>>, vector<8x8xbf16>
    %cst_208 = arith.constant dense<0.000000e+00> : vector<256x8xf32>
    %225 = tpu.matmul %223, %224, %cst_208 {dimension_numbers = #tpu.dot_dimension_numbers<[1], [0], [0], [1], [0, 0, 1, 1], [], []>} : vector<256x8xbf16>, vector<8x8xbf16>, vector<256x8xf32> -> vector<256x8xf32>
    %226 = arith.addf %220, %225 : vector<256x8xf32>
    %c0_209 = arith.constant 0 : index
    %c0_210 = arith.constant 0 : index
    %227 = vector.load %arg7[%c0_209, %c0_210] : memref<1x8xf32, #tpu.memory_space<vmem>>, vector<1x8xf32>
    %228 = vector.broadcast %227 : vector<1x8xf32> to vector<256x8xf32>
    %229 = arith.addf %226, %228 : vector<256x8xf32>
    %cst_211 = arith.constant 0.000000e+00 : f32
    %230 = vector.broadcast %cst_211 : f32 to vector<256x8xf32>
    %231 = arith.maximumf %229, %230 : vector<256x8xf32>
    %232 = vector.shape_cast %231 : vector<256x8xf32> to vector<16x16x8xf32>
    %c0_212 = arith.constant 0 : index
    %c0_213 = arith.constant 0 : index
    %c0_214 = arith.constant 0 : index
    %c0_215 = arith.constant 0 : index
    %233 = vector.load %arg8[%c0_212, %c0_213, %c0_214, %c0_215] : memref<1x16x16x8xf32, #tpu.memory_space<vmem>>, vector<1x16x16x8xf32>
    %234 = vector.shape_cast %233 : vector<1x16x16x8xf32> to vector<16x16x8xf32>
    %235 = vector.shape_cast %232 : vector<16x16x8xf32> to vector<1x16x16x8xf32>
    tpu.vector_store %arg8[%c0_212, %c0_213, %c0_214, %c0_215], %235 {strides = array<i32>} : memref<1x16x16x8xf32, #tpu.memory_space<vmem>>, vector<1x16x16x8xf32>,
    return
  }
  func.func @transform_0(%arg0: i32) -> (i32, i32, i32, i32) {
    %c0_i32 = arith.constant 0 : i32
    %c0_i32_0 = arith.constant 0 : i32
    %c0_i32_1 = arith.constant 0 : i32
    %c0_i32_2 = arith.constant 0 : i32
    return %arg0, %c0_i32, %c0_i32_0, %c0_i32_1 : i32, i32, i32, i32
  }
  func.func @transform_1(%arg0: i32) -> (i32, i32) {
    %c0_i32 = arith.constant 0 : i32
    %c0_i32_0 = arith.constant 0 : i32
    %c0_i32_1 = arith.constant 0 : i32
    return %c0_i32, %c0_i32_0 : i32, i32
  }
  func.func @transform_2(%arg0: i32) -> (i32, i32) {
    %c0_i32 = arith.constant 0 : i32
    %c0_i32_0 = arith.constant 0 : i32
    %c0_i32_1 = arith.constant 0 : i32
    return %c0_i32, %c0_i32_0 : i32, i32
  }
  func.func @transform_3(%arg0: i32) -> (i32, i32) {
    %c0_i32 = arith.constant 0 : i32
    %c0_i32_0 = arith.constant 0 : i32
    %c0_i32_1 = arith.constant 0 : i32
    return %c0_i32, %c0_i32_0 : i32, i32
  }
  func.func @transform_4(%arg0: i32) -> (i32, i32) {
    %c0_i32 = arith.constant 0 : i32
    %c0_i32_0 = arith.constant 0 : i32
    %c0_i32_1 = arith.constant 0 : i32
    return %c0_i32, %c0_i32_0 : i32, i32
  }
  func.func @transform_5(%arg0: i32) -> (i32, i32) {
    %c0_i32 = arith.constant 0 : i32
    %c0_i32_0 = arith.constant 0 : i32
    %c0_i32_1 = arith.constant 0 : i32
    return %c0_i32, %c0_i32_0 : i32, i32
  }
  func.func @transform_6(%arg0: i32) -> (i32, i32) {
    %c0_i32 = arith.constant 0 : i32
    %c0_i32_0 = arith.constant 0 : i32
    %c0_i32_1 = arith.constant 0 : i32
    return %c0_i32, %c0_i32_0 : i32, i32
  }
  func.func @transform_7(%arg0: i32) -> (i32, i32, i32, i32) {
    %c0_i32 = arith.constant 0 : i32
    %c0_i32_0 = arith.constant 0 : i32
    %c0_i32_1 = arith.constant 0 : i32
    %c0_i32_2 = arith.constant 0 : i32
    return %arg0, %c0_i32, %c0_i32_0, %c0_i32_1 : i32, i32, i32, i32
  }
}

</mosaic_0001>

<bundles_post_ra>
// kernel: tpu_custom_call.1
= control target key start
LH: loop header
LB: loop body
LE: loop exit
PB: predicated region body
PF: predicated region fallthrough
CT: control target
= control target key end

     0   :  { %s7010_s24 = smov 0   ;;  %s9189_s0 = inlined_call_operand.vmem [shape: f32[2,16,16,8], index: 0, kind: input, shape index: {}]   ;;  %s9190_s1 = inlined_call_operand.vmem [shape: bf16[72,8], index: 1, kind: input, shape index: {}]   ;;  %s9191_s2 = inlined_call_operand.vmem [shape: f32[1,8], index: 2, kind: input, shape index: {}]   ;;  %s9192_s3 = inlined_call_operand.vmem [shape: bf16[72,8], index: 3, kind: input, shape index: {}]   ;;  %s9193_s4 = inlined_call_operand.vmem [shape: f32[1,8], index: 4, kind: input, shape index: {}]   ;;  %s9194_s5 = inlined_call_operand.vmem [shape: bf16[72,8], index: 5, kind: input, shape index: {}]   ;;  %s9195_s6 = inlined_call_operand.vmem [shape: f32[1,8], index: 6, kind: input, shape index: {}]   ;;  %s9196_s7 = inlined_call_operand.vmem [shape: f32[2,16,16,8], index: 7, kind: output, shape index: {}]  }
   0x1 LB: > { %s6384_s25 = sadd.s32 4294967295, %s6967_s24   ;;  %p6388_p0 = scmp.ge.s32.totalorder %s6967_s24, 1  ;;  %s6967_s24 = sphi %s7010_s24, %s17_s24  }
   0x2   : > { %p237_p1 = scmp.lt.s32.totalorder %s6967_s24, 3 }
   0x4   : > { %p238_p2 = pnand %p6388_p0, %p237_p1 }
   0x6   : > { %241 = sbr.rel (%p238_p2) target bundleno = 1753 (0x6d9), region = 48 }
   0xb   : > { %v1129_v0 = vld [vmem:[%s9190_s1 + $0x4] sm:$0xf]  ;;  %vm1142_vm0 = vcmask 1043456   ;;  %v1116_v1 = vld [vmem:[%s9190_s1] sm:$0xf]  ;;  %p269_p3 = scmp.lt.s32.totalorder %s6384_s25, 1 }
   0xc   : > { %v1144_v2 = vsel %vm1142_vm0, %v1129_v0, 0  ;;  %v1188_v3 = vsel %vm1142_vm0, %v1116_v1, 0  ;;  %v1231_v4 = vld [vmem:[%s9190_s1 + $0x8] sm:$0xf]  ;;  %vm280_vm1 = vcmask 64512   ;;  %vm283_vm2 = vcmask 58368  }
   0xd   : > { %1153 = vmatpush.bf16.msra.mxu0 %v1144_v2  ;;  %6785 = vmatpush.bf16.msra.mxu3 %v1144_v2  ;;  %v1245_v5 = vsel %vm1142_vm0, %v1231_v4, 0  ;;  %s9334_s25 = smov (!%p269_p3, %s6384_s25), 1  ;;  %v6969_v6 = vmov 0.0   ;;  %vm1024_vm3 = vcmask 1041409   ;;  %vm1026_vm4 = vcmask 1042434  }
   0xe   : > { %326 = vst.msk [vmem:[#allocation3] sm:$0xff] %vm280_vm1, %v6969_v6  ;;  %1197 = vmatpush.bf16.msra.mxu1 %v1188_v3  ;;  %1254 = vmatpush.bf16.msra.mxu2 %v1245_v5  ;;  %s6783_s9 = sshll.u32 %s9334_s25, 8  ;;  %vm1028_vm5 = vcmask 1043459   ;;  %vm1030_vm6 = vcmask 1044484   ;;  %vm1032_vm7 = vcmask 1045509   ;;  %vm1034_vm8 = vcmask 1046534  }
   0xf   : > { %327 = vst.msk [vmem:[#allocation3 + $0x8] sm:$0x3] %vm283_vm2, %v6969_v6  ;;  %s7044_s12 = scalar_lea.vmem %s9189_s0, %s6783_s9  ;;  %vm1036_vm9 = vcmask 1047559   ;;  %vm289_vm10 = vcmask 57344   ;;  %s9047_s11 = scalar_lea.vmem %s9196_s7, %s6783_s9 }
  0x10   : > { %281 = vst.msk [vmem:[#allocation2] sm:$0xff] %vm280_vm1, %v6969_v6  ;;  %v351_v7 = vld [vmem:[%s7044_s12] sm:$0xff]  ;;  %v352_v8 = vld [vmem:[%s7044_s12 + $0x8] sm:$0xff]  ;;  %v353_v9 = vld [vmem:[%s7044_s12 + $0x10] sm:$0xff] }
  0x11   : > { %282 = vst.msk [vmem:[#allocation2 + $0x8] sm:$0xff] %vm280_vm1, %v6969_v6  ;;  %v354_v10 = vld [vmem:[%s7044_s12 + $0x18] sm:$0xff]  ;;  %v363_v11 = vld [vmem:[%s7044_s12 + $0x60] sm:$0xff]  ;;  %v364_v13 = vld [vmem:[%s7044_s12 + $0x68] sm:$0xff] }
  0x12   : > { %284 = vst.msk [vmem:[#allocation2 + $0x10] sm:$0x3] %vm283_vm2, %v6969_v6  ;;  %v365_v15 = vld [vmem:[%s7044_s12 + $0x70] sm:$0xff]  ;;  %v366_v17 = vld [vmem:[%s7044_s12 + $0x78] sm:$0xff]  ;;  %v367_v20 = vld [vmem:[%s7044_s12 + $0x80] sm:$0xff] }
  0x13   : > { %384 = vst.msk [vmem:[#allocation2 + $0x19] sm:$0xff] %vm280_vm1, %v351_v7  ;;  %v368_v22 = vld [vmem:[%s7044_s12 + $0x88] sm:$0xff]  ;;  %v369_v27 = vld [vmem:[%s7044_s12 + $0x90] sm:$0xff]  ;;  %v370_v32 = vld [vmem:[%s7044_s12 + $0x98] sm:$0xff] }
  0x14   : > { %385 = vst.msk [vmem:[#allocation2 + $0x21] sm:$0xff] %vm280_vm1, %v352_v8 }
  0x15   : > { %386 = vst.msk [vmem:[#allocation2 + $0x31] sm:$0xff] %vm280_vm1, %v353_v9 }
  0x16   : > { %387 = vst.msk [vmem:[#allocation2 + $0x39] sm:$0xff] %vm280_vm1, %v354_v10 }
  0x17   : > { %286 = vst.msk [vmem:[#allocation2 + $0x198] sm:$0xff] %vm280_vm1, %v6969_v6 }
  0x18   : > { %287 = vst.msk [vmem:[#allocation2 + $0x1a0] sm:$0xff] %vm280_vm1, %v6969_v6 }
  0x19   : > { %288 = vst.msk [vmem:[#allocation2 + $0x1a8] sm:$0x3] %vm283_vm2, %v6969_v6 }
  0x1a   : > { %v416_v12 = vld [vmem:[#allocation2 + $0x19] sm:$0xff]  ;;  %329 = vst.msk [vmem:[#allocation3 + $0x90] sm:$0xff] %vm280_vm1, %v6969_v6 }
  0x1b   : > { %v417_v14 = vld [vmem:[#allocation2 + $0x21] sm:$0xff]  ;;  %330 = vst.msk [vmem:[#allocation3 + $0x98] sm:$0x3] %vm283_vm2, %v6969_v6 }
  0x1c   : > { %v418_v16 = vld [vmem:[#allocation2 + $0x31] sm:$0xff]  ;;  %396 = vst.msk [vmem:[#allocation2 + $0xa9] sm:$0xff] %vm280_vm1, %v363_v11 }
  0x1d   : > { %v419_v18 = vld [vmem:[#allocation2 + $0x39] sm:$0xff]  ;;  %v448_v19 = vadd.f32 %v418_v16, %v416_v12  ;;  %397 = vst.msk [vmem:[#allocation2 + $0xb1] sm:$0xff] %vm280_vm1, %v364_v13 }
  0x1e   : > { %v449_v21 = vadd.f32 %v419_v18, %v417_v14  ;;  %398 = vst.msk [vmem:[#allocation2 + $0xc1] sm:$0xff] %vm280_vm1, %v365_v15 }
  0x1f   : > { %v480_v23 = vrot.slane %v448_v19, 2  ;;  %v481_v24 = vrot.slane %v448_v19, 4  ;;  %v482_v25 = vrot.slane %v448_v19, 6  ;;  %v6393_v26 = vrot.slane %v448_v19, 9  ;;  %399 = vst.msk [vmem:[#allocation2 + $0xc9] sm:$0xff] %vm280_vm1, %v366_v17 }
  0x20   : > { %v483_v28 = vrot.slane %v449_v21, 2  ;;  %v484_v29 = vrot.slane %v449_v21, 4  ;;  %v485_v30 = vrot.slane %v449_v21, 6  ;;  %v6397_v31 = vrot.slane %v449_v21, 9  ;;  %400 = vst.msk [vmem:[#allocation2 + $0xd9] sm:$0xff] %vm280_vm1, %v367_v20 }
  0x21   : > { %v6394_v33 = vrot.slane %v480_v23, 9  ;;  %v6395_v34 = vrot.slane %v481_v24, 9  ;;  %v6396_v35 = vrot.slane %v482_v25, 9  ;;  %v768_v36 = vadd.f32 %v6393_v26, %v448_v19  ;;  %401 = vst.msk [vmem:[#allocation2 + $0xe1] sm:$0xff] %vm280_vm1, %v368_v22 }
  0x22   : > { %v6398_v37 = vrot.slane %v483_v28, 9  ;;  %v6399_v38 = vrot.slane %v484_v29, 9  ;;  %v6400_v39 = vrot.slane %v485_v30, 9  ;;  %v772_v40 = vadd.f32 %v6397_v31, %v449_v21  ;;  %402 = vst.msk [vmem:[#allocation2 + $0xf1] sm:$0xff] %vm280_vm1, %v369_v27 }
  0x23   : > { %v769_v41 = vadd.f32 %v6394_v33, %v480_v23  ;;  %v770_v42 = vadd.f32 %v6395_v34, %v481_v24  ;;  %v771_v43 = vadd.f32 %v6396_v35, %v482_v25  ;;  %v832_v44 = vmul.f32 0.25, %v768_v36  ;;  %403 = vst.msk [vmem:[#allocation2 + $0xf9] sm:$0xff] %vm280_vm1, %v370_v32  ;;  %v428_v49 = vld [vmem:[#allocation2 + $0xa9] sm:$0xff] }
  0x24   : > { %v773_v45 = vadd.f32 %v6398_v37, %v483_v28  ;;  %v774_v46 = vadd.f32 %v6399_v38, %v484_v29  ;;  %v775_v47 = vadd.f32 %v6400_v39, %v485_v30  ;;  %v836_v48 = vmul.f32 0.25, %v772_v40  ;;  %v429_v54 = vld [vmem:[#allocation2 + $0xb1] sm:$0xff]  ;;  %331 = vst.msk [vmem:[#allocation3] sm:$0x1] %vm289_vm10, %v6969_v6 }
  0x25   : > { %v833_v50 = vmul.f32 0.25, %v769_v41  ;;  %v834_v51 = vmul.f32 0.25, %v770_v42  ;;  %v835_v52 = vmul.f32 0.25, %v771_v43  ;;  %v960_v53 = vperm.slane %v832_v44, 0  ;;  %v430_v55 = vld [vmem:[#allocation2 + $0xc1] sm:$0xff] }
  0x26   : > { %v837_v56 = vmul.f32 0.25, %v773_v45  ;;  %v838_v57 = vmul.f32 0.25, %v774_v46  ;;  %v839_v58 = vmul.f32 0.25, %v775_v47  ;;  %v431_v59 = vld [vmem:[#allocation2 + $0xc9] sm:$0xff]  ;;  %v454_v0 = vadd.f32 %v430_v55, %v428_v49  ;;  %v1117_v55 = vld [vmem:[#allocation3 + $0x1] sm:$0xff] }
  0x27   : > { %v961_v60 = vperm.slane %v833_v50, 0  ;;  %v962_v61 = vperm.slane %v834_v51, 0  ;;  %v963_v62 = vperm.slane %v835_v52, 0  ;;  %v432_v63 = vld [vmem:[#allocation2 + $0xd9] sm:$0xff]  ;;  %v964_v1 = vperm.slane %v836_v48, 0 }
  0x28   : > { %v433_v2 = vld [vmem:[#allocation2 + $0xe1] sm:$0xff]  ;;  %v455_v3 = vadd.f32 %v431_v59, %v429_v54  ;;  %v965_v4 = vperm.slane %v837_v56, 0  ;;  %v966_v5 = vperm.slane %v838_v57, 0  ;;  %v967_v7 = vperm.slane %v839_v58, 0  ;;  %332 = vst.msk [vmem:[#allocation3 + $0x10] sm:$0x1] %vm289_vm10, %v6969_v6 }
  0x29   : > { %v1025_v8 = vsel %vm1024_vm3, %v961_v60, %v960_v53  ;;  %v434_v9 = vld [vmem:[#allocation2 + $0xf1] sm:$0xff]  ;;  %v498_v13 = vrot.slane %v454_v0, 2  ;;  %v499_v14 = vrot.slane %v454_v0, 4  ;;  %v500_v17 = vrot.slane %v454_v0, 6  ;;  %290 = vst.msk [vmem:[#allocation2] sm:$0x1] %vm289_vm10, %v6969_v6 }
  0x2a   : > { %v1027_v10 = vsel %vm1026_vm4, %v962_v61, %v1025_v8  ;;  %v435_v11 = vld [vmem:[#allocation2 + $0xf9] sm:$0xff]  ;;  %v456_v12 = vadd.f32 %v434_v9, %v432_v63  ;;  %v501_v18 = vrot.slane %v455_v3, 2  ;;  %v502_v20 = vrot.slane %v455_v3, 4  ;;  %291 = vst.msk [vmem:[#allocation2 + $0x18] sm:$0x1] %vm289_vm10, %v6969_v6 }
  0x2b   : > { %v1029_v15 = vsel %vm1028_vm5, %v963_v62, %v1027_v10  ;;  %v457_v16 = vadd.f32 %v435_v11, %v433_v2  ;;  %v503_v21 = vrot.slane %v455_v3, 6  ;;  %v6417_v26 = vrot.slane %v454_v0, 9  ;;  %292 = vst.msk [vmem:[#allocation2 + $0x30] sm:$0x1] %vm289_vm10, %v6969_v6 }
  0x2c   : > { %v1031_v19 = vsel %vm1030_vm6, %v964_v1, %v1029_v15  ;;  %v504_v22 = vrot.slane %v456_v12, 2  ;;  %v505_v24 = vrot.slane %v456_v12, 4  ;;  %v506_v25 = vrot.slane %v456_v12, 6  ;;  %293 = vst.msk [vmem:[#allocation2 + $0x48] sm:$0x1] %vm289_vm10, %v6969_v6 }
  0x2d   : > { %v1033_v23 = vsel %vm1032_vm7, %v965_v4, %v1031_v19  ;;  %v507_v28 = vrot.slane %v457_v16, 2  ;;  %v508_v29 = vrot.slane %v457_v16, 4  ;;  %v6418_v30 = vrot.slane %v498_v13, 9  ;;  %294 = vst.msk [vmem:[#allocation2 + $0x60] sm:$0x1] %vm289_vm10, %v6969_v6 }
  0x2e   : > { %v1035_v27 = vsel %vm1034_vm8, %v966_v5, %v1033_v23  ;;  %v509_v32 = vrot.slane %v457_v16, 6  ;;  %v6419_v33 = vrot.slane %v499_v14, 9  ;;  %v6420_v34 = vrot.slane %v500_v17, 9  ;;  %295 = vst.msk [vmem:[#allocation2 + $0x78] sm:$0x1] %vm289_vm10, %v6969_v6 }
  0x2f   : > { %v1037_v31 = vsel %vm1036_vm9, %v967_v7, %v1035_v27  ;;  %v6421_v35 = vrot.slane %v455_v3, 9  ;;  %v6422_v36 = vrot.slane %v501_v18, 9  ;;  %v6425_v37 = vrot.slane %v456_v12, 9  ;;  %296 = vst.msk [vmem:[#allocation2 + $0x90] sm:$0x1] %vm289_vm10, %v6969_v6 }
  0x30   : > { %1096 = vst.msk [vmem:[#allocation3 + $0x11] sm:$0xff] %vm280_vm1, %v1037_v31  ;;  %v6426_v38 = vrot.slane %v504_v22, 9  ;;  %v6423_v39 = vrot.slane %v502_v20, 9  ;;  %v6427_v40 = vrot.slane %v505_v24, 9  ;;  %v6428_v41 = vrot.slane %v506_v25, 9 }
  0x31   : > { %v6429_v42 = vrot.slane %v457_v16, 9  ;;  %v6424_v43 = vrot.slane %v503_v21, 9  ;;  %v6430_v44 = vrot.slane %v507_v28, 9  ;;  %v792_v45 = vadd.f32 %v6417_v26, %v454_v0  ;;  %297 = vst.msk [vmem:[#allocation2 + $0xa8] sm:$0x1] %vm289_vm10, %v6969_v6 }
  0x32   : > { %v793_v46 = vadd.f32 %v6418_v30, %v498_v13  ;;  %v6431_v47 = vrot.slane %v508_v29, 9  ;;  %v6432_v48 = vrot.slane %v509_v32, 9  ;;  %v794_v49 = vadd.f32 %v6419_v33, %v499_v14  ;;  %298 = vst.msk [vmem:[#allocation2 + $0xc0] sm:$0x1] %vm289_vm10, %v6969_v6 }
  0x33   : > { %v795_v50 = vadd.f32 %v6420_v34, %v500_v17  ;;  %v796_v51 = vadd.f32 %v6421_v35, %v455_v3  ;;  %v797_v52 = vadd.f32 %v6422_v36, %v501_v18  ;;  %v800_v53 = vadd.f32 %v6425_v37, %v456_v12  ;;  %299 = vst.msk [vmem:[#allocation2 + $0xd8] sm:$0x1] %vm289_vm10, %v6969_v6 }
  0x34   : > { %v801_v54 = vadd.f32 %v6426_v38, %v504_v22  ;;  %v798_v56 = vadd.f32 %v6423_v39, %v502_v20  ;;  %v802_v57 = vadd.f32 %v6427_v40, %v505_v24  ;;  %v803_v58 = vadd.f32 %v6428_v41, %v506_v25  ;;  %300 = vst.msk [vmem:[#allocation2 + $0xf0] sm:$0x1] %vm289_vm10, %v6969_v6 }
  0x35   : > { %v804_v59 = vadd.f32 %v6429_v42, %v457_v16  ;;  %v799_v60 = vadd.f32 %v6424_v43, %v503_v21  ;;  %v805_v61 = vadd.f32 %v6430_v44, %v507_v28  ;;  %v856_v62 = vmul.f32 0.25, %v792_v45  ;;  %301 = vst.msk [vmem:[#allocation2 + $0x108] sm:$0x1] %vm289_vm10, %v6969_v6 }
  0x36   : > { %v857_v63 = vmul.f32 0.25, %v793_v46  ;;  %v806_v0 = vadd.f32 %v6431_v47, %v508_v29  ;;  %v807_v2 = vadd.f32 %v6432_v48, %v509_v32  ;;  %v858_v4 = vmul.f32 0.25, %v794_v49  ;;  %v1104_v49 = vld [vmem:[#allocation3] sm:$0xff]  ;;  %302 = vst.msk [vmem:[#allocation2 + $0x120] sm:$0x1] %vm289_vm10, %v6969_v6 }
  0x37   : > { %v7092_v1 = vld [vmem:[#allocation3 + $0x11] sm:$0xff]  ;;  %v859_v5 = vmul.f32 0.25, %v795_v50  ;;  %v860_v7 = vmul.f32 0.25, %v796_v51  ;;  %v864_v8 = vmul.f32 0.25, %v800_v53  ;;  %v865_v9 = vmul.f32 0.25, %v801_v54 }
  0x38   : > { %v1125_v3 = vpack.c.bf16 %v7092_v1, %v1117_v55  ;;  %v861_v10 = vmul.f32 0.25, %v797_v52  ;;  %v866_v11 = vmul.f32 0.25, %v802_v57  ;;  %v867_v12 = vmul.f32 0.25, %v803_v58  ;;  %v7124_v50 = vld [vmem:[#allocation3 + $0x10] sm:$0xff]  ;;  %303 = vst.msk [vmem:[#allocation2 + $0x138] sm:$0x1] %vm289_vm10, %v6969_v6 }
  0x39   : > { %v868_v13 = vmul.f32 0.25, %v804_v59  ;;  %v862_v14 = vmul.f32 0.25, %v798_v56  ;;  %v869_v15 = vmul.f32 0.25, %v805_v61  ;;  %v984_v16 = vperm.slane %v856_v62, 0  ;;  %304 = vst.msk [vmem:[#allocation2 + $0x150] sm:$0x1] %vm289_vm10, %v6969_v6 }
  0x3a   : > { %6457 = vmatmul.msk.bf16.vlgmr.msra.gmra.mxu0 %vm280_vm1, %v1125_v3  ;;  %v985_v17 = vperm.slane %v857_v63, 0  ;;  %v863_v18 = vmul.f32 0.25, %v799_v60  ;;  %v870_v19 = vmul.f32 0.25, %v806_v0  ;;  %v871_v20 = vmul.f32 0.25, %v807_v2  ;;  %305 = vst.msk [vmem:[#allocation2 + $0x168] sm:$0x1] %vm289_vm10, %v6969_v6 }
  0x3b   : > { %v986_v21 = vperm.slane %v858_v4, 0  ;;  %v987_v22 = vperm.slane %v859_v5, 0  ;;  %v988_v23 = vperm.slane %v860_v7, 0  ;;  %v992_v24 = vperm.slane %v864_v8, 0  ;;  %306 = vst.msk [vmem:[#allocation2 + $0x180] sm:$0x1] %vm289_vm10, %v6969_v6 }
  0x3c   : > { %v993_v25 = vperm.slane %v865_v9, 0  ;;  %v989_v26 = vperm.slane %v861_v10, 0  ;;  %v994_v27 = vperm.slane %v866_v11, 0  ;;  %v995_v28 = vperm.slane %v867_v12, 0  ;;  %307 = vst.msk [vmem:[#allocation2 + $0x198] sm:$0x1] %vm289_vm10, %v6969_v6 }
  0x3d   : > { %v996_v29 = vperm.slane %v868_v13, 0  ;;  %v990_v30 = vperm.slane %v862_v14, 0  ;;  %v997_v31 = vperm.slane %v869_v15, 0  ;;  %v1052_v32 = vsel %vm1024_vm3, %v985_v17, %v984_v16  ;;  %308 = vst.msk [vmem:[#allocation2 + $0x11] sm:$0x1] %vm289_vm10, %v6969_v6  ;;  %v355_v62 = vld [vmem:[%s7044_s12 + $0x20] sm:$0xff] }
  0x3e   : > { %v1059_v33 = vsel %vm1024_vm3, %v993_v25, %v992_v24  ;;  %v998_v34 = vperm.slane %v870_v19, 0  ;;  %v1053_v35 = vsel %vm1026_vm4, %v986_v21, %v1052_v32  ;;  %v991_v37 = vperm.slane %v863_v18, 0  ;;  %309 = vst.msk [vmem:[#allocation2 + $0x29] sm:$0x1] %vm289_vm10, %v6969_v6  ;;  %v1296_v55 = vld [vmem:[%s9190_s1 + $0xc] sm:$0xf] }
  0x3f   : > { %v1060_v36 = vsel %vm1026_vm4, %v994_v27, %v1059_v33  ;;  %v999_v38 = vperm.slane %v871_v20, 0  ;;  %v1054_v39 = vsel %vm1028_vm5, %v987_v22, %v1053_v35  ;;  %v1112_v51 = vpack.c.bf16 %v7124_v50, %v1104_v49  ;;  %310 = vst.msk [vmem:[#allocation2 + $0x41] sm:$0x1] %vm289_vm10, %v6969_v6  ;;  %v1361_v56 = vld [vmem:[%s9190_s1 + $0x10] sm:$0xf]  ;;  %v356_v0 = vld [vmem:[%s7044_s12 + $0x28] sm:$0xff] }
  0x40   : > { %v1061_v40 = vsel %vm1028_vm5, %v995_v28, %v1060_v36  ;;  %v1055_v41 = vsel %vm1030_vm6, %v988_v23, %v1054_v39  ;;  %311 = vst.msk [vmem:[#allocation2 + $0x59] sm:$0x1] %vm289_vm10, %v6969_v6  ;;  %v1310_v57 = vsel %vm1142_vm0, %v1296_v55, 0  ;;  %v1375_v58 = vsel %vm1142_vm0, %v1361_v56, 0  ;;  %v1426_v59 = vld [vmem:[%s9190_s1 + $0x14] sm:$0xf] }
  0x41   : > { %v1062_v42 = vsel %vm1030_vm6, %v996_v29, %v1061_v40  ;;  %v1056_v43 = vsel %vm1032_vm7, %v989_v26, %v1055_v41  ;;  %6461 = vmatmul.msk.bf16.vlgmr.msra.gmra.mxu1 %vm280_vm1, %v1112_v51  ;;  %312 = vst.msk [vmem:[#allocation2 + $0x71] sm:$0x1] %vm289_vm10, %v6969_v6  ;;  %1319 = vmatpush.bf16.msrb.mxu3 %v1310_v57  ;;  %v1440_v60 = vsel %vm1142_vm0, %v1426_v59, 0  ;;  %v357_v4 = vld [vmem:[%s7044_s12 + $0x30] sm:$0xff]  ;;  %v358_v5 = vld [vmem:[%s7044_s12 + $0x38] sm:$0xff]  ;;  %v359_v3 = vld [vmem:[%s7044_s12 + $0x40] sm:$0xff] }
  0x42   : > { %v1063_v44 = vsel %vm1032_vm7, %v997_v31, %v1062_v42  ;;  %v1057_v45 = vsel %vm1034_vm8, %v990_v30, %v1056_v43  ;;  %313 = vst.msk [vmem:[#allocation2 + $0x89] sm:$0x1] %vm289_vm10, %v6969_v6  ;;  %1384 = vmatpush.bf16.msrb.mxu0 %v1375_v58  ;;  %1449 = vmatpush.bf16.msrb.mxu1 %v1440_v60  ;;  %v360_v7 = vld [vmem:[%s7044_s12 + $0x48] sm:$0xff]  ;;  %v361_v8 = vld [vmem:[%s7044_s12 + $0x50] sm:$0xff]  ;;  %v371_v9 = vld [vmem:[%s7044_s12 + $0xa0] sm:$0xff] }
  0x43   : > { %v1064_v46 = vsel %vm1034_vm8, %v998_v34, %v1063_v44  ;;  %v1058_v47 = vsel %vm1036_vm9, %v991_v37, %v1057_v45  ;;  %314 = vst.msk [vmem:[#allocation2 + $0xa1] sm:$0x1] %vm289_vm10, %v6969_v6  ;;  %v372_v10 = vld [vmem:[%s7044_s12 + $0xa8] sm:$0xff]  ;;  %v373_v12 = vld [vmem:[%s7044_s12 + $0xb0] sm:$0xff]  ;;  %v374_v14 = vld [vmem:[%s7044_s12 + $0xb8] sm:$0xff] }
  0x44   : > { %v1065_v48 = vsel %vm1036_vm9, %v999_v38, %v1064_v46  ;;  %1099 = vst.msk [vmem:[#allocation3 + $0x41] sm:$0xff] %vm280_vm1, %v1058_v47  ;;  %v375_v16 = vld [vmem:[%s7044_s12 + $0xc0] sm:$0xff]  ;;  %v376_v19 = vld [vmem:[%s7044_s12 + $0xc8] sm:$0xff]  ;;  %v377_v22 = vld [vmem:[%s7044_s12 + $0xd0] sm:$0xff] }
  0x45   : > { %1100 = vst.msk [vmem:[#allocation3 + $0x51] sm:$0xff] %vm280_vm1, %v1065_v48  ;;  %v378_v27 = vld [vmem:[%s7044_s12 + $0xd8] sm:$0xff] }
  0x46   : > { %315 = vst.msk [vmem:[#allocation2 + $0xb9] sm:$0x1] %vm289_vm10, %v6969_v6 }
  0x47   : > { %316 = vst.msk [vmem:[#allocation2 + $0xd1] sm:$0x1] %vm289_vm10, %v6969_v6 }
  0x48   : > { %317 = vst.msk [vmem:[#allocation2 + $0xe9] sm:$0x1] %vm289_vm10, %v6969_v6 }
  0x49   : > { %318 = vst.msk [vmem:[#allocation2 + $0x101] sm:$0x1] %vm289_vm10, %v6969_v6 }
  0x4a   : > { %319 = vst.msk [vmem:[#allocation2 + $0x119] sm:$0x1] %vm289_vm10, %v6969_v6 }
  0x4b   : > { %v7136_v52 = vld [vmem:[#allocation3 + $0x41] sm:$0xff]  ;;  %320 = vst.msk [vmem:[#allocation2 + $0x131] sm:$0x1] %vm289_vm10, %v6969_v6 }
  0x4c   : > { %v7140_v53 = vld [vmem:[#allocation3 + $0x51] sm:$0xff]  ;;  %321 = vst.msk [vmem:[#allocation2 + $0x149] sm:$0x1] %vm289_vm10, %v6969_v6 }
  0x4d   : > { %v7146_v54 = vpack.c.bf16 %v7140_v53, %v7136_v52  ;;  %322 = vst.msk [vmem:[#allocation2 + $0x161] sm:$0x1] %vm289_vm10, %v6969_v6 }
  0x4e   : > { %323 = vst.msk [vmem:[#allocation2 + $0x179] sm:$0x1] %vm289_vm10, %v6969_v6 }
  0x4f   : > { %6459 = vmatmul.msk.bf16.vlgmr.msra.gmra.mxu3 %vm280_vm1, %v7146_v54  ;;  %324 = vst.msk [vmem:[#allocation2 + $0x191] sm:$0x1] %vm289_vm10, %v6969_v6 }
  0x50   : > { %325 = vst.msk [vmem:[#allocation2 + $0x1a9] sm:$0x1] %vm289_vm10, %v6969_v6 }
  0x51   : > { %333 = vst.msk [vmem:[#allocation3 + $0x20] sm:$0x1] %vm289_vm10, %v6969_v6 }
  0x52   : > { %334 = vst.msk [vmem:[#allocation3 + $0x30] sm:$0x1] %vm289_vm10, %v6969_v6 }
  0x53   : > { %335 = vst.msk [vmem:[#allocation3 + $0x40] sm:$0x1] %vm289_vm10, %v6969_v6 }
  0x54   : > { %336 = vst.msk [vmem:[#allocation3 + $0x50] sm:$0x1] %vm289_vm10, %v6969_v6 }
  0x55   : > { %337 = vst.msk [vmem:[#allocation3 + $0x60] sm:$0x1] %vm289_vm10, %v6969_v6 }
  0x56   : > { %338 = vst.msk [vmem:[#allocation3 + $0x70] sm:$0x1] %vm289_vm10, %v6969_v6 }
  0x57   : > { %339 = vst.msk [vmem:[#allocation3 + $0x80] sm:$0x1] %vm289_vm10, %v6969_v6 }
  0x58   : > { %340 = vst.msk [vmem:[#allocation3 + $0x90] sm:$0x1] %vm289_vm10, %v6969_v6 }
  0x59   : > { %341 = vst.msk [vmem:[#allocation3 + $0x9] sm:$0x1] %vm289_vm10, %v6969_v6 }
  0x5a   : > { %342 = vst.msk [vmem:[#allocation3 + $0x19] sm:$0x1] %vm289_vm10, %v6969_v6 }
  0x5b   : > { %343 = vst.msk [vmem:[#allocation3 + $0x29] sm:$0x1] %vm289_vm10, %v6969_v6 }
  0x5c   : > { %344 = vst.msk [vmem:[#allocation3 + $0x39] sm:$0x1] %vm289_vm10, %v6969_v6 }
  0x5d   : > { %345 = vst.msk [vmem:[#allocation3 + $0x49] sm:$0x1] %vm289_vm10, %v6969_v6 }
  0x5e   : > { %346 = vst.msk [vmem:[#allocation3 + $0x59] sm:$0x1] %vm289_vm10, %v6969_v6 }
  0x5f   : > { %347 = vst.msk [vmem:[#allocation3 + $0x69] sm:$0x1] %vm289_vm10, %v6969_v6 }
  0x60   : > { %348 = vst.msk [vmem:[#allocation3 + $0x79] sm:$0x1] %vm289_vm10, %v6969_v6  ;;  %v1219_v61 = vld [vmem:[#allocation3 + $0x2] sm:$0xff] }
  0x61   : > { %349 = vst.msk [vmem:[#allocation3 + $0x89] sm:$0x1] %vm289_vm10, %v6969_v6  ;;  %v7249_v63 = vld [vmem:[#allocation3 + $0x12] sm:$0xff] }
  0x62   : > { %350 = vst.msk [vmem:[#allocation3 + $0x99] sm:$0x1] %vm289_vm10, %v6969_v6  ;;  %v1227_v2 = vpack.c.bf16 %v7249_v63, %v1219_v61  ;;  %v362_v6 = vld [vmem:[%s7044_s12 + $0x58] sm:$0xff] }
  0x63   : > { %388 = vst.msk [vmem:[#allocation2 + $0x49] sm:$0xff] %vm280_vm1, %v355_v62 }
  0x64   : > { %6465 = vmatmul.msk.bf16.vlgmr.msra.gmra.mxu2 %vm280_vm1, %v1227_v2  ;;  %389 = vst.msk [vmem:[#allocation2 + $0x51] sm:$0xff] %vm280_vm1, %v356_v0 }
  0x65   : > { %390 = vst.msk [vmem:[#allocation2 + $0x61] sm:$0xff] %vm280_vm1, %v357_v4 }
  0x66   : > { %391 = vst.msk [vmem:[#allocation2 + $0x69] sm:$0xff] %vm280_vm1, %v358_v5 }
  0x67   : > { %392 = vst.msk [vmem:[#allocation2 + $0x79] sm:$0xff] %vm280_vm1, %v359_v3 }
  0x68   : > { %393 = vst.msk [vmem:[#allocation2 + $0x81] sm:$0xff] %vm280_vm1, %v360_v7 }
  0x69   : > { %394 = vst.msk [vmem:[#allocation2 + $0x91] sm:$0xff] %vm280_vm1, %v361_v8 }
  0x6a   : > { %395 = vst.msk [vmem:[#allocation2 + $0x99] sm:$0xff] %vm280_vm1, %v362_v6  ;;  %v7272_v11 = vld [vmem:[#allocation2 + $0x49] sm:$0xff] }
  0x6b   : > { %v7275_v13 = vld [vmem:[#allocation2 + $0x51] sm:$0xff]  ;;  %404 = vst.msk [vmem:[#allocation2 + $0x109] sm:$0xff] %vm280_vm1, %v371_v9 }
  0x6c   : > { %v422_v15 = vld [vmem:[#allocation2 + $0x61] sm:$0xff]  ;;  %405 = vst.msk [vmem:[#allocation2 + $0x111] sm:$0xff] %vm280_vm1, %v372_v10 }
  0x6d   : > { %v423_v17 = vld [vmem:[#allocation2 + $0x69] sm:$0xff]  ;;  %v450_v18 = vadd.f32 %v422_v15, %v7272_v11  ;;  %406 = vst.msk [vmem:[#allocation2 + $0x121] sm:$0xff] %vm280_vm1, %v373_v12 }
  0x6e   : > { %v424_v20 = vld [vmem:[#allocation2 + $0x79] sm:$0xff]  ;;  %v451_v21 = vadd.f32 %v423_v17, %v7275_v13  ;;  %407 = vst.msk [vmem:[#allocation2 + $0x129] sm:$0xff] %vm280_vm1, %v374_v14 }
  0x6f   : > { %v425_v23 = vld [vmem:[#allocation2 + $0x81] sm:$0xff]  ;;  %v486_v24 = vrot.slane %v450_v18, 2  ;;  %v487_v25 = vrot.slane %v450_v18, 4  ;;  %v488_v26 = vrot.slane %v450_v18, 6  ;;  %408 = vst.msk [vmem:[#allocation2 + $0x139] sm:$0xff] %vm280_vm1, %v375_v16  ;;  %v6401_v32 = vrot.slane %v450_v18, 9 }
  0x70   : > { %v426_v28 = vld [vmem:[#allocation2 + $0x91] sm:$0xff]  ;;  %v489_v29 = vrot.slane %v451_v21, 2  ;;  %v490_v30 = vrot.slane %v451_v21, 4  ;;  %v491_v31 = vrot.slane %v451_v21, 6  ;;  %409 = vst.msk [vmem:[#allocation2 + $0x141] sm:$0xff] %vm280_vm1, %v376_v19  ;;  %v6405_v37 = vrot.slane %v451_v21, 9 }
  0x71   : > { %v427_v33 = vld [vmem:[#allocation2 + $0x99] sm:$0xff]  ;;  %v452_v34 = vadd.f32 %v426_v28, %v424_v20  ;;  %v6402_v35 = vrot.slane %v486_v24, 9  ;;  %v6403_v36 = vrot.slane %v487_v25, 9  ;;  %410 = vst.msk [vmem:[#allocation2 + $0x151] sm:$0xff] %vm280_vm1, %v377_v22  ;;  %v6404_v39 = vrot.slane %v488_v26, 9 }
  0x72   : > { %v453_v38 = vadd.f32 %v427_v33, %v425_v23  ;;  %v6406_v40 = vrot.slane %v489_v29, 9  ;;  %v6407_v41 = vrot.slane %v490_v30, 9  ;;  %411 = vst.msk [vmem:[#allocation2 + $0x159] sm:$0xff] %vm280_vm1, %v378_v27  ;;  %v6408_v45 = vrot.slane %v491_v31, 9 }
  0x73   : > { %v492_v42 = vrot.slane %v452_v34, 2  ;;  %v493_v43 = vrot.slane %v452_v34, 4  ;;  %v494_v44 = vrot.slane %v452_v34, 6  ;;  %v6409_v49 = vrot.slane %v452_v34, 9 }
  0x74   : > { %v495_v46 = vrot.slane %v453_v38, 2  ;;  %v496_v47 = vrot.slane %v453_v38, 4  ;;  %v497_v48 = vrot.slane %v453_v38, 6  ;;  %v6413_v57 = vrot.slane %v453_v38, 9 }
  0x75   : > { %v6410_v51 = vrot.slane %v492_v42, 9  ;;  %v6411_v55 = vrot.slane %v493_v43, 9  ;;  %v6412_v56 = vrot.slane %v494_v44, 9  ;;  %v776_v60 = vadd.f32 %v6401_v32, %v450_v18 }
  0x76   : > { %v6414_v58 = vrot.slane %v495_v46, 9  ;;  %v6415_v59 = vrot.slane %v496_v47, 9  ;;  %v777_v61 = vadd.f32 %v6402_v35, %v486_v24  ;;  %v6416_v62 = vrot.slane %v497_v48, 9 }
  0x77   : > { %v778_v0 = vadd.f32 %v6403_v36, %v487_v25  ;;  %v779_v2 = vadd.f32 %v6404_v39, %v488_v26  ;;  %v780_v4 = vadd.f32 %v6405_v37, %v451_v21  ;;  %v781_v5 = vadd.f32 %v6406_v40, %v489_v29  ;;  %v7294_v39 = vld [vmem:[#allocation2 + $0x111] sm:$0xff] }
  0x78   : > { %v782_v3 = vadd.f32 %v6407_v41, %v490_v30  ;;  %v784_v7 = vadd.f32 %v6409_v49, %v452_v34  ;;  %v785_v8 = vadd.f32 %v6410_v51, %v492_v42  ;;  %v783_v6 = vadd.f32 %v6408_v45, %v491_v31  ;;  %v7298_v45 = vld [vmem:[#allocation2 + $0x129] sm:$0xff]  ;;  %v7300_v51 = vld [vmem:[#allocation2 + $0x139] sm:$0xff] }
  0x79   : > { %v786_v9 = vadd.f32 %v6411_v55, %v493_v43  ;;  %v787_v10 = vadd.f32 %v6412_v56, %v494_v44  ;;  %v788_v12 = vadd.f32 %v6413_v57, %v453_v38  ;;  %v789_v14 = vadd.f32 %v6414_v58, %v495_v46  ;;  %v7292_v38 = vld [vmem:[#allocation2 + $0x109] sm:$0xff]  ;;  %v7296_v44 = vld [vmem:[#allocation2 + $0x121] sm:$0xff]  ;;  %v442_v55 = vld [vmem:[#allocation2 + $0x151] sm:$0xff] }
  0x7a   : > { %v790_v15 = vadd.f32 %v6415_v59, %v496_v47  ;;  %v840_v16 = vmul.f32 0.25, %v776_v60  ;;  %v841_v17 = vmul.f32 0.25, %v777_v61  ;;  %v791_v19 = vadd.f32 %v6416_v62, %v497_v48  ;;  %v7304_v60 = vld [vmem:[#allocation2 + $0x141] sm:$0xff]  ;;  %v443_v61 = vld [vmem:[#allocation2 + $0x159] sm:$0xff] }
  0x7b   : > { %v842_v20 = vmul.f32 0.25, %v778_v0  ;;  %v843_v18 = vmul.f32 0.25, %v779_v2  ;;  %v844_v22 = vmul.f32 0.25, %v780_v4  ;;  %v845_v23 = vmul.f32 0.25, %v781_v5 }
  0x7c   : > { %v846_v24 = vmul.f32 0.25, %v782_v3  ;;  %v848_v25 = vmul.f32 0.25, %v784_v7  ;;  %v849_v21 = vmul.f32 0.25, %v785_v8  ;;  %v847_v26 = vmul.f32 0.25, %v783_v6 }
  0x7d   : > { %v850_v27 = vmul.f32 0.25, %v786_v9  ;;  %v851_v28 = vmul.f32 0.25, %v787_v10  ;;  %v852_v29 = vmul.f32 0.25, %v788_v12  ;;  %v853_v30 = vmul.f32 0.25, %v789_v14 }
  0x7e   : > { %v854_v31 = vmul.f32 0.25, %v790_v15  ;;  %v968_v32 = vperm.slane %v840_v16, 0  ;;  %v969_v33 = vperm.slane %v841_v17, 0  ;;  %v855_v34 = vmul.f32 0.25, %v791_v19 }
  0x7f   : > { %v970_v35 = vperm.slane %v842_v20, 0  ;;  %v971_v36 = vperm.slane %v843_v18, 0  ;;  %v972_v37 = vperm.slane %v844_v22, 0  ;;  %v973_v40 = vperm.slane %v845_v23, 0 }
  0x80   : > { %v974_v41 = vperm.slane %v846_v24, 0  ;;  %v976_v42 = vperm.slane %v848_v25, 0  ;;  %v977_v43 = vperm.slane %v849_v21, 0  ;;  %v975_v46 = vperm.slane %v847_v26, 0 }
  0x81   : > { %v978_v47 = vperm.slane %v850_v27, 0  ;;  %v979_v48 = vperm.slane %v851_v28, 0  ;;  %v980_v49 = vperm.slane %v852_v29, 0  ;;  %v981_v56 = vperm.slane %v853_v30, 0 }
  0x82   : > { %v982_v57 = vperm.slane %v854_v31, 0  ;;  %v1038_v58 = vsel %vm1024_vm3, %v969_v33, %v968_v32  ;;  %v1045_v59 = vsel %vm1024_vm3, %v977_v43, %v976_v42  ;;  %v458_v2 = vadd.f32 %v7296_v44, %v7292_v38 }
  0x83   : > { %v1039_v62 = vsel %vm1026_vm4, %v970_v35, %v1038_v58  ;;  %v1046_v0 = vsel %vm1026_vm4, %v978_v47, %v1045_v59  ;;  %v459_v4 = vadd.f32 %v7298_v45, %v7294_v39  ;;  %v983_v5 = vperm.slane %v855_v34, 0 }
  0x84   : > { %v1040_v3 = vsel %vm1028_vm5, %v971_v36, %v1039_v62  ;;  %v1047_v7 = vsel %vm1028_vm5, %v979_v48, %v1046_v0  ;;  %v460_v8 = vadd.f32 %v442_v55, %v7300_v51  ;;  %v461_v10 = vadd.f32 %v443_v61, %v7304_v60 }
  0x85   : > { %v1041_v6 = vsel %vm1030_vm6, %v972_v37, %v1040_v3  ;;  %v1048_v9 = vsel %vm1030_vm6, %v980_v49, %v1047_v7  ;;  %v510_v15 = vrot.slane %v458_v2, 2  ;;  %v511_v16 = vrot.slane %v458_v2, 4 }
  0x86   : > { %v1042_v12 = vsel %vm1032_vm7, %v973_v40, %v1041_v6  ;;  %v1049_v14 = vsel %vm1032_vm7, %v981_v56, %v1048_v9  ;;  %v512_v20 = vrot.slane %v458_v2, 6  ;;  %v513_v18 = vrot.slane %v459_v4, 2 }
  0x87   : > { %v1043_v17 = vsel %vm1034_vm8, %v974_v41, %v1042_v12  ;;  %v1050_v19 = vsel %vm1034_vm8, %v982_v57, %v1049_v14  ;;  %v516_v24 = vrot.slane %v460_v8, 2  ;;  %v517_v25 = vrot.slane %v460_v8, 4 }
  0x88   : > { %v1044_v22 = vsel %vm1036_vm9, %v975_v46, %v1043_v17  ;;  %v1051_v23 = vsel %vm1036_vm9, %v983_v5, %v1050_v19  ;;  %v514_v21 = vrot.slane %v459_v4, 4  ;;  %v515_v26 = vrot.slane %v459_v4, 6 }
  0x89   : > { %1097 = vst.msk [vmem:[#allocation3 + $0x21] sm:$0xff] %vm280_vm1, %v1044_v22  ;;  %v518_v27 = vrot.slane %v460_v8, 6  ;;  %v519_v28 = vrot.slane %v461_v10, 2  ;;  %v520_v29 = vrot.slane %v461_v10, 4  ;;  %v6433_v30 = vrot.slane %v458_v2, 9 }
  0x8a   : > { %1098 = vst.msk [vmem:[#allocation3 + $0x31] sm:$0xff] %vm280_vm1, %v1051_v23  ;;  %v6434_v31 = vrot.slane %v510_v15, 9  ;;  %v521_v32 = vrot.slane %v461_v10, 6  ;;  %v6435_v33 = vrot.slane %v511_v16, 9  ;;  %v6436_v34 = vrot.slane %v512_v20, 9 }
  0x8b   : > { %v6437_v35 = vrot.slane %v459_v4, 9  ;;  %v6438_v36 = vrot.slane %v513_v18, 9  ;;  %v6441_v37 = vrot.slane %v460_v8, 9  ;;  %v6442_v40 = vrot.slane %v516_v24, 9 }
  0x8c   : > { %v6443_v41 = vrot.slane %v517_v25, 9  ;;  %v6439_v42 = vrot.slane %v514_v21, 9  ;;  %v6440_v43 = vrot.slane %v515_v26, 9  ;;  %v6444_v46 = vrot.slane %v518_v27, 9 }
  0x8d   : > { %v6445_v47 = vrot.slane %v461_v10, 9  ;;  %v6446_v48 = vrot.slane %v519_v28, 9  ;;  %v6447_v49 = vrot.slane %v520_v29, 9  ;;  %v808_v55 = vadd.f32 %v6433_v30, %v458_v2 }
  0x8e   : > { %v809_v56 = vadd.f32 %v6434_v31, %v510_v15  ;;  %v6448_v57 = vrot.slane %v521_v32, 9  ;;  %v810_v58 = vadd.f32 %v6435_v33, %v511_v16  ;;  %v811_v59 = vadd.f32 %v6436_v34, %v512_v20 }
  0x8f   : > { %v812_v61 = vadd.f32 %v6437_v35, %v459_v4  ;;  %v813_v0 = vadd.f32 %v6438_v36, %v513_v18  ;;  %v816_v5 = vadd.f32 %v6441_v37, %v460_v8  ;;  %v817_v3 = vadd.f32 %v6442_v40, %v516_v24 }
  0x90   : > { %v7326_v62 = vld [vmem:[#allocation3 + $0x21] sm:$0xff]  ;;  %v818_v7 = vadd.f32 %v6443_v41, %v517_v25  ;;  %v814_v9 = vadd.f32 %v6439_v42, %v514_v21  ;;  %v815_v12 = vadd.f32 %v6440_v43, %v515_v26  ;;  %v819_v14 = vadd.f32 %v6444_v46, %v518_v27 }
  0x91   : > { %v7328_v6 = vld [vmem:[#allocation3 + $0x31] sm:$0xff]  ;;  %v820_v17 = vadd.f32 %v6445_v47, %v461_v10  ;;  %v821_v15 = vadd.f32 %v6446_v48, %v519_v28  ;;  %v872_v16 = vmul.f32 0.25, %v808_v55  ;;  %v873_v19 = vmul.f32 0.25, %v809_v56  ;;  %v7336_v36 = vld [vmem:[#allocation3 + $0x20] sm:$0xff] }
  0x92   : > { %v7332_v2 = vpack.c.bf16 %v7328_v6, %v7326_v62  ;;  %v822_v4 = vadd.f32 %v6447_v49, %v520_v29  ;;  %v823_v20 = vadd.f32 %v6448_v57, %v521_v32  ;;  %v874_v22 = vmul.f32 0.25, %v810_v58  ;;  %v7338_v37 = vld [vmem:[#allocation3 + $0x30] sm:$0xff]  ;;  %v7340_v46 = vld [vmem:[#allocation3 + $0x22] sm:$0xff] }
  0x93   : > { %v875_v18 = vmul.f32 0.25, %v811_v59  ;;  %v876_v8 = vmul.f32 0.25, %v812_v61  ;;  %v880_v23 = vmul.f32 0.25, %v816_v5  ;;  %v881_v24 = vmul.f32 0.25, %v817_v3  ;;  %v7342_v47 = vld [vmem:[#allocation3 + $0x32] sm:$0xff] }
  0x94   : > { %6458 = vmatmul.msk.bf16.gmra.mxu0 %vm280_vm1, %v7332_v2  ;;  %v882_v25 = vmul.f32 0.25, %v818_v7  ;;  %v877_v21 = vmul.f32 0.25, %v813_v0  ;;  %v878_v10 = vmul.f32 0.25, %v814_v9  ;;  %v883_v26 = vmul.f32 0.25, %v819_v14 }
  0x95   : > { %v884_v27 = vmul.f32 0.25, %v820_v17  ;;  %v879_v30 = vmul.f32 0.25, %v815_v12  ;;  %v885_v31 = vmul.f32 0.25, %v821_v15  ;;  %v1000_v28 = vperm.slane %v872_v16, 0  ;;  %v1557_v15 = vld [vmem:[%s9190_s1 + $0x1c] sm:$0xf] }
  0x96   : > { %v1001_v33 = vperm.slane %v873_v19, 0  ;;  %v886_v34 = vmul.f32 0.25, %v822_v4  ;;  %v887_v29 = vmul.f32 0.25, %v823_v20  ;;  %v1002_v32 = vperm.slane %v874_v22, 0  ;;  %v1622_v16 = vld [vmem:[%s9190_s1 + $0x20] sm:$0xf] }
  0x97   : > { %v1003_v35 = vperm.slane %v875_v18, 0  ;;  %v1004_v40 = vperm.slane %v876_v8, 0  ;;  %v1008_v41 = vperm.slane %v880_v23, 0  ;;  %v1009_v42 = vperm.slane %v881_v24, 0 }
  0x98   : > { %v1010_v43 = vperm.slane %v882_v25, 0  ;;  %v1005_v48 = vperm.slane %v877_v21, 0  ;;  %v1006_v49 = vperm.slane %v878_v10, 0  ;;  %v1011_v55 = vperm.slane %v883_v26, 0  ;;  %v7383_v26 = vld [vmem:[#allocation3 + $0x40] sm:$0xff] }
  0x99   : > { %v1012_v56 = vperm.slane %v884_v27, 0  ;;  %v1013_v57 = vperm.slane %v885_v31, 0  ;;  %v1066_v58 = vsel %vm1024_vm3, %v1001_v33, %v1000_v28  ;;  %v1073_v59 = vsel %vm1024_vm3, %v1009_v42, %v1008_v41  ;;  %v7385_v27 = vld [vmem:[#allocation3 + $0x50] sm:$0xff]  ;;  %v379_v28 = vld [vmem:[%s7044_s12 + $0xe0] sm:$0xff]  ;;  %v381_v33 = vld [vmem:[%s7044_s12 + $0xf0] sm:$0xff] }
  0x9a   : > { %v7348_v61 = vpack.c.bf16 %v7338_v37, %v7336_v36  ;;  %v1014_v0 = vperm.slane %v886_v34, 0  ;;  %v1067_v5 = vsel %vm1026_vm4, %v1002_v32, %v1066_v58  ;;  %v1074_v3 = vsel %vm1026_vm4, %v1010_v43, %v1073_v59  ;;  %v7389_v31 = vld [vmem:[#allocation3 + $0x52] sm:$0xff]  ;;  %412 = vst.msk [vmem:[#allocation2 + $0x169] sm:$0xff] %vm280_vm1, %v379_v28  ;;  %v1492_v41 = vld [vmem:[%s9190_s1 + $0x18] sm:$0xf] }
  0x9b   : > { %v7354_v7 = vpack.c.bf16 %v7342_v47, %v7340_v46  ;;  %v1007_v9 = vperm.slane %v879_v30, 0  ;;  %v1015_v12 = vperm.slane %v887_v29, 0  ;;  %v1068_v14 = vsel %vm1028_vm5, %v1003_v35, %v1067_v5  ;;  %v7387_v30 = vld [vmem:[#allocation3 + $0x42] sm:$0xff]  ;;  %414 = vst.msk [vmem:[#allocation2 + $0x181] sm:$0xff] %vm280_vm1, %v381_v33  ;;  %v380_v35 = vld [vmem:[%s7044_s12 + $0xe8] sm:$0xff] }
  0x9c   : > { %v1075_v17 = vsel %vm1028_vm5, %v1011_v55, %v1074_v3  ;;  %6462 = vmatmul.msk.bf16.gmra.mxu1 %vm280_vm1, %v7348_v61  ;;  %v1069_v19 = vsel %vm1030_vm6, %v1004_v40, %v1068_v14  ;;  %v1571_v20 = vsel %vm1142_vm0, %v1557_v15, 0  ;;  %v1636_v8 = vsel %vm1142_vm0, %v1622_v16, 0  ;;  %v382_v40 = vld [vmem:[%s7044_s12 + $0xf8] sm:$0xff]  ;;  %413 = vst.msk [vmem:[#allocation2 + $0x171] sm:$0xff] %vm280_vm1, %v380_v35 }
  0x9d   : > { %v1076_v4 = vsel %vm1030_vm6, %v1012_v56, %v1075_v17  ;;  %6466 = vmatmul.msk.bf16.gmra.mxu2 %vm280_vm1, %v7354_v7  ;;  %v1070_v22 = vsel %vm1032_vm7, %v1005_v48, %v1069_v19  ;;  %1580 = vmatpush.bf16.msra.mxu3 %v1571_v20  ;;  %v1357_v10 = vpack.c.bf16 %v7326_v62, %v7092_v1  ;;  %v1506_v42 = vsel %vm1142_vm0, %v1492_v41, 0 }
  0x9e   : > { %v1077_v18 = vsel %vm1032_vm7, %v1013_v57, %v1076_v4  ;;  %v1071_v23 = vsel %vm1034_vm8, %v1006_v49, %v1070_v22  ;;  %1645 = vmatpush.bf16.msra.mxu0 %v1636_v8  ;;  %v7398_v62 = vpack.c.bf16 %v7385_v27, %v7383_v26  ;;  %v7405_v29 = vpack.c.bf16 %v7389_v31, %v7387_v30 }
  0x9f   : > { %v1078_v24 = vsel %vm1034_vm8, %v1014_v0, %v1077_v18  ;;  %v1072_v25 = vsel %vm1036_vm9, %v1007_v9, %v1071_v23  ;;  %415 = vst.msk [vmem:[#allocation2 + $0x189] sm:$0xff] %vm280_vm1, %v382_v40  ;;  %1515 = vmatpush.bf16.msrb.mxu2 %v1506_v42  ;;  %v1358_v49 = vpack.c.bf16 %v7136_v52, %v7328_v6 }
  0xa0   : > { %v1079_v21 = vsel %vm1036_vm9, %v1015_v12, %v1078_v24  ;;  %1101 = vst.msk [vmem:[#allocation3 + $0x61] sm:$0xff] %vm280_vm1, %v1072_v25  ;;  %v1292_v17 = vpack.c.bf16 %v7336_v36, %v7124_v50 }
  0xa1   : > { %1102 = vst.msk [vmem:[#allocation3 + $0x71] sm:$0xff] %vm280_vm1, %v1079_v21  ;;  %v444_v43 = vld [vmem:[#allocation2 + $0x169] sm:$0xff] }
  0xa2   : > { %v446_v48 = vld [vmem:[#allocation2 + $0x181] sm:$0xff] }
  0xa3   : > { %v462_v55 = vadd.f32 %v446_v48, %v444_v43  ;;  %v445_v0 = vld [vmem:[#allocation2 + $0x171] sm:$0xff] }
  0xa4   : > { %6473 = vmatmul.msk.bf16.vlgmr.msrb.gmra.mxu0 %vm280_vm1, %v1357_v10 }
  0xa5   : > { %v522_v5 = vrot.slane %v462_v55, 2  ;;  %v523_v3 = vrot.slane %v462_v55, 4  ;;  %v524_v12 = vrot.slane %v462_v55, 6  ;;  %v6449_v14 = vrot.slane %v462_v55, 9 }
  0xa6   : > { %v447_v9 = vld [vmem:[#allocation2 + $0x189] sm:$0xff] }
  0xa7   : > { %v7394_v1 = vld [vmem:[#allocation3 + $0x61] sm:$0xff]  ;;  %v463_v52 = vadd.f32 %v447_v9, %v445_v0  ;;  %v6450_v6 = vrot.slane %v522_v5, 9  ;;  %v6451_v15 = vrot.slane %v523_v3, 9  ;;  %v6452_v4 = vrot.slane %v524_v12, 9 }
  0xa8   : > { %v7401_v34 = vld [vmem:[#allocation3 + $0x71] sm:$0xff]  ;;  %v7427_v56 = vld [vmem:[#allocation3 + $0x60] sm:$0xff]  ;;  %v824_v20 = vadd.f32 %v6449_v14, %v462_v55 }
  0xa9   : > { %v7409_v32 = vpack.c.bf16 %v7401_v34, %v7394_v1  ;;  %v7429_v57 = vld [vmem:[#allocation3 + $0x62] sm:$0xff]  ;;  %v7431_v58 = vld [vmem:[#allocation3 + $0x70] sm:$0xff]  ;;  %v525_v22 = vrot.slane %v463_v52, 2  ;;  %v526_v18 = vrot.slane %v463_v52, 4  ;;  %v6453_v8 = vrot.slane %v463_v52, 9 }
  0xaa   : > { %v7433_v59 = vld [vmem:[#allocation3 + $0x72] sm:$0xff]  ;;  %v7440_v16 = vpack.c.bf16 %v7431_v58, %v7427_v56  ;;  %v825_v23 = vadd.f32 %v6450_v6, %v522_v5  ;;  %v527_v50 = vrot.slane %v463_v52, 6  ;;  %v826_v36 = vadd.f32 %v6451_v15, %v523_v3  ;;  %v1792_v5 = vld [vmem:[%s9192_s3 + $0x4] sm:$0xf] }
  0xab   : > { %6460 = vmatmul.msk.bf16.gmra.mxu3 %vm280_vm1, %v7409_v32  ;;  %v7444_v19 = vpack.c.bf16 %v7433_v59, %v7429_v57  ;;  %v827_v24 = vadd.f32 %v6452_v4, %v524_v12  ;;  %v888_v25 = vmul.f32 0.25, %v824_v20  ;;  %v6454_v21 = vrot.slane %v525_v22, 9 }
  0xac   : > { %6463 = vmatmul.msk.bf16.gmra.mxu1 %vm280_vm1, %v7398_v62  ;;  %v6455_v10 = vrot.slane %v526_v18, 9  ;;  %v828_v28 = vadd.f32 %v6453_v8, %v463_v52  ;;  %v889_v33 = vmul.f32 0.25, %v825_v23  ;;  %v6456_v35 = vrot.slane %v527_v50, 9 }
  0xad   : > { %6467 = vmatmul.msk.bf16.gmra.mxu2 %vm280_vm1, %v7405_v29  ;;  %v890_v40 = vmul.f32 0.25, %v826_v36  ;;  %v891_v41 = vmul.f32 0.25, %v827_v24  ;;  %v1016_v42 = vperm.slane %v888_v25, 0  ;;  %v829_v43 = vadd.f32 %v6454_v21, %v525_v22 }
  0xae   : > { %v830_v48 = vadd.f32 %v6455_v10, %v526_v18  ;;  %v892_v55 = vmul.f32 0.25, %v828_v28  ;;  %v1017_v0 = vperm.slane %v889_v33, 0  ;;  %v1842_v52 = vsel %vm1142_vm0, %v1792_v5, 0  ;;  %v1710_v33 = vld [vmem:[#allocation2 + $0xb0] sm:$0xff]  ;;  %v1712_v5 = vld [vmem:[#allocation2 + $0xc8] sm:$0xff] }
  0xaf   : > { %v1018_v9 = vperm.slane %v890_v40, 0  ;;  %v893_v3 = vmul.f32 0.25, %v829_v43  ;;  %v1019_v14 = vperm.slane %v891_v41, 0  ;;  %1851 = vmatpush.bf16.msra.mxu1 %v1842_v52  ;;  %v1359_v23 = vpack.c.bf16 %v7394_v1, %v7140_v53 }
  0xb0   : > { %v894_v12 = vmul.f32 0.25, %v830_v48  ;;  %v1020_v15 = vperm.slane %v892_v55, 0  ;;  %v1080_v4 = vsel %vm1024_vm3, %v1017_v0, %v1016_v42  ;;  %v1293_v21 = vpack.c.bf16 %v7383_v26, %v7338_v37  ;;  %v1617_v42 = vld [vmem:[#allocation3 + $0x92] sm:$0xff] }
  0xb1   : > { %v1081_v22 = vsel %vm1026_vm4, %v1018_v9, %v1080_v4  ;;  %v1422_v10 = vpack.c.bf16 %v7340_v46, %v7249_v63  ;;  %v1294_v37 = vpack.c.bf16 %v7427_v56, %v7385_v27  ;;  %v1423_v63 = vpack.c.bf16 %v7387_v30, %v7342_v47  ;;  %v1743_v46 = vld [vmem:[%s9192_s3] sm:$0xf]  ;;  %v1487_v56 = vld [vmem:[#allocation3 + $0x90] sm:$0xff] }
  0xb2   : > { %v1022_v20 = vperm.slane %v894_v12, 0  ;;  %v1082_v8 = vsel %vm1028_vm5, %v1019_v14, %v1081_v22  ;;  %v1424_v27 = vpack.c.bf16 %v7429_v57, %v7389_v31  ;;  %v2563_v31 = vld [vmem:[%s9192_s3 + $0x10] sm:$0xf]  ;;  %v1711_v9 = vld [vmem:[#allocation2 + $0xc0] sm:$0xff] }
  0xb3   : > { %v2613_v57 = vsel %vm1142_vm0, %v2563_v31, 0  ;;  %v1747_v55 = vld [vmem:[#allocation2 + $0x21] sm:$0xff]  ;;  %v1735_v12 = vpack.c.bf16 %v1712_v5, %v1711_v9 }
  0xb4   : > { %6474 = vmatmul.msk.bf16.gmra.mxu0 %vm280_vm1, %v1358_v49  ;;  %v831_v49 = vadd.f32 %v6456_v35, %v527_v50  ;;  %v1083_v50 = vsel %vm1030_vm6, %v1020_v15, %v1082_v8  ;;  %v2121_v15 = vld [vmem:[%s9192_s3 + $0x8] sm:$0xf] }
  0xb5   : > { %v1695_v4 = vld [vmem:[#allocation2] sm:$0xff] }
  0xb6   : > { %v895_v6 = vmul.f32 0.25, %v831_v49  ;;  %v1746_v49 = vld [vmem:[#allocation2 + $0x19] sm:$0xff] }
  0xb7   : > { %v1155_v30 = vpop.f32.mrf.mxu0 }
  0xb8   : > { %v1023_v18 = vperm.slane %v895_v6, 0 }
  0xbb   : > { %6469 = vmatmul.msk.bf16.vlgmr.msrb.gmra.mxu3 %vm280_vm1, %v1292_v17  ;;  %v1021_v17 = vperm.slane %v893_v3, 0 }
  0xbc   : > { %6464 = vmatmul.msk.bf16.gmra.mxu1 %vm280_vm1, %v7440_v16  ;;  %6786 = vmatpush.bf16.msrb.mxu3 %v1842_v52 }
  0xbd   : > { %6468 = vmatmul.msk.bf16.gmra.mxu2 %vm280_vm1, %v7444_v19  ;;  %v1084_v36 = vsel %vm1032_vm7, %v1021_v17, %v1083_v50  ;;  %v1696_v17 = vld [vmem:[#allocation2 + $0x8] sm:$0xff] }
  0xbe   : > { %v1085_v24 = vsel %vm1034_vm8, %v1022_v20, %v1084_v36  ;;  %v2171_v20 = vsel %vm1142_vm0, %v2121_v15, 0 }
  0xbf   : > { %v1086_v25 = vsel %vm1036_vm9, %v1023_v18, %v1085_v24  ;;  %v7515_v35 = vpop.f32.mrf.mxu0  ;;  %v1727_v18 = vpack.c.bf16 %v1696_v17, %v1695_v4 }
  0xc0   : > { %1103 = vst.msk [vmem:[#allocation3 + $0x81] sm:$0xff] %vm280_vm1, %v1086_v25  ;;  %v1552_v25 = vld [vmem:[#allocation3 + $0x91] sm:$0xff] }
  0xc4   : > { %6475 = vmatmul.msk.bf16.gmra.mxu0 %vm280_vm1, %v1359_v23 }
  0xc7   : > { %v7474_v53 = vld [vmem:[#allocation3 + $0x81] sm:$0xff] }
  0xc8   : > { %v1360_v1 = vpack.c.bf16 %v7474_v53, %v7401_v34  ;;  %v1291_v26 = vld [vmem:[#allocation3 + $0x80] sm:$0xff]  ;;  %v1199_v34 = vpop.f32.mrf.mxu1 }
  0xc9   : > { %v1295_v47 = vpack.c.bf16 %v1291_v26, %v7431_v58  ;;  %v1491_v28 = vpack.c.bf16 %v1487_v56, %v1291_v26  ;;  %v1698_v56 = vld [vmem:[#allocation2 + $0x20] sm:$0xff] }
  0xcb   : > { %6470 = vmatmul.msk.bf16.gmra.mxu3 %vm280_vm1, %v1293_v21 }
  0xcc   : > { %6477 = vmatmul.msk.bf16.vlgmr.msrb.gmra.mxu1 %vm280_vm1, %v1422_v10  ;;  %v1748_v10 = vld [vmem:[#allocation2 + $0x31] sm:$0xff] }
  0xcd   : > { %6481 = vmatmul.msk.bf16.vlgmr.msrb.gmra.mxu2 %vm280_vm1, %v7348_v61  ;;  %v1982_v61 = vsel %vm1142_vm0, %v1743_v46, 0  ;;  %2622 = vmatpush.bf16.msrb.mxu1 %v2613_v57  ;;  %v1556_v46 = vpack.c.bf16 %v1552_v25, %v7474_v53  ;;  %v1718_v25 = vld [vmem:[#allocation2 + $0x110] sm:$0xff] }
  0xce   : > { %1991 = vmatpush.bf16.msrb.mxu0 %v1982_v61  ;;  %6787 = vmatpush.bf16.msra.mxu2 %v1982_v61 }
  0xd0   : > { %v7523_v43 = vpop.f32.mrf.mxu1 }
  0xd2   : > { %v1165_v52 = vpop.f32.mrf.mxu3 }
  0xd4   : > { %6476 = vmatmul.msk.bf16.gmra.mxu0 %vm280_vm1, %v1360_v1  ;;  %v1749_v1 = vld [vmem:[#allocation2 + $0x39] sm:$0xff] }
  0xd5   : > { %v1778_v26 = vpack.c.bf16 %v1749_v1, %v1748_v10 }
  0xda   : > { %v1167_v24 = vpop.f32.mrf.mxu3 }
  0xdb   : > { %6471 = vmatmul.msk.bf16.gmra.mxu3 %vm280_vm1, %v1294_v37  ;;  %v1713_v37 = vld [vmem:[#allocation2 + $0xd8] sm:$0xff] }
  0xdc   : > { %6478 = vmatmul.msk.bf16.gmra.mxu1 %vm280_vm1, %v1423_v63  ;;  %v1714_v63 = vld [vmem:[#allocation2 + $0xe0] sm:$0xff] }
  0xdd   : > { %6482 = vmatmul.msk.bf16.gmra.mxu2 %vm280_vm1, %v7398_v62  ;;  %v7500_v62 = vadd.f32 %v1199_v34, %v1155_v30  ;;  %v1736_v30 = vpack.c.bf16 %v1714_v63, %v1713_v37 }
  0xe4   : > { %6489 = vmatmul.msk.bf16.vlgmr.msra.gmra.mxu0 %vm280_vm1, %v7354_v7  ;;  %v1421_v7 = vld [vmem:[#allocation3 + $0x82] sm:$0xff] }
  0xe5   : > { %v1425_v58 = vpack.c.bf16 %v1421_v7, %v7433_v59  ;;  %v1745_v59 = vld [vmem:[#allocation2 + $0x9] sm:$0xff] }
  0xe7   : > { %v7520_v41 = vpop.f32.mrf.mxu2 }
  0xeb   : > { %6472 = vmatmul.msk.bf16.gmra.mxu3 %vm280_vm1, %v1295_v47 }
  0xec   : > { %6479 = vmatmul.msk.bf16.gmra.mxu1 %vm280_vm1, %v1424_v27 }
  0xed   : > { %6483 = vmatmul.msk.bf16.gmra.mxu2 %vm280_vm1, %v7440_v16  ;;  %v1709_v16 = vld [vmem:[#allocation2 + $0xa8] sm:$0xff] }
  0xee   : > { %v1734_v40 = vpack.c.bf16 %v1710_v33, %v1709_v16  ;;  %v1762_v16 = vld [vmem:[#allocation2 + $0xd9] sm:$0xff]  ;;  %v1763_v33 = vld [vmem:[#allocation2 + $0xe1] sm:$0xff] }
  0xef   : > { %v7526_v0 = vpop.f32.mrf.mxu2 }
  0xf4   : > { %6490 = vmatmul.msk.bf16.gmra.mxu0 %vm280_vm1, %v7405_v29  ;;  %v1744_v29 = vld [vmem:[#allocation2 + $0x1] sm:$0xff] }
  0xfb   : > { %6485 = vmatmul.msk.bf16.vlgmr.msra.gmra.mxu3 %vm280_vm1, %v7332_v2  ;;  %v1776_v2 = vpack.c.bf16 %v1745_v59, %v1744_v29 }
  0xfc   : > { %6480 = vmatmul.msk.bf16.gmra.mxu1 %vm280_vm1, %v1425_v58  ;;  %2180 = vmatpush.bf16.msra.mxu3 %v2171_v20 }
  0xfd   : > { %6484 = vmatmul.msk.bf16.gmra.mxu2 %vm280_vm1, %v1491_v28 }
 0x104   : > { %6491 = vmatmul.msk.bf16.gmra.mxu0 %vm280_vm1, %v7444_v19  ;;  %v1621_v19 = vpack.c.bf16 %v1617_v42, %v1421_v7  ;;  %v1697_v7 = vld [vmem:[#allocation2 + $0x18] sm:$0xff] }
 0x105   : > { %v7554_v57 = vpack.c.bf16 %v1698_v56, %v1697_v7 }
 0x10b   : > { %6486 = vmatmul.msk.bf16.gmra.mxu3 %vm280_vm1, %v7146_v54  ;;  %v7528_v54 = vpack.c.bf16 %v1747_v55, %v1746_v49  ;;  %v1779_v49 = vpack.c.bf16 %v7275_v13, %v7272_v11 }
 0x10c   : > { %6493 = vmatmul.msk.bf16.vlgmr.msra.gmra.mxu1 %vm280_vm1, %v1776_v2  ;;  %v1715_v2 = vld [vmem:[#allocation2 + $0xf0] sm:$0xff] }
 0x10d   : > { %6516 = vmatmul.msk.bf16.vlgmr.msra.gmra.mxu2 %vm280_vm1, %v1734_v40  ;;  %v1716_v40 = vld [vmem:[#allocation2 + $0xf8] sm:$0xff] }
 0x111   : > { %v1160_v48 = vpop.f32.mrf.mxu0 }
 0x114   : > { %6492 = vmatmul.msk.bf16.gmra.mxu0 %vm280_vm1, %v1621_v19  ;;  %v1785_v19 = vpack.c.bf16 %v1763_v33, %v1762_v16  ;;  %v1719_v16 = vld [vmem:[#allocation2 + $0x120] sm:$0xff]  ;;  %v1720_v33 = vld [vmem:[#allocation2 + $0x128] sm:$0xff] }
 0x119   : > { %v1204_v3 = vpop.f32.mrf.mxu1  ;;  %v1162_v6 = vpop.f32.mrf.mxu0 }
 0x11a   : > { %v1205_v14 = vadd.f32 %v1204_v3, %v1160_v48  ;;  %v1737_v3 = vpack.c.bf16 %v1716_v40, %v1715_v2 }
 0x11b   : > { %6487 = vmatmul.msk.bf16.gmra.mxu3 %vm280_vm1, %v7409_v32  ;;  %v2342_v32 = vld [vmem:[%s9192_s3 + $0xc] sm:$0xf] }
 0x11c   : > { %6494 = vmatmul.msk.bf16.gmra.mxu1 %vm280_vm1, %v7528_v54  ;;  %v2392_v50 = vsel %vm1142_vm0, %v2342_v32, 0  ;;  %v1765_v32 = vld [vmem:[#allocation2 + $0xf9] sm:$0xff] }
 0x11d   : > { %6517 = vmatmul.msk.bf16.gmra.mxu2 %vm280_vm1, %v1735_v12  ;;  %2401 = vmatpush.bf16.msra.mxu0 %v2392_v50  ;;  %v1753_v50 = vld [vmem:[#allocation2 + $0x69] sm:$0xff] }
 0x120   : > { %v1261_v22 = vpop.f32.mrf.mxu2 }
 0x121   : > { %v7542_v8 = vadd.f32 %v1261_v22, %v1205_v14  ;;  %v1206_v23 = vpop.f32.mrf.mxu1  ;;  %v7546_v21 = vpop.f32.mrf.mxu0  ;;  %v1699_v14 = vld [vmem:[#allocation2 + $0x30] sm:$0xff]  ;;  %v1202_v22 = vadd.f32 %v7523_v43, %v7515_v35 }
 0x122   : > { %v1207_v36 = vadd.f32 %v1206_v23, %v1162_v6  ;;  %v1752_v23 = vld [vmem:[#allocation2 + $0x61] sm:$0xff] }
 0x124   : > { %6509 = vmatmul.msk.bf16.vlgmr.msrb.gmra.mxu0 %vm280_vm1, %v1727_v18  ;;  %v1764_v18 = vld [vmem:[#allocation2 + $0xf1] sm:$0xff] }
 0x125   : > { %v1786_v37 = vpack.c.bf16 %v1765_v32, %v1764_v18 }
 0x128   : > { %v1263_v61 = vpop.f32.mrf.mxu2 }
 0x129   : > { %v7549_v47 = vadd.f32 %v1263_v61, %v1207_v36  ;;  %v1209_v27 = vpop.f32.mrf.mxu1  ;;  %v1388_v28 = vpop.f32.mrf.mxu0  ;;  %v1277_v36 = vadd.f32 %v7526_v0, %v1202_v22  ;;  %v1701_v0 = vld [vmem:[#allocation2 + $0x48] sm:$0xff]  ;;  %v1722_v22 = vld [vmem:[#allocation2 + $0x140] sm:$0xff] }
 0x12a   : > { %v1210_v34 = vadd.f32 %v1209_v27, %v1165_v52  ;;  %v1700_v52 = vld [vmem:[#allocation2 + $0x38] sm:$0xff] }
 0x12b   : > { %6488 = vmatmul.msk.bf16.gmra.mxu3 %vm280_vm1, %v1556_v46  ;;  %v7569_v4 = vpack.c.bf16 %v1700_v52, %v1699_v14  ;;  %v1780_v46 = vpack.c.bf16 %v1753_v50, %v1752_v23 }
 0x12c   : > { %6495 = vmatmul.msk.bf16.gmra.mxu1 %vm280_vm1, %v1778_v26 }
 0x12d   : > { %6518 = vmatmul.msk.bf16.gmra.mxu2 %vm280_vm1, %v1736_v30  ;;  %v1702_v30 = vld [vmem:[#allocation2 + $0x50] sm:$0xff] }
 0x12e   : > { %v1170_v58 = vpop.f32.mrf.mxu3  ;;  %v7588_v56 = vpack.c.bf16 %v1702_v30, %v1701_v0  ;;  %v1789_v30 = vpack.c.bf16 %v7304_v60, %v7300_v51 }
 0x130   : > { %v1266_v31 = vpop.f32.mrf.mxu2 }
 0x131   : > { %v7556_v53 = vadd.f32 %v1266_v31, %v1210_v34  ;;  %v1211_v29 = vpop.f32.mrf.mxu1  ;;  %v1391_v5 = vpop.f32.mrf.mxu0 }
 0x132   : > { %v1212_v59 = vadd.f32 %v1211_v29, %v1167_v24  ;;  %v1717_v24 = vld [vmem:[#allocation2 + $0x108] sm:$0xff]  ;;  %v1754_v29 = vld [vmem:[#allocation2 + $0x79] sm:$0xff] }
 0x133   : > { %v1738_v35 = vpack.c.bf16 %v1718_v25, %v1717_v24 }
 0x134   : > { %6510 = vmatmul.msk.bf16.gmra.mxu0 %vm280_vm1, %v7554_v57 }
 0x136   : > { %v1172_v42 = vpop.f32.mrf.mxu3 }
 0x138   : > { %v1268_v48 = vpop.f32.mrf.mxu2 }
 0x139   : > { %v7562_v55 = vadd.f32 %v1268_v48, %v1212_v59  ;;  %v1214_v9 = vpop.f32.mrf.mxu1  ;;  %v1393_v20 = vpop.f32.mrf.mxu0  ;;  %v1755_v59 = vld [vmem:[#allocation2 + $0x81] sm:$0xff] }
 0x13a   : > { %v1215_v12 = vadd.f32 %v1214_v9, %v1170_v58 }
 0x13b   : > { %6502 = vmatmul.msk.bf16.vlgmr.msrb.gmra.mxu3 %vm280_vm1, %v1785_v19  ;;  %v1781_v19 = vpack.c.bf16 %v1755_v59, %v1754_v29  ;;  %v1705_v59 = vld [vmem:[#allocation2 + $0x78] sm:$0xff] }
 0x13c   : > { %6496 = vmatmul.msk.bf16.gmra.mxu1 %vm280_vm1, %v1779_v49  ;;  %v1739_v49 = vpack.c.bf16 %v1720_v33, %v1719_v16  ;;  %v1706_v16 = vld [vmem:[#allocation2 + $0x80] sm:$0xff] }
 0x13d   : > { %6519 = vmatmul.msk.bf16.gmra.mxu2 %vm280_vm1, %v1737_v3  ;;  %v1704_v3 = vld [vmem:[#allocation2 + $0x68] sm:$0xff] }
 0x13e   : > { %v7567_v6 = vpop.f32.mrf.mxu3 }
 0x140   : > { %v1271_v15 = vpop.f32.mrf.mxu2 }
 0x141   : > { %v7571_v11 = vadd.f32 %v1271_v15, %v1215_v12  ;;  %v1216_v13 = vpop.f32.mrf.mxu1  ;;  %v1396_v27 = vpop.f32.mrf.mxu0 }
 0x142   : > { %v1217_v17 = vadd.f32 %v1216_v13, %v1172_v42  ;;  %v1787_v42 = vpack.c.bf16 %v7294_v39, %v7292_v38  ;;  %v1756_v13 = vld [vmem:[#allocation2 + $0x91] sm:$0xff] }
 0x144   : > { %6511 = vmatmul.msk.bf16.gmra.mxu0 %vm280_vm1, %v7569_v4 }
 0x146   : > { %v1323_v10 = vpop.f32.mrf.mxu3 }
 0x147   : > { %v1342_v1 = vadd.f32 %v1323_v10, %v1277_v36 }
 0x148   : > { %v1273_v63 = vpop.f32.mrf.mxu2 }
 0x149   : > { %v7578_v61 = vadd.f32 %v1273_v63, %v1217_v17  ;;  %v7580_v26 = vpop.f32.mrf.mxu1  ;;  %v7582_v43 = vadd.f32 %v1388_v28, %v1342_v1  ;;  %v7598_v40 = vpop.f32.mrf.mxu0  ;;  %v1757_v17 = vld [vmem:[#allocation2 + $0x99] sm:$0xff]  ;;  %v1276_v63 = vadd.f32 %v7520_v41, %v7500_v62  ;;  %v7651_v41 = vpack.c.bf16 %v1706_v16, %v1705_v59 }
 0x14a   : > { %v1782_v23 = vpack.c.bf16 %v1757_v17, %v1756_v13 }
 0x14b   : > { %6503 = vmatmul.msk.bf16.gmra.mxu3 %vm280_vm1, %v1786_v37 }
 0x14c   : > { %6497 = vmatmul.msk.bf16.gmra.mxu1 %vm280_vm1, %v1780_v46 }
 0x14d   : > { %6520 = vmatmul.msk.bf16.gmra.mxu2 %vm280_vm1, %v1738_v35  ;;  %v1341_v35 = vadd.f32 %v7567_v6, %v1276_v63  ;;  %v1723_v6 = vld [vmem:[#allocation2 + $0x150] sm:$0xff] }
 0x14e   : > { %v1326_v34 = vpop.f32.mrf.mxu3 }
 0x14f   : > { %v1343_v7 = vadd.f32 %v1326_v34, %v7542_v8  ;;  %v1758_v34 = vld [vmem:[#allocation2 + $0xa9] sm:$0xff]  ;;  %v1406_v33 = vadd.f32 %v7546_v21, %v1341_v35 }
 0x150   : > { %v7596_v28 = vpop.f32.mrf.mxu2 }
 0x151   : > { %v7590_v58 = vpop.f32.mrf.mxu1  ;;  %v7592_v31 = vadd.f32 %v1391_v5, %v1343_v7  ;;  %v1703_v5 = vld [vmem:[#allocation2 + $0x60] sm:$0xff]  ;;  %v1401_v39 = vpop.f32.mrf.mxu0 }
 0x152   : > { %v7613_v38 = vpack.c.bf16 %v1704_v3, %v1703_v5  ;;  %v1772_v3 = vld [vmem:[#allocation2 + $0x151] sm:$0xff] }
 0x154   : > { %6512 = vmatmul.msk.bf16.gmra.mxu0 %vm280_vm1, %v7588_v56 }
 0x156   : > { %v1328_v2 = vpop.f32.mrf.mxu3 }
 0x157   : > { %v1344_v8 = vadd.f32 %v1328_v2, %v7549_v47  ;;  %v1724_v2 = vld [vmem:[#allocation2 + $0x158] sm:$0xff] }
 0x158   : > { %v7610_v14 = vpop.f32.mrf.mxu2 }
 0x159   : > { %v7603_v48 = vpop.f32.mrf.mxu1  ;;  %v7605_v9 = vadd.f32 %v1393_v20, %v1344_v8  ;;  %v1721_v20 = vld [vmem:[#allocation2 + $0x138] sm:$0xff]  ;;  %v7628_v10 = vpop.f32.mrf.mxu0  ;;  %v1471_v8 = vadd.f32 %v7580_v26, %v1406_v33  ;;  %v1760_v33 = vld [vmem:[#allocation2 + $0xc1] sm:$0xff] }
 0x15a   : > { %v1740_v24 = vpack.c.bf16 %v1722_v22, %v1721_v20  ;;  %v7666_v26 = vld [vmem:[%s9191_s2] ss:$0 sm:$0xff] }
 0x15b   : > { %6504 = vmatmul.msk.bf16.gmra.mxu3 %vm280_vm1, %v1787_v42  ;;  %v1537_v60 = vadd.f32 %v7596_v28, %v1471_v8  ;;  %v1774_v8 = vld [vmem:[#allocation2 + $0x169] sm:$0xff] }
 0x15c   : > { %6498 = vmatmul.msk.bf16.gmra.mxu1 %vm280_vm1, %v1781_v19 }
 0x15d   : > { %6521 = vmatmul.msk.bf16.gmra.mxu2 %vm280_vm1, %v1739_v49 }
 0x15e   : > { %v1331_v12 = vpop.f32.mrf.mxu3 }
 0x15f   : > { %v1345_v47 = vadd.f32 %v1331_v12, %v7556_v53  ;;  %v1788_v53 = vpack.c.bf16 %v7298_v45, %v7296_v44  ;;  %v1773_v12 = vld [vmem:[#allocation2 + $0x159] sm:$0xff] }
 0x160   : > { %v7624_v50 = vpop.f32.mrf.mxu2  ;;  %v1790_v13 = vpack.c.bf16 %v1773_v12, %v1772_v3  ;;  %v1725_v3 = vld [vmem:[#allocation2 + $0x168] sm:$0xff]  ;;  %v1726_v12 = vld [vmem:[#allocation2 + $0x170] sm:$0xff] }
 0x161   : > { %v7615_v52 = vpop.f32.mrf.mxu1  ;;  %v1410_v15 = vadd.f32 %v1396_v27, %v1345_v47  ;;  %v1647_v46 = vpop.f32.mrf.mxu0 }
 0x164   : > { %6513 = vmatmul.msk.bf16.gmra.mxu0 %vm280_vm1, %v7613_v38 }
 0x166   : > { %v1333_v18 = vpop.f32.mrf.mxu3 }
 0x167   : > { %v7620_v32 = vadd.f32 %v1333_v18, %v7562_v55 }
 0x168   : > { %v7636_v45 = vpop.f32.mrf.mxu2 }
 0x169   : > { %v1461_v36 = vpop.f32.mrf.mxu1  ;;  %v1649_v42 = vpop.f32.mrf.mxu0 }
 0x16a   : > { %v7626_v25 = vadd.f32 %v1461_v36, %v1410_v15 }
 0x16b   : > { %6505 = vmatmul.msk.bf16.gmra.mxu3 %vm280_vm1, %v1788_v53 }
 0x16c   : > { %6499 = vmatmul.msk.bf16.gmra.mxu1 %vm280_vm1, %v1782_v23 }
 0x16d   : > { %6522 = vmatmul.msk.bf16.gmra.mxu2 %vm280_vm1, %v1740_v24 }
 0x16e   : > { %v1336_v55 = vpop.f32.mrf.mxu3 }
 0x16f   : > { %v1347_v1 = vadd.f32 %v1336_v55, %v7571_v11  ;;  %v1759_v11 = vld [vmem:[#allocation2 + $0xb1] sm:$0xff] }
 0x170   : > { %v7646_v29 = vpack.c.bf16 %v1759_v11, %v1758_v34  ;;  %v7657_v51 = vpop.f32.mrf.mxu2 }
 0x171   : > { %v7634_v37 = vpop.f32.mrf.mxu1  ;;  %v1412_v44 = vadd.f32 %v1401_v39, %v1347_v1  ;;  %v1472_v39 = vadd.f32 %v7590_v58, %v7582_v43  ;;  %v7674_v55 = vpop.f32.mrf.mxu0 }
 0x173   : > { %v1538_v53 = vadd.f32 %v7610_v14, %v1472_v39 }
 0x174   : > { %6514 = vmatmul.msk.bf16.gmra.mxu0 %vm280_vm1, %v7651_v41 }
 0x176   : > { %v1338_v27 = vpop.f32.mrf.mxu3 }
 0x177   : > { %v7642_v0 = vadd.f32 %v1338_v27, %v7578_v61  ;;  %v1741_v61 = vpack.c.bf16 %v1724_v2, %v1723_v6  ;;  %v1761_v6 = vld [vmem:[#allocation2 + $0xc9] sm:$0xff] }
 0x178   : > { %v7671_v15 = vpop.f32.mrf.mxu2 }
 0x179   : > { %v1466_v7 = vpop.f32.mrf.mxu1  ;;  %v7681_v59 = vpop.f32.mrf.mxu0 }
 0x17a   : > { %v7649_v62 = vadd.f32 %v1466_v7, %v1412_v44 }
 0x17b   : > { %6506 = vmatmul.msk.bf16.gmra.mxu3 %vm280_vm1, %v1789_v30 }
 0x17c   : > { %6500 = vmatmul.msk.bf16.gmra.mxu1 %vm280_vm1, %v7646_v29 }
 0x17d   : > { %6523 = vmatmul.msk.bf16.gmra.mxu2 %vm280_vm1, %v1741_v61  ;;  %v7686_v61 = vpack.c.bf16 %v1761_v6, %v1760_v33 }
 0x17e   : > { %v1582_v21 = vpop.f32.mrf.mxu3 }
 0x17f   : > { %v1602_v19 = vadd.f32 %v1582_v21, %v1537_v60  ;;  %v1775_v60 = vld [vmem:[#allocation2 + $0x171] sm:$0xff] }
 0x180   : > { %v7677_v11 = vpop.f32.mrf.mxu2  ;;  %v1707_v21 = vld [vmem:[#allocation2 + $0x90] sm:$0xff] }
 0x181   : > { %v1667_v49 = vadd.f32 %v1647_v46, %v1602_v19  ;;  %v7679_v7 = vpop.f32.mrf.mxu1 }
 0x183   : > { %v1679_v5 = vadd.f32 %v7666_v26, %v1667_v49  ;;  %v1791_v49 = vpack.c.bf16 %v1775_v60, %v1774_v8 }
 0x185   : > { %v1687_v47 = vmax.f32 %v1679_v5, 0.0  ;;  %v1708_v5 = vld [vmem:[#allocation2 + $0x98] sm:$0xff] }
 0x186   : > { %v1584_v28 = vpop.f32.mrf.mxu3  ;;  %v7694_v39 = vpack.c.bf16 %v1708_v5, %v1707_v21 }
 0x187   : > { %v3697_v17 = vrot.slane %v1687_v47, 1  ;;  %v3698_v20 = vrot.slane %v1687_v47, 2  ;;  %v3699_v22 = vrot.slane %v1687_v47, 3  ;;  %v3700_v18 = vrot.slane %v1687_v47, 4 }
 0x188   : > { %v3701_v23 = vrot.slane %v1687_v47, 5  ;;  %v3702_v36 = vrot.slane %v1687_v47, 6  ;;  %v3753_v24 = vperm.slane %v1687_v47, 0  ;;  %v3703_v1 = vrot.slane %v1687_v47, 7  ;;  %6515 = vmatmul.msk.bf16.gmra.mxu0 %vm280_vm1, %v7694_v39 }
 0x189   : > { %v3754_v44 = vperm.slane %v3697_v17, 0  ;;  %v3755_v63 = vperm.slane %v3698_v20, 0  ;;  %v3756_v46 = vperm.slane %v3699_v22, 0  ;;  %v3757_v43 = vperm.slane %v3700_v18, 0  ;;  %v7702_v22 = vpop.f32.mrf.mxu0  ;;  %v7704_v18 = vpop.f32.mrf.mxu1 }
 0x18a   : > { %3817 = vst [vmem:[#allocation1] ss:$4 sm:$0xff] %v3753_v24  ;;  %v3758_v58 = vperm.slane %v3701_v23, 0  ;;  %v1603_v35 = vadd.f32 %v1584_v28, %v1538_v53  ;;  %v3759_v27 = vperm.slane %v3702_v36, 0  ;;  %v3760_v30 = vperm.slane %v3703_v1, 0 }
 0x18b   : > { %3819 = vst [vmem:[#allocation1 + $0x1] ss:$4 sm:$0xff] %v3754_v44  ;;  %6507 = vmatmul.msk.bf16.gmra.mxu3 %vm280_vm1, %v1790_v13  ;;  %v1742_v28 = vpack.c.bf16 %v1726_v12, %v1725_v3  ;;  %v7696_v13 = vpop.f32.mrf.mxu2  ;;  %v1473_v53 = vadd.f32 %v7603_v48, %v7592_v31  ;;  %v2074_v12 = vld [vmem:[#allocation2 + $0xa] sm:$0xff] }
 0x18c   : > { %3821 = vst [vmem:[#allocation1 + $0x2] ss:$4 sm:$0xff] %v3755_v63  ;;  %v1668_v34 = vadd.f32 %v1649_v42, %v1603_v35  ;;  %6501 = vmatmul.msk.bf16.gmra.mxu1 %vm280_vm1, %v7686_v61 }
 0x18d   : > { %3823 = vst [vmem:[#allocation1 + $0x3] ss:$4 sm:$0xff] %v3756_v46  ;;  %6524 = vmatmul.msk.bf16.gmra.mxu2 %vm280_vm1, %v1742_v28  ;;  %v1539_v1 = vadd.f32 %v7624_v50, %v1473_v53 }
 0x18e   : > { %3825 = vst [vmem:[#allocation1 + $0x20] ss:$4 sm:$0xff] %v3757_v43  ;;  %v1587_v14 = vpop.f32.mrf.mxu3  ;;  %v1680_v16 = vadd.f32 %v7666_v26, %v1668_v34 }
 0x18f   : > { %3827 = vst [vmem:[#allocation1 + $0x21] ss:$4 sm:$0xff] %v3758_v58 }
 0x190   : > { %3829 = vst [vmem:[#allocation1 + $0x22] ss:$4 sm:$0xff] %v3759_v27  ;;  %v1688_v42 = vmax.f32 %v1680_v16, 0.0 }
 0x191   : > { %3831 = vst [vmem:[#allocation1 + $0x23] ss:$4 sm:$0xff] %v3760_v30  ;;  %v7718_v60 = vpop.f32.mrf.mxu0 }
 0x192   : > { %v3704_v17 = vrot.slane %v1688_v42, 1  ;;  %v3705_v20 = vrot.slane %v1688_v42, 2  ;;  %v3706_v23 = vrot.slane %v1688_v42, 3  ;;  %v3707_v36 = vrot.slane %v1688_v42, 4 }
 0x193   : > { %v3710_v35 = vrot.slane %v1688_v42, 7  ;;  %v7715_v33 = vpop.f32.mrf.mxu2 }
 0x194   : > { %v7684_v2 = vld.sshfl [vmem:[#allocation1] sm:$0xff pattern:$0x73625140]  ;;  %v3765_v16 = vperm.slane %v3707_v36, 0 }
 0x195   : > { %3834 = vst [vmem:[#allocation1] ss:$4 sm:$0xff] %v3753_v24  ;;  %v3761_v24 = vperm.slane %v1688_v42, 0  ;;  %v3768_v6 = vperm.slane %v3710_v35, 0 }
 0x196   : > { %3835 = vst [vmem:[#allocation1 + $0x1] ss:$4 sm:$0xff] %v3754_v44  ;;  %v7688_v19 = vpop.f32.mrf.mxu3 }
 0x197   : > { %3836 = vst [vmem:[#allocation1 + $0x2] ss:$4 sm:$0xff] %v3755_v63  ;;  %v3708_v63 = vrot.slane %v1688_v42, 5 }
 0x198   : > { %v7690_v47 = vld.sshfl [vmem:[#allocation1 + $0x20] sm:$0xff pattern:$0x73625140]  ;;  %3837 = vst [vmem:[#allocation1 + $0x3] ss:$4 sm:$0xff] %v3756_v46  ;;  %v3762_v46 = vperm.slane %v3704_v17, 0  ;;  %6541 = vmatmul.msk.bf16.vlgmr.msra.gmra.mxu0 %vm280_vm1, %v7554_v57 }
 0x199   : > { %3838 = vst [vmem:[#allocation1 + $0x20] ss:$4 sm:$0xff] %v3757_v43  ;;  %v3709_v43 = vrot.slane %v1688_v42, 6  ;;  %v3766_v48 = vperm.slane %v3708_v63, 0  ;;  %v1662_v28 = vpop.f32.mrf.mxu0 }
 0x19a   : > { %3839 = vst [vmem:[#allocation1 + $0x21] ss:$4 sm:$0xff] %v3758_v58  ;;  %v3763_v58 = vperm.slane %v3705_v20, 0 }
 0x19b   : > { %3840 = vst [vmem:[#allocation1 + $0x22] ss:$4 sm:$0xff] %v3759_v27  ;;  %6508 = vmatmul.msk.bf16.gmra.mxu3 %vm280_vm1, %v1791_v49  ;;  %v3764_v27 = vperm.slane %v3706_v23, 0  ;;  %v3767_v50 = vperm.slane %v3709_v43, 0  ;;  %v7735_v3 = vpop.f32.mrf.mxu2  ;;  %v1474_v23 = vadd.f32 %v7615_v52, %v7605_v9 }
 0x19c   : > { %3841 = vst [vmem:[#allocation1 + $0x23] ss:$4 sm:$0xff] %v3760_v30  ;;  %v1604_v30 = vadd.f32 %v1587_v14, %v1539_v1  ;;  %v7720_v14 = vpop.f32.mrf.mxu1  ;;  %6557 = vmatmul.msk.bf16.vlgmr.msrb.gmra.mxu1 %vm280_vm1, %v7528_v54  ;;  %v2073_v54 = vld [vmem:[#allocation2 + $0x2] sm:$0xff]  ;;  %v1543_v1 = vadd.f32 %v7677_v11, %v7649_v62 }
 0x19d   : > { %v2105_v57 = vpack.c.bf16 %v2074_v12, %v2073_v54  ;;  %v1540_v43 = vadd.f32 %v7636_v45, %v1474_v23  ;;  %v2737_v54 = vld [vmem:[#allocation2 + $0x22] sm:$0xff] }
 0x19e   : > { %v7711_v34 = vpop.f32.mrf.mxu3  ;;  %v1669_v8 = vadd.f32 %v7674_v55, %v1604_v30 }
 0x19f   : > { %v7709_v44 = vld.sshfl [vmem:[#allocation1] sm:$0xff pattern:$0x73625140] }
 0x1a0   : > { %3844 = vst [vmem:[#allocation1] ss:$4 sm:$0xff] %v3761_v24  ;;  %v1681_v21 = vadd.f32 %v7666_v26, %v1669_v8 }
 0x1a1   : > { %3845 = vst [vmem:[#allocation1 + $0x1] ss:$4 sm:$0xff] %v3762_v46 }
 0x1a2   : > { %3846 = vst [vmem:[#allocation1 + $0x2] ss:$4 sm:$0xff] %v3763_v58  ;;  %v7731_v55 = vmax.f32 %v1681_v21, 0.0  ;;  %v2736_v21 = vld [vmem:[#allocation2 + $0x1a] sm:$0xff] }
 0x1a3   : > { %v7713_v31 = vld.sshfl [vmem:[#allocation1 + $0x20] sm:$0xff pattern:$0x73625140]  ;;  %3847 = vst [vmem:[#allocation1 + $0x3] ss:$4 sm:$0xff] %v3764_v27  ;;  %v7762_v8 = vpop.f32.mrf.mxu2 }
 0x1a4   : > { %3848 = vst [vmem:[#allocation1 + $0x20] ss:$4 sm:$0xff] %v3765_v16  ;;  %v7737_v17 = vpop.f32.mrf.mxu1  ;;  %v3711_v20 = vrot.slane %v7731_v55, 1  ;;  %v3712_v53 = vrot.slane %v7731_v55, 2  ;;  %v3713_v36 = vrot.slane %v7731_v55, 3  ;;  %v3714_v63 = vrot.slane %v7731_v55, 4 }
 0x1a5   : > { %3849 = vst [vmem:[#allocation1 + $0x21] ss:$4 sm:$0xff] %v3766_v48  ;;  %v3715_v35 = vrot.slane %v7731_v55, 5  ;;  %v3717_v62 = vrot.slane %v7731_v55, 7 }
 0x1a6   : > { %3850 = vst [vmem:[#allocation1 + $0x22] ss:$4 sm:$0xff] %v3767_v50  ;;  %v7729_v49 = vpop.f32.mrf.mxu3  ;;  %v3770_v9 = vperm.slane %v3711_v20, 0  ;;  %v3771_v30 = vperm.slane %v3712_v53, 0  ;;  %v3772_v11 = vperm.slane %v3713_v36, 0  ;;  %v3773_v45 = vperm.slane %v3714_v63, 0 }
 0x1a7   : > { %3851 = vst [vmem:[#allocation1 + $0x23] ss:$4 sm:$0xff] %v3768_v6  ;;  %v2768_v20 = vpack.c.bf16 %v2737_v54, %v2736_v21  ;;  %v1413_v36 = vadd.f32 %v7628_v10, %v7642_v0  ;;  %v2517_v10 = vld [vmem:[#allocation2 + $0x31] sm:$0xff]  ;;  %v2518_v0 = vld [vmem:[#allocation2 + $0x39] sm:$0xff] }
 0x1a8   : > { %6542 = vmatmul.msk.bf16.gmra.mxu0 %vm280_vm1, %v7569_v4  ;;  %v2739_v21 = vld [vmem:[#allocation2 + $0x3a] sm:$0xff] }
 0x1aa   : > { %v7725_v42 = vld.sshfl [vmem:[#allocation1] sm:$0xff pattern:$0x73625140] }
 0x1ab   : > { %3854 = vst [vmem:[#allocation1] ss:$4 sm:$0xff] %v3761_v24  ;;  %6525 = vmatmul.msk.bf16.vlgmr.msra.gmra.mxu3 %vm280_vm1, %v2105_v57  ;;  %v2784_v24 = vld [vmem:[%s9192_s3 + $0x14] sm:$0xf]  ;;  %v3774_v57 = vperm.slane %v3715_v35, 0  ;;  %v7779_v35 = vpop.f32.mrf.mxu2 }
 0x1ac   : > { %3855 = vst [vmem:[#allocation1 + $0x1] ss:$4 sm:$0xff] %v3762_v46  ;;  %v3769_v46 = vperm.slane %v7731_v55, 0  ;;  %v7766_v23 = vpop.f32.mrf.mxu1 }
 0x1ad   : > { %3856 = vst [vmem:[#allocation1 + $0x2] ss:$4 sm:$0xff] %v3763_v58 }
 0x1ae   : > { %v7733_v5 = vld.sshfl [vmem:[#allocation1 + $0x20] sm:$0xff pattern:$0x73625140]  ;;  %3857 = vst [vmem:[#allocation1 + $0x3] ss:$4 sm:$0xff] %v3764_v27  ;;  %v1597_v52 = vpop.f32.mrf.mxu3  ;;  %v3716_v27 = vrot.slane %v7731_v55, 6  ;;  %v1664_v55 = vpop.f32.mrf.mxu0 }
 0x1af   : > { %3858 = vst [vmem:[#allocation1 + $0x20] ss:$4 sm:$0xff] %v3765_v16  ;;  %v2834_v16 = vsel %vm1142_vm0, %v2784_v24, 0  ;;  %v1478_v24 = vadd.f32 %v7679_v7, %v1413_v36 }
 0x1b0   : > { %3859 = vst [vmem:[#allocation1 + $0x21] ss:$4 sm:$0xff] %v3766_v48  ;;  %v1608_v48 = vadd.f32 %v1597_v52, %v1543_v1  ;;  %2843 = vmatpush.bf16.msrb.mxu2 %v2834_v16  ;;  %v3775_v53 = vperm.slane %v3716_v27, 0 }
 0x1b1   : > { %3860 = vst [vmem:[#allocation1 + $0x22] ss:$4 sm:$0xff] %v3767_v50  ;;  %v1605_v50 = vadd.f32 %v7688_v19, %v1540_v43  ;;  %v3776_v19 = vperm.slane %v3717_v62, 0  ;;  %v1544_v43 = vadd.f32 %v7696_v13, %v1478_v24  ;;  %v2548_v13 = vpack.c.bf16 %v2518_v0, %v2517_v10 }
 0x1b2   : > { %3861 = vst [vmem:[#allocation1 + $0x23] ss:$4 sm:$0xff] %v3768_v6  ;;  %v7760_v6 = vadd.f32 %v1662_v28, %v1608_v48 }
 0x1b3   : > { %v1670_v28 = vadd.f32 %v7681_v59, %v1605_v50  ;;  %6573 = vmatmul.msk.bf16.vlgmr.msrb.gmra.mxu2 %vm280_vm1, %v2768_v20  ;;  %6558 = vmatmul.msk.bf16.gmra.mxu1 %vm280_vm1, %v2548_v13  ;;  %v2038_v50 = vpop.f32.mrf.mxu2 }
 0x1b4   : > { %v7781_v52 = vpop.f32.mrf.mxu1 }
 0x1b5   : > { %v7753_v58 = vld.sshfl [vmem:[#allocation1] sm:$0xff pattern:$0x73625140]  ;;  %v1682_v1 = vadd.f32 %v7666_v26, %v1670_v28 }
 0x1b6   : > { %9219 = vst [vmem:[#allocation4_spill] sm:$0xff] %v7753_v58  ;;  %v1599_v4 = vpop.f32.mrf.mxu3  ;;  %v1993_v27 = vpop.f32.mrf.mxu0 }
 0x1b7   : > { %3864 = vst [vmem:[#allocation1] ss:$4 sm:$0xff] %v3769_v46  ;;  %v1609_v59 = vadd.f32 %v1599_v4, %v1544_v43  ;;  %v7784_v7 = vmax.f32 %v1682_v1, 0.0  ;;  %v7787_v16 = vadd.f32 %v1993_v27, %v7704_v18  ;;  %v2738_v18 = vld [vmem:[#allocation2 + $0x32] sm:$0xff] }
 0x1b8   : > { %3865 = vst [vmem:[#allocation1 + $0x1] ss:$4 sm:$0xff] %v3770_v9  ;;  %6543 = vmatmul.msk.bf16.gmra.mxu0 %vm280_vm1, %v7588_v56 }
 0x1b9   : > { %3866 = vst [vmem:[#allocation1 + $0x2] ss:$4 sm:$0xff] %v3771_v30  ;;  %v7764_v12 = vld.sshfl [vmem:[#allocation1 + $0x20] sm:$0xff pattern:$0x73625140]  ;;  %v3720_v54 = vrot.slane %v7784_v7, 3 }
 0x1ba   : > { %9220 = vst [vmem:[#allocation5_spill] sm:$0xff] %v7764_v12  ;;  %v3722_v36 = vrot.slane %v7784_v7, 5  ;;  %v3723_v43 = vrot.slane %v7784_v7, 6 }
 0x1bb   : > { %3867 = vst [vmem:[#allocation1 + $0x3] ss:$4 sm:$0xff] %v3772_v11  ;;  %6526 = vmatmul.msk.bf16.gmra.mxu3 %vm280_vm1, %v2768_v20  ;;  %v3780_v56 = vperm.slane %v3720_v54, 0  ;;  %v2040_v13 = vpop.f32.mrf.mxu2 }
 0x1bc   : > { %3868 = vst [vmem:[#allocation1 + $0x20] ss:$4 sm:$0xff] %v3773_v45  ;;  %v3782_v10 = vperm.slane %v3722_v36, 0  ;;  %v2740_v36 = vld [vmem:[#allocation2 + $0x4a] sm:$0xff] }
 0x1bd   : > { %3869 = vst [vmem:[#allocation1 + $0x21] ss:$4 sm:$0xff] %v3774_v57 }
 0x1be   : > { %3870 = vst [vmem:[#allocation1 + $0x22] ss:$4 sm:$0xff] %v3775_v53  ;;  %v1898_v62 = vpop.f32.mrf.mxu3 }
 0x1bf   : > { %3871 = vst [vmem:[#allocation1 + $0x23] ss:$4 sm:$0xff] %v3776_v19  ;;  %v7797_v20 = vadd.f32 %v2038_v50, %v1898_v62  ;;  %v2519_v50 = vld [vmem:[#allocation2 + $0x49] sm:$0xff] }
 0x1c2   : > { %v7776_v63 = vld.sshfl [vmem:[#allocation1] sm:$0xff pattern:$0x73625140] }
 0x1c3   : > { %9221 = vst [vmem:[#allocation6_spill] sm:$0xff] %v7776_v63 }
 0x1c4   : > { %3874 = vst [vmem:[#allocation1] ss:$4 sm:$0xff] %v3769_v46  ;;  %v7791_v46 = vadd.f32 %v1664_v55, %v1609_v59  ;;  %v3777_v55 = vperm.slane %v7784_v7, 0  ;;  %v3724_v59 = vrot.slane %v7784_v7, 7 }
 0x1c5   : > { %3875 = vst [vmem:[#allocation1 + $0x1] ss:$4 sm:$0xff] %v3770_v9  ;;  %v3718_v9 = vrot.slane %v7784_v7, 1 }
 0x1c6   : > { %3876 = vst [vmem:[#allocation1 + $0x2] ss:$4 sm:$0xff] %v3771_v30  ;;  %v7789_v48 = vld.sshfl [vmem:[#allocation1 + $0x20] sm:$0xff pattern:$0x73625140]  ;;  %v3719_v30 = vrot.slane %v7784_v7, 2  ;;  %v1900_v0 = vpop.f32.mrf.mxu3 }
 0x1c7   : > { %9222 = vst [vmem:[#allocation7_spill] sm:$0xff] %v7789_v48  ;;  %v3778_v24 = vperm.slane %v3718_v9, 0  ;;  %v3784_v9 = vperm.slane %v3724_v59, 0  ;;  %v7820_v62 = vadd.f32 %v2040_v13, %v1900_v0 }
 0x1c8   : > { %3877 = vst [vmem:[#allocation1 + $0x3] ss:$4 sm:$0xff] %v3772_v11  ;;  %v2769_v11 = vpack.c.bf16 %v2739_v21, %v2738_v18  ;;  %v3779_v4 = vperm.slane %v3719_v30, 0  ;;  %v2520_v18 = vld [vmem:[#allocation2 + $0x51] sm:$0xff]  ;;  %6544 = vmatmul.msk.bf16.gmra.mxu0 %vm280_vm1, %v7613_v38 }
 0x1c9   : > { %3878 = vst [vmem:[#allocation1 + $0x20] ss:$4 sm:$0xff] %v3773_v45  ;;  %v3721_v45 = vrot.slane %v7784_v7, 4  ;;  %v2549_v54 = vpack.c.bf16 %v2520_v18, %v2519_v50 }
 0x1ca   : > { %3879 = vst [vmem:[#allocation1 + $0x21] ss:$4 sm:$0xff] %v3774_v57  ;;  %v7801_v57 = vpop.f32.mrf.mxu1  ;;  %6574 = vmatmul.msk.bf16.gmra.mxu2 %vm280_vm1, %v2769_v11 }
 0x1cb   : > { %3880 = vst [vmem:[#allocation1 + $0x22] ss:$4 sm:$0xff] %v3775_v53  ;;  %v1995_v53 = vpop.f32.mrf.mxu0  ;;  %6527 = vmatmul.msk.bf16.gmra.mxu3 %vm280_vm1, %v2769_v11  ;;  %6559 = vmatmul.msk.bf16.gmra.mxu1 %vm280_vm1, %v2549_v54 }
 0x1cc   : > { %3881 = vst [vmem:[#allocation1 + $0x23] ss:$4 sm:$0xff] %v3776_v19  ;;  %v1541_v19 = vadd.f32 %v7657_v51, %v7626_v25  ;;  %v7811_v1 = vadd.f32 %v1995_v53, %v7720_v14  ;;  %v3781_v51 = vperm.slane %v3721_v45, 0  ;;  %v3783_v14 = vperm.slane %v3723_v43, 0  ;;  %v2741_v43 = vld [vmem:[#allocation2 + $0x52] sm:$0xff] }
 0x1ce   : > { %v1606_v25 = vadd.f32 %v7711_v34, %v1541_v19  ;;  %v1903_v53 = vpop.f32.mrf.mxu3  ;;  %v2043_v19 = vpop.f32.mrf.mxu2 }
 0x1cf   : > { %v7807_v28 = vld.sshfl [vmem:[#allocation1] sm:$0xff pattern:$0x73625140]  ;;  %v7834_v59 = vadd.f32 %v2043_v19, %v1903_v53  ;;  %v2521_v53 = vld [vmem:[#allocation2 + $0x61] sm:$0xff]  ;;  %v2522_v19 = vld [vmem:[#allocation2 + $0x69] sm:$0xff] }
 0x1d0   : > { %9223 = vst [vmem:[#allocation8_spill] sm:$0xff] %v7807_v28  ;;  %v1671_v30 = vadd.f32 %v7702_v22, %v1606_v25 }
 0x1d1   : > { %3884 = vst [vmem:[#allocation1] ss:$4 sm:$0xff] %v3777_v55 }
 0x1d2   : > { %3885 = vst [vmem:[#allocation1 + $0x1] ss:$4 sm:$0xff] %v3778_v24  ;;  %v7822_v7 = vpop.f32.mrf.mxu1  ;;  %v1683_v45 = vadd.f32 %v7666_v26, %v1671_v30 }
 0x1d3   : > { %3886 = vst [vmem:[#allocation1 + $0x2] ss:$4 sm:$0xff] %v3779_v4  ;;  %v7817_v27 = vld.sshfl [vmem:[#allocation1 + $0x20] sm:$0xff pattern:$0x73625140]  ;;  %v1998_v34 = vpop.f32.mrf.mxu0 }
 0x1d4   : > { %9224 = vst [vmem:[#allocation9_spill] sm:$0xff] %v7817_v27  ;;  %v7826_v21 = vadd.f32 %v1998_v34, %v7737_v17  ;;  %v7832_v11 = vmax.f32 %v1683_v45, 0.0  ;;  %v2770_v17 = vpack.c.bf16 %v2741_v43, %v2740_v36 }
 0x1d5   : > { %3887 = vst [vmem:[#allocation1 + $0x3] ss:$4 sm:$0xff] %v3780_v56 }
 0x1d6   : > { %3888 = vst [vmem:[#allocation1 + $0x20] ss:$4 sm:$0xff] %v3781_v51  ;;  %v3726_v30 = vrot.slane %v7832_v11, 2  ;;  %v3727_v38 = vrot.slane %v7832_v11, 3  ;;  %v3785_v34 = vperm.slane %v7832_v11, 0  ;;  %v1905_v50 = vpop.f32.mrf.mxu3  ;;  %v2045_v18 = vpop.f32.mrf.mxu2 }
 0x1d7   : > { %3889 = vst [vmem:[#allocation1 + $0x21] ss:$4 sm:$0xff] %v3782_v10 }
 0x1d8   : > { %3890 = vst [vmem:[#allocation1 + $0x22] ss:$4 sm:$0xff] %v3783_v14  ;;  %v3787_v54 = vperm.slane %v3726_v30, 0  ;;  %v3788_v36 = vperm.slane %v3727_v38, 0  ;;  %6545 = vmatmul.msk.bf16.gmra.mxu0 %vm280_vm1, %v7651_v41 }
 0x1d9   : > { %3891 = vst [vmem:[#allocation1 + $0x23] ss:$4 sm:$0xff] %v3784_v9 }
 0x1da   : > { %v7838_v0 = vpop.f32.mrf.mxu1  ;;  %6575 = vmatmul.msk.bf16.gmra.mxu2 %vm280_vm1, %v2770_v17 }
 0x1db   : > { %v2000_v13 = vpop.f32.mrf.mxu0  ;;  %6528 = vmatmul.msk.bf16.gmra.mxu3 %vm280_vm1, %v2770_v17 }
 0x1dc   : > { %v7830_v22 = vld.sshfl [vmem:[#allocation1] sm:$0xff pattern:$0x73625140] }
 0x1dd   : > { %9225 = vst [vmem:[#allocation10_spill] sm:$0xff] %v7830_v22  ;;  %v2747_v22 = vld [vmem:[#allocation2 + $0x9a] sm:$0xff] }
 0x1de   : > { %3894 = vst [vmem:[#allocation1] ss:$4 sm:$0xff] %v3777_v55  ;;  %v7843_v55 = vadd.f32 %v2000_v13, %v7766_v23  ;;  %v3728_v23 = vrot.slane %v7832_v11, 4 }
 0x1df   : > { %3895 = vst [vmem:[#allocation1 + $0x1] ss:$4 sm:$0xff] %v3778_v24  ;;  %v1411_v24 = vadd.f32 %v7598_v40, %v7620_v32  ;;  %v3729_v32 = vrot.slane %v7832_v11, 5 }
 0x1e0   : > { %3896 = vst [vmem:[#allocation1 + $0x2] ss:$4 sm:$0xff] %v3779_v4  ;;  %v7836_v25 = vld.sshfl [vmem:[#allocation1 + $0x20] sm:$0xff pattern:$0x73625140]  ;;  %v3725_v4 = vrot.slane %v7832_v11, 1 }
 0x1e1   : > { %9226 = vst [vmem:[#allocation11_spill] sm:$0xff] %v7836_v25  ;;  %v2746_v25 = vld [vmem:[#allocation2 + $0x92] sm:$0xff] }
 0x1e2   : > { %3897 = vst [vmem:[#allocation1 + $0x3] ss:$4 sm:$0xff] %v3780_v56  ;;  %v1476_v56 = vadd.f32 %v7634_v37, %v1411_v24  ;;  %v3786_v37 = vperm.slane %v3725_v4, 0  ;;  %v2550_v24 = vpack.c.bf16 %v2522_v19, %v2521_v53  ;;  %v3789_v4 = vperm.slane %v3728_v23, 0 }
 0x1e3   : > { %3898 = vst [vmem:[#allocation1 + $0x20] ss:$4 sm:$0xff] %v3781_v51  ;;  %v2003_v45 = vpop.f32.mrf.mxu0 }
 0x1e4   : > { %3899 = vst [vmem:[#allocation1 + $0x21] ss:$4 sm:$0xff] %v3782_v10  ;;  %v1542_v51 = vadd.f32 %v7671_v15, %v1476_v56  ;;  %v3730_v10 = vrot.slane %v7832_v11, 6  ;;  %v7862_v15 = vpop.f32.mrf.mxu1  ;;  %v7867_v13 = vadd.f32 %v2003_v45, %v7781_v52  ;;  %v3790_v56 = vperm.slane %v3729_v32, 0  ;;  %6560 = vmatmul.msk.bf16.gmra.mxu1 %vm280_vm1, %v2550_v24  ;;  %v2742_v52 = vld [vmem:[#allocation2 + $0x62] sm:$0xff] }
 0x1e5   : > { %3900 = vst [vmem:[#allocation1 + $0x22] ss:$4 sm:$0xff] %v3783_v14  ;;  %v7859_v14 = vadd.f32 %v2045_v18, %v1905_v50  ;;  %v2743_v50 = vld [vmem:[#allocation2 + $0x6a] sm:$0xff] }
 0x1e6   : > { %3901 = vst [vmem:[#allocation1 + $0x23] ss:$4 sm:$0xff] %v3784_v9  ;;  %v3731_v9 = vrot.slane %v7832_v11, 7  ;;  %v1607_v43 = vadd.f32 %v7729_v49, %v1542_v51  ;;  %v3791_v30 = vperm.slane %v3730_v10, 0  ;;  %v1908_v49 = vpop.f32.mrf.mxu3  ;;  %v2048_v51 = vpop.f32.mrf.mxu2  ;;  %v2771_v18 = vpack.c.bf16 %v2743_v50, %v2742_v52  ;;  %v3006_v32 = vld [vmem:[%s9192_s3 + $0x18] sm:$0xf] }
 0x1e7   : > { %v7873_v23 = vadd.f32 %v2048_v51, %v1908_v49  ;;  %v2523_v52 = vld [vmem:[#allocation2 + $0x79] sm:$0xff] }
 0x1e8   : > { %v3792_v17 = vperm.slane %v3731_v9, 0  ;;  %v1672_v38 = vadd.f32 %v7718_v60, %v1607_v43  ;;  %v3056_v9 = vsel %vm1142_vm0, %v3006_v32, 0  ;;  %6546 = vmatmul.msk.bf16.gmra.mxu0 %vm280_vm1, %v7694_v39  ;;  %v1685_v39 = vadd.f32 %v7666_v26, %v7760_v6 }
 0x1e9   : > { %v7855_v40 = vld.sshfl [vmem:[#allocation1] sm:$0xff pattern:$0x73625140]  ;;  %3065 = vmatpush.bf16.msrb.mxu3 %v3056_v9 }
 0x1ea   : > { %9227 = vst [vmem:[#allocation12_spill] sm:$0xff] %v7855_v40  ;;  %v1684_v60 = vadd.f32 %v7666_v26, %v1672_v38  ;;  %6576 = vmatmul.msk.bf16.gmra.mxu2 %vm280_vm1, %v2771_v18  ;;  %v2307_v40 = vld [vmem:[#allocation2 + $0xb0] sm:$0xff]  ;;  %v1693_v6 = vmax.f32 %v1685_v39, 0.0 }
 0x1eb   : > { %3904 = vst [vmem:[#allocation1] ss:$4 sm:$0xff] %v3785_v34  ;;  %v2005_v10 = vpop.f32.mrf.mxu0  ;;  %6529 = vmatmul.msk.bf16.gmra.mxu3 %vm280_vm1, %v2771_v18  ;;  %v3448_v18 = vld [vmem:[%s9192_s3 + $0x20] sm:$0xf] }
 0x1ec   : > { %3905 = vst [vmem:[#allocation1 + $0x1] ss:$4 sm:$0xff] %v3786_v37  ;;  %v7878_v45 = vpop.f32.mrf.mxu1  ;;  %v7885_v53 = vadd.f32 %v2005_v10, %v7801_v57  ;;  %v7890_v43 = vmax.f32 %v1684_v60, 0.0  ;;  %v3498_v10 = vsel %vm1142_vm0, %v3448_v18, 0  ;;  %v2745_v60 = vld [vmem:[#allocation2 + $0x82] sm:$0xff]  ;;  %v3741_v39 = vrot.slane %v1693_v6, 3 }
 0x1ed   : > { %3906 = vst [vmem:[#allocation1 + $0x2] ss:$4 sm:$0xff] %v3787_v54  ;;  %v7869_v11 = vld.sshfl [vmem:[#allocation1 + $0x20] sm:$0xff pattern:$0x73625140]  ;;  %3507 = vmatpush.bf16.msra.mxu1 %v3498_v10 }
 0x1ee   : > { %9228 = vst [vmem:[#allocation13_spill] sm:$0xff] %v7869_v11  ;;  %v1910_v41 = vpop.f32.mrf.mxu3  ;;  %v2050_v38 = vpop.f32.mrf.mxu2  ;;  %v3734_v50 = vrot.slane %v7890_v43, 3  ;;  %v3793_v32 = vperm.slane %v7890_v43, 0  ;;  %v2525_v10 = vld [vmem:[#allocation2 + $0x91] sm:$0xff] }
 0x1ef   : > { %3907 = vst [vmem:[#allocation1 + $0x3] ss:$4 sm:$0xff] %v3788_v36  ;;  %v7894_v49 = vadd.f32 %v2050_v38, %v1910_v41  ;;  %v3736_v41 = vrot.slane %v7890_v43, 5 }
 0x1f0   : > { %3908 = vst [vmem:[#allocation1 + $0x20] ss:$4 sm:$0xff] %v3789_v4 }
 0x1f1   : > { %3909 = vst [vmem:[#allocation1 + $0x21] ss:$4 sm:$0xff] %v3790_v56 }
 0x1f2   : > { %3910 = vst [vmem:[#allocation1 + $0x22] ss:$4 sm:$0xff] %v3791_v30 }
 0x1f3   : > { %3911 = vst [vmem:[#allocation1 + $0x23] ss:$4 sm:$0xff] %v3792_v17  ;;  %v2008_v51 = vpop.f32.mrf.mxu0 }
 0x1f4   : > { %v7896_v57 = vpop.f32.mrf.mxu1 }
 0x1f6   : > { %v7888_v19 = vld.sshfl [vmem:[#allocation1] sm:$0xff pattern:$0x73625140] }
 0x1f7   : > { %9229 = vst [vmem:[#allocation14_spill] sm:$0xff] %v7888_v19  ;;  %v3738_v19 = vrot.slane %v7890_v43, 7 }
 0x1f8   : > { %3914 = vst [vmem:[#allocation1] ss:$4 sm:$0xff] %v3785_v34  ;;  %v2524_v34 = vld [vmem:[#allocation2 + $0x81] sm:$0xff] }
 0x1f9   : > { %3915 = vst [vmem:[#allocation1 + $0x1] ss:$4 sm:$0xff] %v3786_v37  ;;  %v3732_v37 = vrot.slane %v7890_v43, 1 }
 0x1fa   : > { %3916 = vst [vmem:[#allocation1 + $0x2] ss:$4 sm:$0xff] %v3787_v54  ;;  %v7892_v24 = vld.sshfl [vmem:[#allocation1 + $0x20] sm:$0xff pattern:$0x73625140]  ;;  %v7901_v54 = vadd.f32 %v2008_v51, %v7822_v7  ;;  %v3735_v7 = vrot.slane %v7890_v43, 4 }
 0x1fb   : > { %9230 = vst [vmem:[#allocation15_spill] sm:$0xff] %v7892_v24  ;;  %v3794_v38 = vperm.slane %v3732_v37, 0  ;;  %v2053_v24 = vpop.f32.mrf.mxu2  ;;  %v2010_v37 = vpop.f32.mrf.mxu0 }
 0x1fc   : > { %3917 = vst [vmem:[#allocation1 + $0x3] ss:$4 sm:$0xff] %v3788_v36  ;;  %v2551_v36 = vpack.c.bf16 %v2524_v34, %v2523_v52  ;;  %v3737_v52 = vrot.slane %v7890_v43, 6  ;;  %v3797_v11 = vperm.slane %v3735_v7, 0 }
 0x1fd   : > { %3918 = vst [vmem:[#allocation1 + $0x20] ss:$4 sm:$0xff] %v3789_v4  ;;  %v3733_v4 = vrot.slane %v7890_v43, 2 }
 0x1fe   : > { %3919 = vst [vmem:[#allocation1 + $0x21] ss:$4 sm:$0xff] %v3790_v56  ;;  %v3227_v56 = vld [vmem:[%s9192_s3 + $0x1c] sm:$0xf]  ;;  %6561 = vmatmul.msk.bf16.gmra.mxu1 %vm280_vm1, %v2551_v36  ;;  %v1913_v36 = vpop.f32.mrf.mxu3  ;;  %v3799_v43 = vperm.slane %v3737_v52, 0 }
 0x1ff   : > { %3920 = vst [vmem:[#allocation1 + $0x22] ss:$4 sm:$0xff] %v3791_v30  ;;  %v2744_v30 = vld [vmem:[#allocation2 + $0x7a] sm:$0xff]  ;;  %v3795_v34 = vperm.slane %v3733_v4, 0  ;;  %v7921_v18 = vadd.f32 %v2053_v24, %v1913_v36  ;;  %v3798_v4 = vperm.slane %v3736_v41, 0  ;;  %v3800_v24 = vperm.slane %v3738_v19, 0 }
 0x200   : > { %3921 = vst [vmem:[#allocation1 + $0x23] ss:$4 sm:$0xff] %v3792_v17  ;;  %v3277_v17 = vsel %vm1142_vm0, %v3227_v56, 0  ;;  %v2772_v51 = vpack.c.bf16 %v2745_v60, %v2744_v30  ;;  %v3796_v56 = vperm.slane %v3734_v50, 0  ;;  %v2526_v60 = vld [vmem:[#allocation2 + $0x99] sm:$0xff] }
 0x201   : > { %3286 = vmatpush.bf16.msrb.mxu0 %v3277_v17  ;;  %v7930_v17 = vadd.f32 %v2010_v37, %v7838_v0  ;;  %v2552_v36 = vpack.c.bf16 %v2526_v60, %v2525_v10  ;;  %v2773_v10 = vpack.c.bf16 %v2747_v22, %v2746_v25  ;;  %v3742_v22 = vrot.slane %v1693_v6, 4 }
 0x202   : > { %6577 = vmatmul.msk.bf16.gmra.mxu2 %vm280_vm1, %v2772_v51  ;;  %6530 = vmatmul.msk.bf16.gmra.mxu3 %vm280_vm1, %v2772_v51  ;;  %v3801_v25 = vperm.slane %v1693_v6, 0 }
 0x203   : > { %v7916_v9 = vld.sshfl [vmem:[#allocation1] sm:$0xff pattern:$0x73625140]  ;;  %v2055_v7 = vpop.f32.mrf.mxu2  ;;  %v2013_v52 = vpop.f32.mrf.mxu0 }
 0x204   : > { %9231 = vst [vmem:[#allocation16_spill] sm:$0xff] %v7916_v9  ;;  %v7923_v9 = vpop.f32.mrf.mxu1  ;;  %v7943_v19 = vadd.f32 %v2013_v52, %v7862_v15  ;;  %v3739_v15 = vrot.slane %v1693_v6, 1 }
 0x205   : > { %3924 = vst [vmem:[#allocation1] ss:$4 sm:$0xff] %v3793_v32 }
 0x206   : > { %3925 = vst [vmem:[#allocation1 + $0x1] ss:$4 sm:$0xff] %v3794_v38  ;;  %v1915_v50 = vpop.f32.mrf.mxu3 }
 0x207   : > { %3926 = vst [vmem:[#allocation1 + $0x2] ss:$4 sm:$0xff] %v3795_v34  ;;  %v7927_v30 = vld.sshfl [vmem:[#allocation1 + $0x20] sm:$0xff pattern:$0x73625140]  ;;  %v7935_v41 = vadd.f32 %v2055_v7, %v1915_v50 }
 0x208   : > { %9232 = vst [vmem:[#allocation17_spill] sm:$0xff] %v7927_v30  ;;  %v2306_v30 = vld [vmem:[#allocation2 + $0xa8] sm:$0xff] }
 0x209   : > { %3927 = vst [vmem:[#allocation1 + $0x3] ss:$4 sm:$0xff] %v3796_v56  ;;  %v2332_v7 = vpack.c.bf16 %v2307_v40, %v2306_v30  ;;  %v3743_v40 = vrot.slane %v1693_v6, 5 }
 0x20a   : > { %3928 = vst [vmem:[#allocation1 + $0x20] ss:$4 sm:$0xff] %v3797_v11 }
 0x20b   : > { %3929 = vst [vmem:[#allocation1 + $0x21] ss:$4 sm:$0xff] %v3798_v4  ;;  %v2058_v51 = vpop.f32.mrf.mxu2  ;;  %6547 = vmatmul.msk.bf16.gmra.mxu0 %vm280_vm1, %v2332_v7 }
 0x20c   : > { %3930 = vst [vmem:[#allocation1 + $0x22] ss:$4 sm:$0xff] %v3799_v43  ;;  %v7939_v37 = vpop.f32.mrf.mxu1 }
 0x20d   : > { %3931 = vst [vmem:[#allocation1 + $0x23] ss:$4 sm:$0xff] %v3800_v24 }
 0x20e   : > { %6562 = vmatmul.msk.bf16.gmra.mxu1 %vm280_vm1, %v2552_v36  ;;  %v3804_v36 = vperm.slane %v3741_v39, 0  ;;  %v2308_v39 = vld [vmem:[#allocation2 + $0xc0] sm:$0xff] }
 0x210   : > { %v7937_v0 = vld.sshfl [vmem:[#allocation1] sm:$0xff pattern:$0x73625140] }
 0x211   : > { %9233 = vst [vmem:[#allocation18_spill] sm:$0xff] %v7937_v0 }
 0x212   : > { %3934 = vst [vmem:[#allocation1] ss:$4 sm:$0xff] %v3793_v32  ;;  %v1918_v32 = vpop.f32.mrf.mxu3  ;;  %6578 = vmatmul.msk.bf16.gmra.mxu2 %vm280_vm1, %v2773_v10  ;;  %6531 = vmatmul.msk.bf16.gmra.mxu3 %vm280_vm1, %v2773_v10 }
 0x213   : > { %3935 = vst [vmem:[#allocation1 + $0x1] ss:$4 sm:$0xff] %v3794_v38  ;;  %v7948_v60 = vadd.f32 %v2058_v51, %v1918_v32  ;;  %v3740_v38 = vrot.slane %v1693_v6, 2  ;;  %v3805_v32 = vperm.slane %v3742_v22, 0  ;;  %v2060_v51 = vpop.f32.mrf.mxu2  ;;  %v2309_v22 = vld [vmem:[#allocation2 + $0xc8] sm:$0xff] }
 0x214   : > { %3936 = vst [vmem:[#allocation1 + $0x2] ss:$4 sm:$0xff] %v3795_v34  ;;  %v7946_v50 = vld.sshfl [vmem:[#allocation1 + $0x20] sm:$0xff pattern:$0x73625140]  ;;  %v7950_v52 = vpop.f32.mrf.mxu1  ;;  %v2015_v34 = vpop.f32.mrf.mxu0 }
 0x215   : > { %9234 = vst [vmem:[#allocation19_spill] sm:$0xff] %v7946_v50 }
 0x216   : > { %3937 = vst [vmem:[#allocation1 + $0x3] ss:$4 sm:$0xff] %v3796_v56  ;;  %v7954_v56 = vadd.f32 %v2015_v34, %v7878_v45  ;;  %v3806_v45 = vperm.slane %v3743_v40, 0  ;;  %v2748_v40 = vld [vmem:[#allocation2 + $0xaa] sm:$0xff] }
 0x217   : > { %3938 = vst [vmem:[#allocation1 + $0x20] ss:$4 sm:$0xff] %v3797_v11  ;;  %v3802_v11 = vperm.slane %v3739_v15, 0 }
 0x218   : > { %3939 = vst [vmem:[#allocation1 + $0x21] ss:$4 sm:$0xff] %v3798_v4  ;;  %v3744_v4 = vrot.slane %v1693_v6, 6 }
 0x219   : > { %3940 = vst [vmem:[#allocation1 + $0x22] ss:$4 sm:$0xff] %v3799_v43  ;;  %v3803_v43 = vperm.slane %v3740_v38, 0 }
 0x21a   : > { %3941 = vst [vmem:[#allocation1 + $0x23] ss:$4 sm:$0xff] %v3800_v24  ;;  %v3745_v24 = vrot.slane %v1693_v6, 7  ;;  %v1920_v7 = vpop.f32.mrf.mxu3  ;;  %v3807_v0 = vperm.slane %v3744_v4, 0  ;;  %v2333_v4 = vpack.c.bf16 %v2309_v22, %v2308_v39 }
 0x21b   : > { %v7961_v50 = vadd.f32 %v2060_v51, %v1920_v7  ;;  %v1686_v7 = vadd.f32 %v7666_v26, %v7791_v46 }
 0x21c   : > { %v7963_v15 = vpop.f32.mrf.mxu1  ;;  %v3808_v6 = vperm.slane %v3745_v24, 0  ;;  %v2063_v24 = vpop.f32.mrf.mxu2  ;;  %6548 = vmatmul.msk.bf16.gmra.mxu0 %vm280_vm1, %v2333_v4 }
 0x21d   : > { %v7957_v30 = vld.sshfl [vmem:[#allocation1] sm:$0xff pattern:$0x73625140]  ;;  %v7980_v48 = vmax.f32 %v1686_v7, 0.0 }
 0x21e   : > { %9235 = vst [vmem:[#allocation20_spill] sm:$0xff] %v7957_v30  ;;  %v2018_v30 = vpop.f32.mrf.mxu0  ;;  %6563 = vmatmul.msk.bf16.gmra.mxu1 %vm280_vm1, %v7646_v29 }
 0x21f   : > { %3944 = vst [vmem:[#allocation1] ss:$4 sm:$0xff] %v3801_v25  ;;  %v7967_v38 = vadd.f32 %v2018_v30, %v7896_v57  ;;  %v3746_v46 = vrot.slane %v7980_v48, 1  ;;  %v3750_v4 = vrot.slane %v7980_v48, 5 }
 0x220   : > { %3945 = vst [vmem:[#allocation1 + $0x1] ss:$4 sm:$0xff] %v3802_v11 }
 0x221   : > { %3946 = vst [vmem:[#allocation1 + $0x2] ss:$4 sm:$0xff] %v3803_v43  ;;  %v7959_v34 = vld.sshfl [vmem:[#allocation1 + $0x20] sm:$0xff pattern:$0x73625140] }
 0x222   : > { %9236 = vst [vmem:[#allocation21_spill] sm:$0xff] %v7959_v34  ;;  %v2749_v34 = vld [vmem:[#allocation2 + $0xb2] sm:$0xff]  ;;  %v1923_v10 = vpop.f32.mrf.mxu3 }
 0x223   : > { %3947 = vst [vmem:[#allocation1 + $0x3] ss:$4 sm:$0xff] %v3804_v36  ;;  %v2774_v51 = vpack.c.bf16 %v2749_v34, %v2748_v40  ;;  %v7975_v57 = vadd.f32 %v2063_v24, %v1923_v10  ;;  %v2311_v40 = vld [vmem:[#allocation2 + $0xe0] sm:$0xff]  ;;  %v2751_v24 = vld [vmem:[#allocation2 + $0xca] sm:$0xff] }
 0x224   : > { %3948 = vst [vmem:[#allocation1 + $0x20] ss:$4 sm:$0xff] %v3805_v32  ;;  %v7977_v30 = vpop.f32.mrf.mxu1  ;;  %v2750_v10 = vld [vmem:[#allocation2 + $0xc2] sm:$0xff] }
 0x225   : > { %3949 = vst [vmem:[#allocation1 + $0x21] ss:$4 sm:$0xff] %v3806_v45  ;;  %6579 = vmatmul.msk.bf16.gmra.mxu2 %vm280_vm1, %v2774_v51  ;;  %6532 = vmatmul.msk.bf16.gmra.mxu3 %vm280_vm1, %v2774_v51  ;;  %v3752_v51 = vrot.slane %v7980_v48, 7 }
 0x226   : > { %3950 = vst [vmem:[#allocation1 + $0x22] ss:$4 sm:$0xff] %v3807_v0  ;;  %v2020_v28 = vpop.f32.mrf.mxu0 }
 0x227   : > { %3951 = vst [vmem:[#allocation1 + $0x23] ss:$4 sm:$0xff] %v3808_v6  ;;  %v7983_v29 = vadd.f32 %v2020_v28, %v7923_v9  ;;  %v3748_v28 = vrot.slane %v7980_v48, 3  ;;  %v3749_v9 = vrot.slane %v7980_v48, 4 }
 0x22a   : > { %v7973_v27 = vld.sshfl [vmem:[#allocation1] sm:$0xff pattern:$0x73625140]  ;;  %v1925_v34 = vpop.f32.mrf.mxu3 }
 0x22b   : > { %9237 = vst [vmem:[#allocation22_spill] sm:$0xff] %v7973_v27 }
 0x22c   : > { %3954 = vst [vmem:[#allocation1] ss:$4 sm:$0xff] %v3801_v25  ;;  %v3747_v25 = vrot.slane %v7980_v48, 2  ;;  %v7995_v22 = vpop.f32.mrf.mxu1 }
 0x22d   : > { %3955 = vst [vmem:[#allocation1 + $0x1] ss:$4 sm:$0xff] %v3802_v11  ;;  %v2065_v11 = vpop.f32.mrf.mxu2 }
 0x22e   : > { %3956 = vst [vmem:[#allocation1 + $0x2] ss:$4 sm:$0xff] %v3803_v43  ;;  %v7986_v26 = vld.sshfl [vmem:[#allocation1 + $0x20] sm:$0xff pattern:$0x73625140]  ;;  %v7990_v39 = vadd.f32 %v2065_v11, %v1925_v34  ;;  %v3809_v43 = vperm.slane %v7980_v48, 0  ;;  %6564 = vmatmul.msk.bf16.gmra.mxu1 %vm280_vm1, %v7686_v61 }
 0x22f   : > { %9238 = vst [vmem:[#allocation23_spill] sm:$0xff] %v7986_v26  ;;  %v3811_v7 = vperm.slane %v3747_v25, 0  ;;  %v3751_v34 = vrot.slane %v7980_v48, 6  ;;  %v3813_v11 = vperm.slane %v3749_v9, 0  ;;  %v4401_v25 = vld [vmem:[%s9194_s5 + $0x4] sm:$0xf] }
 0x230   : > { %3957 = vst [vmem:[#allocation1 + $0x3] ss:$4 sm:$0xff] %v3804_v36  ;;  %v2023_v36 = vpop.f32.mrf.mxu0  ;;  %v3814_v26 = vperm.slane %v3750_v4, 0  ;;  %v4451_v12 = vsel %vm1142_vm0, %v4401_v25, 0  ;;  %v3816_v48 = vperm.slane %v3752_v51, 0  ;;  %v2532_v4 = vld [vmem:[#allocation2 + $0xe1] sm:$0xff] }
 0x231   : > { %3958 = vst [vmem:[#allocation1 + $0x20] ss:$4 sm:$0xff] %v3805_v32  ;;  %v3810_v32 = vperm.slane %v3746_v46, 0  ;;  %v3815_v61 = vperm.slane %v3751_v34, 0  ;;  %4460 = vmatpush.bf16.msra.mxu2 %v4451_v12  ;;  %v2531_v12 = vld [vmem:[#allocation2 + $0xd9] sm:$0xff] }
 0x232   : > { %3959 = vst [vmem:[#allocation1 + $0x21] ss:$4 sm:$0xff] %v3806_v45  ;;  %v2310_v45 = vld [vmem:[#allocation2 + $0xd8] sm:$0xff]  ;;  %v1928_v27 = vpop.f32.mrf.mxu3 }
 0x233   : > { %3960 = vst [vmem:[#allocation1 + $0x22] ss:$4 sm:$0xff] %v3807_v0  ;;  %v7999_v0 = vadd.f32 %v2023_v36, %v7939_v37  ;;  %v3812_v37 = vperm.slane %v3748_v28, 0  ;;  %v2334_v46 = vpack.c.bf16 %v2311_v40, %v2310_v45  ;;  %v2775_v36 = vpack.c.bf16 %v2751_v24, %v2750_v10 }
 0x234   : > { %3961 = vst [vmem:[#allocation1 + $0x23] ss:$4 sm:$0xff] %v3808_v6  ;;  %v8016_v28 = vpop.f32.mrf.mxu1  ;;  %v2555_v24 = vpack.c.bf16 %v2532_v4, %v2531_v12 }
 0x235   : > { %v2068_v63 = vpop.f32.mrf.mxu2  ;;  %6549 = vmatmul.msk.bf16.gmra.mxu0 %vm280_vm1, %v2334_v46  ;;  %6580 = vmatmul.msk.bf16.gmra.mxu2 %vm280_vm1, %v2775_v36  ;;  %v2313_v46 = vld [vmem:[#allocation2 + $0xf8] sm:$0xff] }
 0x236   : > { %v8014_v58 = vadd.f32 %v2068_v63, %v1928_v27  ;;  %6533 = vmatmul.msk.bf16.gmra.mxu3 %vm280_vm1, %v2775_v36 }
 0x237   : > { %v8001_v6 = vld.sshfl [vmem:[#allocation1] sm:$0xff pattern:$0x73625140] }
 0x238   : > { %9239 = vst [vmem:[#allocation24_spill] sm:$0xff] %v8001_v6  ;;  %v2025_v9 = vpop.f32.mrf.mxu0 }
 0x239   : > { %3964 = vst [vmem:[#allocation1] ss:$4 sm:$0xff] %v3809_v43  ;;  %v8020_v45 = vadd.f32 %v2025_v9, %v7950_v52  ;;  %v2312_v52 = vld [vmem:[#allocation2 + $0xf0] sm:$0xff]  ;;  %v2752_v9 = vld [vmem:[#allocation2 + $0xda] sm:$0xff] }
 0x23a   : > { %3965 = vst [vmem:[#allocation1 + $0x1] ss:$4 sm:$0xff] %v3810_v32  ;;  %v1930_v63 = vpop.f32.mrf.mxu3 }
 0x23b   : > { %3966 = vst [vmem:[#allocation1 + $0x2] ss:$4 sm:$0xff] %v3811_v7  ;;  %v8011_v6 = vld.sshfl [vmem:[#allocation1 + $0x20] sm:$0xff pattern:$0x73625140] }
 0x23c   : > { %9240 = vst [vmem:[#allocation25_spill] sm:$0xff] %v8011_v6  ;;  %v2624_v51 = vpop.f32.mrf.mxu1 }
 0x23d   : > { %3967 = vst [vmem:[#allocation1 + $0x3] ss:$4 sm:$0xff] %v3812_v37  ;;  %v2070_v27 = vpop.f32.mrf.mxu2 }
 0x23e   : > { %3968 = vst [vmem:[#allocation1 + $0x20] ss:$4 sm:$0xff] %v3813_v11  ;;  %v8025_v10 = vadd.f32 %v2070_v27, %v1930_v63  ;;  %6565 = vmatmul.msk.bf16.gmra.mxu1 %vm280_vm1, %v2555_v24  ;;  %v2533_v24 = vld [vmem:[#allocation2 + $0xf1] sm:$0xff] }
 0x23f   : > { %3969 = vst [vmem:[#allocation1 + $0x21] ss:$4 sm:$0xff] %v3814_v26 }
 0x240   : > { %3970 = vst [vmem:[#allocation1 + $0x22] ss:$4 sm:$0xff] %v3815_v61  ;;  %v2403_v34 = vpop.f32.mrf.mxu0 }
 0x241   : > { %3971 = vst [vmem:[#allocation1 + $0x23] ss:$4 sm:$0xff] %v3816_v48 }
 0x244   : > { %v8023_v40 = vld.sshfl [vmem:[#allocation1] sm:$0xff pattern:$0x73625140] }
 0x245   : > { %9241 = vst [vmem:[#allocation26_spill] sm:$0xff] %v8023_v40  ;;  %v2753_v40 = vld [vmem:[#allocation2 + $0xe2] sm:$0xff] }
 0x246   : > { %3974 = vst [vmem:[#allocation1] ss:$4 sm:$0xff] %v3809_v43  ;;  %v2335_v43 = vpack.c.bf16 %v2313_v46, %v2312_v52  ;;  %v2776_v63 = vpack.c.bf16 %v2753_v40, %v2752_v9  ;;  %v2314_v46 = vld [vmem:[#allocation2 + $0x108] sm:$0xff]  ;;  %v2315_v9 = vld [vmem:[#allocation2 + $0x110] sm:$0xff] }
 0x247   : > { %3975 = vst [vmem:[#allocation1 + $0x1] ss:$4 sm:$0xff] %v3810_v32  ;;  %v2182_v32 = vpop.f32.mrf.mxu3 }
 0x248   : > { %3976 = vst [vmem:[#allocation1 + $0x2] ss:$4 sm:$0xff] %v3811_v7  ;;  %v8028_v25 = vld.sshfl [vmem:[#allocation1 + $0x20] sm:$0xff pattern:$0x73625140]  ;;  %v2262_v27 = vadd.f32 %v2182_v32, %v7787_v16  ;;  %v2405_v36 = vpop.f32.mrf.mxu0  ;;  %v2626_v7 = vpop.f32.mrf.mxu1  ;;  %6550 = vmatmul.msk.bf16.gmra.mxu0 %vm280_vm1, %v2335_v43  ;;  %6581 = vmatmul.msk.bf16.gmra.mxu2 %vm280_vm1, %v2776_v63 }
 0x249   : > { %9242 = vst [vmem:[#allocation27_spill] sm:$0xff] %v8028_v25  ;;  %6534 = vmatmul.msk.bf16.gmra.mxu3 %vm280_vm1, %v2776_v63  ;;  %v2755_v43 = vld [vmem:[#allocation2 + $0xfa] sm:$0xff] }
 0x24a   : > { %3977 = vst [vmem:[#allocation1 + $0x3] ss:$4 sm:$0xff] %v3812_v37  ;;  %v2483_v12 = vadd.f32 %v2403_v34, %v2262_v27  ;;  %v2845_v37 = vpop.f32.mrf.mxu2  ;;  %v2754_v34 = vld [vmem:[#allocation2 + $0xf2] sm:$0xff]  ;;  %v2336_v27 = vpack.c.bf16 %v2315_v9, %v2314_v46 }
 0x24b   : > { %3978 = vst [vmem:[#allocation1 + $0x20] ss:$4 sm:$0xff] %v3813_v11 }
 0x24c   : > { %3979 = vst [vmem:[#allocation1 + $0x21] ss:$4 sm:$0xff] %v3814_v26  ;;  %v2704_v4 = vadd.f32 %v2624_v51, %v2483_v12  ;;  %v2534_v26 = vld [vmem:[#allocation2 + $0xf9] sm:$0xff] }
 0x24d   : > { %3980 = vst [vmem:[#allocation1 + $0x22] ss:$4 sm:$0xff] %v3815_v61  ;;  %v2556_v40 = vpack.c.bf16 %v2534_v26, %v2533_v24 }
 0x24e   : > { %3981 = vst [vmem:[#allocation1 + $0x23] ss:$4 sm:$0xff] %v3816_v48  ;;  %v8034_v25 = vadd.f32 %v2845_v37, %v2704_v4  ;;  %v2777_v4 = vpack.c.bf16 %v2755_v43, %v2754_v34 }
 0x24f   : > { %v2184_v11 = vpop.f32.mrf.mxu3  ;;  %6566 = vmatmul.msk.bf16.gmra.mxu1 %vm280_vm1, %v2556_v40  ;;  %v2535_v40 = vld [vmem:[#allocation2 + $0x109] sm:$0xff] }
 0x250   : > { %v2263_v61 = vadd.f32 %v2184_v11, %v7811_v1  ;;  %v2408_v48 = vpop.f32.mrf.mxu0  ;;  %v2629_v52 = vpop.f32.mrf.mxu1 }
 0x252   : > { %v2484_v16 = vadd.f32 %v2405_v36, %v2263_v61  ;;  %v2847_v32 = vpop.f32.mrf.mxu2 }
 0x254   : > { %v2705_v51 = vadd.f32 %v2626_v7, %v2484_v16  ;;  %v2536_v16 = vld [vmem:[#allocation2 + $0x111] sm:$0xff] }
 0x255   : > { %v2557_v9 = vpack.c.bf16 %v2536_v16, %v2535_v40 }
 0x256   : > { %v8039_v12 = vadd.f32 %v2847_v32, %v2705_v51  ;;  %v2316_v51 = vld [vmem:[#allocation2 + $0x120] sm:$0xff]  ;;  %v2317_v32 = vld [vmem:[#allocation2 + $0x128] sm:$0xff] }
 0x257   : > { %v2187_v37 = vpop.f32.mrf.mxu3 }
 0x258   : > { %v2264_v1 = vadd.f32 %v2187_v37, %v7826_v21  ;;  %v2410_v11 = vpop.f32.mrf.mxu0  ;;  %v2631_v24 = vpop.f32.mrf.mxu1  ;;  %6551 = vmatmul.msk.bf16.gmra.mxu0 %vm280_vm1, %v2336_v27  ;;  %6582 = vmatmul.msk.bf16.gmra.mxu2 %vm280_vm1, %v2777_v4  ;;  %v2757_v27 = vld [vmem:[#allocation2 + $0x112] sm:$0xff] }
 0x259   : > { %6535 = vmatmul.msk.bf16.gmra.mxu3 %vm280_vm1, %v2777_v4 }
 0x25a   : > { %v2485_v63 = vadd.f32 %v2408_v48, %v2264_v1  ;;  %v2850_v26 = vpop.f32.mrf.mxu2  ;;  %v2756_v48 = vld [vmem:[#allocation2 + $0x10a] sm:$0xff]  ;;  %v2337_v1 = vpack.c.bf16 %v2317_v32, %v2316_v51 }
 0x25c   : > { %v2706_v36 = vadd.f32 %v2629_v52, %v2485_v63 }
 0x25e   : > { %v8044_v61 = vadd.f32 %v2850_v26, %v2706_v36  ;;  %v2778_v36 = vpack.c.bf16 %v2757_v27, %v2756_v48 }
 0x25f   : > { %v2189_v7 = vpop.f32.mrf.mxu3  ;;  %6567 = vmatmul.msk.bf16.gmra.mxu1 %vm280_vm1, %v2557_v9  ;;  %v2537_v9 = vld [vmem:[#allocation2 + $0x121] sm:$0xff] }
 0x260   : > { %v2265_v46 = vadd.f32 %v2189_v7, %v7843_v55  ;;  %v2413_v34 = vpop.f32.mrf.mxu0  ;;  %v2634_v43 = vpop.f32.mrf.mxu1 }
 0x262   : > { %v2486_v21 = vadd.f32 %v2410_v11, %v2265_v46  ;;  %v2852_v37 = vpop.f32.mrf.mxu2 }
 0x264   : > { %v2707_v52 = vadd.f32 %v2631_v24, %v2486_v21  ;;  %v2538_v21 = vld [vmem:[#allocation2 + $0x129] sm:$0xff] }
 0x265   : > { %v2558_v32 = vpack.c.bf16 %v2538_v21, %v2537_v9 }
 0x266   : > { %v8049_v63 = vadd.f32 %v2852_v37, %v2707_v52  ;;  %v2318_v52 = vld [vmem:[#allocation2 + $0x138] sm:$0xff]  ;;  %v2319_v37 = vld [vmem:[#allocation2 + $0x140] sm:$0xff] }
 0x267   : > { %v2192_v26 = vpop.f32.mrf.mxu3 }
 0x268   : > { %v2266_v55 = vadd.f32 %v2192_v26, %v7867_v13  ;;  %v2415_v7 = vpop.f32.mrf.mxu0  ;;  %v2636_v40 = vpop.f32.mrf.mxu1  ;;  %6552 = vmatmul.msk.bf16.gmra.mxu0 %vm280_vm1, %v2337_v1  ;;  %6583 = vmatmul.msk.bf16.gmra.mxu2 %vm280_vm1, %v2778_v36  ;;  %v2759_v1 = vld [vmem:[#allocation2 + $0x12a] sm:$0xff] }
 0x269   : > { %6536 = vmatmul.msk.bf16.gmra.mxu3 %vm280_vm1, %v2778_v36 }
 0x26a   : > { %v2487_v4 = vadd.f32 %v2413_v34, %v2266_v55  ;;  %v2855_v16 = vpop.f32.mrf.mxu2  ;;  %v2758_v34 = vld [vmem:[#allocation2 + $0x122] sm:$0xff]  ;;  %v2338_v55 = vpack.c.bf16 %v2319_v37, %v2318_v52 }
 0x26c   : > { %v2708_v11 = vadd.f32 %v2634_v43, %v2487_v4 }
 0x26e   : > { %v8054_v46 = vadd.f32 %v2855_v16, %v2708_v11  ;;  %v2779_v11 = vpack.c.bf16 %v2759_v1, %v2758_v34 }
 0x26f   : > { %v2194_v24 = vpop.f32.mrf.mxu3  ;;  %6568 = vmatmul.msk.bf16.gmra.mxu1 %vm280_vm1, %v2558_v32  ;;  %v2539_v32 = vld [vmem:[#allocation2 + $0x139] sm:$0xff] }
 0x270   : > { %v2267_v51 = vadd.f32 %v2194_v24, %v7885_v53  ;;  %v2418_v48 = vpop.f32.mrf.mxu0  ;;  %v2639_v27 = vpop.f32.mrf.mxu1 }
 0x272   : > { %v2488_v13 = vadd.f32 %v2415_v7, %v2267_v51  ;;  %v2857_v26 = vpop.f32.mrf.mxu2 }
 0x274   : > { %v2709_v43 = vadd.f32 %v2636_v40, %v2488_v13  ;;  %v2540_v13 = vld [vmem:[#allocation2 + $0x141] sm:$0xff] }
 0x275   : > { %v2559_v37 = vpack.c.bf16 %v2540_v13, %v2539_v32 }
 0x276   : > { %v8059_v4 = vadd.f32 %v2857_v26, %v2709_v43  ;;  %v2320_v43 = vld [vmem:[#allocation2 + $0x150] sm:$0xff]  ;;  %v2321_v26 = vld [vmem:[#allocation2 + $0x158] sm:$0xff] }
 0x277   : > { %v2197_v16 = vpop.f32.mrf.mxu3 }
 0x278   : > { %v2268_v53 = vadd.f32 %v2197_v16, %v7901_v54  ;;  %v2420_v24 = vpop.f32.mrf.mxu0  ;;  %v2641_v9 = vpop.f32.mrf.mxu1  ;;  %6553 = vmatmul.msk.bf16.gmra.mxu0 %vm280_vm1, %v2338_v55  ;;  %6584 = vmatmul.msk.bf16.gmra.mxu2 %vm280_vm1, %v2779_v11  ;;  %v2761_v55 = vld [vmem:[#allocation2 + $0x142] sm:$0xff] }
 0x279   : > { %6537 = vmatmul.msk.bf16.gmra.mxu3 %vm280_vm1, %v2779_v11 }
 0x27a   : > { %v2489_v36 = vadd.f32 %v2418_v48, %v2268_v53  ;;  %v2860_v21 = vpop.f32.mrf.mxu2  ;;  %v2760_v48 = vld [vmem:[#allocation2 + $0x13a] sm:$0xff]  ;;  %v2339_v53 = vpack.c.bf16 %v2321_v26, %v2320_v43 }
 0x27c   : > { %v2710_v7 = vadd.f32 %v2639_v27, %v2489_v36 }
 0x27e   : > { %v8064_v51 = vadd.f32 %v2860_v21, %v2710_v7  ;;  %v2780_v7 = vpack.c.bf16 %v2761_v55, %v2760_v48 }
 0x27f   : > { %v2199_v40 = vpop.f32.mrf.mxu3  ;;  %6569 = vmatmul.msk.bf16.gmra.mxu1 %vm280_vm1, %v2559_v37  ;;  %v2541_v37 = vld [vmem:[#allocation2 + $0x151] sm:$0xff] }
 0x280   : > { %v2269_v52 = vadd.f32 %v2199_v40, %v7930_v17  ;;  %v2423_v34 = vpop.f32.mrf.mxu0  ;;  %v2644_v1 = vpop.f32.mrf.mxu1 }
 0x282   : > { %v2490_v54 = vadd.f32 %v2420_v24, %v2269_v52  ;;  %v2862_v16 = vpop.f32.mrf.mxu2 }
 0x284   : > { %v2711_v27 = vadd.f32 %v2641_v9, %v2490_v54  ;;  %v2542_v54 = vld [vmem:[#allocation2 + $0x159] sm:$0xff] }
 0x285   : > { %v2560_v26 = vpack.c.bf16 %v2542_v54, %v2541_v37 }
 0x286   : > { %v8069_v36 = vadd.f32 %v2862_v16, %v2711_v27  ;;  %v2322_v27 = vld [vmem:[#allocation2 + $0x168] sm:$0xff]  ;;  %v2323_v16 = vld [vmem:[#allocation2 + $0x170] sm:$0xff] }
 0x287   : > { %v2202_v21 = vpop.f32.mrf.mxu3 }
 0x288   : > { %v2270_v17 = vadd.f32 %v2202_v21, %v7943_v19  ;;  %v2425_v40 = vpop.f32.mrf.mxu0  ;;  %v2646_v32 = vpop.f32.mrf.mxu1  ;;  %6554 = vmatmul.msk.bf16.gmra.mxu0 %vm280_vm1, %v2339_v53  ;;  %6585 = vmatmul.msk.bf16.gmra.mxu2 %vm280_vm1, %v2780_v7  ;;  %v2763_v53 = vld [vmem:[#allocation2 + $0x15a] sm:$0xff] }
 0x289   : > { %6538 = vmatmul.msk.bf16.gmra.mxu3 %vm280_vm1, %v2780_v7 }
 0x28a   : > { %v2491_v11 = vadd.f32 %v2423_v34, %v2270_v17  ;;  %v2865_v13 = vpop.f32.mrf.mxu2  ;;  %v2762_v34 = vld [vmem:[#allocation2 + $0x152] sm:$0xff]  ;;  %v2340_v17 = vpack.c.bf16 %v2323_v16, %v2322_v27 }
 0x28c   : > { %v2712_v24 = vadd.f32 %v2644_v1, %v2491_v11  ;;  %v2781_v11 = vpack.c.bf16 %v2763_v53, %v2762_v34  ;;  %v2324_v53 = vld [vmem:[#allocation2 + $0x180] sm:$0xff] }
 0x28e   : > { %v8074_v52 = vadd.f32 %v2865_v13, %v2712_v24 }
 0x28f   : > { %v2204_v9 = vpop.f32.mrf.mxu3  ;;  %6570 = vmatmul.msk.bf16.gmra.mxu1 %vm280_vm1, %v2560_v26  ;;  %v2544_v26 = vld [vmem:[#allocation2 + $0x171] sm:$0xff] }
 0x290   : > { %v2271_v43 = vadd.f32 %v2204_v9, %v7954_v56  ;;  %v2428_v48 = vpop.f32.mrf.mxu0  ;;  %v2649_v55 = vpop.f32.mrf.mxu1 }
 0x292   : > { %v2492_v19 = vadd.f32 %v2425_v40, %v2271_v43  ;;  %v8081_v21 = vpop.f32.mrf.mxu2  ;;  %v2543_v43 = vld [vmem:[#allocation2 + $0x169] sm:$0xff] }
 0x293   : > { %v2561_v27 = vpack.c.bf16 %v2544_v26, %v2543_v43 }
 0x294   : > { %v8079_v1 = vadd.f32 %v2646_v32, %v2492_v19 }
 0x297   : > { %v2207_v24 = vpop.f32.mrf.mxu3 }
 0x298   : > { %v2272_v56 = vadd.f32 %v2207_v24, %v7967_v38  ;;  %v2430_v13 = vpop.f32.mrf.mxu0  ;;  %v2651_v9 = vpop.f32.mrf.mxu1  ;;  %6555 = vmatmul.msk.bf16.gmra.mxu0 %vm280_vm1, %v2340_v17  ;;  %6586 = vmatmul.msk.bf16.gmra.mxu2 %vm280_vm1, %v2781_v11  ;;  %v2325_v17 = vld [vmem:[#allocation2 + $0x188] sm:$0xff]  ;;  %v2765_v24 = vld [vmem:[#allocation2 + $0x172] sm:$0xff] }
 0x299   : > { %6539 = vmatmul.msk.bf16.gmra.mxu3 %vm280_vm1, %v2781_v11 }
 0x29a   : > { %v2493_v7 = vadd.f32 %v2428_v48, %v2272_v56  ;;  %v2870_v37 = vpop.f32.mrf.mxu2  ;;  %v2764_v48 = vld [vmem:[#allocation2 + $0x16a] sm:$0xff] }
 0x29c   : > { %v2714_v40 = vadd.f32 %v2649_v55, %v2493_v7  ;;  %v2341_v7 = vpack.c.bf16 %v2325_v17, %v2324_v53 }
 0x29e   : > { %v8086_v54 = vadd.f32 %v2870_v37, %v2714_v40  ;;  %v8095_v40 = vpack.c.bf16 %v2765_v24, %v2764_v48 }
 0x29f   : > { %v2209_v32 = vpop.f32.mrf.mxu3  ;;  %6571 = vmatmul.msk.bf16.gmra.mxu1 %vm280_vm1, %v2561_v27  ;;  %v2545_v27 = vld [vmem:[#allocation2 + $0x181] sm:$0xff] }
 0x2a0   : > { %v2273_v19 = vadd.f32 %v2209_v32, %v7983_v29  ;;  %v2433_v16 = vpop.f32.mrf.mxu0  ;;  %v2654_v34 = vpop.f32.mrf.mxu1 }
 0x2a2   : > { %v2494_v38 = vadd.f32 %v2430_v13, %v2273_v19  ;;  %v8093_v56 = vpop.f32.mrf.mxu2 }
 0x2a4   : > { %v8091_v55 = vadd.f32 %v2651_v9, %v2494_v38  ;;  %v2546_v38 = vld [vmem:[#allocation2 + $0x189] sm:$0xff] }
 0x2a5   : > { %v2562_v17 = vpack.c.bf16 %v2546_v38, %v2545_v27 }
 0x2a7   : > { %v2212_v29 = vpop.f32.mrf.mxu3 }
 0x2a8   : > { %v2274_v37 = vadd.f32 %v2212_v29, %v7999_v0  ;;  %v2435_v32 = vpop.f32.mrf.mxu0  ;;  %v2656_v43 = vpop.f32.mrf.mxu1  ;;  %6556 = vmatmul.msk.bf16.gmra.mxu0 %vm280_vm1, %v2341_v7  ;;  %6587 = vmatmul.msk.bf16.gmra.mxu2 %vm280_vm1, %v8095_v40  ;;  %v3180_v7 = vld [vmem:[#allocation2 + $0x39] sm:$0xff]  ;;  %v2766_v29 = vld [vmem:[#allocation2 + $0x182] sm:$0xff] }
 0x2a9   : > { %6540 = vmatmul.msk.bf16.gmra.mxu3 %vm280_vm1, %v8095_v40 }
 0x2aa   : > { %v2495_v11 = vadd.f32 %v2433_v16, %v2274_v37  ;;  %v2875_v26 = vpop.f32.mrf.mxu2  ;;  %v3179_v16 = vld [vmem:[#allocation2 + $0x31] sm:$0xff] }
 0x2ab   : > { %v2767_v37 = vld [vmem:[#allocation2 + $0x18a] sm:$0xff] }
 0x2ac   : > { %v2716_v13 = vadd.f32 %v2654_v34, %v2495_v11 }
 0x2ae   : > { %v8101_v9 = vadd.f32 %v2875_v26, %v2716_v13  ;;  %v3211_v13 = vpack.c.bf16 %v3180_v7, %v3179_v16  ;;  %v8113_v26 = vpack.c.bf16 %v2767_v37, %v2766_v29  ;;  %v3400_v7 = vld [vmem:[#allocation2 + $0x32] sm:$0xff] }
 0x2af   : > { %v2214_v19 = vpop.f32.mrf.mxu3  ;;  %6572 = vmatmul.msk.bf16.gmra.mxu1 %vm280_vm1, %v2562_v17  ;;  %v2959_v17 = vld [vmem:[#allocation2 + $0x38] sm:$0xff] }
 0x2b0   : > { %v2275_v53 = vadd.f32 %v2214_v19, %v8020_v45  ;;  %v2438_v48 = vpop.f32.mrf.mxu0  ;;  %v2659_v0 = vpop.f32.mrf.mxu1  ;;  %v2029_v45 = vadd.f32 %v7715_v33, %v7963_v15  ;;  %v2031_v33 = vadd.f32 %v7735_v3, %v7977_v30  ;;  %v2034_v3 = vadd.f32 %v7762_v8, %v7995_v22 }
 0x2b2   : > { %v2496_v24 = vadd.f32 %v2435_v32, %v2275_v53  ;;  %v8109_v11 = vpop.f32.mrf.mxu2 }
 0x2b3   : > { %9244 = vst [vmem:[#allocation29_spill] sm:$0xff] %v8109_v11  ;;  %v3401_v11 = vld [vmem:[#allocation2 + $0x3a] sm:$0xff] }
 0x2b4   : > { %v8107_v34 = vadd.f32 %v2656_v43, %v2496_v24  ;;  %v2958_v43 = vld [vmem:[#allocation2 + $0x30] sm:$0xff] }
 0x2b5   : > { %v2990_v16 = vpack.c.bf16 %v2959_v17, %v2958_v43 }
 0x2b6   : > { %9243 = vst [vmem:[#allocation28_spill] sm:$0xff] %v8107_v34  ;;  %v3182_v34 = vld [vmem:[#allocation2 + $0x51] sm:$0xff] }
 0x2b7   : > { %v2217_v19 = vpop.f32.mrf.mxu3 }
 0x2b8   : > { %v2276_v27 = vadd.f32 %v2217_v19, %v2029_v45  ;;  %v2440_v38 = vpop.f32.mrf.mxu0  ;;  %v2661_v32 = vpop.f32.mrf.mxu1  ;;  %6605 = vmatmul.msk.bf16.vlgmr.msrb.gmra.mxu0 %vm280_vm1, %v3211_v13  ;;  %6588 = vmatmul.msk.bf16.gmra.mxu2 %vm280_vm1, %v8113_v26  ;;  %v3432_v45 = vpack.c.bf16 %v3401_v11, %v3400_v7 }
 0x2b9   : > { %6589 = vmatmul.msk.bf16.vlgmr.msrb.gmra.mxu3 %vm280_vm1, %v2990_v16  ;;  %v2961_v16 = vld [vmem:[#allocation2 + $0x50] sm:$0xff] }
 0x2ba   : > { %v2497_v53 = vadd.f32 %v2438_v48, %v2276_v27  ;;  %v2880_v6 = vpop.f32.mrf.mxu2  ;;  %v3181_v27 = vld [vmem:[#allocation2 + $0x49] sm:$0xff] }
 0x2bb   : > { %v3212_v43 = vpack.c.bf16 %v3182_v34, %v3181_v27  ;;  %v2036_v34 = vadd.f32 %v7779_v35, %v8016_v28 }
 0x2bc   : > { %v2718_v24 = vadd.f32 %v2659_v0, %v2497_v53 }
 0x2be   : > { %v8120_v15 = vadd.f32 %v2880_v6, %v2718_v24 }
 0x2bf   : > { %v2219_v29 = vpop.f32.mrf.mxu3  ;;  %6621 = vmatmul.msk.bf16.vlgmr.msra.gmra.mxu1 %vm280_vm1, %v3432_v45 }
 0x2c0   : > { %v2277_v37 = vadd.f32 %v2219_v29, %v2031_v33  ;;  %v2443_v13 = vpop.f32.mrf.mxu0  ;;  %v2664_v48 = vpop.f32.mrf.mxu1 }
 0x2c2   : > { %v2498_v19 = vadd.f32 %v2440_v38, %v2277_v37  ;;  %v8126_v53 = vpop.f32.mrf.mxu2  ;;  %v2960_v38 = vld [vmem:[#allocation2 + $0x48] sm:$0xff]  ;;  %v3403_v37 = vld [vmem:[#allocation2 + $0x52] sm:$0xff] }
 0x2c3   : > { %v2991_v29 = vpack.c.bf16 %v2961_v16, %v2960_v38 }
 0x2c4   : > { %v8124_v0 = vadd.f32 %v2661_v32, %v2498_v19  ;;  %v3402_v32 = vld [vmem:[#allocation2 + $0x4a] sm:$0xff] }
 0x2c5   : > { %v3433_v19 = vpack.c.bf16 %v3403_v37, %v3402_v32 }
 0x2c7   : > { %v2222_v30 = vpop.f32.mrf.mxu3 }
 0x2c8   : > { %v2278_v6 = vadd.f32 %v2222_v30, %v2034_v3  ;;  %v2445_v11 = vpop.f32.mrf.mxu0  ;;  %v2666_v17 = vpop.f32.mrf.mxu1  ;;  %6606 = vmatmul.msk.bf16.gmra.mxu0 %vm280_vm1, %v3212_v43  ;;  %v3183_v43 = vld [vmem:[#allocation2 + $0x61] sm:$0xff]  ;;  %v3184_v30 = vld [vmem:[#allocation2 + $0x69] sm:$0xff] }
 0x2c9   : > { %6590 = vmatmul.msk.bf16.gmra.mxu3 %vm280_vm1, %v2991_v29  ;;  %v2963_v29 = vld [vmem:[#allocation2 + $0x68] sm:$0xff] }
 0x2ca   : > { %v2499_v24 = vadd.f32 %v2443_v13, %v2278_v6 }
 0x2cb   : > { %v2885_v33 = vpop.f32.mrf.mxu2 }
 0x2cc   : > { %v2720_v7 = vadd.f32 %v2664_v48, %v2499_v24  ;;  %v3213_v24 = vpack.c.bf16 %v3184_v30, %v3183_v43 }
 0x2ce   : > { %v8133_v45 = vadd.f32 %v2885_v33, %v2720_v7  ;;  %v2962_v33 = vld [vmem:[#allocation2 + $0x60] sm:$0xff] }
 0x2cf   : > { %v2224_v8 = vpop.f32.mrf.mxu3  ;;  %6622 = vmatmul.msk.bf16.gmra.mxu1 %vm280_vm1, %v3433_v19  ;;  %v2992_v37 = vpack.c.bf16 %v2963_v29, %v2962_v33 }
 0x2d0   : > { %v2279_v22 = vadd.f32 %v2224_v8, %v2036_v34  ;;  %v2448_v27 = vpop.f32.mrf.mxu0  ;;  %v2669_v3 = vpop.f32.mrf.mxu1  ;;  %v3404_v34 = vld [vmem:[#allocation2 + $0x62] sm:$0xff]  ;;  %v3405_v8 = vld [vmem:[#allocation2 + $0x6a] sm:$0xff] }
 0x2d2   : > { %v2500_v13 = vadd.f32 %v2445_v11, %v2279_v22 }
 0x2d3   : > { %v8139_v6 = vpop.f32.mrf.mxu2 }
 0x2d4   : > { %v8137_v48 = vadd.f32 %v2666_v17, %v2500_v13  ;;  %v3434_v13 = vpack.c.bf16 %v3405_v8, %v3404_v34 }
 0x2d7   : > { %v2227_v35 = vpop.f32.mrf.mxu3 }
 0x2d8   : > { %v2280_v28 = vadd.f32 %v2227_v35, %v7797_v20  ;;  %v2450_v38 = vpop.f32.mrf.mxu0  ;;  %v2671_v16 = vpop.f32.mrf.mxu1  ;;  %6607 = vmatmul.msk.bf16.gmra.mxu0 %vm280_vm1, %v3213_v24  ;;  %v3185_v24 = vld [vmem:[#allocation2 + $0x79] sm:$0xff] }
 0x2d9   : > { %6591 = vmatmul.msk.bf16.gmra.mxu3 %vm280_vm1, %v2992_v37  ;;  %v2965_v37 = vld [vmem:[#allocation2 + $0x80] sm:$0xff] }
 0x2da   : > { %v2501_v7 = vadd.f32 %v2448_v27, %v2280_v28  ;;  %v3186_v27 = vld [vmem:[#allocation2 + $0x81] sm:$0xff] }
 0x2db   : > { %v2890_v32 = vpop.f32.mrf.mxu2  ;;  %v3214_v28 = vpack.c.bf16 %v3186_v27, %v3185_v24 }
 0x2dc   : > { %v2722_v11 = vadd.f32 %v2669_v3, %v2501_v7 }
 0x2de   : > { %v8143_v17 = vadd.f32 %v2890_v32, %v2722_v11  ;;  %v2964_v32 = vld [vmem:[#allocation2 + $0x78] sm:$0xff] }
 0x2df   : > { %v2229_v22 = vpop.f32.mrf.mxu3  ;;  %6623 = vmatmul.msk.bf16.gmra.mxu1 %vm280_vm1, %v3434_v13  ;;  %v2993_v8 = vpack.c.bf16 %v2965_v37, %v2964_v32 }
 0x2e0   : > { %v2281_v19 = vadd.f32 %v2229_v22, %v7820_v62  ;;  %v2453_v43 = vpop.f32.mrf.mxu0  ;;  %v2674_v20 = vpop.f32.mrf.mxu1  ;;  %v3406_v22 = vld [vmem:[#allocation2 + $0x7a] sm:$0xff] }
 0x2e2   : > { %v2502_v30 = vadd.f32 %v2450_v38, %v2281_v19  ;;  %v3407_v19 = vld [vmem:[#allocation2 + $0x82] sm:$0xff] }
 0x2e3   : > { %v8150_v35 = vpop.f32.mrf.mxu2  ;;  %v3435_v24 = vpack.c.bf16 %v3407_v19, %v3406_v22  ;;  %v2966_v22 = vld [vmem:[#allocation2 + $0x90] sm:$0xff] }
 0x2e4   : > { %v8148_v3 = vadd.f32 %v2671_v16, %v2502_v30 }
 0x2e7   : > { %v2232_v7 = vpop.f32.mrf.mxu3 }
 0x2e8   : > { %v2282_v33 = vadd.f32 %v2232_v7, %v7834_v59  ;;  %v2455_v29 = vpop.f32.mrf.mxu0  ;;  %v2676_v62 = vpop.f32.mrf.mxu1  ;;  %6608 = vmatmul.msk.bf16.gmra.mxu0 %vm280_vm1, %v3214_v28  ;;  %v3187_v28 = vld [vmem:[#allocation2 + $0x91] sm:$0xff] }
 0x2e9   : > { %6592 = vmatmul.msk.bf16.gmra.mxu3 %vm280_vm1, %v2993_v8  ;;  %v2967_v8 = vld [vmem:[#allocation2 + $0x98] sm:$0xff] }
 0x2ea   : > { %v2503_v11 = vadd.f32 %v2453_v43, %v2282_v33  ;;  %v3188_v43 = vld [vmem:[#allocation2 + $0x99] sm:$0xff] }
 0x2eb   : > { %v2895_v34 = vpop.f32.mrf.mxu2 }
 0x2ec   : > { %v2724_v38 = vadd.f32 %v2674_v20, %v2503_v11  ;;  %v3215_v11 = vpack.c.bf16 %v3188_v43, %v3187_v28 }
 0x2ee   : > { %v8154_v16 = vadd.f32 %v2895_v34, %v2724_v38 }
 0x2ef   : > { %v2234_v13 = vpop.f32.mrf.mxu3  ;;  %6624 = vmatmul.msk.bf16.gmra.mxu1 %vm280_vm1, %v3435_v24  ;;  %v3409_v24 = vld [vmem:[#allocation2 + $0x9a] sm:$0xff] }
 0x2f0   : > { %v2283_v30 = vadd.f32 %v2234_v13, %v7859_v14  ;;  %v2458_v27 = vpop.f32.mrf.mxu0  ;;  %v2679_v59 = vpop.f32.mrf.mxu1  ;;  %v2994_v13 = vpack.c.bf16 %v2967_v8, %v2966_v22 }
 0x2f2   : > { %v2504_v7 = vadd.f32 %v2455_v29, %v2283_v30  ;;  %v3408_v30 = vld [vmem:[#allocation2 + $0x92] sm:$0xff] }
 0x2f3   : > { %v8161_v33 = vpop.f32.mrf.mxu2  ;;  %v3436_v43 = vpack.c.bf16 %v3409_v24, %v3408_v30  ;;  %v2968_v30 = vld [vmem:[#allocation2 + $0xa8] sm:$0xff] }
 0x2f4   : > { %v8159_v20 = vadd.f32 %v2676_v62, %v2504_v7  ;;  %9245 = vst [vmem:[#allocation30_spill] sm:$0xff] %v8161_v33 }
 0x2f7   : > { %v2237_v32 = vpop.f32.mrf.mxu3 }
 0x2f8   : > { %v2284_v37 = vadd.f32 %v2237_v32, %v7873_v23  ;;  %v2460_v38 = vpop.f32.mrf.mxu0  ;;  %v2681_v14 = vpop.f32.mrf.mxu1  ;;  %6609 = vmatmul.msk.bf16.gmra.mxu0 %vm280_vm1, %v3215_v11  ;;  %v3189_v11 = vld [vmem:[#allocation2 + $0xa9] sm:$0xff] }
 0x2f9   : > { %6593 = vmatmul.msk.bf16.gmra.mxu3 %vm280_vm1, %v2994_v13  ;;  %v2969_v13 = vld [vmem:[#allocation2 + $0xb0] sm:$0xff] }
 0x2fa   : > { %v2505_v34 = vadd.f32 %v2458_v27, %v2284_v37  ;;  %v3190_v27 = vld [vmem:[#allocation2 + $0xb1] sm:$0xff] }
 0x2fb   : > { %v2900_v19 = vpop.f32.mrf.mxu2 }
 0x2fc   : > { %v2726_v29 = vadd.f32 %v2679_v59, %v2505_v34  ;;  %v3216_v34 = vpack.c.bf16 %v3190_v27, %v3189_v11 }
 0x2fe   : > { %v8165_v62 = vadd.f32 %v2900_v19, %v2726_v29 }
 0x2ff   : > { %v2239_v7 = vpop.f32.mrf.mxu3  ;;  %6625 = vmatmul.msk.bf16.gmra.mxu1 %vm280_vm1, %v3436_v43  ;;  %v3411_v43 = vld [vmem:[#allocation2 + $0xb2] sm:$0xff] }
 0x300   : > { %v2285_v28 = vadd.f32 %v2239_v7, %v7894_v49  ;;  %v2463_v33 = vpop.f32.mrf.mxu0  ;;  %v2684_v23 = vpop.f32.mrf.mxu1  ;;  %v2995_v7 = vpack.c.bf16 %v2969_v13, %v2968_v30 }
 0x302   : > { %v2506_v32 = vadd.f32 %v2460_v38, %v2285_v28  ;;  %v3410_v28 = vld [vmem:[#allocation2 + $0xaa] sm:$0xff] }
 0x303   : > { %v8172_v37 = vpop.f32.mrf.mxu2  ;;  %v3437_v27 = vpack.c.bf16 %v3411_v43, %v3410_v28  ;;  %v2970_v28 = vld [vmem:[#allocation2 + $0xc0] sm:$0xff] }
 0x304   : > { %v8170_v59 = vadd.f32 %v2681_v14, %v2506_v32  ;;  %9246 = vst [vmem:[#allocation31_spill] sm:$0xff] %v8172_v37 }
 0x307   : > { %v2242_v22 = vpop.f32.mrf.mxu3 }
 0x308   : > { %v2286_v8 = vadd.f32 %v2242_v22, %v7921_v18  ;;  %v2465_v29 = vpop.f32.mrf.mxu0  ;;  %v2686_v49 = vpop.f32.mrf.mxu1  ;;  %6610 = vmatmul.msk.bf16.gmra.mxu0 %vm280_vm1, %v3216_v34  ;;  %v3191_v34 = vld [vmem:[#allocation2 + $0xc1] sm:$0xff] }
 0x309   : > { %6594 = vmatmul.msk.bf16.gmra.mxu3 %vm280_vm1, %v2995_v7  ;;  %v2971_v7 = vld [vmem:[#allocation2 + $0xc8] sm:$0xff] }
 0x30a   : > { %v2507_v19 = vadd.f32 %v2463_v33, %v2286_v8  ;;  %v3192_v33 = vld [vmem:[#allocation2 + $0xc9] sm:$0xff] }
 0x30b   : > { %v2905_v24 = vpop.f32.mrf.mxu2 }
 0x30c   : > { %v2728_v38 = vadd.f32 %v2684_v23, %v2507_v19  ;;  %v3217_v19 = vpack.c.bf16 %v3192_v33, %v3191_v34 }
 0x30e   : > { %v8176_v14 = vadd.f32 %v2905_v24, %v2728_v38 }
 0x30f   : > { %v2244_v32 = vpop.f32.mrf.mxu3  ;;  %6626 = vmatmul.msk.bf16.gmra.mxu1 %vm280_vm1, %v3437_v27  ;;  %v3413_v27 = vld [vmem:[#allocation2 + $0xca] sm:$0xff] }
 0x310   : > { %v2287_v11 = vadd.f32 %v2244_v32, %v7935_v41  ;;  %v2468_v37 = vpop.f32.mrf.mxu0  ;;  %v2689_v18 = vpop.f32.mrf.mxu1  ;;  %v2996_v32 = vpack.c.bf16 %v2971_v7, %v2970_v28 }
 0x312   : > { %v2508_v22 = vadd.f32 %v2465_v29, %v2287_v11  ;;  %v3412_v11 = vld [vmem:[#allocation2 + $0xc2] sm:$0xff] }
 0x313   : > { %v8183_v8 = vpop.f32.mrf.mxu2  ;;  %v3438_v33 = vpack.c.bf16 %v3413_v27, %v3412_v11  ;;  %v2972_v11 = vld [vmem:[#allocation2 + $0xd8] sm:$0xff] }
 0x314   : > { %v8181_v23 = vadd.f32 %v2686_v49, %v2508_v22  ;;  %9247 = vst [vmem:[#allocation32_spill] sm:$0xff] %v8183_v8 }
 0x317   : > { %v2247_v30 = vpop.f32.mrf.mxu3 }
 0x318   : > { %v2288_v13 = vadd.f32 %v2247_v30, %v7948_v60  ;;  %v2470_v38 = vpop.f32.mrf.mxu0  ;;  %v2691_v41 = vpop.f32.mrf.mxu1  ;;  %6611 = vmatmul.msk.bf16.gmra.mxu0 %vm280_vm1, %v3217_v19  ;;  %v3193_v19 = vld [vmem:[#allocation2 + $0xd9] sm:$0xff] }
 0x319   : > { %6595 = vmatmul.msk.bf16.gmra.mxu3 %vm280_vm1, %v2996_v32  ;;  %v2973_v32 = vld [vmem:[#allocation2 + $0xe0] sm:$0xff] }
 0x31a   : > { %v2509_v24 = vadd.f32 %v2468_v37, %v2288_v13  ;;  %v3194_v37 = vld [vmem:[#allocation2 + $0xe1] sm:$0xff] }
 0x31b   : > { %v2910_v43 = vpop.f32.mrf.mxu2 }
 0x31c   : > { %v2730_v29 = vadd.f32 %v2689_v18, %v2509_v24  ;;  %v3218_v24 = vpack.c.bf16 %v3194_v37, %v3193_v19 }
 0x31e   : > { %v8187_v49 = vadd.f32 %v2910_v43, %v2730_v29 }
 0x31f   : > { %v2249_v22 = vpop.f32.mrf.mxu3  ;;  %6627 = vmatmul.msk.bf16.gmra.mxu1 %vm280_vm1, %v3438_v33  ;;  %v3415_v33 = vld [vmem:[#allocation2 + $0xe2] sm:$0xff] }
 0x320   : > { %v2289_v34 = vadd.f32 %v2249_v22, %v7961_v50  ;;  %v2473_v8 = vpop.f32.mrf.mxu0  ;;  %v2694_v60 = vpop.f32.mrf.mxu1  ;;  %v2997_v22 = vpack.c.bf16 %v2973_v32, %v2972_v11  ;;  %v4353_v11 = vld [vmem:[#allocation2 + $0x1] sm:$0xff]  ;;  %v4354_v32 = vld [vmem:[#allocation2 + $0x9] sm:$0xff] }
 0x322   : > { %v2510_v30 = vadd.f32 %v2470_v38, %v2289_v34  ;;  %v3414_v34 = vld [vmem:[#allocation2 + $0xda] sm:$0xff] }
 0x323   : > { %v8194_v13 = vpop.f32.mrf.mxu2 }
 0x324   : > { %v8192_v18 = vadd.f32 %v2691_v41, %v2510_v30  ;;  %9249 = vst [vmem:[#allocation34_spill] sm:$0xff] %v8194_v13  ;;  %v6928_v30 = vld [vmem:[#allocation2 + $0x19] sm:$0xff] }
 0x325   : > { %v4016_v19 = vadd.f32 %v6928_v30, %v7684_v2 }
 0x326   : > { %9248 = vst [vmem:[#allocation33_spill] sm:$0xff] %v8192_v18 }
 0x327   : > { %v2252_v28 = vpop.f32.mrf.mxu3 }
 0x328   : > { %v2290_v7 = vadd.f32 %v2252_v28, %v7975_v57  ;;  %v2475_v29 = vpop.f32.mrf.mxu0  ;;  %v2696_v50 = vpop.f32.mrf.mxu1  ;;  %6612 = vmatmul.msk.bf16.gmra.mxu0 %vm280_vm1, %v3218_v24  ;;  %v3439_v28 = vpack.c.bf16 %v3415_v33, %v3414_v34  ;;  %v3195_v24 = vld [vmem:[#allocation2 + $0xf1] sm:$0xff]  ;;  %v6929_v34 = vld [vmem:[#allocation2 + $0x21] sm:$0xff] }
 0x329   : > { %6596 = vmatmul.msk.bf16.gmra.mxu3 %vm280_vm1, %v2997_v22  ;;  %v4017_v33 = vadd.f32 %v6929_v34, %v7690_v47 }
 0x32a   : > { %v2511_v43 = vadd.f32 %v2473_v8, %v2290_v7  ;;  %v4048_v7 = vadd.f32 1e-08, %v4016_v19 }
 0x32b   : > { %v2915_v27 = vpop.f32.mrf.mxu2 }
 0x32c   : > { %v2732_v38 = vadd.f32 %v2694_v60, %v2511_v43  ;;  %v3196_v60 = vld [vmem:[#allocation2 + $0xf9] sm:$0xff] }
 0x32d   : > { %v3219_v2 = vpack.c.bf16 %v3196_v60, %v3195_v24  ;;  %v4352_v60 = vld [vmem:[%s9194_s5] sm:$0xf] }
 0x32e   : > { %v8198_v41 = vadd.f32 %v2915_v27, %v2732_v38  ;;  %v4385_v27 = vpack.c.bf16 %v4354_v32, %v4353_v11  ;;  %v3416_v11 = vld [vmem:[#allocation2 + $0xf2] sm:$0xff]  ;;  %v3417_v32 = vld [vmem:[#allocation2 + $0xfa] sm:$0xff] }
 0x32f   : > { %v2254_v37 = vpop.f32.mrf.mxu3  ;;  %6628 = vmatmul.msk.bf16.gmra.mxu1 %vm280_vm1, %v3439_v28 }
 0x330   : > { %v2291_v57 = vadd.f32 %v2254_v37, %v7990_v39  ;;  %v2478_v13 = vpop.f32.mrf.mxu0  ;;  %v2699_v18 = vpop.f32.mrf.mxu1  ;;  %v4080_v39 = vsub.f32 0.0, %v4048_v7  ;;  %6637 = vmatmul.msk.bf16.vlgmr.msra.gmra.mxu2 %vm280_vm1, %v4385_v27  ;;  %v2974_v37 = vld [vmem:[#allocation2 + $0xf0] sm:$0xff] }
 0x331   : > { %v6930_v27 = vld [vmem:[#allocation2 + $0x31] sm:$0xff] }
 0x332   : > { %v2512_v8 = vadd.f32 %v2475_v29, %v2291_v57  ;;  %v2975_v57 = vld [vmem:[#allocation2 + $0xf8] sm:$0xff]  ;;  %v4112_v28 = vmul.f32 1.442695, %v4080_v39  ;;  %v4018_v34 = vadd.f32 %v6930_v27, %v7709_v44 }
 0x333   : > { %v8206_v38 = vpop.f32.mrf.mxu2  ;;  %v2998_v7 = vpack.c.bf16 %v2975_v57, %v2974_v37 }
 0x334   : > { %v8204_v43 = vadd.f32 %v2696_v50, %v2512_v8  ;;  %v4049_v8 = vadd.f32 1e-08, %v4017_v33  ;;  %6800 = vpow2.f32 %v4112_v28  ;;  %v4050_v44 = vadd.f32 1e-08, %v4018_v34 }
 0x336   : > { %v4082_v34 = vsub.f32 0.0, %v4050_v44  ;;  %v2976_v44 = vld [vmem:[#allocation2 + $0x108] sm:$0xff] }
 0x337   : > { %v2257_v30 = vpop.f32.mrf.mxu3 }
 0x338   : > { %v2292_v29 = vadd.f32 %v2257_v30, %v8014_v58  ;;  %v2480_v22 = vpop.f32.mrf.mxu0  ;;  %v2701_v19 = vpop.f32.mrf.mxu1  ;;  %6613 = vmatmul.msk.bf16.gmra.mxu0 %vm280_vm1, %v3219_v2  ;;  %v4591_v58 = vsel %vm1142_vm0, %v4352_v60, 0 }
 0x339   : > { %4600 = vmatpush.bf16.msra.mxu3 %v4591_v58 }
 0x33a   : > { %v2513_v50 = vadd.f32 %v2478_v13, %v2292_v29  ;;  %v4081_v13 = vsub.f32 0.0, %v4049_v8  ;;  %v3440_v29 = vpack.c.bf16 %v3417_v32, %v3416_v11  ;;  %6597 = vmatmul.msk.bf16.gmra.mxu3 %vm280_vm1, %v2998_v7  ;;  %v3197_v8 = vld [vmem:[#allocation2 + $0x109] sm:$0xff]  ;;  %v6801_v60 = vpop.eup %6800  ;;  %v4951_v11 = vld [vmem:[%s9194_s5 + $0xc] sm:$0xf]  ;;  %v6931_v32 = vld [vmem:[#allocation2 + $0x39] sm:$0xff] }
 0x33b   : > { %v2920_v47 = vpop.f32.mrf.mxu2  ;;  %v4019_v7 = vadd.f32 %v6931_v32, %v7713_v31  ;;  %v5001_v27 = vsel %vm1142_vm0, %v4951_v11, 0  ;;  %v6932_v32 = vld [vmem:[#allocation2 + $0x49] sm:$0xff] }
 0x33c   : > { %v2734_v24 = vadd.f32 %v2699_v18, %v2513_v50  ;;  %v5172_v18 = vld [vmem:[%s9194_s5 + $0x10] sm:$0xf]  ;;  %v4114_v28 = vmul.f32 1.442695, %v4081_v13  ;;  %5010 = vmatpush.bf16.msrb.mxu1 %v5001_v27  ;;  %v4176_v13 = vadd.f32 1.0, %v6801_v60 }
 0x33d   : > { %v5222_v33 = vsel %vm1142_vm0, %v5172_v18, 0 }
 0x33e   : > { %v8217_v2 = vadd.f32 %v2920_v47, %v2734_v24  ;;  %5231 = vmatpush.bf16.msrb.mxu2 %v5222_v33  ;;  %v3198_v24 = vld [vmem:[#allocation2 + $0x111] sm:$0xff]  ;;  %6802 = vpow2.f32 %v4114_v28 }
 0x33f   : > { %v2259_v39 = vpop.f32.mrf.mxu3  ;;  %6629 = vmatmul.msk.bf16.gmra.mxu1 %vm280_vm1, %v3440_v29  ;;  %v4116_v29 = vmul.f32 1.442695, %v4082_v34  ;;  %v2977_v28 = vld [vmem:[#allocation2 + $0x110] sm:$0xff]  ;;  %6804 = vrcp.f32 %v4176_v13 }
 0x340   : > { %v2293_v30 = vadd.f32 %v2259_v39, %v8025_v10  ;;  %v3288_v50 = vpop.f32.mrf.mxu0  ;;  %v3509_v37 = vpop.f32.mrf.mxu1  ;;  %v4730_v10 = vld [vmem:[%s9194_s5 + $0x8] sm:$0xf]  ;;  %v4051_v39 = vadd.f32 1e-08, %v4019_v7  ;;  %v2999_v60 = vpack.c.bf16 %v2977_v28, %v2976_v44  ;;  %v4020_v7 = vadd.f32 %v6932_v32, %v7725_v42  ;;  %v3200_v28 = vld [vmem:[#allocation2 + $0x129] sm:$0xff] }
 0x341   : > { %v4780_v58 = vsel %vm1142_vm0, %v4730_v10, 0  ;;  %v3418_v10 = vld [vmem:[#allocation2 + $0x10a] sm:$0xff]  ;;  %6806 = vpow2.f32 %v4116_v29  ;;  %v3199_v44 = vld [vmem:[#allocation2 + $0x121] sm:$0xff] }
 0x342   : > { %v2514_v57 = vadd.f32 %v2480_v22, %v2293_v30  ;;  %v3220_v22 = vpack.c.bf16 %v3198_v24, %v3197_v8  ;;  %4789 = vmatpush.bf16.msra.mxu0 %v4780_v58  ;;  %v4083_v11 = vsub.f32 0.0, %v4051_v39 }
 0x344   : > { %v8226_v47 = vadd.f32 %v2701_v19, %v2514_v57  ;;  %v8242_v57 = vld [vmem:[%s9193_s4] ss:$0 sm:$0xff]  ;;  %v6803_v8 = vpop.eup %6802 }
 0x345   : > { %v4177_v58 = vadd.f32 1.0, %v6803_v8 }
 0x346   : > { %9250 = vst [vmem:[#allocation35_spill] sm:$0xff] %v8226_v47 }
 0x347   : > { %v3067_v19 = vpop.f32.mrf.mxu3  ;;  %6808 = vrcp.f32 %v4177_v58 }
 0x348   : > { %v3147_v18 = vadd.f32 %v3067_v19, %v8034_v25  ;;  %v3290_v33 = vpop.f32.mrf.mxu0  ;;  %v3511_v30 = vpop.f32.mrf.mxu1  ;;  %6614 = vmatmul.msk.bf16.gmra.mxu0 %vm280_vm1, %v3220_v22  ;;  %v3419_v25 = vld [vmem:[#allocation2 + $0x112] sm:$0xff] }
 0x349   : > { %v3441_v19 = vpack.c.bf16 %v3419_v25, %v3418_v10 }
 0x34a   : > { %v3368_v31 = vadd.f32 %v3288_v50, %v3147_v18  ;;  %v6805_v18 = vpop.eup %6804  ;;  %6598 = vmatmul.msk.bf16.gmra.mxu3 %vm280_vm1, %v2999_v60 }
 0x34b   : > { %v6807_v42 = vpop.eup %6806 }
 0x34c   : > { %v3589_v24 = vadd.f32 %v3509_v37, %v3368_v31  ;;  %v4118_v37 = vmul.f32 1.442695, %v4083_v11  ;;  %v4052_v31 = vadd.f32 1e-08, %v4020_v7  ;;  %v4178_v11 = vadd.f32 1.0, %v6807_v42  ;;  %v9251_v42 = vld [vmem:[#allocation4_spill] sm:$0xff] }
 0x34e   : > { %v3625_v50 = vadd.f32 %v8242_v57, %v3589_v24  ;;  %6810 = vpow2.f32 %v4118_v37  ;;  %v6933_v24 = vld [vmem:[#allocation2 + $0x51] sm:$0xff]  ;;  %v4084_v25 = vsub.f32 0.0, %v4052_v31  ;;  %v2979_v37 = vld [vmem:[#allocation2 + $0x128] sm:$0xff] }
 0x34f   : > { %v3069_v22 = vpop.f32.mrf.mxu3  ;;  %6630 = vmatmul.msk.bf16.gmra.mxu1 %vm280_vm1, %v3441_v19  ;;  %v4021_v10 = vadd.f32 %v6933_v24, %v7733_v5  ;;  %6812 = vrcp.f32 %v4178_v11 }
 0x350   : > { %v3657_v27 = vmax.f32 %v3625_v50, 0.0  ;;  %v3148_v34 = vadd.f32 %v3069_v22, %v8039_v12  ;;  %v3293_v13 = vpop.f32.mrf.mxu0  ;;  %v3514_v47 = vpop.f32.mrf.mxu1  ;;  %v3221_v12 = vpack.c.bf16 %v3200_v28, %v3199_v44  ;;  %v3421_v44 = vld [vmem:[#allocation2 + $0x12a] sm:$0xff]  ;;  %v6934_v28 = vld [vmem:[#allocation2 + $0x61] sm:$0xff] }
 0x351   : > { %v6809_v50 = vpop.eup %6808 }
 0x352   : > { %v4240_v39 = vmul.f32 %v6805_v18, %v3657_v27  ;;  %v3369_v29 = vadd.f32 %v3290_v33, %v3148_v34  ;;  %v4120_v27 = vmul.f32 1.442695, %v4084_v25  ;;  %v2978_v18 = vld [vmem:[#allocation2 + $0x120] sm:$0xff] }
 0x354   : > { %4272 = vst.msk [vmem:[#allocation2 + $0x19] sm:$0xff] %vm280_vm1, %v4240_v39  ;;  %v3590_v8 = vadd.f32 %v3511_v30, %v3369_v29  ;;  %v4053_v30 = vadd.f32 1e-08, %v4021_v10  ;;  %v6811_v5 = vpop.eup %6810  ;;  %v3000_v39 = vpack.c.bf16 %v2979_v37, %v2978_v18  ;;  %v3420_v29 = vld [vmem:[#allocation2 + $0x122] sm:$0xff]  ;;  %6814 = vpow2.f32 %v4120_v27  ;;  %v3201_v27 = vld [vmem:[#allocation2 + $0x139] sm:$0xff] }
 0x355   : > { %v4179_v24 = vadd.f32 1.0, %v6811_v5  ;;  %v6813_v11 = vpop.eup %6812 }
 0x356   : > { %v3626_v60 = vadd.f32 %v8242_v57, %v3590_v8  ;;  %v4022_v8 = vadd.f32 %v6934_v28, %v9251_v42 }
 0x357   : > { %v3072_v32 = vpop.f32.mrf.mxu3  ;;  %6816 = vrcp.f32 %v4179_v24 }
 0x358   : > { %v3658_v33 = vmax.f32 %v3626_v60, 0.0  ;;  %v3149_v7 = vadd.f32 %v3072_v32, %v8044_v61  ;;  %v3295_v22 = vpop.f32.mrf.mxu0  ;;  %v3516_v58 = vpop.f32.mrf.mxu1  ;;  %6615 = vmatmul.msk.bf16.gmra.mxu0 %vm280_vm1, %v3221_v12  ;;  %v4085_v61 = vsub.f32 0.0, %v4053_v30  ;;  %v3442_v60 = vpack.c.bf16 %v3421_v44, %v3420_v29  ;;  %v6935_v29 = vld [vmem:[#allocation2 + $0x69] sm:$0xff] }
 0x35a   : > { %v4241_v34 = vmul.f32 %v6809_v50, %v3658_v33  ;;  %v3370_v19 = vadd.f32 %v3293_v13, %v3149_v7  ;;  %6599 = vmatmul.msk.bf16.gmra.mxu3 %vm280_vm1, %v3000_v39  ;;  %v4054_v7 = vadd.f32 1e-08, %v4022_v8  ;;  %v6815_v37 = vpop.eup %6814  ;;  %v9252_v39 = vld [vmem:[#allocation5_spill] sm:$0xff] }
 0x35b   : > { %v4023_v44 = vadd.f32 %v6935_v29, %v9252_v39  ;;  %v4180_v28 = vadd.f32 1.0, %v6815_v37  ;;  %v9253_v37 = vld [vmem:[#allocation6_spill] sm:$0xff] }
 0x35c   : > { %4273 = vst.msk [vmem:[#allocation2 + $0x21] sm:$0xff] %vm280_vm1, %v4241_v34  ;;  %v3591_v31 = vadd.f32 %v3514_v47, %v3370_v19  ;;  %v4122_v47 = vmul.f32 1.442695, %v4085_v61  ;;  %v3202_v34 = vld [vmem:[#allocation2 + $0x141] sm:$0xff]  ;;  %v4355_v19 = vld [vmem:[#allocation2 + $0x19] sm:$0xff]  ;;  %v4086_v61 = vsub.f32 0.0, %v4054_v7 }
 0x35d   : > { %v6817_v24 = vpop.eup %6816  ;;  %v2981_v7 = vld [vmem:[#allocation2 + $0x140] sm:$0xff] }
 0x35e   : > { %v3627_v12 = vadd.f32 %v8242_v57, %v3591_v31  ;;  %v3222_v31 = vpack.c.bf16 %v3202_v34, %v3201_v27  ;;  %6818 = vpow2.f32 %v4122_v47  ;;  %v2980_v47 = vld [vmem:[#allocation2 + $0x138] sm:$0xff] }
 0x35f   : > { %v3074_v10 = vpop.f32.mrf.mxu3  ;;  %6631 = vmatmul.msk.bf16.gmra.mxu1 %vm280_vm1, %v3442_v60  ;;  %6820 = vrcp.f32 %v4180_v28  ;;  %v3001_v27 = vpack.c.bf16 %v2981_v7, %v2980_v47  ;;  %v3422_v34 = vld [vmem:[#allocation2 + $0x13a] sm:$0xff] }
 0x360   : > { %v3659_v13 = vmax.f32 %v3627_v12, 0.0  ;;  %v3150_v25 = vadd.f32 %v3074_v10, %v8049_v63  ;;  %v3298_v32 = vpop.f32.mrf.mxu0  ;;  %v3519_v33 = vpop.f32.mrf.mxu1 }
 0x362   : > { %v4242_v50 = vmul.f32 %v6813_v11, %v3659_v13  ;;  %v3371_v30 = vadd.f32 %v3295_v22, %v3150_v25  ;;  %v4055_v13 = vadd.f32 1e-08, %v4023_v44  ;;  %v4124_v25 = vmul.f32 1.442695, %v4086_v61 }
 0x363   : > { %v4356_v18 = vld [vmem:[#allocation2 + $0x21] sm:$0xff] }
 0x364   : > { %4274 = vst.msk [vmem:[#allocation2 + $0x31] sm:$0xff] %vm280_vm1, %v4242_v50  ;;  %v3592_v5 = vadd.f32 %v3516_v58, %v3371_v30  ;;  %v4386_v63 = vpack.c.bf16 %v4356_v18, %v4355_v19  ;;  %v6819_v50 = vpop.eup %6818  ;;  %v3423_v19 = vld [vmem:[#allocation2 + $0x142] sm:$0xff]  ;;  %6822 = vpow2.f32 %v4124_v25  ;;  %v6936_v18 = vld [vmem:[#allocation2 + $0x79] sm:$0xff] }
 0x365   : > { %v3443_v44 = vpack.c.bf16 %v3423_v19, %v3422_v34  ;;  %v6821_v61 = vpop.eup %6820 }
 0x366   : > { %v3628_v22 = vadd.f32 %v8242_v57, %v3592_v5  ;;  %6638 = vmatmul.msk.bf16.gmra.mxu2 %vm280_vm1, %v4386_v63  ;;  %v4024_v5 = vadd.f32 %v6936_v18, %v9253_v37 }
 0x367   : > { %v3077_v42 = vpop.f32.mrf.mxu3 }
 0x368   : > { %v3660_v8 = vmax.f32 %v3628_v22, 0.0  ;;  %v3151_v12 = vadd.f32 %v3077_v42, %v8054_v46  ;;  %v3300_v58 = vpop.f32.mrf.mxu0  ;;  %v3521_v10 = vpop.f32.mrf.mxu1  ;;  %6616 = vmatmul.msk.bf16.gmra.mxu0 %vm280_vm1, %v3222_v31  ;;  %v4087_v46 = vsub.f32 0.0, %v4055_v13  ;;  %v4181_v31 = vadd.f32 1.0, %v6819_v50  ;;  %v3204_v13 = vld [vmem:[#allocation2 + $0x159] sm:$0xff]  ;;  %v6937_v50 = vld [vmem:[#allocation2 + $0x81] sm:$0xff] }
 0x369   : > { %v4056_v42 = vadd.f32 1e-08, %v4024_v5 }
 0x36a   : > { %v4243_v60 = vmul.f32 %v6817_v24, %v3660_v8  ;;  %v3372_v11 = vadd.f32 %v3298_v32, %v3151_v12  ;;  %6600 = vmatmul.msk.bf16.gmra.mxu3 %vm280_vm1, %v3001_v27  ;;  %v3203_v24 = vld [vmem:[#allocation2 + $0x151] sm:$0xff]  ;;  %6824 = vrcp.f32 %v4181_v31 }
 0x36b   : > { %v4357_v25 = vld [vmem:[#allocation2 + $0x31] sm:$0xff]  ;;  %v3223_v7 = vpack.c.bf16 %v3204_v13, %v3203_v24  ;;  %v4088_v34 = vsub.f32 0.0, %v4056_v42  ;;  %v3425_v24 = vld [vmem:[#allocation2 + $0x15a] sm:$0xff] }
 0x36c   : > { %4275 = vst.msk [vmem:[#allocation2 + $0x39] sm:$0xff] %vm280_vm1, %v4243_v60  ;;  %v3593_v30 = vadd.f32 %v3519_v33, %v3372_v11  ;;  %v4126_v33 = vmul.f32 1.442695, %v4087_v46  ;;  %v6823_v11 = vpop.eup %6822  ;;  %v6938_v13 = vld [vmem:[#allocation2 + $0x91] sm:$0xff] }
 0x36d   : > { %v4182_v19 = vadd.f32 1.0, %v6823_v11 }
 0x36e   : > { %v3629_v63 = vadd.f32 %v8242_v57, %v3593_v30  ;;  %6826 = vpow2.f32 %v4126_v33  ;;  %v9254_v30 = vld [vmem:[#allocation7_spill] sm:$0xff] }
 0x36f   : > { %v3079_v29 = vpop.f32.mrf.mxu3  ;;  %6632 = vmatmul.msk.bf16.gmra.mxu1 %vm280_vm1, %v3443_v44  ;;  %v4025_v27 = vadd.f32 %v6937_v50, %v9254_v30  ;;  %v2982_v44 = vld [vmem:[#allocation2 + $0x150] sm:$0xff]  ;;  %6828 = vrcp.f32 %v4182_v19 }
 0x370   : > { %v3661_v32 = vmax.f32 %v3629_v63, 0.0  ;;  %v3152_v39 = vadd.f32 %v3079_v29, %v8059_v4  ;;  %v3303_v22 = vpop.f32.mrf.mxu0  ;;  %v3524_v28 = vpop.f32.mrf.mxu1  ;;  %v4128_v29 = vmul.f32 1.442695, %v4088_v34 }
 0x371   : > { %v6825_v5 = vpop.eup %6824  ;;  %v4057_v31 = vadd.f32 1e-08, %v4025_v27 }
 0x372   : > { %v4244_v8 = vmul.f32 %v6821_v61, %v3661_v32  ;;  %v3373_v12 = vadd.f32 %v3300_v58, %v3152_v39  ;;  %v2983_v61 = vld [vmem:[#allocation2 + $0x158] sm:$0xff]  ;;  %6830 = vpow2.f32 %v4128_v29 }
 0x373   : > { %v4358_v60 = vld [vmem:[#allocation2 + $0x39] sm:$0xff] }
 0x374   : > { %4276 = vst.msk [vmem:[#allocation2 + $0x49] sm:$0xff] %vm280_vm1, %v4244_v8  ;;  %v3594_v47 = vadd.f32 %v3521_v10, %v3373_v12  ;;  %v4387_v4 = vpack.c.bf16 %v4358_v60, %v4357_v25  ;;  %v6827_v33 = vpop.eup %6826  ;;  %v3002_v8 = vpack.c.bf16 %v2983_v61, %v2982_v44  ;;  %v3424_v12 = vld [vmem:[#allocation2 + $0x152] sm:$0xff] }
 0x375   : > { %v9255_v25 = vld [vmem:[#allocation8_spill] sm:$0xff]  ;;  %v3444_v50 = vpack.c.bf16 %v3425_v24, %v3424_v12  ;;  %v6829_v30 = vpop.eup %6828  ;;  %v9256_v44 = vld [vmem:[#allocation9_spill] sm:$0xff] }
 0x376   : > { %v3630_v58 = vadd.f32 %v8242_v57, %v3594_v47  ;;  %6639 = vmatmul.msk.bf16.gmra.mxu2 %vm280_vm1, %v4387_v4  ;;  %v4026_v60 = vadd.f32 %v6938_v13, %v9255_v25  ;;  %v4183_v47 = vadd.f32 1.0, %v6827_v33 }
 0x377   : > { %v3082_v46 = vpop.f32.mrf.mxu3 }
 0x378   : > { %v3662_v18 = vmax.f32 %v3630_v58, 0.0  ;;  %v3153_v37 = vadd.f32 %v3082_v46, %v8064_v51  ;;  %v3305_v10 = vpop.f32.mrf.mxu0  ;;  %v3526_v63 = vpop.f32.mrf.mxu1  ;;  %6617 = vmatmul.msk.bf16.gmra.mxu0 %vm280_vm1, %v3223_v7  ;;  %v4089_v51 = vsub.f32 0.0, %v4057_v31  ;;  %v4058_v58 = vadd.f32 1e-08, %v4026_v60 }
 0x379   : > { %6832 = vrcp.f32 %v4183_v47  ;;  %v6831_v29 = vpop.eup %6830 }
 0x37a   : > { %v4245_v32 = vmul.f32 %v6825_v5, %v3662_v18  ;;  %v3374_v39 = vadd.f32 %v3303_v22, %v3153_v37  ;;  %6601 = vmatmul.msk.bf16.gmra.mxu3 %vm280_vm1, %v3002_v8  ;;  %v3205_v18 = vld [vmem:[#allocation2 + $0x169] sm:$0xff]  ;;  %v3206_v37 = vld [vmem:[#allocation2 + $0x171] sm:$0xff]  ;;  %v4184_v8 = vadd.f32 1.0, %v6831_v29 }
 0x37b   : > { %v4359_v5 = vld [vmem:[#allocation2 + $0x49] sm:$0xff]  ;;  %v3224_v33 = vpack.c.bf16 %v3206_v37, %v3205_v18  ;;  %v2934_v18 = vadd.f32 %v8081_v21, %v8079_v1 }
 0x37c   : > { %4277 = vst.msk [vmem:[#allocation2 + $0x51] sm:$0xff] %vm280_vm1, %v4245_v32  ;;  %v3595_v42 = vadd.f32 %v3524_v28, %v3374_v39  ;;  %v4130_v28 = vmul.f32 1.442695, %v4089_v51  ;;  %v6939_v39 = vld [vmem:[#allocation2 + $0x99] sm:$0xff] }
 0x37d   : > { %v4027_v61 = vadd.f32 %v6939_v39, %v9256_v44 }
 0x37e   : > { %v3631_v11 = vadd.f32 %v8242_v57, %v3595_v42  ;;  %6834 = vpow2.f32 %v4130_v28  ;;  %v4090_v42 = vsub.f32 0.0, %v4058_v58 }
 0x37f   : > { %v3084_v4 = vpop.f32.mrf.mxu3  ;;  %6633 = vmatmul.msk.bf16.gmra.mxu1 %vm280_vm1, %v3444_v50  ;;  %v6833_v13 = vpop.eup %6832  ;;  %6836 = vrcp.f32 %v4184_v8 }
 0x380   : > { %v3663_v22 = vmax.f32 %v3631_v11, 0.0  ;;  %v3154_v7 = vadd.f32 %v3084_v4, %v8069_v36  ;;  %v3308_v27 = vpop.f32.mrf.mxu0  ;;  %v3529_v34 = vpop.f32.mrf.mxu1  ;;  %v4132_v11 = vmul.f32 1.442695, %v4090_v42  ;;  %v3207_v42 = vld [vmem:[#allocation2 + $0x181] sm:$0xff] }
 0x382   : > { %v4246_v19 = vmul.f32 %v6829_v30, %v3663_v22  ;;  %v3375_v46 = vadd.f32 %v3305_v10, %v3154_v7  ;;  %v2984_v22 = vld [vmem:[#allocation2 + $0x168] sm:$0xff]  ;;  %v2985_v7 = vld [vmem:[#allocation2 + $0x170] sm:$0xff]  ;;  %6838 = vpow2.f32 %v4132_v11 }
 0x383   : > { %v4360_v31 = vld [vmem:[#allocation2 + $0x51] sm:$0xff]  ;;  %v3003_v58 = vpack.c.bf16 %v2985_v7, %v2984_v22 }
 0x384   : > { %4278 = vst.msk [vmem:[#allocation2 + $0x61] sm:$0xff] %vm280_vm1, %v4246_v19  ;;  %v3596_v32 = vadd.f32 %v3526_v63, %v3375_v46  ;;  %v4388_v36 = vpack.c.bf16 %v4360_v31, %v4359_v5  ;;  %v4059_v63 = vadd.f32 1e-08, %v4027_v61  ;;  %v6835_v50 = vpop.eup %6834  ;;  %v9257_v19 = vld [vmem:[#allocation10_spill] sm:$0xff] }
 0x385   : > { %v4185_v5 = vadd.f32 1.0, %v6835_v50 }
 0x386   : > { %v3632_v10 = vadd.f32 %v8242_v57, %v3596_v32  ;;  %6640 = vmatmul.msk.bf16.gmra.mxu2 %vm280_vm1, %v4388_v36  ;;  %v4091_v28 = vsub.f32 0.0, %v4059_v63  ;;  %v6837_v32 = vpop.eup %6836 }
 0x387   : > { %v3087_v12 = vpop.f32.mrf.mxu3  ;;  %6840 = vrcp.f32 %v4185_v5 }
 0x388   : > { %v3664_v24 = vmax.f32 %v3632_v10, 0.0  ;;  %v3155_v51 = vadd.f32 %v3087_v12, %v8074_v52  ;;  %v3310_v25 = vpop.f32.mrf.mxu0  ;;  %v3531_v60 = vpop.f32.mrf.mxu1  ;;  %6618 = vmatmul.msk.bf16.gmra.mxu0 %vm280_vm1, %v3224_v33  ;;  %v6940_v52 = vld [vmem:[#allocation2 + $0xa9] sm:$0xff] }
 0x389   : > { %v4028_v46 = vadd.f32 %v6940_v52, %v9257_v19  ;;  %v3208_v10 = vld [vmem:[#allocation2 + $0x189] sm:$0xff]  ;;  %v6839_v21 = vpop.eup %6838 }
 0x38a   : > { %v4247_v47 = vmul.f32 %v6833_v13, %v3664_v24  ;;  %v3376_v4 = vadd.f32 %v3308_v27, %v3155_v51  ;;  %6602 = vmatmul.msk.bf16.gmra.mxu3 %vm280_vm1, %v3003_v58  ;;  %v6941_v51 = vld [vmem:[#allocation2 + $0xb1] sm:$0xff]  ;;  %v9258_v13 = vld [vmem:[#allocation11_spill] sm:$0xff]  ;;  %v3225_v11 = vpack.c.bf16 %v3208_v10, %v3207_v42 }
 0x38b   : > { %v4060_v44 = vadd.f32 1e-08, %v4028_v46  ;;  %v4361_v8 = vld [vmem:[#allocation2 + $0x61] sm:$0xff]  ;;  %v4029_v63 = vadd.f32 %v6941_v51, %v9258_v13  ;;  %v3209_v51 = vld [vmem:[#allocation2 + $0x199] sm:$0xff] }
 0x38c   : > { %4279 = vst.msk [vmem:[#allocation2 + $0x69] sm:$0xff] %vm280_vm1, %v4247_v47  ;;  %v3597_v30 = vadd.f32 %v3529_v34, %v3376_v4  ;;  %v4134_v34 = vmul.f32 1.442695, %v4091_v28  ;;  %v4186_v4 = vadd.f32 1.0, %v6839_v21  ;;  %v2986_v46 = vld [vmem:[#allocation2 + $0x180] sm:$0xff] }
 0x38d   : > { %v4092_v47 = vsub.f32 0.0, %v4060_v44  ;;  %v3210_v13 = vld [vmem:[#allocation2 + $0x1a1] sm:$0xff] }
 0x38e   : > { %v3633_v37 = vadd.f32 %v8242_v57, %v3597_v30  ;;  %6842 = vpow2.f32 %v4134_v34  ;;  %v4061_v30 = vadd.f32 1e-08, %v4029_v63  ;;  %v2936_v34 = vadd.f32 %v8093_v56, %v8091_v55 }
 0x38f   : > { %v3089_v27 = vpop.f32.mrf.mxu3  ;;  %6634 = vmatmul.msk.bf16.gmra.mxu1 %vm280_vm1, %v8095_v40  ;;  %v4136_v58 = vmul.f32 1.442695, %v4092_v47  ;;  %6844 = vrcp.f32 %v4186_v4  ;;  %v9260_v4 = vld [vmem:[#allocation13_spill] sm:$0xff] }
 0x390   : > { %v3665_v31 = vmax.f32 %v3633_v37, 0.0  ;;  %v3156_v29 = vadd.f32 %v3089_v27, %v2934_v18  ;;  %v3313_v36 = vpop.f32.mrf.mxu0  ;;  %v3534_v39 = vpop.f32.mrf.mxu1  ;;  %v2987_v18 = vld [vmem:[#allocation2 + $0x188] sm:$0xff]  ;;  %v4093_v27 = vsub.f32 0.0, %v4061_v30 }
 0x391   : > { %6846 = vpow2.f32 %v4136_v58 }
 0x392   : > { %v4248_v61 = vmul.f32 %v6837_v32, %v3665_v31  ;;  %v3377_v33 = vadd.f32 %v3310_v25, %v3156_v29  ;;  %v3004_v31 = vpack.c.bf16 %v2987_v18, %v2986_v46  ;;  %v9259_v29 = vld [vmem:[#allocation12_spill] sm:$0xff] }
 0x393   : > { %v4362_v1 = vld [vmem:[#allocation2 + $0x69] sm:$0xff] }
 0x394   : > { %4280 = vst.msk [vmem:[#allocation2 + $0x79] sm:$0xff] %vm280_vm1, %v4248_v61  ;;  %v3598_v12 = vadd.f32 %v3531_v60, %v3377_v33  ;;  %v4389_v24 = vpack.c.bf16 %v4362_v1, %v4361_v8  ;;  %v6841_v60 = vpop.eup %6840 }
 0x395   : > { %v6843_v37 = vpop.eup %6842 }
 0x396   : > { %v3634_v25 = vadd.f32 %v8242_v57, %v3598_v12  ;;  %6641 = vmatmul.msk.bf16.gmra.mxu2 %vm280_vm1, %v4389_v24  ;;  %v4187_v61 = vadd.f32 1.0, %v6843_v37  ;;  %v6845_v10 = vpop.eup %6844 }
 0x397   : > { %v3092_v22 = vpop.f32.mrf.mxu3  ;;  %v6847_v56 = vpop.eup %6846 }
 0x398   : > { %v3666_v7 = vmax.f32 %v3634_v25, 0.0  ;;  %v3157_v50 = vadd.f32 %v3092_v22, %v8086_v54  ;;  %v3315_v28 = vpop.f32.mrf.mxu0  ;;  %v3536_v40 = vpop.f32.mrf.mxu1  ;;  %6619 = vmatmul.msk.bf16.gmra.mxu0 %vm280_vm1, %v3225_v11  ;;  %v6942_v54 = vld [vmem:[#allocation2 + $0xc1] sm:$0xff]  ;;  %6848 = vrcp.f32 %v4187_v61  ;;  %v6943_v25 = vld [vmem:[#allocation2 + $0xc9] sm:$0xff]  ;;  %v4188_v30 = vadd.f32 1.0, %v6847_v56  ;;  %v6944_v61 = vld [vmem:[#allocation2 + $0xd9] sm:$0xff] }
 0x399   : > { %v4030_v32 = vadd.f32 %v6942_v54, %v9259_v29  ;;  %v4031_v22 = vadd.f32 %v6943_v25, %v9260_v4  ;;  %v4682_v4 = vld [vmem:[#allocation2 + $0x2] sm:$0xff] }
 0x39a   : > { %v4249_v52 = vmul.f32 %v6841_v60, %v3666_v7  ;;  %v3378_v19 = vadd.f32 %v3313_v36, %v3157_v50  ;;  %6603 = vmatmul.msk.bf16.gmra.mxu3 %vm280_vm1, %v3004_v31  ;;  %v3226_v7 = vpack.c.bf16 %v3210_v13, %v3209_v51  ;;  %v2989_v31 = vld [vmem:[#allocation2 + $0x1a0] sm:$0xff] }
 0x39b   : > { %v4062_v21 = vadd.f32 1e-08, %v4030_v32  ;;  %v4363_v63 = vld [vmem:[#allocation2 + $0x79] sm:$0xff] }
 0x39c   : > { %4281 = vst.msk [vmem:[#allocation2 + $0x81] sm:$0xff] %vm280_vm1, %v4249_v52  ;;  %v3599_v5 = vadd.f32 %v3534_v39, %v3378_v19  ;;  %v4138_v39 = vmul.f32 1.442695, %v4093_v27  ;;  %v4063_v19 = vadd.f32 1e-08, %v4031_v22  ;;  %v2988_v27 = vld [vmem:[#allocation2 + $0x198] sm:$0xff] }
 0x39d   : > { %v4094_v50 = vsub.f32 0.0, %v4062_v21  ;;  %v4683_v22 = vld [vmem:[#allocation2 + $0xa] sm:$0xff] }
 0x39e   : > { %v3635_v44 = vadd.f32 %v8242_v57, %v3599_v5  ;;  %6850 = vpow2.f32 %v4138_v39  ;;  %v4095_v32 = vsub.f32 0.0, %v4063_v19  ;;  %v4714_v19 = vpack.c.bf16 %v4683_v22, %v4682_v4  ;;  %v4903_v4 = vld [vmem:[#allocation2 + $0x18] sm:$0xff] }
 0x39f   : > { %v3094_v36 = vpop.f32.mrf.mxu3  ;;  %6635 = vmatmul.msk.bf16.gmra.mxu1 %vm280_vm1, %v8113_v26  ;;  %v4140_v18 = vmul.f32 1.442695, %v4094_v50  ;;  %6852 = vrcp.f32 %v4188_v30 }
 0x3a0   : > { %v3667_v33 = vmax.f32 %v3635_v44, 0.0  ;;  %v3158_v42 = vadd.f32 %v3094_v36, %v2936_v34  ;;  %v3318_v8 = vpop.f32.mrf.mxu0  ;;  %v3539_v1 = vpop.f32.mrf.mxu1  ;;  %v3005_v34 = vpack.c.bf16 %v2989_v31, %v2988_v27  ;;  %v3430_v44 = vld [vmem:[#allocation2 + $0x19a] sm:$0xff]  ;;  %v4142_v56 = vmul.f32 1.442695, %v4095_v32 }
 0x3a1   : > { %6854 = vpow2.f32 %v4140_v18  ;;  %v9261_v36 = vld [vmem:[#allocation14_spill] sm:$0xff] }
 0x3a2   : > { %v4250_v12 = vmul.f32 %v6845_v10, %v3667_v33  ;;  %v3379_v24 = vadd.f32 %v3315_v28, %v3158_v42  ;;  %v4032_v33 = vadd.f32 %v6944_v61, %v9261_v36  ;;  %v9262_v42 = vld [vmem:[#allocation28_spill] sm:$0xff]  ;;  %v9263_v10 = vld [vmem:[#allocation29_spill] sm:$0xff]  ;;  %v4304_v61 = vld [vmem:[#allocation2] sm:$0xff] }
 0x3a3   : > { %v4364_v55 = vld [vmem:[#allocation2 + $0x81] sm:$0xff]  ;;  %v2938_v39 = vadd.f32 %v9263_v10, %v9262_v42 }
 0x3a4   : > { %4282 = vst.msk [vmem:[#allocation2 + $0x91] sm:$0xff] %vm280_vm1, %v4250_v12  ;;  %v3600_v11 = vadd.f32 %v3536_v40, %v3379_v24  ;;  %v4390_v47 = vpack.c.bf16 %v4364_v55, %v4363_v63  ;;  %v6849_v40 = vpop.eup %6848  ;;  %v4305_v36 = vld [vmem:[#allocation2 + $0x8] sm:$0xff] }
 0x3a5   : > { %v6851_v54 = vpop.eup %6850 }
 0x3a6   : > { %v3636_v60 = vadd.f32 %v8242_v57, %v3600_v11  ;;  %6642 = vmatmul.msk.bf16.gmra.mxu2 %vm280_vm1, %v4390_v47  ;;  %v4189_v21 = vadd.f32 1.0, %v6851_v54  ;;  %v6853_v63 = vpop.eup %6852  ;;  %v4064_v11 = vadd.f32 1e-08, %v4032_v33 }
 0x3a7   : > { %v3097_v28 = vpop.f32.mrf.mxu3 }
 0x3a8   : > { %v3668_v58 = vmax.f32 %v3636_v60, 0.0  ;;  %v3159_v52 = vadd.f32 %v3097_v28, %v8101_v9  ;;  %v3320_v46 = vpop.f32.mrf.mxu0  ;;  %v3541_v26 = vpop.f32.mrf.mxu1  ;;  %6620 = vmatmul.msk.bf16.gmra.mxu0 %vm280_vm1, %v3226_v7  ;;  %v3431_v9 = vld [vmem:[#allocation2 + $0x1a2] sm:$0xff]  ;;  %6856 = vrcp.f32 %v4189_v21  ;;  %v4096_v18 = vsub.f32 0.0, %v4064_v11 }
 0x3a9   : > { %v3447_v13 = vpack.c.bf16 %v3431_v9, %v3430_v44  ;;  %v6855_v60 = vpop.eup %6854  ;;  %6858 = vpow2.f32 %v4142_v56 }
 0x3aa   : > { %v4251_v37 = vmul.f32 %v6849_v40, %v3668_v58  ;;  %v3380_v5 = vadd.f32 %v3318_v8, %v3159_v52  ;;  %6604 = vmatmul.msk.bf16.gmra.mxu3 %vm280_vm1, %v3005_v34  ;;  %v6945_v58 = vld [vmem:[#allocation2 + $0xe1] sm:$0xff]  ;;  %v4144_v34 = vmul.f32 1.442695, %v4096_v18  ;;  %v9266_v18 = vld [vmem:[#allocation17_spill] sm:$0xff] }
 0x3ab   : > { %v4365_v7 = vld [vmem:[#allocation2 + $0x91] sm:$0xff]  ;;  %v9264_v52 = vld [vmem:[#allocation15_spill] sm:$0xff] }
 0x3ac   : > { %4283 = vst.msk [vmem:[#allocation2 + $0x99] sm:$0xff] %vm280_vm1, %v4251_v37  ;;  %v3601_v29 = vadd.f32 %v3539_v1, %v3380_v5  ;;  %v4033_v40 = vadd.f32 %v6945_v58, %v9264_v52  ;;  %v4190_v37 = vadd.f32 1.0, %v6855_v60  ;;  %v4684_v52 = vld [vmem:[#allocation2 + $0x1a] sm:$0xff] }
 0x3ae   : > { %v3637_v8 = vadd.f32 %v8242_v57, %v3601_v29  ;;  %v6857_v54 = vpop.eup %6856  ;;  %6860 = vrcp.f32 %v4190_v37 }
 0x3af   : > { %v3099_v12 = vpop.f32.mrf.mxu3  ;;  %6636 = vmatmul.msk.bf16.gmra.mxu1 %vm280_vm1, %v3447_v13  ;;  %v6859_v33 = vpop.eup %6858  ;;  %6862 = vpow2.f32 %v4144_v34 }
 0x3b0   : > { %v3669_v24 = vmax.f32 %v3637_v8, 0.0  ;;  %v3160_v51 = vadd.f32 %v3099_v12, %v2938_v39  ;;  %v3323_v1 = vpop.f32.mrf.mxu0  ;;  %v3544_v55 = vpop.f32.mrf.mxu1  ;;  %v4336_v39 = vpack.c.bf16 %v4305_v36, %v4304_v61  ;;  %v9265_v8 = vld [vmem:[#allocation16_spill] sm:$0xff]  ;;  %v2940_v12 = vadd.f32 %v8126_v53, %v8124_v0 }
 0x3b2   : > { %v4252_v47 = vmul.f32 %v6853_v63, %v3669_v24  ;;  %v3381_v25 = vadd.f32 %v3320_v46, %v3160_v51  ;;  %v4191_v51 = vadd.f32 1.0, %v6859_v33  ;;  %v4904_v63 = vld [vmem:[#allocation2 + $0x20] sm:$0xff] }
 0x3b3   : > { %v4366_v50 = vld [vmem:[#allocation2 + $0x99] sm:$0xff]  ;;  %v4935_v60 = vpack.c.bf16 %v4904_v63, %v4903_v4  ;;  %v8352_v63 = vpop.f32.mrf.mxu2  ;;  %v4905_v4 = vld [vmem:[#allocation2 + $0x30] sm:$0xff] }
 0x3b4   : > { %4284 = vst.msk [vmem:[#allocation2 + $0xa9] sm:$0xff] %vm280_vm1, %v4252_v47  ;;  %v3602_v30 = vadd.f32 %v3541_v26, %v3381_v25  ;;  %v4391_v28 = vpack.c.bf16 %v4366_v50, %v4365_v7  ;;  %v4065_v26 = vadd.f32 1e-08, %v4033_v40  ;;  %v6861_v11 = vpop.eup %6860  ;;  %6864 = vrcp.f32 %v4191_v51  ;;  %v4685_v40 = vld [vmem:[#allocation2 + $0x22] sm:$0xff] }
 0x3b6   : > { %v3638_v46 = vadd.f32 %v8242_v57, %v3602_v30  ;;  %6643 = vmatmul.msk.bf16.gmra.mxu2 %vm280_vm1, %v4391_v28  ;;  %v4097_v10 = vsub.f32 0.0, %v4065_v26  ;;  %v6863_v30 = vpop.eup %6862 }
 0x3b7   : > { %v3102_v5 = vpop.f32.mrf.mxu3 }
 0x3b8   : > { %v3670_v27 = vmax.f32 %v3638_v46, 0.0  ;;  %v3161_v31 = vadd.f32 %v3102_v5, %v8120_v15  ;;  %v3325_v29 = vpop.f32.mrf.mxu0  ;;  %v3546_v32 = vpop.f32.mrf.mxu1  ;;  %6669 = vmatmul.msk.bf16.vlgmr.msra.gmra.mxu0 %vm280_vm1, %v4714_v19  ;;  %v6946_v15 = vld [vmem:[#allocation2 + $0xf1] sm:$0xff]  ;;  %v4146_v47 = vmul.f32 1.442695, %v4097_v10  ;;  %v6947_v19 = vld [vmem:[#allocation2 + $0xf9] sm:$0xff] }
 0x3b9   : > { %v4034_v21 = vadd.f32 %v6946_v15, %v9265_v8  ;;  %v4035_v46 = vadd.f32 %v6947_v19, %v9266_v18  ;;  %v6948_v15 = vld [vmem:[#allocation2 + $0x109] sm:$0xff]  ;;  %v9267_v8 = vld [vmem:[#allocation18_spill] sm:$0xff] }
 0x3ba   : > { %v4253_v44 = vmul.f32 %v6857_v54, %v3670_v27  ;;  %v3382_v9 = vadd.f32 %v3323_v1, %v3161_v31  ;;  %6653 = vmatmul.msk.bf16.vlgmr.msra.gmra.mxu3 %vm280_vm1, %v4336_v39  ;;  %6866 = vpow2.f32 %v4146_v47  ;;  %v4192_v27 = vadd.f32 1.0, %v6863_v30 }
 0x3bb   : > { %v4066_v22 = vadd.f32 1e-08, %v4034_v21  ;;  %v4367_v0 = vld [vmem:[#allocation2 + $0xa9] sm:$0xff]  ;;  %v8342_v54 = vpack.c.bf16 %v4685_v40, %v4684_v52  ;;  %v4067_v34 = vadd.f32 1e-08, %v4035_v46  ;;  %v2942_v21 = vadd.f32 %v8139_v6, %v8137_v48  ;;  %v6949_v52 = vld [vmem:[#allocation2 + $0x111] sm:$0xff] }
 0x3bc   : > { %4285 = vst.msk [vmem:[#allocation2 + $0xb1] sm:$0xff] %vm280_vm1, %v4253_v44  ;;  %v3603_v42 = vadd.f32 %v3544_v55, %v3382_v9  ;;  %6868 = vrcp.f32 %v4192_v27  ;;  %v9268_v40 = vld [vmem:[#allocation19_spill] sm:$0xff] }
 0x3bd   : > { %v4098_v37 = vsub.f32 0.0, %v4066_v22  ;;  %v4099_v39 = vsub.f32 0.0, %v4067_v34  ;;  %v4037_v19 = vadd.f32 %v6949_v52, %v9268_v40  ;;  %v9270_v52 = vld [vmem:[#allocation21_spill] sm:$0xff] }
 0x3be   : > { %v3639_v24 = vadd.f32 %v8242_v57, %v3603_v42 }
 0x3bf   : > { %v3104_v13 = vpop.f32.mrf.mxu3  ;;  %6685 = vmatmul.msk.bf16.vlgmr.msrb.gmra.mxu1 %vm280_vm1, %v4935_v60  ;;  %v4148_v61 = vmul.f32 1.442695, %v4098_v37  ;;  %v4150_v47 = vmul.f32 1.442695, %v4099_v39  ;;  %v4069_v34 = vadd.f32 1e-08, %v4037_v19 }
 0x3c0   : > { %v3671_v1 = vmax.f32 %v3639_v24, 0.0  ;;  %v3162_v56 = vadd.f32 %v3104_v13, %v2940_v12  ;;  %v3328_v25 = vpop.f32.mrf.mxu0  ;;  %v3549_v55 = vpop.f32.mrf.mxu1  ;;  %v4906_v13 = vld [vmem:[#allocation2 + $0x38] sm:$0xff] }
 0x3c1   : > { %6870 = vpow2.f32 %v4148_v61  ;;  %v8355_v48 = vpack.c.bf16 %v4906_v13, %v4905_v4  ;;  %v4101_v39 = vsub.f32 0.0, %v4069_v34 }
 0x3c2   : > { %v4254_v7 = vmul.f32 %v6861_v11, %v3671_v1  ;;  %v3383_v50 = vadd.f32 %v3325_v29, %v3162_v56 }
 0x3c3   : > { %v4368_v53 = vld [vmem:[#allocation2 + $0xb1] sm:$0xff] }
 0x3c4   : > { %4286 = vst.msk [vmem:[#allocation2 + $0xc1] sm:$0xff] %vm280_vm1, %v4254_v7  ;;  %v3604_v28 = vadd.f32 %v3546_v32, %v3383_v50  ;;  %v4392_v58 = vpack.c.bf16 %v4368_v53, %v4367_v0  ;;  %v6865_v32 = vpop.eup %6864 }
 0x3c5   : > { %v6867_v42 = vpop.eup %6866 }
 0x3c6   : > { %v3640_v5 = vadd.f32 %v8242_v57, %v3604_v28  ;;  %6644 = vmatmul.msk.bf16.gmra.mxu2 %vm280_vm1, %v4392_v58  ;;  %v4193_v24 = vadd.f32 1.0, %v6867_v42  ;;  %v6869_v11 = vpop.eup %6868  ;;  %v4686_v58 = vld [vmem:[#allocation2 + $0x32] sm:$0xff] }
 0x3c7   : > { %v3107_v31 = vpop.f32.mrf.mxu3  ;;  %v6871_v53 = vpop.eup %6870 }
 0x3c8   : > { %v3672_v26 = vmax.f32 %v3640_v5, 0.0  ;;  %v3163_v29 = vadd.f32 %v3107_v31, %v8133_v45  ;;  %v3330_v44 = vpop.f32.mrf.mxu0  ;;  %v3551_v9 = vpop.f32.mrf.mxu1  ;;  %6670 = vmatmul.msk.bf16.gmra.mxu0 %vm280_vm1, %v8342_v54  ;;  %v4036_v45 = vadd.f32 %v6948_v15, %v9267_v8  ;;  %6872 = vrcp.f32 %v4193_v24  ;;  %v6950_v15 = vld [vmem:[#allocation2 + $0x121] sm:$0xff]  ;;  %v9269_v8 = vld [vmem:[#allocation20_spill] sm:$0xff] }
 0x3c9   : > { %6874 = vpow2.f32 %v4150_v47  ;;  %v4194_v37 = vadd.f32 1.0, %v6871_v53 }
 0x3ca   : > { %v4255_v36 = vmul.f32 %v6865_v32, %v3672_v26  ;;  %v3384_v33 = vadd.f32 %v3328_v25, %v3163_v29  ;;  %6654 = vmatmul.msk.bf16.gmra.mxu3 %vm280_vm1, %v4935_v60  ;;  %v4068_v22 = vadd.f32 1e-08, %v4036_v45  ;;  %v4687_v60 = vld [vmem:[#allocation2 + $0x3a] sm:$0xff]  ;;  %v8368_v26 = vpop.f32.mrf.mxu2  ;;  %v2944_v45 = vadd.f32 %v8150_v35, %v8148_v3 }
 0x3cb   : > { %v4369_v6 = vld [vmem:[#allocation2 + $0xc1] sm:$0xff]  ;;  %v8366_v27 = vpack.c.bf16 %v4687_v60, %v4686_v58  ;;  %6876 = vrcp.f32 %v4194_v37  ;;  %v4689_v58 = vld [vmem:[#allocation2 + $0x52] sm:$0xff]  ;;  %v6951_v60 = vld [vmem:[#allocation2 + $0x129] sm:$0xff] }
 0x3cc   : > { %4287 = vst.msk [vmem:[#allocation2 + $0xc9] sm:$0xff] %vm280_vm1, %v4255_v36  ;;  %v3605_v10 = vadd.f32 %v3549_v55, %v3384_v33  ;;  %v4100_v18 = vsub.f32 0.0, %v4068_v22  ;;  %v4039_v40 = vadd.f32 %v6951_v60, %v9270_v52 }
 0x3ce   : > { %v3641_v12 = vadd.f32 %v8242_v57, %v3605_v10  ;;  %v6873_v32 = vpop.eup %6872  ;;  %v4152_v61 = vmul.f32 1.442695, %v4100_v18  ;;  %v8393_v18 = vld [vmem:[%s9193_s4] ss:$0 sm:$0xff] }
 0x3cf   : > { %v3109_v51 = vpop.f32.mrf.mxu3  ;;  %6686 = vmatmul.msk.bf16.gmra.mxu1 %vm280_vm1, %v8355_v48  ;;  %v6875_v42 = vpop.eup %6874 }
 0x3d0   : > { %v3673_v1 = vmax.f32 %v3641_v12, 0.0  ;;  %v3164_v56 = vadd.f32 %v3109_v51, %v2942_v21  ;;  %v3333_v25 = vpop.f32.mrf.mxu0  ;;  %v3554_v55 = vpop.f32.mrf.mxu1  ;;  %6878 = vpow2.f32 %v4152_v61  ;;  %v4195_v12 = vadd.f32 1.0, %v6875_v42  ;;  %v4908_v51 = vld [vmem:[#allocation2 + $0x50] sm:$0xff] }
 0x3d2   : > { %v4256_v7 = vmul.f32 %v6869_v11, %v3673_v1  ;;  %v3385_v50 = vadd.f32 %v3330_v44, %v3164_v56  ;;  %v6877_v56 = vpop.eup %6876  ;;  %v4154_v11 = vmul.f32 1.442695, %v4101_v39  ;;  %6880 = vrcp.f32 %v4195_v12 }
 0x3d3   : > { %v4370_v0 = vld [vmem:[#allocation2 + $0xc9] sm:$0xff] }
 0x3d4   : > { %4288 = vst.msk [vmem:[#allocation2 + $0xd9] sm:$0xff] %vm280_vm1, %v4256_v7  ;;  %v3606_v30 = vadd.f32 %v3551_v9, %v3385_v50  ;;  %v8360_v28 = vpack.c.bf16 %v4370_v0, %v4369_v6  ;;  %v8380_v7 = vpop.f32.mrf.mxu2  ;;  %6882 = vpow2.f32 %v4154_v11 }
 0x3d6   : > { %v3642_v46 = vadd.f32 %v8242_v57, %v3606_v30  ;;  %6645 = vmatmul.msk.bf16.gmra.mxu2 %vm280_vm1, %v8360_v28  ;;  %v6879_v6 = vpop.eup %6878  ;;  %v4688_v30 = vld [vmem:[#allocation2 + $0x4a] sm:$0xff] }
 0x3d7   : > { %v3112_v5 = vpop.f32.mrf.mxu3  ;;  %v4196_v37 = vadd.f32 1.0, %v6879_v6 }
 0x3d8   : > { %v3674_v31 = vmax.f32 %v3642_v46, 0.0  ;;  %v3165_v29 = vadd.f32 %v3112_v5, %v8143_v17  ;;  %v3335_v44 = vpop.f32.mrf.mxu0  ;;  %v3556_v9 = vpop.f32.mrf.mxu1  ;;  %6671 = vmatmul.msk.bf16.gmra.mxu0 %vm280_vm1, %v8366_v27  ;;  %v4038_v17 = vadd.f32 %v6950_v15, %v9269_v8 }
 0x3d9   : > { %v6881_v34 = vpop.eup %6880  ;;  %6884 = vrcp.f32 %v4196_v37  ;;  %v9273_v37 = vld [vmem:[#allocation23_spill] sm:$0xff] }
 0x3da   : > { %v4257_v36 = vmul.f32 %v6873_v32, %v3674_v31  ;;  %v3386_v33 = vadd.f32 %v3333_v25, %v3165_v29  ;;  %6655 = vmatmul.msk.bf16.gmra.mxu3 %vm280_vm1, %v8355_v48  ;;  %v4070_v4 = vadd.f32 1e-08, %v4038_v17  ;;  %v8398_v31 = vpack.c.bf16 %v4689_v58, %v4688_v30  ;;  %v6883_v39 = vpop.eup %6882  ;;  %v9271_v17 = vld [vmem:[#allocation22_spill] sm:$0xff] }
 0x3dc   : > { %4289 = vst.msk [vmem:[#allocation2 + $0xe1] sm:$0xff] %vm280_vm1, %v4257_v36  ;;  %v3607_v10 = vadd.f32 %v3554_v55, %v3386_v33  ;;  %v4907_v55 = vld [vmem:[#allocation2 + $0x48] sm:$0xff]  ;;  %v4102_v19 = vsub.f32 0.0, %v4070_v4 }
 0x3dd   : > { %v8382_v35 = vpack.c.bf16 %v4908_v51, %v4907_v55  ;;  %v4197_v51 = vadd.f32 1.0, %v6883_v39 }
 0x3de   : > { %v3643_v21 = vadd.f32 %v8242_v57, %v3607_v10  ;;  %v4371_v57 = vld [vmem:[#allocation2 + $0xd9] sm:$0xff]  ;;  %v4156_v36 = vmul.f32 1.442695, %v4102_v19  ;;  %v4691_v19 = vld [vmem:[#allocation2 + $0x6a] sm:$0xff] }
 0x3df   : > { %v3114_v24 = vpop.f32.mrf.mxu3  ;;  %6687 = vmatmul.msk.bf16.gmra.mxu1 %vm280_vm1, %v8382_v35 }
 0x3e0   : > { %v3675_v13 = vmax.f32 %v3643_v21, 0.0  ;;  %v3166_v1 = vadd.f32 %v3114_v24, %v2944_v45  ;;  %v3338_v47 = vpop.f32.mrf.mxu0  ;;  %v3559_v25 = vpop.f32.mrf.mxu1  ;;  %6886 = vpow2.f32 %v4156_v36  ;;  %v9272_v21 = vld [vmem:[#allocation30_spill] sm:$0xff] }
 0x3e1   : > { %v2946_v12 = vadd.f32 %v9272_v21, %v8159_v20  ;;  %6888 = vrcp.f32 %v4197_v51  ;;  %v9274_v51 = vld [vmem:[#allocation24_spill] sm:$0xff] }
 0x3e2   : > { %v4258_v22 = vmul.f32 %v6877_v56, %v3675_v13  ;;  %v3387_v3 = vadd.f32 %v3335_v44, %v3166_v1  ;;  %v4071_v44 = vadd.f32 1e-08, %v4039_v40  ;;  %v4910_v1 = vld [vmem:[#allocation2 + $0x68] sm:$0xff] }
 0x3e3   : > { %v4372_v50 = vld [vmem:[#allocation2 + $0xe1] sm:$0xff] }
 0x3e4   : > { %4290 = vst.msk [vmem:[#allocation2 + $0xf1] sm:$0xff] %vm280_vm1, %v4258_v22  ;;  %v3608_v0 = vadd.f32 %v3556_v9, %v3387_v3  ;;  %v8387_v53 = vpack.c.bf16 %v4372_v50, %v4371_v57  ;;  %v4103_v8 = vsub.f32 0.0, %v4071_v44  ;;  %v4690_v40 = vld [vmem:[#allocation2 + $0x62] sm:$0xff] }
 0x3e6   : > { %v3644_v46 = vadd.f32 %v8393_v18, %v3608_v0  ;;  %6646 = vmatmul.msk.bf16.gmra.mxu2 %vm280_vm1, %v8387_v53  ;;  %v4158_v55 = vmul.f32 1.442695, %v4103_v8 }
 0x3e7   : > { %v3117_v5 = vpop.f32.mrf.mxu3 }
 0x3e8   : > { %v3676_v29 = vmax.f32 %v3644_v46, 0.0  ;;  %v3167_v32 = vadd.f32 %v3117_v5, %v8154_v16  ;;  %v3340_v9 = vpop.f32.mrf.mxu0  ;;  %v3561_v61 = vpop.f32.mrf.mxu1  ;;  %6672 = vmatmul.msk.bf16.gmra.mxu0 %vm280_vm1, %v8398_v31  ;;  %v6953_v16 = vld [vmem:[#allocation2 + $0x139] sm:$0xff]  ;;  %v6954_v46 = vld [vmem:[#allocation2 + $0x141] sm:$0xff]  ;;  %6890 = vpow2.f32 %v4158_v55 }
 0x3e9   : > { %v8403_v10 = vpop.f32.mrf.mxu2  ;;  %v4040_v45 = vadd.f32 %v6953_v16, %v9271_v17  ;;  %v4041_v5 = vadd.f32 %v6954_v46, %v9273_v37 }
 0x3ea   : > { %v4259_v33 = vmul.f32 %v6881_v34, %v3676_v29  ;;  %v3388_v42 = vadd.f32 %v3338_v47, %v3167_v32  ;;  %v6885_v47 = vpop.eup %6884  ;;  %6656 = vmatmul.msk.bf16.gmra.mxu3 %vm280_vm1, %v8382_v35 }
 0x3eb   : > { %v4072_v3 = vadd.f32 1e-08, %v4040_v45  ;;  %v4373_v0 = vld [vmem:[#allocation2 + $0xf1] sm:$0xff]  ;;  %v6887_v58 = vpop.eup %6886 }
 0x3ec   : > { %4291 = vst.msk [vmem:[#allocation2 + $0xf9] sm:$0xff] %vm280_vm1, %v4259_v33  ;;  %v3609_v15 = vadd.f32 %v3559_v25, %v3388_v42  ;;  %v4909_v25 = vld [vmem:[#allocation2 + $0x60] sm:$0xff]  ;;  %v4198_v34 = vadd.f32 1.0, %v6887_v58  ;;  %v6889_v33 = vpop.eup %6888  ;;  %v4073_v42 = vadd.f32 1e-08, %v4041_v5 }
 0x3ed   : > { %v8414_v20 = vpack.c.bf16 %v4910_v1, %v4909_v25  ;;  %v4104_v29 = vsub.f32 0.0, %v4072_v3  ;;  %v9275_v1 = vld [vmem:[#allocation31_spill] sm:$0xff] }
 0x3ee   : > { %v3645_v24 = vadd.f32 %v8393_v18, %v3609_v15  ;;  %6892 = vrcp.f32 %v4198_v34  ;;  %v6891_v21 = vpop.eup %6890  ;;  %v4692_v34 = vld [vmem:[#allocation2 + $0x7a] sm:$0xff] }
 0x3ef   : > { %v3119_v13 = vpop.f32.mrf.mxu3  ;;  %6688 = vmatmul.msk.bf16.gmra.mxu1 %vm280_vm1, %v8414_v20  ;;  %v4160_v8 = vmul.f32 1.442695, %v4104_v29 }
 0x3f0   : > { %v3677_v56 = vmax.f32 %v3645_v24, 0.0  ;;  %v3168_v11 = vadd.f32 %v3119_v13, %v2946_v12  ;;  %v3343_v4 = vpop.f32.mrf.mxu0  ;;  %v3564_v22 = vpop.f32.mrf.mxu1  ;;  %v4105_v24 = vsub.f32 0.0, %v4073_v42 }
 0x3f1   : > { %v8412_v6 = vpop.f32.mrf.mxu2  ;;  %6894 = vpow2.f32 %v4160_v8 }
 0x3f2   : > { %v4260_v57 = vmul.f32 %v6885_v47, %v3677_v56  ;;  %v3389_v50 = vadd.f32 %v3340_v9, %v3168_v11  ;;  %v8425_v9 = vpack.c.bf16 %v4691_v19, %v4690_v40  ;;  %v2948_v56 = vadd.f32 %v9275_v1, %v8170_v59 }
 0x3f3   : > { %v4374_v30 = vld [vmem:[#allocation2 + $0xf9] sm:$0xff]  ;;  %v4199_v47 = vadd.f32 1.0, %v6891_v21 }
 0x3f4   : > { %4292 = vst.msk [vmem:[#allocation2 + $0x109] sm:$0xff] %vm280_vm1, %v4260_v57  ;;  %v3610_v60 = vadd.f32 %v3561_v61, %v3389_v50  ;;  %v8419_v52 = vpack.c.bf16 %v4374_v30, %v4373_v0  ;;  %v6893_v57 = vpop.eup %6892  ;;  %v4162_v50 = vmul.f32 1.442695, %v4105_v24 }
 0x3f5   : > { %6896 = vrcp.f32 %v4199_v47 }
 0x3f6   : > { %v3646_v32 = vadd.f32 %v8393_v18, %v3610_v60  ;;  %6647 = vmatmul.msk.bf16.gmra.mxu2 %vm280_vm1, %v8419_v52  ;;  %6898 = vpow2.f32 %v4162_v50 }
 0x3f7   : > { %v3122_v44 = vpop.f32.mrf.mxu3  ;;  %v6895_v5 = vpop.eup %6894 }
 0x3f8   : > { %v3678_v61 = vmax.f32 %v3646_v32, 0.0  ;;  %v3169_v36 = vadd.f32 %v3122_v44, %v8165_v62  ;;  %v3345_v39 = vpop.f32.mrf.mxu0  ;;  %v3566_v15 = vpop.f32.mrf.mxu1  ;;  %6673 = vmatmul.msk.bf16.gmra.mxu0 %vm280_vm1, %v8425_v9  ;;  %v6955_v62 = vld [vmem:[#allocation2 + $0x151] sm:$0xff]  ;;  %v4693_v44 = vld [vmem:[#allocation2 + $0x82] sm:$0xff]  ;;  %v4200_v8 = vadd.f32 1.0, %v6895_v5 }
 0x3f9   : > { %v8430_v45 = vpop.f32.mrf.mxu2  ;;  %v4042_v13 = vadd.f32 %v6955_v62, %v9274_v51 }
 0x3fa   : > { %v4261_v16 = vmul.f32 %v6889_v33, %v3678_v61  ;;  %v3390_v17 = vadd.f32 %v3343_v4, %v3169_v36  ;;  %v4912_v4 = vld [vmem:[#allocation2 + $0x80] sm:$0xff]  ;;  %6657 = vmatmul.msk.bf16.gmra.mxu3 %vm280_vm1, %v8414_v20  ;;  %v9276_v36 = vld [vmem:[#allocation25_spill] sm:$0xff]  ;;  %6900 = vrcp.f32 %v4200_v8 }
 0x3fb   : > { %v4074_v58 = vadd.f32 1e-08, %v4042_v13  ;;  %v4375_v46 = vld [vmem:[#allocation2 + $0x109] sm:$0xff]  ;;  %v6956_v61 = vld [vmem:[#allocation2 + $0x159] sm:$0xff] }
 0x3fc   : > { %4293 = vst.msk [vmem:[#allocation2 + $0x111] sm:$0xff] %vm280_vm1, %v4261_v16  ;;  %v3611_v12 = vadd.f32 %v3564_v22, %v3390_v17  ;;  %v4911_v22 = vld [vmem:[#allocation2 + $0x78] sm:$0xff]  ;;  %v4043_v33 = vadd.f32 %v6956_v61, %v9276_v36 }
 0x3fd   : > { %v8441_v59 = vpack.c.bf16 %v4912_v4, %v4911_v22  ;;  %v4106_v42 = vsub.f32 0.0, %v4074_v58 }
 0x3fe   : > { %v3647_v11 = vadd.f32 %v8393_v18, %v3611_v12  ;;  %v6897_v12 = vpop.eup %6896  ;;  %v4075_v24 = vadd.f32 1e-08, %v4043_v33 }
 0x3ff   : > { %v3124_v55 = vpop.f32.mrf.mxu3  ;;  %6689 = vmatmul.msk.bf16.gmra.mxu1 %vm280_vm1, %v8441_v59  ;;  %v4164_v13 = vmul.f32 1.442695, %v4106_v42  ;;  %v6899_v47 = vpop.eup %6898 }
 0x400   : > { %v3679_v25 = vmax.f32 %v3647_v11, 0.0  ;;  %v3170_v3 = vadd.f32 %v3124_v55, %v2948_v56  ;;  %v3348_v0 = vpop.f32.mrf.mxu0  ;;  %v3569_v30 = vpop.f32.mrf.mxu1  ;;  %v4107_v4 = vsub.f32 0.0, %v4075_v24  ;;  %v4201_v58 = vadd.f32 1.0, %v6899_v47  ;;  %v6958_v24 = vld [vmem:[#allocation2 + $0x171] sm:$0xff] }
 0x401   : > { %v8439_v19 = vpop.f32.mrf.mxu2  ;;  %6902 = vpow2.f32 %v4164_v13 }
 0x402   : > { %v4262_v60 = vmul.f32 %v6893_v57, %v3679_v25  ;;  %v3391_v40 = vadd.f32 %v3345_v39, %v3170_v3  ;;  %v9277_v25 = vld [vmem:[#allocation26_spill] sm:$0xff]  ;;  %v9278_v57 = vld [vmem:[#allocation32_spill] sm:$0xff]  ;;  %v4166_v5 = vmul.f32 1.442695, %v4107_v4  ;;  %6904 = vrcp.f32 %v4201_v58 }
 0x403   : > { %v4376_v37 = vld [vmem:[#allocation2 + $0x111] sm:$0xff]  ;;  %v2950_v50 = vadd.f32 %v9278_v57, %v8181_v23 }
 0x404   : > { %4294 = vst.msk [vmem:[#allocation2 + $0x121] sm:$0xff] %vm280_vm1, %v4262_v60  ;;  %v3612_v29 = vadd.f32 %v3566_v15, %v3391_v40  ;;  %v8446_v32 = vpack.c.bf16 %v4376_v37, %v4375_v46  ;;  %v8452_v15 = vpack.c.bf16 %v4693_v44, %v4692_v34  ;;  %v6901_v37 = vpop.eup %6900  ;;  %6906 = vpow2.f32 %v4166_v5 }
 0x406   : > { %v3648_v39 = vadd.f32 %v8393_v18, %v3612_v29  ;;  %6648 = vmatmul.msk.bf16.gmra.mxu2 %vm280_vm1, %v8446_v32 }
 0x407   : > { %v3127_v16 = vpop.f32.mrf.mxu3  ;;  %v6903_v8 = vpop.eup %6902 }
 0x408   : > { %v3680_v17 = vmax.f32 %v3648_v39, 0.0  ;;  %v3171_v21 = vadd.f32 %v3127_v16, %v8176_v14  ;;  %v3350_v62 = vpop.f32.mrf.mxu0  ;;  %v3571_v51 = vpop.f32.mrf.mxu1  ;;  %6674 = vmatmul.msk.bf16.gmra.mxu0 %vm280_vm1, %v8452_v15  ;;  %v6957_v14 = vld [vmem:[#allocation2 + $0x169] sm:$0xff]  ;;  %v4202_v47 = vadd.f32 1.0, %v6903_v8 }
 0x409   : > { %v8457_v11 = vpop.f32.mrf.mxu2  ;;  %v4044_v3 = vadd.f32 %v6957_v14, %v9277_v25  ;;  %v6905_v25 = vpop.eup %6904 }
 0x40a   : > { %v4263_v1 = vmul.f32 %v6897_v12, %v3680_v17  ;;  %v3392_v56 = vadd.f32 %v3348_v0, %v3171_v21  ;;  %v4914_v0 = vld [vmem:[#allocation2 + $0x98] sm:$0xff]  ;;  %6658 = vmatmul.msk.bf16.gmra.mxu3 %vm280_vm1, %v8441_v59  ;;  %6908 = vrcp.f32 %v4202_v47 }
 0x40b   : > { %v4076_v44 = vadd.f32 1e-08, %v4044_v3  ;;  %v4377_v42 = vld [vmem:[#allocation2 + $0x121] sm:$0xff]  ;;  %v4694_v21 = vld [vmem:[#allocation2 + $0x92] sm:$0xff] }
 0x40c   : > { %4295 = vst.msk [vmem:[#allocation2 + $0x129] sm:$0xff] %vm280_vm1, %v4263_v1  ;;  %v3613_v55 = vadd.f32 %v3569_v30, %v3392_v56  ;;  %v4913_v30 = vld [vmem:[#allocation2 + $0x90] sm:$0xff]  ;;  %v4695_v12 = vld [vmem:[#allocation2 + $0x9a] sm:$0xff] }
 0x40d   : > { %v8468_v23 = vpack.c.bf16 %v4914_v0, %v4913_v30  ;;  %v4108_v1 = vsub.f32 0.0, %v4076_v44  ;;  %v9281_v44 = vld [vmem:[#allocation33_spill] sm:$0xff] }
 0x40e   : > { %v3649_v22 = vadd.f32 %v8393_v18, %v3613_v55 }
 0x40f   : > { %v3129_v60 = vpop.f32.mrf.mxu3  ;;  %6690 = vmatmul.msk.bf16.gmra.mxu1 %vm280_vm1, %v8468_v23 }
 0x410   : > { %v3681_v40 = vmax.f32 %v3649_v22, 0.0  ;;  %v3172_v46 = vadd.f32 %v3129_v60, %v2950_v50  ;;  %v3353_v29 = vpop.f32.mrf.mxu0  ;;  %v3574_v34 = vpop.f32.mrf.mxu1  ;;  %v4168_v22 = vmul.f32 1.442695, %v4108_v1 }
 0x411   : > { %v8466_v33 = vpop.f32.mrf.mxu2 }
 0x412   : > { %v4264_v61 = vmul.f32 %v6901_v37, %v3681_v40  ;;  %v3393_v36 = vadd.f32 %v3350_v62, %v3172_v46  ;;  %v9279_v62 = vld [vmem:[#allocation27_spill] sm:$0xff]  ;;  %v3982_v40 = vld.sshfl [vmem:[#allocation1] sm:$0xff pattern:$0x73625140]  ;;  %v6907_v46 = vpop.eup %6906  ;;  %6910 = vpow2.f32 %v4168_v22 }
 0x413   : > { %v4378_v39 = vld [vmem:[#allocation2 + $0x129] sm:$0xff]  ;;  %v4045_v13 = vadd.f32 %v6958_v24, %v9279_v62 }
 0x414   : > { %4296 = vst.msk [vmem:[#allocation2 + $0x139] sm:$0xff] %vm280_vm1, %v4264_v61  ;;  %v3614_v16 = vadd.f32 %v3571_v51, %v3393_v36  ;;  %v8473_v17 = vpack.c.bf16 %v4378_v39, %v4377_v42  ;;  %v8479_v51 = vpack.c.bf16 %v4695_v12, %v4694_v21  ;;  %v9282_v61 = vld [vmem:[#allocation34_spill] sm:$0xff]  ;;  %v4203_v39 = vadd.f32 1.0, %v6907_v46  ;;  %v6909_v12 = vpop.eup %6908  ;;  %v4697_v46 = vld [vmem:[#allocation2 + $0xb2] sm:$0xff] }
 0x415   : > { %v4077_v3 = vadd.f32 1e-08, %v4045_v13  ;;  %v2952_v36 = vadd.f32 %v9282_v61, %v9281_v44 }
 0x416   : > { %v3650_v56 = vadd.f32 %v8393_v18, %v3614_v16  ;;  %6649 = vmatmul.msk.bf16.gmra.mxu2 %vm280_vm1, %v8473_v17  ;;  %9280 = vst [vmem:[#allocation4_spill] sm:$0xff] %v8479_v51  ;;  %6912 = vrcp.f32 %v4203_v39 }
 0x417   : > { %v3132_v55 = vpop.f32.mrf.mxu3  ;;  %v4109_v5 = vsub.f32 0.0, %v4077_v3 }
 0x418   : > { %v3682_v4 = vmax.f32 %v3650_v56, 0.0  ;;  %v3173_v14 = vadd.f32 %v3132_v55, %v8187_v49  ;;  %v3355_v57 = vpop.f32.mrf.mxu0  ;;  %v3576_v50 = vpop.f32.mrf.mxu1  ;;  %6675 = vmatmul.msk.bf16.gmra.mxu0 %vm280_vm1, %v8479_v51  ;;  %v6959_v49 = vld [vmem:[#allocation2 + $0x181] sm:$0xff] }
 0x419   : > { %v8484_v0 = vpop.f32.mrf.mxu2  ;;  %v4046_v30 = vadd.f32 %v6959_v49, %v3982_v40  ;;  %v4170_v24 = vmul.f32 1.442695, %v4109_v5  ;;  %v6911_v22 = vpop.eup %6910  ;;  %v4696_v40 = vld [vmem:[#allocation2 + $0xaa] sm:$0xff] }
 0x41a   : > { %v4265_v58 = vmul.f32 %v6905_v25, %v3682_v4  ;;  %v3394_v60 = vadd.f32 %v3353_v29, %v3173_v14  ;;  %v4916_v29 = vld [vmem:[#allocation2 + $0xb0] sm:$0xff]  ;;  %6659 = vmatmul.msk.bf16.gmra.mxu3 %vm280_vm1, %v8468_v23  ;;  %v3983_v14 = vld.sshfl [vmem:[#allocation1 + $0x20] sm:$0xff pattern:$0x73625140]  ;;  %v8504_v61 = vpack.c.bf16 %v4697_v46, %v4696_v40 }
 0x41b   : > { %v4078_v1 = vadd.f32 1e-08, %v4046_v30  ;;  %v4379_v25 = vld [vmem:[#allocation2 + $0x139] sm:$0xff]  ;;  %6914 = vpow2.f32 %v4170_v24  ;;  %v4204_v30 = vadd.f32 1.0, %v6911_v22 }
 0x41c   : > { %4297 = vst.msk [vmem:[#allocation2 + $0x141] sm:$0xff] %vm280_vm1, %v4265_v58  ;;  %v3615_v37 = vadd.f32 %v3574_v34, %v3394_v60  ;;  %v4915_v34 = vld [vmem:[#allocation2 + $0xa8] sm:$0xff] }
 0x41d   : > { %v8494_v4 = vpack.c.bf16 %v4916_v29, %v4915_v34  ;;  %v4110_v5 = vsub.f32 0.0, %v4078_v1  ;;  %9284 = vst [vmem:[#allocation6_spill] sm:$0xff] %v8504_v61  ;;  %6916 = vrcp.f32 %v4204_v30 }
 0x41e   : > { %v3651_v42 = vadd.f32 %v8393_v18, %v3615_v37 }
 0x41f   : > { %v3134_v8 = vpop.f32.mrf.mxu3  ;;  %6691 = vmatmul.msk.bf16.gmra.mxu1 %vm280_vm1, %v8494_v4 }
 0x420   : > { %v3683_v16 = vmax.f32 %v3651_v42, 0.0  ;;  %v3174_v21 = vadd.f32 %v3134_v8, %v2952_v36  ;;  %v3358_v62 = vpop.f32.mrf.mxu0  ;;  %v3579_v13 = vpop.f32.mrf.mxu1 }
 0x421   : > { %v8492_v55 = vpop.f32.mrf.mxu2  ;;  %v6913_v42 = vpop.eup %6912 }
 0x422   : > { %v4266_v56 = vmul.f32 %v6909_v12, %v3683_v16  ;;  %v3395_v47 = vadd.f32 %v3355_v57, %v3174_v21  ;;  %v6960_v57 = vld [vmem:[#allocation2 + $0x189] sm:$0xff]  ;;  %v4172_v16 = vmul.f32 1.442695, %v4110_v5  ;;  %v6915_v34 = vpop.eup %6914 }
 0x423   : > { %v4380_v3 = vld [vmem:[#allocation2 + $0x141] sm:$0xff]  ;;  %v4047_v37 = vadd.f32 %v6960_v57, %v3983_v14  ;;  %v4205_v14 = vadd.f32 1.0, %v6915_v34 }
 0x424   : > { %4298 = vst.msk [vmem:[#allocation2 + $0x151] sm:$0xff] %vm280_vm1, %v4266_v56  ;;  %v3616_v58 = vadd.f32 %v3576_v50, %v3395_v47  ;;  %v8499_v60 = vpack.c.bf16 %v4380_v3, %v4379_v25  ;;  %6918 = vpow2.f32 %v4172_v16  ;;  %v4918_v3 = vld [vmem:[#allocation2 + $0xc8] sm:$0xff]  ;;  %v4917_v57 = vld [vmem:[#allocation2 + $0xc0] sm:$0xff] }
 0x425   : > { %v4079_v29 = vadd.f32 1e-08, %v4047_v37  ;;  %6920 = vrcp.f32 %v4205_v14  ;;  %v4699_v16 = vld [vmem:[#allocation2 + $0xca] sm:$0xff] }
 0x426   : > { %9283 = vst [vmem:[#allocation5_spill] sm:$0xff] %v8499_v60  ;;  %v3652_v49 = vadd.f32 %v8393_v18, %v3616_v58  ;;  %6650 = vmatmul.msk.bf16.gmra.mxu2 %vm280_vm1, %v8499_v60 }
 0x427   : > { %v3137_v44 = vpop.f32.mrf.mxu3  ;;  %v4111_v56 = vsub.f32 0.0, %v4079_v29  ;;  %v4698_v29 = vld [vmem:[#allocation2 + $0xc2] sm:$0xff] }
 0x428   : > { %v3684_v50 = vmax.f32 %v3652_v49, 0.0  ;;  %v3175_v36 = vadd.f32 %v3137_v44, %v8198_v41  ;;  %v3360_v39 = vpop.f32.mrf.mxu0  ;;  %v3581_v8 = vpop.f32.mrf.mxu1  ;;  %6676 = vmatmul.msk.bf16.gmra.mxu0 %vm280_vm1, %v8504_v61  ;;  %v2954_v41 = vadd.f32 %v8206_v38, %v8204_v43  ;;  %v8519_v43 = vpack.c.bf16 %v4918_v3, %v4917_v57  ;;  %v5393_v38 = vld [vmem:[%s9194_s5 + $0x14] sm:$0xf]  ;;  %v5614_v57 = vld [vmem:[%s9194_s5 + $0x18] sm:$0xf] }
 0x429   : > { %v8509_v24 = vpop.f32.mrf.mxu2 }
 0x42a   : > { %v4267_v21 = vmul.f32 %v6913_v42, %v3684_v50  ;;  %v3396_v12 = vadd.f32 %v3358_v62, %v3175_v36  ;;  %v6917_v62 = vpop.eup %6916  ;;  %6660 = vmatmul.msk.bf16.gmra.mxu3 %vm280_vm1, %v8494_v4  ;;  %9285 = vst [vmem:[#allocation7_spill] sm:$0xff] %v8519_v43  ;;  %v5443_v50 = vsel %vm1142_vm0, %v5393_v38, 0 }
 0x42b   : > { %v4381_v30 = vld [vmem:[#allocation2 + $0x151] sm:$0xff]  ;;  %v6919_v36 = vpop.eup %6918  ;;  %5452 = vmatpush.bf16.msrb.mxu3 %v5443_v50 }
 0x42c   : > { %4299 = vst.msk [vmem:[#allocation2 + $0x159] sm:$0xff] %vm280_vm1, %v4267_v21  ;;  %v3617_v1 = vadd.f32 %v3579_v13, %v3396_v12  ;;  %v4174_v13 = vmul.f32 1.442695, %v4111_v56  ;;  %v6056_v12 = vld [vmem:[%s9194_s5 + $0x20] sm:$0xf]  ;;  %v4206_v34 = vadd.f32 1.0, %v6919_v36  ;;  %v6921_v14 = vpop.eup %6920 }
 0x42d   : > { %v6106_v56 = vsel %vm1142_vm0, %v6056_v12, 0 }
 0x42e   : > { %v3653_v47 = vadd.f32 %v8393_v18, %v3617_v1  ;;  %6922 = vpow2.f32 %v4174_v13  ;;  %v8536_v1 = vpack.c.bf16 %v4699_v16, %v4698_v29  ;;  %6115 = vmatpush.bf16.msra.mxu2 %v6106_v56  ;;  %v5835_v13 = vld [vmem:[%s9194_s5 + $0x1c] sm:$0xf] }
 0x42f   : > { %v3139_v25 = vpop.f32.mrf.mxu3  ;;  %6692 = vmatmul.msk.bf16.gmra.mxu1 %vm280_vm1, %v8519_v43  ;;  %6924 = vrcp.f32 %v4206_v34 }
 0x430   : > { %v3685_v22 = vmax.f32 %v3653_v47, 0.0  ;;  %v3176_v58 = vadd.f32 %v3139_v25, %v2954_v41  ;;  %v3363_v40 = vpop.f32.mrf.mxu0  ;;  %v3584_v46 = vpop.f32.mrf.mxu1  ;;  %9287 = vst [vmem:[#allocation9_spill] sm:$0xff] %v8536_v1 }
 0x431   : > { %v8517_v49 = vpop.f32.mrf.mxu2 }
 0x432   : > { %v4268_v37 = vmul.f32 %v6917_v62, %v3685_v22  ;;  %v3397_v5 = vadd.f32 %v3360_v39, %v3176_v58 }
 0x433   : > { %v4382_v44 = vld [vmem:[#allocation2 + $0x159] sm:$0xff] }
 0x434   : > { %4300 = vst.msk [vmem:[#allocation2 + $0x169] sm:$0xff] %vm280_vm1, %v4268_v37  ;;  %v3618_v42 = vadd.f32 %v3581_v8, %v3397_v5  ;;  %v8528_v39 = vpack.c.bf16 %v4382_v44, %v4381_v30  ;;  %v5885_v37 = vsel %vm1142_vm0, %v5835_v13, 0  ;;  %v6923_v5 = vpop.eup %6922  ;;  %v4701_v13 = vld [vmem:[#allocation2 + $0xe2] sm:$0xff] }
 0x435   : > { %5894 = vmatpush.bf16.msra.mxu1 %v5885_v37  ;;  %v4207_v50 = vadd.f32 1.0, %v6923_v5 }
 0x436   : > { %9286 = vst [vmem:[#allocation8_spill] sm:$0xff] %v8528_v39  ;;  %v3654_v21 = vadd.f32 %v8393_v18, %v3618_v42  ;;  %6651 = vmatmul.msk.bf16.gmra.mxu2 %vm280_vm1, %v8528_v39  ;;  %v4920_v42 = vld [vmem:[#allocation2 + $0xe0] sm:$0xff]  ;;  %v4930_v39 = vld [vmem:[#allocation2 + $0x158] sm:$0xff] }
 0x437   : > { %v3142_v8 = vpop.f32.mrf.mxu3  ;;  %6926 = vrcp.f32 %v4207_v50 }
 0x438   : > { %v3686_v41 = vmax.f32 %v3654_v21, 0.0  ;;  %v3177_v47 = vadd.f32 %v3142_v8, %v8217_v2  ;;  %v3365_v25 = vpop.f32.mrf.mxu0  ;;  %v3586_v3 = vpop.f32.mrf.mxu1  ;;  %6677 = vmatmul.msk.bf16.gmra.mxu0 %vm280_vm1, %v8536_v1  ;;  %v5664_v2 = vsel %vm1142_vm0, %v5614_v57, 0  ;;  %v4919_v8 = vld [vmem:[#allocation2 + $0xd8] sm:$0xff] }
 0x439   : > { %v8542_v62 = vpop.f32.mrf.mxu2  ;;  %5673 = vmatpush.bf16.msrb.mxu0 %v5664_v2  ;;  %v6925_v21 = vpop.eup %6924  ;;  %v4700_v57 = vld [vmem:[#allocation2 + $0xda] sm:$0xff] }
 0x43a   : > { %v4269_v22 = vmul.f32 %v6921_v14, %v3686_v41  ;;  %v3398_v58 = vadd.f32 %v3363_v40, %v3177_v47  ;;  %v9288_v40 = vld [vmem:[#allocation35_spill] sm:$0xff]  ;;  %6661 = vmatmul.msk.bf16.gmra.mxu3 %vm280_vm1, %v8519_v43  ;;  %v8560_v47 = vpack.c.bf16 %v4920_v42, %v4919_v8  ;;  %v8570_v37 = vpack.c.bf16 %v4701_v13, %v4700_v57  ;;  %v4922_v42 = vld [vmem:[#allocation2 + $0xf8] sm:$0xff] }
 0x43b   : > { %v2956_v30 = vadd.f32 %v8352_v63, %v9288_v40  ;;  %v4383_v63 = vld [vmem:[#allocation2 + $0x169] sm:$0xff]  ;;  %v5125_v8 = vld [vmem:[#allocation2 + $0x21] sm:$0xff] }
 0x43c   : > { %4301 = vst.msk [vmem:[#allocation2 + $0x171] sm:$0xff] %vm280_vm1, %v4269_v22  ;;  %v3619_v38 = vadd.f32 %v3584_v46, %v3398_v58  ;;  %v4703_v57 = vld [vmem:[#allocation2 + $0xfa] sm:$0xff] }
 0x43d   : > { %9289 = vst [vmem:[#allocation10_spill] sm:$0xff] %v8560_v47  ;;  %v6927_v40 = vpop.eup %6926 }
 0x43e   : > { %v3655_v44 = vadd.f32 %v8393_v18, %v3619_v38  ;;  %9291 = vst [vmem:[#allocation12_spill] sm:$0xff] %v8570_v37 }
 0x43f   : > { %v3144_v36 = vpop.f32.mrf.mxu3  ;;  %6693 = vmatmul.msk.bf16.gmra.mxu1 %vm280_vm1, %v8560_v47 }
 0x440   : > { %v3687_v29 = vmax.f32 %v3655_v44, 0.0  ;;  %v3178_v16 = vadd.f32 %v3144_v36, %v2956_v30  ;;  %v4791_v12 = vpop.f32.mrf.mxu0  ;;  %v5012_v34 = vpop.f32.mrf.mxu1 }
 0x441   : > { %v8558_v41 = vpop.f32.mrf.mxu2 }
 0x442   : > { %v4270_v46 = vmul.f32 %v6925_v21, %v3687_v29  ;;  %v3399_v56 = vadd.f32 %v3365_v25, %v3178_v16 }
 0x443   : > { %v4384_v14 = vld [vmem:[#allocation2 + $0x171] sm:$0xff] }
 0x444   : > { %4302 = vst.msk [vmem:[#allocation2 + $0x181] sm:$0xff] %vm280_vm1, %v4270_v46  ;;  %v3620_v22 = vadd.f32 %v3586_v3, %v3399_v56  ;;  %v8565_v58 = vpack.c.bf16 %v4384_v14, %v4383_v63  ;;  %v4932_v60 = vld [vmem:[#allocation2 + $0x170] sm:$0xff] }
 0x446   : > { %9290 = vst [vmem:[#allocation11_spill] sm:$0xff] %v8565_v58  ;;  %v3656_v2 = vadd.f32 %v8393_v18, %v3620_v22  ;;  %6652 = vmatmul.msk.bf16.gmra.mxu2 %vm280_vm1, %v8565_v58  ;;  %v4702_v22 = vld [vmem:[#allocation2 + $0xf2] sm:$0xff]  ;;  %v4928_v58 = vld [vmem:[#allocation2 + $0x140] sm:$0xff] }
 0x447   : > { %v4602_v25 = vpop.f32.mrf.mxu3  ;;  %v8588_v13 = vpack.c.bf16 %v4703_v57, %v4702_v22 }
 0x448   : > { %v3688_v5 = vmax.f32 %v3656_v2, 0.0  ;;  %v4603_v38 = vadd.f32 %v4602_v25, %v8368_v26  ;;  %v4793_v3 = vpop.f32.mrf.mxu0  ;;  %v5014_v30 = vpop.f32.mrf.mxu1  ;;  %6678 = vmatmul.msk.bf16.gmra.mxu0 %vm280_vm1, %v8570_v37  ;;  %v4921_v26 = vld [vmem:[#allocation2 + $0xf0] sm:$0xff] }
 0x449   : > { %v8575_v36 = vpop.f32.mrf.mxu2  ;;  %v8583_v63 = vpack.c.bf16 %v4922_v42, %v4921_v26  ;;  %9293 = vst [vmem:[#allocation14_spill] sm:$0xff] %v8588_v13 }
 0x44a   : > { %v4271_v44 = vmul.f32 %v6927_v40, %v3688_v5  ;;  %v4871_v50 = vadd.f32 %v4791_v12, %v4603_v38  ;;  %6662 = vmatmul.msk.bf16.gmra.mxu3 %vm280_vm1, %v8560_v47  ;;  %v5124_v12 = vld [vmem:[#allocation2 + $0x19] sm:$0xff] }
 0x44b   : > { %9292 = vst [vmem:[#allocation13_spill] sm:$0xff] %v8583_v63  ;;  %v5156_v14 = vpack.c.bf16 %v5125_v8, %v5124_v12  ;;  %v5127_v8 = vld [vmem:[#allocation2 + $0x39] sm:$0xff] }
 0x44c   : > { %4303 = vst.msk [vmem:[#allocation2 + $0x189] sm:$0xff] %vm280_vm1, %v4271_v44 }
 0x44f   : > { %v4604_v18 = vpop.f32.mrf.mxu3  ;;  %6694 = vmatmul.msk.bf16.gmra.mxu1 %vm280_vm1, %v8583_v63 }
 0x450   : > { %v4605_v29 = vadd.f32 %v4604_v18, %v8380_v7  ;;  %v4796_v16 = vpop.f32.mrf.mxu0  ;;  %v5017_v21 = vpop.f32.mrf.mxu1  ;;  %v4924_v18 = vld [vmem:[#allocation2 + $0x110] sm:$0xff] }
 0x451   : > { %v8581_v56 = vpop.f32.mrf.mxu2 }
 0x452   : > { %v4872_v46 = vadd.f32 %v4793_v3, %v4605_v29  ;;  %v8595_v3 = vadd.f32 %v5012_v34, %v4871_v50  ;;  %v4704_v50 = vld [vmem:[#allocation2 + $0x10a] sm:$0xff] }
 0x453   : > { %v4934_v51 = vld [vmem:[#allocation2 + $0x188] sm:$0xff] }
 0x454   : > { %v8610_v57 = vadd.f32 %v5014_v30, %v4872_v46 }
 0x456   : > { %6701 = vmatmul.msk.bf16.vlgmr.msrb.gmra.mxu2 %vm280_vm1, %v5156_v14 }
 0x457   : > { %v4607_v7 = vpop.f32.mrf.mxu3 }
 0x458   : > { %v4608_v2 = vadd.f32 %v4607_v7, %v8403_v10  ;;  %v4798_v25 = vpop.f32.mrf.mxu0  ;;  %v5019_v5 = vpop.f32.mrf.mxu1  ;;  %6679 = vmatmul.msk.bf16.gmra.mxu0 %vm280_vm1, %v8588_v13  ;;  %v4923_v10 = vld [vmem:[#allocation2 + $0x108] sm:$0xff] }
 0x459   : > { %v8593_v40 = vpop.f32.mrf.mxu2  ;;  %v8602_v22 = vpack.c.bf16 %v4924_v18, %v4923_v10  ;;  %v4926_v13 = vld [vmem:[#allocation2 + $0x128] sm:$0xff] }
 0x45a   : > { %v4873_v38 = vadd.f32 %v4796_v16, %v4608_v2  ;;  %6663 = vmatmul.msk.bf16.gmra.mxu3 %vm280_vm1, %v8583_v63  ;;  %v5126_v16 = vld [vmem:[#allocation2 + $0x31] sm:$0xff] }
 0x45b   : > { %9294 = vst [vmem:[#allocation28_spill] sm:$0xff] %v8602_v22  ;;  %v8606_v34 = vpack.c.bf16 %v5127_v8, %v5126_v16 }
 0x45c   : > { %v8619_v8 = vadd.f32 %v5017_v21, %v4873_v38  ;;  %v4706_v38 = vld [vmem:[#allocation2 + $0x122] sm:$0xff] }
 0x45f   : > { %v4609_v44 = vpop.f32.mrf.mxu3  ;;  %6695 = vmatmul.msk.bf16.gmra.mxu1 %vm280_vm1, %v8602_v22 }
 0x460   : > { %v4610_v42 = vadd.f32 %v4609_v44, %v8412_v6  ;;  %v4801_v29 = vpop.f32.mrf.mxu0  ;;  %v5022_v26 = vpop.f32.mrf.mxu1  ;;  %v4705_v6 = vld [vmem:[#allocation2 + $0x112] sm:$0xff] }
 0x461   : > { %v8600_v14 = vpop.f32.mrf.mxu2  ;;  %v8612_v2 = vpack.c.bf16 %v4705_v6, %v4704_v50  ;;  %v5129_v50 = vld [vmem:[#allocation2 + $0x51] sm:$0xff] }
 0x462   : > { %v4874_v12 = vadd.f32 %v4798_v25, %v4610_v42 }
 0x463   : > { %9295 = vst [vmem:[#allocation29_spill] sm:$0xff] %v8612_v2 }
 0x466   : > { %6702 = vmatmul.msk.bf16.gmra.mxu2 %vm280_vm1, %v8606_v34 }
 0x467   : > { %v4612_v7 = vpop.f32.mrf.mxu3 }
 0x468   : > { %v4613_v25 = vadd.f32 %v4612_v7, %v8430_v45  ;;  %v4803_v44 = vpop.f32.mrf.mxu0  ;;  %v5024_v18 = vpop.f32.mrf.mxu1  ;;  %6680 = vmatmul.msk.bf16.gmra.mxu0 %vm280_vm1, %v8612_v2  ;;  %v4925_v45 = vld [vmem:[#allocation2 + $0x120] sm:$0xff] }
 0x469   : > { %v8617_v10 = vpop.f32.mrf.mxu2  ;;  %v8626_v2 = vpack.c.bf16 %v4926_v13, %v4925_v45 }
 0x46a   : > { %v4875_v42 = vadd.f32 %v4801_v29, %v4613_v25  ;;  %6664 = vmatmul.msk.bf16.gmra.mxu3 %vm280_vm1, %v8602_v22  ;;  %v5128_v29 = vld [vmem:[#allocation2 + $0x49] sm:$0xff]  ;;  %v8634_v25 = vadd.f32 %v5019_v5, %v4874_v12 }
 0x46b   : > { %9296 = vst [vmem:[#allocation15_spill] sm:$0xff] %v8626_v2  ;;  %v8630_v21 = vpack.c.bf16 %v5129_v50, %v5128_v29 }
 0x46c   : > { %v8643_v29 = vadd.f32 %v5022_v26, %v4875_v42  ;;  %v4708_v42 = vld [vmem:[#allocation2 + $0x13a] sm:$0xff] }
 0x46f   : > { %v4614_v16 = vpop.f32.mrf.mxu3  ;;  %6696 = vmatmul.msk.bf16.gmra.mxu1 %vm280_vm1, %v8626_v2 }
 0x470   : > { %v4615_v30 = vadd.f32 %v4614_v16, %v8439_v19  ;;  %v4806_v46 = vpop.f32.mrf.mxu0  ;;  %v5027_v37 = vpop.f32.mrf.mxu1  ;;  %v4707_v19 = vld [vmem:[#allocation2 + $0x12a] sm:$0xff] }
 0x471   : > { %v8624_v7 = vpop.f32.mrf.mxu2  ;;  %v8636_v22 = vpack.c.bf16 %v4707_v19, %v4706_v38  ;;  %v5131_v38 = vld [vmem:[#allocation2 + $0x69] sm:$0xff] }
 0x472   : > { %v4876_v6 = vadd.f32 %v4803_v44, %v4615_v30 }
 0x473   : > { %9297 = vst [vmem:[#allocation16_spill] sm:$0xff] %v8636_v22 }
 0x476   : > { %6703 = vmatmul.msk.bf16.gmra.mxu2 %vm280_vm1, %v8630_v21 }
 0x477   : > { %v4617_v16 = vpop.f32.mrf.mxu3 }
 0x478   : > { %v4618_v44 = vadd.f32 %v4617_v16, %v8457_v11  ;;  %v4808_v13 = vpop.f32.mrf.mxu0  ;;  %v5029_v30 = vpop.f32.mrf.mxu1  ;;  %6681 = vmatmul.msk.bf16.gmra.mxu0 %vm280_vm1, %v8636_v22  ;;  %v4927_v11 = vld [vmem:[#allocation2 + $0x138] sm:$0xff] }
 0x479   : > { %v8641_v50 = vpop.f32.mrf.mxu2  ;;  %v8650_v22 = vpack.c.bf16 %v4928_v58, %v4927_v11 }
 0x47a   : > { %v4877_v45 = vadd.f32 %v4806_v46, %v4618_v44  ;;  %6665 = vmatmul.msk.bf16.gmra.mxu3 %vm280_vm1, %v8626_v2  ;;  %v5130_v46 = vld [vmem:[#allocation2 + $0x61] sm:$0xff] }
 0x47b   : > { %9298 = vst [vmem:[#allocation17_spill] sm:$0xff] %v8650_v22  ;;  %v8654_v26 = vpack.c.bf16 %v5131_v38, %v5130_v46 }
 0x47c   : > { %v8667_v46 = vadd.f32 %v5027_v37, %v4877_v45  ;;  %v4710_v45 = vld [vmem:[#allocation2 + $0x152] sm:$0xff] }
 0x47f   : > { %v4619_v63 = vpop.f32.mrf.mxu3  ;;  %6697 = vmatmul.msk.bf16.gmra.mxu1 %vm280_vm1, %v8650_v22 }
 0x480   : > { %v4620_v5 = vadd.f32 %v4619_v63, %v8466_v33  ;;  %v4811_v12 = vpop.f32.mrf.mxu0  ;;  %v5032_v1 = vpop.f32.mrf.mxu1  ;;  %v4709_v33 = vld [vmem:[#allocation2 + $0x142] sm:$0xff]  ;;  %v8658_v63 = vadd.f32 %v5024_v18, %v4876_v6 }
 0x481   : > { %v8648_v16 = vpop.f32.mrf.mxu2  ;;  %v8660_v2 = vpack.c.bf16 %v4709_v33, %v4708_v42  ;;  %v5133_v42 = vld [vmem:[#allocation2 + $0x81] sm:$0xff] }
 0x482   : > { %v4878_v19 = vadd.f32 %v4808_v13, %v4620_v5 }
 0x483   : > { %9299 = vst [vmem:[#allocation18_spill] sm:$0xff] %v8660_v2 }
 0x486   : > { %6704 = vmatmul.msk.bf16.gmra.mxu2 %vm280_vm1, %v8654_v26 }
 0x487   : > { %v4622_v44 = vpop.f32.mrf.mxu3 }
 0x488   : > { %v4623_v13 = vadd.f32 %v4622_v44, %v8484_v0  ;;  %v4813_v58 = vpop.f32.mrf.mxu0  ;;  %v5034_v5 = vpop.f32.mrf.mxu1  ;;  %6682 = vmatmul.msk.bf16.gmra.mxu0 %vm280_vm1, %v8660_v2  ;;  %v4929_v0 = vld [vmem:[#allocation2 + $0x150] sm:$0xff] }
 0x489   : > { %v8665_v38 = vpop.f32.mrf.mxu2  ;;  %v8674_v2 = vpack.c.bf16 %v4930_v39, %v4929_v0 }
 0x48a   : > { %v4879_v11 = vadd.f32 %v4811_v12, %v4623_v13  ;;  %6666 = vmatmul.msk.bf16.gmra.mxu3 %vm280_vm1, %v8650_v22  ;;  %v5132_v12 = vld [vmem:[#allocation2 + $0x79] sm:$0xff] }
 0x48b   : > { %9300 = vst [vmem:[#allocation19_spill] sm:$0xff] %v8674_v2  ;;  %v8678_v37 = vpack.c.bf16 %v5133_v42, %v5132_v12 }
 0x48c   : > { %v8691_v12 = vadd.f32 %v5032_v1, %v4879_v11  ;;  %v4712_v11 = vld [vmem:[#allocation2 + $0x16a] sm:$0xff] }
 0x48e   : > { %9303 = vst [vmem:[#allocation22_spill] sm:$0xff] %v8691_v12 }
 0x48f   : > { %v4624_v47 = vpop.f32.mrf.mxu3  ;;  %6698 = vmatmul.msk.bf16.gmra.mxu1 %vm280_vm1, %v8674_v2 }
 0x490   : > { %v4625_v18 = vadd.f32 %v4624_v47, %v8492_v55  ;;  %v4816_v6 = vpop.f32.mrf.mxu0  ;;  %v5037_v61 = vpop.f32.mrf.mxu1  ;;  %v4711_v55 = vld [vmem:[#allocation2 + $0x15a] sm:$0xff]  ;;  %v8682_v47 = vadd.f32 %v5029_v30, %v4878_v19 }
 0x491   : > { %v8672_v44 = vpop.f32.mrf.mxu2  ;;  %v8684_v22 = vpack.c.bf16 %v4711_v55, %v4710_v45  ;;  %v5135_v45 = vld [vmem:[#allocation2 + $0x99] sm:$0xff] }
 0x492   : > { %v4880_v33 = vadd.f32 %v4813_v58, %v4625_v18  ;;  %9301 = vst [vmem:[#allocation20_spill] sm:$0xff] %v8682_v47 }
 0x493   : > { %9302 = vst [vmem:[#allocation21_spill] sm:$0xff] %v8684_v22 }
 0x496   : > { %6705 = vmatmul.msk.bf16.gmra.mxu2 %vm280_vm1, %v8678_v37 }
 0x497   : > { %v4627_v13 = vpop.f32.mrf.mxu3 }
 0x498   : > { %v4628_v58 = vadd.f32 %v4627_v13, %v8509_v24  ;;  %v4818_v39 = vpop.f32.mrf.mxu0  ;;  %v5039_v18 = vpop.f32.mrf.mxu1  ;;  %6683 = vmatmul.msk.bf16.gmra.mxu0 %vm280_vm1, %v8684_v22  ;;  %v4931_v24 = vld [vmem:[#allocation2 + $0x168] sm:$0xff] }
 0x499   : > { %v8689_v42 = vpop.f32.mrf.mxu2  ;;  %v8698_v22 = vpack.c.bf16 %v4932_v60, %v4931_v24 }
 0x49a   : > { %v4881_v0 = vadd.f32 %v4816_v6, %v4628_v58  ;;  %6667 = vmatmul.msk.bf16.gmra.mxu3 %vm280_vm1, %v8674_v2  ;;  %v5134_v6 = vld [vmem:[#allocation2 + $0x91] sm:$0xff] }
 0x49b   : > { %9304 = vst [vmem:[#allocation30_spill] sm:$0xff] %v8698_v22  ;;  %v8702_v1 = vpack.c.bf16 %v5135_v45, %v5134_v6 }
 0x49c   : > { %v8715_v6 = vadd.f32 %v5037_v61, %v4881_v0 }
 0x49f   : > { %v4629_v43 = vpop.f32.mrf.mxu3  ;;  %6699 = vmatmul.msk.bf16.gmra.mxu1 %vm280_vm1, %v8698_v22 }
 0x4a0   : > { %v4630_v30 = vadd.f32 %v4629_v43, %v8517_v49  ;;  %v4821_v19 = vpop.f32.mrf.mxu0  ;;  %v5042_v47 = vpop.f32.mrf.mxu1  ;;  %v4713_v49 = vld [vmem:[#allocation2 + $0x172] sm:$0xff]  ;;  %v8706_v43 = vadd.f32 %v5034_v5, %v4880_v33 }
 0x4a1   : > { %v8696_v13 = vpop.f32.mrf.mxu2  ;;  %v8708_v2 = vpack.c.bf16 %v4713_v49, %v4712_v11  ;;  %v5137_v11 = vld [vmem:[#allocation2 + $0xb1] sm:$0xff] }
 0x4a2   : > { %v4882_v55 = vadd.f32 %v4818_v39, %v4630_v30  ;;  %9305 = vst [vmem:[#allocation23_spill] sm:$0xff] %v8706_v43 }
 0x4a3   : > { %9306 = vst [vmem:[#allocation24_spill] sm:$0xff] %v8708_v2 }
 0x4a6   : > { %6706 = vmatmul.msk.bf16.gmra.mxu2 %vm280_vm1, %v8702_v1 }
 0x4a7   : > { %v4632_v58 = vpop.f32.mrf.mxu3 }
 0x4a8   : > { %v4633_v39 = vadd.f32 %v4632_v58, %v8542_v62  ;;  %v4823_v60 = vpop.f32.mrf.mxu0  ;;  %v5044_v30 = vpop.f32.mrf.mxu1  ;;  %6684 = vmatmul.msk.bf16.gmra.mxu0 %vm280_vm1, %v8708_v2  ;;  %v4933_v62 = vld [vmem:[#allocation2 + $0x180] sm:$0xff] }
 0x4a9   : > { %v8713_v45 = vpop.f32.mrf.mxu2  ;;  %v8722_v2 = vpack.c.bf16 %v4934_v51, %v4933_v62 }
 0x4aa   : > { %v4883_v24 = vadd.f32 %v4821_v19, %v4633_v39  ;;  %6668 = vmatmul.msk.bf16.gmra.mxu3 %vm280_vm1, %v8698_v22  ;;  %v5136_v19 = vld [vmem:[#allocation2 + $0xa9] sm:$0xff] }
 0x4ab   : > { %9307 = vst [vmem:[#allocation31_spill] sm:$0xff] %v8722_v2  ;;  %v8726_v61 = vpack.c.bf16 %v5137_v11, %v5136_v19 }
 0x4ac   : > { %v8737_v62 = vadd.f32 %v5042_v47, %v4883_v24 }
 0x4af   : > { %v4634_v12 = vpop.f32.mrf.mxu3  ;;  %6700 = vmatmul.msk.bf16.gmra.mxu1 %vm280_vm1, %v8722_v2 }
 0x4b0   : > { %v4635_v5 = vadd.f32 %v4634_v12, %v8558_v41  ;;  %v4826_v33 = vpop.f32.mrf.mxu0  ;;  %v5047_v43 = vpop.f32.mrf.mxu1  ;;  %v8730_v41 = vadd.f32 %v5039_v18, %v4882_v55 }
 0x4b1   : > { %v8720_v58 = vpop.f32.mrf.mxu2 }
 0x4b2   : > { %v4884_v49 = vadd.f32 %v4823_v60, %v4635_v5 }
 0x4b6   : > { %6707 = vmatmul.msk.bf16.gmra.mxu2 %vm280_vm1, %v8726_v61 }
 0x4b7   : > { %v4637_v0 = vpop.f32.mrf.mxu3 }
 0x4b8   : > { %v4638_v12 = vadd.f32 %v4637_v0, %v8575_v36  ;;  %v4828_v39 = vpop.f32.mrf.mxu0  ;;  %v5049_v60 = vpop.f32.mrf.mxu1  ;;  %6733 = vmatmul.msk.bf16.vlgmr.msrb.gmra.mxu0 %vm280_vm1, %v8355_v48  ;;  %v8748_v48 = vadd.f32 %v5044_v30, %v4884_v49 }
 0x4b9   : > { %v8735_v5 = vpop.f32.mrf.mxu2 }
 0x4ba   : > { %v4885_v51 = vadd.f32 %v4826_v33, %v4638_v12  ;;  %6717 = vmatmul.msk.bf16.vlgmr.msrb.gmra.mxu3 %vm280_vm1, %v8342_v54 }
 0x4bc   : > { %v8755_v0 = vadd.f32 %v5047_v43, %v4885_v51 }
 0x4bf   : > { %v4639_v11 = vpop.f32.mrf.mxu3  ;;  %6749 = vmatmul.msk.bf16.vlgmr.msra.gmra.mxu1 %vm280_vm1, %v8606_v34 }
 0x4c0   : > { %v4640_v19 = vadd.f32 %v4639_v11, %v8581_v56  ;;  %v4831_v2 = vpop.f32.mrf.mxu0  ;;  %v5052_v22 = vpop.f32.mrf.mxu1 }
 0x4c1   : > { %v8742_v36 = vpop.f32.mrf.mxu2 }
 0x4c2   : > { %v4886_v18 = vadd.f32 %v4828_v39, %v4640_v19 }
 0x4c6   : > { %6708 = vmatmul.msk.bf16.gmra.mxu2 %vm280_vm1, %v8360_v28 }
 0x4c7   : > { %v4642_v47 = vpop.f32.mrf.mxu3 }
 0x4c8   : > { %v4643_v55 = vadd.f32 %v4642_v47, %v8593_v40  ;;  %v4833_v56 = vpop.f32.mrf.mxu0  ;;  %v5054_v24 = vpop.f32.mrf.mxu1  ;;  %6734 = vmatmul.msk.bf16.gmra.mxu0 %vm280_vm1, %v8382_v35  ;;  %v8766_v35 = vadd.f32 %v5049_v60, %v4886_v18 }
 0x4c9   : > { %v8753_v33 = vpop.f32.mrf.mxu2 }
 0x4ca   : > { %v4887_v54 = vadd.f32 %v4831_v2, %v4643_v55  ;;  %6718 = vmatmul.msk.bf16.gmra.mxu3 %vm280_vm1, %v8366_v27 }
 0x4cc   : > { %v8774_v19 = vadd.f32 %v5052_v22, %v4887_v54 }
 0x4cf   : > { %v4644_v12 = vpop.f32.mrf.mxu3  ;;  %6750 = vmatmul.msk.bf16.gmra.mxu1 %vm280_vm1, %v8630_v21 }
 0x4d0   : > { %v4645_v34 = vadd.f32 %v4644_v12, %v8600_v14  ;;  %v4836_v39 = vpop.f32.mrf.mxu0  ;;  %v5057_v28 = vpop.f32.mrf.mxu1 }
 0x4d1   : > { %v8760_v40 = vpop.f32.mrf.mxu2 }
 0x4d2   : > { %v4888_v30 = vadd.f32 %v4833_v56, %v4645_v34 }
 0x4d6   : > { %6709 = vmatmul.msk.bf16.gmra.mxu2 %vm280_vm1, %v8387_v53 }
 0x4d7   : > { %v4647_v2 = vpop.f32.mrf.mxu3 }
 0x4d8   : > { %v4648_v43 = vadd.f32 %v4647_v2, %v8617_v10  ;;  %v4838_v14 = vpop.f32.mrf.mxu0  ;;  %v5059_v49 = vpop.f32.mrf.mxu1  ;;  %6735 = vmatmul.msk.bf16.gmra.mxu0 %vm280_vm1, %v8414_v20  ;;  %v8786_v20 = vadd.f32 %v5054_v24, %v4888_v30 }
 0x4d9   : > { %v5233_v51 = vpop.f32.mrf.mxu2 }
 0x4da   : > { %v4889_v27 = vadd.f32 %v4836_v39, %v4648_v43  ;;  %v8772_v11 = vadd.f32 %v5233_v51, %v8595_v3  ;;  %6719 = vmatmul.msk.bf16.gmra.mxu3 %vm280_vm1, %v8398_v31 }
 0x4dc   : > { %v8794_v12 = vadd.f32 %v5057_v28, %v4889_v27 }
 0x4df   : > { %v4649_v21 = vpop.f32.mrf.mxu3  ;;  %6751 = vmatmul.msk.bf16.gmra.mxu1 %vm280_vm1, %v8654_v26 }
 0x4e0   : > { %v4650_v53 = vadd.f32 %v4649_v21, %v8624_v7  ;;  %v4841_v60 = vpop.f32.mrf.mxu0  ;;  %v5062_v18 = vpop.f32.mrf.mxu1 }
 0x4e1   : > { %v5235_v47 = vpop.f32.mrf.mxu2 }
 0x4e2   : > { %v4890_v10 = vadd.f32 %v4838_v14, %v4650_v53  ;;  %v8780_v55 = vadd.f32 %v5235_v47, %v8610_v57 }
 0x4e6   : > { %6710 = vmatmul.msk.bf16.gmra.mxu2 %vm280_vm1, %v8419_v52 }
 0x4e7   : > { %v4652_v3 = vpop.f32.mrf.mxu3 }
 0x4e8   : > { %v4653_v22 = vadd.f32 %v4652_v3, %v8641_v50  ;;  %v4843_v7 = vpop.f32.mrf.mxu0  ;;  %v5064_v56 = vpop.f32.mrf.mxu1  ;;  %6736 = vmatmul.msk.bf16.gmra.mxu0 %vm280_vm1, %v8441_v59  ;;  %v8806_v59 = vadd.f32 %v5059_v49, %v4890_v10  ;;  %v9308_v3 = vld [vmem:[#allocation4_spill] sm:$0xff] }
 0x4e9   : > { %v5238_v54 = vpop.f32.mrf.mxu2 }
 0x4ea   : > { %v4891_v31 = vadd.f32 %v4841_v60, %v4653_v22  ;;  %v8792_v57 = vadd.f32 %v5238_v54, %v8619_v8  ;;  %6720 = vmatmul.msk.bf16.gmra.mxu3 %vm280_vm1, %v8425_v9 }
 0x4ec   : > { %v8814_v14 = vadd.f32 %v5062_v18, %v4891_v31 }
 0x4ef   : > { %v4654_v26 = vpop.f32.mrf.mxu3  ;;  %6752 = vmatmul.msk.bf16.gmra.mxu1 %vm280_vm1, %v8678_v37 }
 0x4f0   : > { %v4655_v52 = vadd.f32 %v4654_v26, %v8648_v16  ;;  %v4846_v24 = vpop.f32.mrf.mxu0  ;;  %v5067_v34 = vpop.f32.mrf.mxu1 }
 0x4f1   : > { %v5240_v39 = vpop.f32.mrf.mxu2 }
 0x4f2   : > { %v4892_v50 = vadd.f32 %v4843_v7, %v4655_v52  ;;  %v8800_v30 = vadd.f32 %v5240_v39, %v8634_v25  ;;  %v9311_v52 = vld [vmem:[#allocation7_spill] sm:$0xff] }
 0x4f6   : > { %6711 = vmatmul.msk.bf16.gmra.mxu2 %vm280_vm1, %v8446_v32 }
 0x4f7   : > { %v4657_v8 = vpop.f32.mrf.mxu3 }
 0x4f8   : > { %v4658_v16 = vadd.f32 %v4657_v8, %v8665_v38  ;;  %v4848_v28 = vpop.f32.mrf.mxu0  ;;  %v5069_v2 = vpop.f32.mrf.mxu1  ;;  %6737 = vmatmul.msk.bf16.gmra.mxu0 %vm280_vm1, %v8468_v23  ;;  %v8826_v23 = vadd.f32 %v5064_v56, %v4892_v50  ;;  %v9309_v56 = vld [vmem:[#allocation20_spill] sm:$0xff]  ;;  %v9312_v50 = vld [vmem:[#allocation22_spill] sm:$0xff] }
 0x4f9   : > { %v5243_v43 = vpop.f32.mrf.mxu2 }
 0x4fa   : > { %v4893_v9 = vadd.f32 %v4846_v24, %v4658_v16  ;;  %v8812_v25 = vadd.f32 %v5243_v43, %v8643_v29  ;;  %6721 = vmatmul.msk.bf16.gmra.mxu3 %vm280_vm1, %v8452_v15  ;;  %v9313_v43 = vld [vmem:[#allocation6_spill] sm:$0xff] }
 0x4fc   : > { %v8834_v10 = vadd.f32 %v5067_v34, %v4893_v9 }
 0x4ff   : > { %v4659_v37 = vpop.f32.mrf.mxu3  ;;  %6753 = vmatmul.msk.bf16.gmra.mxu1 %vm280_vm1, %v8702_v1 }
 0x500   : > { %v4660_v32 = vadd.f32 %v4659_v37, %v8672_v44  ;;  %v4851_v49 = vpop.f32.mrf.mxu0  ;;  %v5072_v27 = vpop.f32.mrf.mxu1 }
 0x501   : > { %v5245_v51 = vpop.f32.mrf.mxu2 }
 0x502   : > { %v4894_v38 = vadd.f32 %v4848_v28, %v4660_v32  ;;  %v8820_v21 = vadd.f32 %v5245_v51, %v8658_v63  ;;  %v5800_v28 = vld [vmem:[#allocation2 + $0xc9] sm:$0xff] }
 0x506   : > { %6712 = vmatmul.msk.bf16.gmra.mxu2 %vm280_vm1, %v8473_v17 }
 0x507   : > { %v4662_v29 = vpop.f32.mrf.mxu3 }
 0x508   : > { %v4663_v44 = vadd.f32 %v4662_v29, %v8689_v42  ;;  %v4853_v53 = vpop.f32.mrf.mxu0  ;;  %v5074_v60 = vpop.f32.mrf.mxu1  ;;  %6738 = vmatmul.msk.bf16.gmra.mxu0 %vm280_vm1, %v8494_v4  ;;  %v9310_v4 = vld [vmem:[#allocation5_spill] sm:$0xff] }
 0x509   : > { %v5248_v18 = vpop.f32.mrf.mxu2 }
 0x50a   : > { %v4895_v15 = vadd.f32 %v4851_v49, %v4663_v44  ;;  %v8832_v63 = vadd.f32 %v5248_v18, %v8667_v46  ;;  %6722 = vmatmul.msk.bf16.gmra.mxu3 %vm280_vm1, %v9308_v3  ;;  %v8846_v46 = vadd.f32 %v5069_v2, %v4894_v38  ;;  %v9314_v38 = vld [vmem:[#allocation23_spill] sm:$0xff]  ;;  %v9316_v18 = vld [vmem:[#allocation10_spill] sm:$0xff] }
 0x50c   : > { %v8854_v16 = vadd.f32 %v5072_v27, %v4895_v15  ;;  %v9315_v27 = vld [vmem:[#allocation8_spill] sm:$0xff] }
 0x50f   : > { %v4664_v1 = vpop.f32.mrf.mxu3  ;;  %6754 = vmatmul.msk.bf16.gmra.mxu1 %vm280_vm1, %v8726_v61 }
 0x510   : > { %v4665_v17 = vadd.f32 %v4664_v1, %v8696_v13  ;;  %v4856_v47 = vpop.f32.mrf.mxu0  ;;  %v5077_v22 = vpop.f32.mrf.mxu1 }
 0x511   : > { %v5250_v7 = vpop.f32.mrf.mxu2 }
 0x512   : > { %v4896_v42 = vadd.f32 %v4853_v53, %v4665_v17  ;;  %v8840_v31 = vadd.f32 %v5250_v7, %v9309_v56  ;;  %v5802_v56 = vld [vmem:[#allocation2 + $0xe1] sm:$0xff] }
 0x514   : > { %v8865_v44 = vadd.f32 %v5074_v60, %v4896_v42 }
 0x516   : > { %6713 = vmatmul.msk.bf16.gmra.mxu2 %vm280_vm1, %v9310_v4 }
 0x517   : > { %v4667_v54 = vpop.f32.mrf.mxu3 }
 0x518   : > { %v4668_v13 = vadd.f32 %v4667_v54, %v8713_v45  ;;  %v4858_v26 = vpop.f32.mrf.mxu0  ;;  %6739 = vmatmul.msk.bf16.gmra.mxu0 %vm280_vm1, %v9311_v52  ;;  %v5079_v8 = vpop.f32.mrf.mxu1  ;;  %v5799_v45 = vld [vmem:[#allocation2 + $0xc1] sm:$0xff]  ;;  %v9317_v54 = vld [vmem:[#allocation9_spill] sm:$0xff] }
 0x519   : > { %v5253_v34 = vpop.f32.mrf.mxu2  ;;  %v5825_v49 = vpack.c.bf16 %v5800_v28, %v5799_v45 }
 0x51a   : > { %v4897_v24 = vadd.f32 %v4856_v47, %v4668_v13  ;;  %v8852_v39 = vadd.f32 %v5253_v34, %v9312_v50  ;;  %6723 = vmatmul.msk.bf16.gmra.mxu3 %vm280_vm1, %v9313_v43 }
 0x51c   : > { %v8873_v3 = vadd.f32 %v5077_v22, %v4897_v24 }
 0x51f   : > { %v4669_v61 = vpop.f32.mrf.mxu3  ;;  %6755 = vmatmul.msk.bf16.gmra.mxu1 %vm280_vm1, %v5825_v49  ;;  %v9320_v49 = vld [vmem:[#allocation12_spill] sm:$0xff] }
 0x520   : > { %v4670_v2 = vadd.f32 %v4669_v61, %v8720_v58  ;;  %v4861_v9 = vpop.f32.mrf.mxu0  ;;  %v5082_v29 = vpop.f32.mrf.mxu1  ;;  %v9319_v61 = vld [vmem:[#allocation13_spill] sm:$0xff] }
 0x521   : > { %v5255_v32 = vpop.f32.mrf.mxu2 }
 0x522   : > { %v4898_v37 = vadd.f32 %v4858_v26, %v4670_v2  ;;  %v8860_v51 = vadd.f32 %v5255_v32, %v9314_v38  ;;  %v5804_v32 = vld [vmem:[#allocation2 + $0xf9] sm:$0xff]  ;;  %v5155_v38 = vld [vmem:[#allocation2 + $0x189] sm:$0xff] }
 0x524   : > { %v8884_v22 = vadd.f32 %v5079_v8, %v4898_v37 }
 0x526   : > { %6714 = vmatmul.msk.bf16.gmra.mxu2 %vm280_vm1, %v9315_v27 }
 0x527   : > { %v4672_v58 = vpop.f32.mrf.mxu3 }
 0x528   : > { %v4673_v53 = vadd.f32 %v4672_v58, %v8735_v5  ;;  %v4863_v15 = vpop.f32.mrf.mxu0  ;;  %6740 = vmatmul.msk.bf16.gmra.mxu0 %vm280_vm1, %v9316_v18  ;;  %v5084_v4 = vpop.f32.mrf.mxu1  ;;  %v5801_v5 = vld [vmem:[#allocation2 + $0xd9] sm:$0xff] }
 0x529   : > { %v5258_v17 = vpop.f32.mrf.mxu2  ;;  %v5826_v52 = vpack.c.bf16 %v5802_v56, %v5801_v5  ;;  %v9321_v56 = vld [vmem:[#allocation28_spill] sm:$0xff] }
 0x52a   : > { %v4899_v1 = vadd.f32 %v4861_v9, %v4673_v53  ;;  %v8871_v47 = vadd.f32 %v5258_v17, %v8715_v6  ;;  %6724 = vmatmul.msk.bf16.gmra.mxu3 %vm280_vm1, %v9317_v54  ;;  %v9318_v6 = vld [vmem:[#allocation11_spill] sm:$0xff] }
 0x52c   : > { %v8892_v43 = vadd.f32 %v5082_v29, %v4899_v1 }
 0x52f   : > { %v4674_v7 = vpop.f32.mrf.mxu3  ;;  %6756 = vmatmul.msk.bf16.gmra.mxu1 %vm280_vm1, %v5826_v52  ;;  %v5806_v52 = vld [vmem:[#allocation2 + $0x111] sm:$0xff] }
 0x530   : > { %v4675_v60 = vadd.f32 %v4674_v7, %v8742_v36  ;;  %v4866_v42 = vpop.f32.mrf.mxu0  ;;  %v5087_v28 = vpop.f32.mrf.mxu1 }
 0x531   : > { %v5260_v26 = vpop.f32.mrf.mxu2 }
 0x532   : > { %v4900_v13 = vadd.f32 %v4863_v15, %v4675_v60  ;;  %v8879_v34 = vadd.f32 %v5260_v26, %v8730_v41 }
 0x536   : > { %6715 = vmatmul.msk.bf16.gmra.mxu2 %vm280_vm1, %v9318_v6  ;;  %v9322_v6 = vld [vmem:[#allocation14_spill] sm:$0xff] }
 0x537   : > { %v4677_v24 = vpop.f32.mrf.mxu3 }
 0x538   : > { %v4678_v36 = vadd.f32 %v4677_v24, %v8753_v33  ;;  %v4868_v50 = vpop.f32.mrf.mxu0  ;;  %6741 = vmatmul.msk.bf16.gmra.mxu0 %vm280_vm1, %v9319_v61  ;;  %v5803_v33 = vld [vmem:[#allocation2 + $0xf1] sm:$0xff]  ;;  %v5089_v18 = vpop.f32.mrf.mxu1 }
 0x539   : > { %v5263_v9 = vpop.f32.mrf.mxu2  ;;  %v5827_v53 = vpack.c.bf16 %v5804_v32, %v5803_v33  ;;  %v6008_v24 = vld [vmem:[#allocation2 + $0x32] sm:$0xff] }
 0x53a   : > { %v4901_v2 = vadd.f32 %v4866_v42, %v4678_v36  ;;  %v8890_v41 = vadd.f32 %v5263_v9, %v8737_v62  ;;  %6725 = vmatmul.msk.bf16.gmra.mxu3 %vm280_vm1, %v9320_v49  ;;  %v5154_v62 = vld [vmem:[#allocation2 + $0x181] sm:$0xff] }
 0x53b   : > { %v8901_v29 = vpack.c.bf16 %v5155_v38, %v5154_v62  ;;  %v6009_v36 = vld [vmem:[#allocation2 + $0x3a] sm:$0xff] }
 0x53c   : > { %v8913_v5 = vadd.f32 %v5087_v28, %v4901_v2  ;;  %v6040_v28 = vpack.c.bf16 %v6009_v36, %v6008_v24  ;;  %v9324_v62 = vld [vmem:[#allocation29_spill] sm:$0xff] }
 0x53f   : > { %v4679_v45 = vpop.f32.mrf.mxu3  ;;  %6757 = vmatmul.msk.bf16.gmra.mxu1 %vm280_vm1, %v5827_v53  ;;  %v5808_v53 = vld [vmem:[#allocation2 + $0x129] sm:$0xff] }
 0x540   : > { %v4680_v8 = vadd.f32 %v4679_v45, %v8760_v40  ;;  %v5675_v37 = vpop.f32.mrf.mxu0  ;;  %v8905_v40 = vadd.f32 %v5084_v4, %v4900_v13  ;;  %v5896_v54 = vpop.f32.mrf.mxu1 }
 0x541   : > { %v5265_v58 = vpop.f32.mrf.mxu2 }
 0x542   : > { %v4902_v27 = vadd.f32 %v4868_v50, %v4680_v8  ;;  %v8898_v15 = vadd.f32 %v5265_v58, %v8748_v48 }
 0x544   : > { %v8923_v2 = vadd.f32 %v5089_v18, %v4902_v27  ;;  %v5807_v18 = vld [vmem:[#allocation2 + $0x121] sm:$0xff] }
 0x546   : > { %6716 = vmatmul.msk.bf16.gmra.mxu2 %vm280_vm1, %v8901_v29 }
 0x547   : > { %v5454_v1 = vpop.f32.mrf.mxu3 }
 0x548   : > { %v5534_v17 = vadd.f32 %v5454_v1, %v8772_v11  ;;  %v5677_v7 = vpop.f32.mrf.mxu0  ;;  %6742 = vmatmul.msk.bf16.gmra.mxu0 %vm280_vm1, %v9321_v56  ;;  %v5805_v11 = vld [vmem:[#allocation2 + $0x109] sm:$0xff]  ;;  %v5898_v45 = vpop.f32.mrf.mxu1  ;;  %v6011_v1 = vld [vmem:[#allocation2 + $0x52] sm:$0xff] }
 0x549   : > { %v5268_v60 = vpop.f32.mrf.mxu2  ;;  %v5828_v9 = vpack.c.bf16 %v5806_v52, %v5805_v11 }
 0x54a   : > { %v5755_v48 = vadd.f32 %v5675_v37, %v5534_v17  ;;  %v8911_v42 = vadd.f32 %v5268_v60, %v8755_v0  ;;  %6726 = vmatmul.msk.bf16.gmra.mxu3 %vm280_vm1, %v9322_v6  ;;  %v9323_v37 = vld [vmem:[#allocation15_spill] sm:$0xff]  ;;  %v5829_v60 = vpack.c.bf16 %v5808_v53, %v5807_v18 }
 0x54c   : > { %v8931_v38 = vadd.f32 %v5896_v54, %v5755_v48 }
 0x54f   : > { %v5456_v26 = vpop.f32.mrf.mxu3  ;;  %6758 = vmatmul.msk.bf16.gmra.mxu1 %vm280_vm1, %v5828_v9  ;;  %v5810_v9 = vld [vmem:[#allocation2 + $0x141] sm:$0xff] }
 0x550   : > { %v5535_v4 = vadd.f32 %v5456_v26, %v8780_v55  ;;  %v5680_v13 = vpop.f32.mrf.mxu0  ;;  %v5901_v17 = vpop.f32.mrf.mxu1 }
 0x551   : > { %v5270_v61 = vpop.f32.mrf.mxu2 }
 0x552   : > { %v5756_v50 = vadd.f32 %v5677_v7, %v5535_v4  ;;  %v8919_v0 = vadd.f32 %v5270_v61, %v8766_v35  ;;  %v9325_v4 = vld [vmem:[#allocation17_spill] sm:$0xff] }
 0x556   : > { %6765 = vmatmul.msk.bf16.vlgmr.msra.gmra.mxu2 %vm280_vm1, %v6040_v28  ;;  %v9326_v28 = vld [vmem:[#allocation16_spill] sm:$0xff] }
 0x557   : > { %v5459_v55 = vpop.f32.mrf.mxu3 }
 0x558   : > { %v5536_v32 = vadd.f32 %v5459_v55, %v8792_v57  ;;  %v5682_v8 = vpop.f32.mrf.mxu0  ;;  %6743 = vmatmul.msk.bf16.gmra.mxu0 %vm280_vm1, %v9323_v37  ;;  %v6010_v57 = vld [vmem:[#allocation2 + $0x4a] sm:$0xff]  ;;  %v6012_v55 = vld [vmem:[#allocation2 + $0x62] sm:$0xff] }
 0x559   : > { %v5273_v33 = vpop.f32.mrf.mxu2  ;;  %v6041_v48 = vpack.c.bf16 %v6011_v1, %v6010_v57 }
 0x55a   : > { %v5757_v49 = vadd.f32 %v5680_v13, %v5536_v32  ;;  %v8929_v35 = vadd.f32 %v5273_v33, %v8774_v19  ;;  %6727 = vmatmul.msk.bf16.gmra.mxu3 %vm280_vm1, %v9324_v62  ;;  %v9327_v62 = vld [vmem:[#allocation19_spill] sm:$0xff] }
 0x55c   : > { %v8949_v36 = vadd.f32 %v5901_v17, %v5757_v49 }
 0x55f   : > { %v5461_v58 = vpop.f32.mrf.mxu3  ;;  %6759 = vmatmul.msk.bf16.gmra.mxu1 %vm280_vm1, %v5829_v60 }
 0x560   : > { %v5537_v27 = vadd.f32 %v5461_v58, %v8800_v30  ;;  %v5685_v19 = vpop.f32.mrf.mxu0  ;;  %v8941_v30 = vadd.f32 %v5898_v45, %v5756_v50  ;;  %v6013_v45 = vld [vmem:[#allocation2 + $0x6a] sm:$0xff] }
 0x561   : > { %v5275_v56 = vpop.f32.mrf.mxu2  ;;  %v6042_v49 = vpack.c.bf16 %v6013_v45, %v6012_v55  ;;  %v5813_v55 = vld [vmem:[#allocation2 + $0x169] sm:$0xff]  ;;  %v6016_v45 = vld [vmem:[#allocation2 + $0x92] sm:$0xff] }
 0x562   : > { %v5758_v7 = vadd.f32 %v5682_v8, %v5537_v27  ;;  %v8937_v26 = vadd.f32 %v5275_v56, %v8786_v20  ;;  %v5903_v20 = vpop.f32.mrf.mxu1  ;;  %v5812_v56 = vld [vmem:[#allocation2 + $0x159] sm:$0xff] }
 0x564   : > { %v8959_v58 = vadd.f32 %v5903_v20, %v5758_v7 }
 0x566   : > { %6766 = vmatmul.msk.bf16.gmra.mxu2 %vm280_vm1, %v6041_v48  ;;  %v9328_v48 = vld [vmem:[#allocation18_spill] sm:$0xff] }
 0x567   : > { %v5464_v54 = vpop.f32.mrf.mxu3 }
 0x568   : > { %v5538_v52 = vadd.f32 %v5464_v54, %v8812_v25  ;;  %6744 = vmatmul.msk.bf16.gmra.mxu0 %vm280_vm1, %v9325_v4  ;;  %v5687_v24 = vpop.f32.mrf.mxu0  ;;  %v5809_v25 = vld [vmem:[#allocation2 + $0x139] sm:$0xff] }
 0x569   : > { %v5278_v6 = vpop.f32.mrf.mxu2  ;;  %v5830_v37 = vpack.c.bf16 %v5810_v9, %v5809_v25  ;;  %v6014_v54 = vld [vmem:[#allocation2 + $0x7a] sm:$0xff]  ;;  %v5814_v25 = vld [vmem:[#allocation2 + $0x171] sm:$0xff] }
 0x56a   : > { %v5759_v13 = vadd.f32 %v5685_v19, %v5538_v52  ;;  %v8947_v11 = vadd.f32 %v5278_v6, %v8794_v12  ;;  %6728 = vmatmul.msk.bf16.gmra.mxu3 %vm280_vm1, %v9326_v28  ;;  %v5906_v33 = vpop.f32.mrf.mxu1  ;;  %v6015_v52 = vld [vmem:[#allocation2 + $0x82] sm:$0xff] }
 0x56c   : > { %v8967_v1 = vadd.f32 %v5906_v33, %v5759_v13  ;;  %v6043_v13 = vpack.c.bf16 %v6015_v52, %v6014_v54  ;;  %v5375_v54 = vld [vmem:[#allocation2 + $0x182] sm:$0xff]  ;;  %v5376_v52 = vld [vmem:[#allocation2 + $0x18a] sm:$0xff] }
 0x56f   : > { %v5466_v61 = vpop.f32.mrf.mxu3  ;;  %6760 = vmatmul.msk.bf16.gmra.mxu1 %vm280_vm1, %v5830_v37 }
 0x570   : > { %v5539_v50 = vadd.f32 %v5466_v61, %v8820_v21  ;;  %v5690_v21 = vpop.f32.mrf.mxu0 }
 0x571   : > { %v5280_v8 = vpop.f32.mrf.mxu2 }
 0x572   : > { %v5760_v32 = vadd.f32 %v5687_v24, %v5539_v50  ;;  %v8955_v12 = vadd.f32 %v5280_v8, %v8806_v59  ;;  %v5908_v7 = vpop.f32.mrf.mxu1  ;;  %v9329_v24 = vld [vmem:[#allocation30_spill] sm:$0xff] }
 0x573   : > { %v6017_v8 = vld [vmem:[#allocation2 + $0x9a] sm:$0xff] }
 0x574   : > { %v6044_v33 = vpack.c.bf16 %v6017_v8, %v6016_v45 }
 0x576   : > { %6767 = vmatmul.msk.bf16.gmra.mxu2 %vm280_vm1, %v6042_v49 }
 0x577   : > { %v5469_v53 = vpop.f32.mrf.mxu3 }
 0x578   : > { %v5540_v27 = vadd.f32 %v5469_v53, %v8832_v63  ;;  %6745 = vmatmul.msk.bf16.gmra.mxu0 %vm280_vm1, %v9327_v62  ;;  %v5692_v19 = vpop.f32.mrf.mxu0  ;;  %v5811_v63 = vld [vmem:[#allocation2 + $0x151] sm:$0xff]  ;;  %v9331_v53 = vld [vmem:[#allocation31_spill] sm:$0xff] }
 0x579   : > { %v5283_v57 = vpop.f32.mrf.mxu2  ;;  %v5831_v20 = vpack.c.bf16 %v5812_v56, %v5811_v63  ;;  %v5596_v56 = vld [vmem:[#allocation2 + $0x198] sm:$0xff] }
 0x57a   : > { %v5761_v18 = vadd.f32 %v5690_v21, %v5540_v27  ;;  %v8965_v59 = vadd.f32 %v5283_v57, %v8814_v14  ;;  %6729 = vmatmul.msk.bf16.gmra.mxu3 %vm280_vm1, %v9328_v48  ;;  %v5911_v9 = vpop.f32.mrf.mxu1  ;;  %v6019_v57 = vld [vmem:[#allocation2 + $0xb2] sm:$0xff] }
 0x57c   : > { %v8984_v28 = vadd.f32 %v5911_v9, %v5761_v18  ;;  %v9332_v18 = vld [vmem:[#allocation24_spill] sm:$0xff] }
 0x57f   : > { %v5471_v17 = vpop.f32.mrf.mxu3  ;;  %6761 = vmatmul.msk.bf16.gmra.mxu1 %vm280_vm1, %v5831_v20  ;;  %v9012_v20 = vpack.c.bf16 %v5376_v52, %v5375_v54 }
 0x580   : > { %v5541_v60 = vadd.f32 %v5471_v17, %v8840_v31  ;;  %v8977_v31 = vadd.f32 %v5908_v7, %v5760_v32  ;;  %v5832_v32 = vpack.c.bf16 %v5814_v25, %v5813_v55  ;;  %v6023_v55 = vld [vmem:[#allocation2 + $0xe2] sm:$0xff] }
 0x581   : > { %v5285_v6 = vpop.f32.mrf.mxu2 }
 0x582   : > { %v5762_v4 = vadd.f32 %v5692_v19, %v5541_v60  ;;  %v8973_v14 = vadd.f32 %v5285_v6, %v8826_v23  ;;  %v9330_v23 = vld [vmem:[#allocation21_spill] sm:$0xff]  ;;  %v5913_v21 = vpop.f32.mrf.mxu1  ;;  %v5597_v60 = vld [vmem:[#allocation2 + $0x1a0] sm:$0xff] }
 0x583   : > { %v5613_v48 = vpack.c.bf16 %v5597_v60, %v5596_v56  ;;  %v5818_v6 = vld [vmem:[#allocation2 + $0x1a1] sm:$0xff]  ;;  %v6027_v56 = vld [vmem:[#allocation2 + $0x112] sm:$0xff] }
 0x586   : > { %6768 = vmatmul.msk.bf16.gmra.mxu2 %vm280_vm1, %v6043_v13  ;;  %v6021_v13 = vld [vmem:[#allocation2 + $0xca] sm:$0xff] }
 0x588   : > { %6746 = vmatmul.msk.bf16.gmra.mxu0 %vm280_vm1, %v9329_v24 }
 0x589   : > { %v5288_v61 = vpop.f32.mrf.mxu2 }
 0x58a   : > { %v8982_v50 = vadd.f32 %v5288_v61, %v8834_v10  ;;  %6730 = vmatmul.msk.bf16.gmra.mxu3 %vm280_vm1, %v9330_v23  ;;  %v8993_v10 = vadd.f32 %v5913_v21, %v5762_v4  ;;  %v5817_v4 = vld [vmem:[#allocation2 + $0x199] sm:$0xff]  ;;  %v5916_v52 = vpop.f32.mrf.mxu1 }
 0x58b   : > { %v6022_v23 = vld [vmem:[#allocation2 + $0xda] sm:$0xff] }
 0x58c   : > { %v6025_v21 = vld [vmem:[#allocation2 + $0xfa] sm:$0xff] }
 0x58f   : > { %6762 = vmatmul.msk.bf16.gmra.mxu1 %vm280_vm1, %v5832_v32 }
 0x591   : > { %v5290_v37 = vpop.f32.mrf.mxu2 }
 0x592   : > { %v8989_v49 = vadd.f32 %v5290_v37, %v8846_v46  ;;  %v6018_v46 = vld [vmem:[#allocation2 + $0xaa] sm:$0xff]  ;;  %v6047_v37 = vpack.c.bf16 %v6023_v55, %v6022_v23  ;;  %v5918_v23 = vpop.f32.mrf.mxu1 }
 0x593   : > { %v6045_v19 = vpack.c.bf16 %v6019_v57, %v6018_v46  ;;  %v5474_v57 = vpop.f32.mrf.mxu3 }
 0x596   : > { %6769 = vmatmul.msk.bf16.gmra.mxu2 %vm280_vm1, %v6044_v33  ;;  %v6024_v33 = vld [vmem:[#allocation2 + $0xf2] sm:$0xff] }
 0x598   : > { %6747 = vmatmul.msk.bf16.gmra.mxu0 %vm280_vm1, %v9331_v53 }
 0x599   : > { %v5293_v27 = vpop.f32.mrf.mxu2 }
 0x59a   : > { %v8998_v62 = vadd.f32 %v5293_v27, %v8854_v16  ;;  %6731 = vmatmul.msk.bf16.gmra.mxu3 %vm280_vm1, %v9332_v18  ;;  %v6048_v27 = vpack.c.bf16 %v6025_v21, %v6024_v33 }
 0x59f   : > { %6763 = vmatmul.msk.bf16.gmra.mxu1 %vm280_vm1, %v8901_v29  ;;  %v6020_v29 = vld [vmem:[#allocation2 + $0xc2] sm:$0xff] }
 0x5a0   : > { %v6046_v9 = vpack.c.bf16 %v6021_v13, %v6020_v29 }
 0x5a1   : > { %v5295_v17 = vpop.f32.mrf.mxu2 }
 0x5a2   : > { %v9003_v7 = vadd.f32 %v5295_v17, %v8865_v44  ;;  %v5834_v44 = vpack.c.bf16 %v5818_v6, %v5817_v4  ;;  %v6026_v17 = vld [vmem:[#allocation2 + $0x10a] sm:$0xff]  ;;  %v5476_v4 = vpop.f32.mrf.mxu3 }
 0x5a6   : > { %6770 = vmatmul.msk.bf16.gmra.mxu2 %vm280_vm1, %v6045_v19  ;;  %v6049_v19 = vpack.c.bf16 %v6027_v56, %v6026_v17 }
 0x5a8   : > { %6748 = vmatmul.msk.bf16.gmra.mxu0 %vm280_vm1, %v5613_v48 }
 0x5a9   : > { %v5298_v16 = vpop.f32.mrf.mxu2 }
 0x5aa   : > { %v9010_v63 = vadd.f32 %v5298_v16, %v8873_v3  ;;  %6732 = vmatmul.msk.bf16.gmra.mxu3 %vm280_vm1, %v9012_v20  ;;  %v5695_v16 = vpop.f32.mrf.mxu0 }
 0x5af   : > { %6764 = vmatmul.msk.bf16.gmra.mxu1 %vm280_vm1, %v5834_v44 }
 0x5b1   : > { %v5300_v24 = vpop.f32.mrf.mxu2 }
 0x5b2   : > { %v9017_v61 = vadd.f32 %v5300_v24, %v8884_v22  ;;  %v5697_v24 = vpop.f32.mrf.mxu0 }
 0x5b6   : > { %6771 = vmatmul.msk.bf16.gmra.mxu2 %vm280_vm1, %v6046_v9  ;;  %v6029_v9 = vld [vmem:[#allocation2 + $0x12a] sm:$0xff] }
 0x5b9   : > { %v5303_v3 = vpop.f32.mrf.mxu2 }
 0x5ba   : > { %v9022_v25 = vadd.f32 %v5303_v3, %v8892_v43  ;;  %v5700_v33 = vpop.f32.mrf.mxu0 }
 0x5c1   : > { %v5305_v45 = vpop.f32.mrf.mxu2 }
 0x5c2   : > { %v9025_v8 = vadd.f32 %v5305_v45, %v8905_v40  ;;  %v9038_v40 = vld [vmem:[%s9195_s6] ss:$0 sm:$0xff]  ;;  %v5479_v45 = vpop.f32.mrf.mxu3 }
 0x5c6   : > { %6772 = vmatmul.msk.bf16.gmra.mxu2 %vm280_vm1, %v6047_v37 }
 0x5c9   : > { %v5308_v22 = vpop.f32.mrf.mxu2 }
 0x5ca   : > { %v9029_v32 = vadd.f32 %v5308_v22, %v8913_v5 }
 0x5d1   : > { %v5310_v53 = vpop.f32.mrf.mxu2 }
 0x5d2   : > { %v9032_v43 = vadd.f32 %v5310_v53, %v8923_v2 }
 0x5d6   : > { %6773 = vmatmul.msk.bf16.gmra.mxu2 %vm280_vm1, %v6048_v27  ;;  %v9066_v27 = vpop.f32.mrf.mxu1 }
 0x5d9   : > { %v6117_v18 = vpop.f32.mrf.mxu2 }
 0x5da   : > { %v6197_v46 = vadd.f32 %v6117_v18, %v8931_v38 }
 0x5dc   : > { %v6233_v5 = vadd.f32 %v9038_v40, %v6197_v46  ;;  %v5481_v46 = vpop.f32.mrf.mxu3 }
 0x5de   : > { %v6265_v2 = vmax.f32 %v6233_v5, 0.0  ;;  %v6030_v5 = vld [vmem:[#allocation2 + $0x13a] sm:$0xff] }
 0x5e0   : > { %6297 = vst.msk [vmem:[%s9047_s11] sm:$0xff] %vm280_vm1, %v6265_v2  ;;  %v6031_v2 = vld [vmem:[#allocation2 + $0x142] sm:$0xff] }
 0x5e1   : > { %v6119_v60 = vpop.f32.mrf.mxu2 }
 0x5e2   : > { %v6198_v38 = vadd.f32 %v6119_v60, %v8941_v30  ;;  %v6028_v30 = vld [vmem:[#allocation2 + $0x122] sm:$0xff]  ;;  %v5702_v60 = vpop.f32.mrf.mxu0 }
 0x5e3   : > { %v6050_v37 = vpack.c.bf16 %v6029_v9, %v6028_v30 }
 0x5e4   : > { %v6234_v48 = vadd.f32 %v9038_v40, %v6198_v38  ;;  %v6051_v38 = vpack.c.bf16 %v6031_v2, %v6030_v5 }
 0x5e6   : > { %6774 = vmatmul.msk.bf16.gmra.mxu2 %vm280_vm1, %v6049_v19  ;;  %v6266_v54 = vmax.f32 %v6234_v48, 0.0 }
 0x5e8   : > { %6298 = vst.msk [vmem:[%s9047_s11 + $0x8] sm:$0xff] %vm280_vm1, %v6266_v54  ;;  %v5484_v54 = vpop.f32.mrf.mxu3 }
 0x5e9   : > { %v6122_v6 = vpop.f32.mrf.mxu2 }
 0x5ea   : > { %v6199_v44 = vadd.f32 %v6122_v6, %v8949_v36 }
 0x5ec   : > { %v6235_v29 = vadd.f32 %v9038_v40, %v6199_v44 }
 0x5ee   : > { %v6267_v13 = vmax.f32 %v6235_v29, 0.0 }
 0x5f0   : > { %6299 = vst.msk [vmem:[%s9047_s11 + $0x10] sm:$0xff] %vm280_vm1, %v6267_v13  ;;  %v5705_v13 = vpop.f32.mrf.mxu0 }
 0x5f1   : > { %v6124_v3 = vpop.f32.mrf.mxu2 }
 0x5f2   : > { %v6200_v55 = vadd.f32 %v6124_v3, %v8959_v58  ;;  %v6032_v3 = vld [vmem:[#allocation2 + $0x152] sm:$0xff] }
 0x5f4   : > { %v6236_v22 = vadd.f32 %v9038_v40, %v6200_v55  ;;  %v6033_v55 = vld [vmem:[#allocation2 + $0x15a] sm:$0xff] }
 0x5f6   : > { %6775 = vmatmul.msk.bf16.gmra.mxu2 %vm280_vm1, %v6050_v37  ;;  %v6268_v36 = vmax.f32 %v6236_v22, 0.0  ;;  %v5486_v37 = vpop.f32.mrf.mxu3 }
 0x5f8   : > { %6300 = vst.msk [vmem:[%s9047_s11 + $0x18] sm:$0xff] %vm280_vm1, %v6268_v36 }
 0x5f9   : > { %v6127_v21 = vpop.f32.mrf.mxu2 }
 0x5fa   : > { %v6201_v53 = vadd.f32 %v6127_v21, %v8967_v1  ;;  %v5923_v1 = vpop.f32.mrf.mxu1  ;;  %v6052_v21 = vpack.c.bf16 %v6033_v55, %v6032_v3 }
 0x5fc   : > { %v6237_v18 = vadd.f32 %v9038_v40, %v6201_v53 }
 0x5fe   : > { %v6269_v58 = vmax.f32 %v6237_v18, 0.0 }
 0x600   : > { %6301 = vst.msk [vmem:[%s9047_s11 + $0x20] sm:$0xff] %vm280_vm1, %v6269_v58  ;;  %v5707_v58 = vpop.f32.mrf.mxu0 }
 0x601   : > { %v6129_v17 = vpop.f32.mrf.mxu2 }
 0x602   : > { %v6202_v56 = vadd.f32 %v6129_v17, %v8977_v31  ;;  %v5542_v31 = vadd.f32 %v5474_v57, %v8852_v39  ;;  %v5926_v9 = vpop.f32.mrf.mxu1  ;;  %v5543_v39 = vadd.f32 %v5476_v4, %v8860_v51 }
 0x604   : > { %v6238_v19 = vadd.f32 %v9038_v40, %v6202_v56  ;;  %v5763_v53 = vadd.f32 %v5695_v16, %v5542_v31  ;;  %v5489_v56 = vpop.f32.mrf.mxu3 }
 0x606   : > { %6776 = vmatmul.msk.bf16.gmra.mxu2 %vm280_vm1, %v6051_v38  ;;  %v6270_v48 = vmax.f32 %v6238_v19, 0.0  ;;  %v5984_v57 = vadd.f32 %v5916_v52, %v5763_v53  ;;  %v5764_v38 = vadd.f32 %v5697_v24, %v5543_v39  ;;  %v5544_v19 = vadd.f32 %v5479_v45, %v8871_v47 }
 0x607   : > { %v5545_v47 = vadd.f32 %v5481_v46, %v8879_v34  ;;  %v5546_v39 = vadd.f32 %v5484_v54, %v8890_v41 }
 0x608   : > { %6302 = vst.msk [vmem:[%s9047_s11 + $0x28] sm:$0xff] %vm280_vm1, %v6270_v48  ;;  %v5985_v48 = vadd.f32 %v5918_v23, %v5764_v38  ;;  %v5710_v51 = vpop.f32.mrf.mxu0  ;;  %v5547_v38 = vadd.f32 %v5486_v37, %v8898_v15 }
 0x609   : > { %v6132_v6 = vpop.f32.mrf.mxu2 }
 0x60a   : > { %v6203_v44 = vadd.f32 %v6132_v6, %v8984_v28  ;;  %v5928_v2 = vpop.f32.mrf.mxu1  ;;  %v6034_v6 = vld [vmem:[#allocation2 + $0x16a] sm:$0xff] }
 0x60c   : > { %v6239_v29 = vadd.f32 %v9038_v40, %v6203_v44  ;;  %v6035_v44 = vld [vmem:[#allocation2 + $0x172] sm:$0xff]  ;;  %v5491_v24 = vpop.f32.mrf.mxu3 }
 0x60d   : > { %v6053_v52 = vpack.c.bf16 %v6035_v44, %v6034_v6  ;;  %v6038_v6 = vld [vmem:[#allocation2 + $0x19a] sm:$0xff]  ;;  %v6039_v44 = vld [vmem:[#allocation2 + $0x1a2] sm:$0xff] }
 0x60e   : > { %v6271_v30 = vmax.f32 %v6239_v29, 0.0 }
 0x610   : > { %6303 = vst.msk [vmem:[%s9047_s11 + $0x30] sm:$0xff] %vm280_vm1, %v6271_v30  ;;  %v5765_v30 = vadd.f32 %v5700_v33, %v5544_v19  ;;  %v5768_v19 = vadd.f32 %v5707_v58, %v5547_v38 }
 0x611   : > { %v6134_v22 = vpop.f32.mrf.mxu2 }
 0x612   : > { %v6204_v36 = vadd.f32 %v6134_v22, %v8993_v10  ;;  %v5931_v31 = vpop.f32.mrf.mxu1  ;;  %v5986_v23 = vadd.f32 %v9066_v27, %v5765_v30  ;;  %v5989_v15 = vadd.f32 %v5928_v2, %v5768_v19 }
 0x614   : > { %v6240_v28 = vadd.f32 %v9038_v40, %v6204_v36  ;;  %v5712_v36 = vpop.f32.mrf.mxu0 }
 0x616   : > { %6777 = vmatmul.msk.bf16.gmra.mxu2 %vm280_vm1, %v6052_v21  ;;  %v6272_v18 = vmax.f32 %v6240_v28, 0.0  ;;  %v5766_v21 = vadd.f32 %v5702_v60, %v5545_v47  ;;  %v5549_v47 = vadd.f32 %v5491_v24, %v8919_v0 }
 0x618   : > { %6304 = vst.msk [vmem:[%s9047_s11 + $0x38] sm:$0xff] %vm280_vm1, %v6272_v18  ;;  %v5494_v18 = vpop.f32.mrf.mxu3 }
 0x619   : > { %v6137_v5 = vpop.f32.mrf.mxu2 }
 0x61a   : > { %v6205_v17 = vadd.f32 %v6137_v5, %v5984_v57  ;;  %v5933_v53 = vpop.f32.mrf.mxu1  ;;  %v5987_v57 = vadd.f32 %v5923_v1, %v5766_v21  ;;  %v5767_v5 = vadd.f32 %v5705_v13, %v5546_v39 }
 0x61c   : > { %v6241_v10 = vadd.f32 %v9038_v40, %v6205_v17  ;;  %v5715_v17 = vpop.f32.mrf.mxu0  ;;  %v5988_v41 = vadd.f32 %v5926_v9, %v5767_v5 }
 0x61e   : > { %v6273_v16 = vmax.f32 %v6241_v10, 0.0 }
 0x620   : > { %6305 = vst.msk [vmem:[%s9047_s11 + $0x40] sm:$0xff] %vm280_vm1, %v6273_v16  ;;  %v5496_v54 = vpop.f32.mrf.mxu3 }
 0x621   : > { %v6139_v4 = vpop.f32.mrf.mxu2 }
 0x622   : > { %v6206_v29 = vadd.f32 %v6139_v4, %v5985_v48  ;;  %v5936_v10 = vpop.f32.mrf.mxu1 }
 0x624   : > { %v6242_v3 = vadd.f32 %v9038_v40, %v6206_v29  ;;  %v5717_v4 = vpop.f32.mrf.mxu0  ;;  %v6055_v29 = vpack.c.bf16 %v6039_v44, %v6038_v6 }
 0x626   : > { %6778 = vmatmul.msk.bf16.gmra.mxu2 %vm280_vm1, %v6053_v52  ;;  %v6274_v55 = vmax.f32 %v6242_v3, 0.0 }
 0x628   : > { %6306 = vst.msk [vmem:[%s9047_s11 + $0x48] sm:$0xff] %vm280_vm1, %v6274_v55  ;;  %v5499_v30 = vpop.f32.mrf.mxu3 }
 0x629   : > { %v6142_v45 = vpop.f32.mrf.mxu2 }
 0x62a   : > { %v6207_v22 = vadd.f32 %v6142_v45, %v5986_v23  ;;  %v5938_v52 = vpop.f32.mrf.mxu1  ;;  %v5770_v45 = vadd.f32 %v5712_v36, %v5549_v47 }
 0x62c   : > { %v6243_v33 = vadd.f32 %v9038_v40, %v6207_v22  ;;  %v5991_v39 = vadd.f32 %v5933_v53, %v5770_v45 }
 0x62e   : > { %v6275_v28 = vmax.f32 %v6243_v33, 0.0 }
 0x630   : > { %6307 = vst.msk [vmem:[%s9047_s11 + $0x50] sm:$0xff] %vm280_vm1, %v6275_v28  ;;  %v5550_v28 = vadd.f32 %v5494_v18, %v8929_v35 }
 0x631   : > { %v6144_v34 = vpop.f32.mrf.mxu2 }
 0x632   : > { %v6208_v46 = vadd.f32 %v6144_v34, %v5987_v57  ;;  %v5941_v22 = vpop.f32.mrf.mxu1  ;;  %v5771_v34 = vadd.f32 %v5715_v17, %v5550_v28  ;;  %v5552_v17 = vadd.f32 %v5499_v30, %v8947_v11 }
 0x634   : > { %v6244_v27 = vadd.f32 %v9038_v40, %v6208_v46 }
 0x636   : > { %6779 = vmatmul.msk.bf16.gmra.mxu2 %vm280_vm1, %v9012_v20  ;;  %v6276_v60 = vmax.f32 %v6244_v27, 0.0  ;;  %v5548_v20 = vadd.f32 %v5489_v56, %v8911_v42  ;;  %v5720_v56 = vpop.f32.mrf.mxu0  ;;  %v5551_v27 = vadd.f32 %v5496_v54, %v8937_v26 }
 0x637   : > { %v5773_v54 = vadd.f32 %v5720_v56, %v5552_v17 }
 0x638   : > { %6308 = vst.msk [vmem:[%s9047_s11 + $0x58] sm:$0xff] %vm280_vm1, %v6276_v60  ;;  %v5769_v3 = vadd.f32 %v5710_v51, %v5548_v20  ;;  %v5501_v51 = vpop.f32.mrf.mxu3  ;;  %v5992_v60 = vadd.f32 %v5936_v10, %v5771_v34  ;;  %v5772_v18 = vadd.f32 %v5717_v4, %v5551_v27 }
 0x639   : > { %v6147_v16 = vpop.f32.mrf.mxu2  ;;  %v5553_v4 = vadd.f32 %v5501_v51, %v8955_v12  ;;  %v5994_v20 = vadd.f32 %v5941_v22, %v5773_v54 }
 0x63a   : > { %v6209_v1 = vadd.f32 %v6147_v16, %v5988_v41  ;;  %v5990_v42 = vadd.f32 %v5931_v31, %v5769_v3  ;;  %v5943_v46 = vpop.f32.mrf.mxu1  ;;  %v5993_v19 = vadd.f32 %v5938_v52, %v5772_v18 }
 0x63c   : > { %v6245_v13 = vadd.f32 %v9038_v40, %v6209_v1 }
 0x63e   : > { %v6277_v48 = vmax.f32 %v6245_v13, 0.0  ;;  %v5722_v24 = vpop.f32.mrf.mxu0 }
 0x63f   : > { %v5774_v52 = vadd.f32 %v5722_v24, %v5553_v4 }
 0x640   : > { %6309 = vst.msk [vmem:[%s9047_s11 + $0x60] sm:$0xff] %vm280_vm1, %v6277_v48  ;;  %v5504_v5 = vpop.f32.mrf.mxu3 }
 0x641   : > { %v6149_v37 = vpop.f32.mrf.mxu2  ;;  %v5554_v3 = vadd.f32 %v5504_v5, %v8965_v59 }
 0x642   : > { %v6210_v9 = vadd.f32 %v6149_v37, %v5989_v15  ;;  %v5946_v1 = vpop.f32.mrf.mxu1 }
 0x644   : > { %v6246_v58 = vadd.f32 %v9038_v40, %v6210_v9 }
 0x646   : > { %6780 = vmatmul.msk.bf16.gmra.mxu2 %vm280_vm1, %v6055_v29  ;;  %v6278_v55 = vmax.f32 %v6246_v58, 0.0  ;;  %v5725_v41 = vpop.f32.mrf.mxu0  ;;  %v5995_v58 = vadd.f32 %v5943_v46, %v5774_v52 }
 0x648   : > { %6310 = vst.msk [vmem:[%s9047_s11 + $0x68] sm:$0xff] %vm280_vm1, %v6278_v55  ;;  %v5506_v13 = vpop.f32.mrf.mxu3 }
 0x649   : > { %v6152_v23 = vpop.f32.mrf.mxu2  ;;  %v5555_v22 = vadd.f32 %v5506_v13, %v8973_v14 }
 0x64a   : > { %v6211_v2 = vadd.f32 %v6152_v23, %v5990_v42  ;;  %v5948_v11 = vpop.f32.mrf.mxu1  ;;  %v5775_v42 = vadd.f32 %v5725_v41, %v5554_v3 }
 0x64c   : > { %v6247_v21 = vadd.f32 %v9038_v40, %v6211_v2 }
 0x64e   : > { %v6279_v33 = vmax.f32 %v6247_v21, 0.0  ;;  %v5727_v44 = vpop.f32.mrf.mxu0  ;;  %v5996_v21 = vadd.f32 %v5946_v1, %v5775_v42 }
 0x64f   : > { %v5776_v28 = vadd.f32 %v5727_v44, %v5555_v22 }
 0x650   : > { %6311 = vst.msk [vmem:[%s9047_s11 + $0x70] sm:$0xff] %vm280_vm1, %v6279_v33  ;;  %v5509_v29 = vpop.f32.mrf.mxu3 }
 0x651   : > { %v6154_v57 = vpop.f32.mrf.mxu2  ;;  %v5556_v34 = vadd.f32 %v5509_v29, %v8982_v50 }
 0x652   : > { %v6212_v0 = vadd.f32 %v6154_v57, %v5991_v39  ;;  %v5951_v56 = vpop.f32.mrf.mxu1 }
 0x654   : > { %v6248_v31 = vadd.f32 %v9038_v40, %v6212_v0 }
 0x656   : > { %v6280_v36 = vmax.f32 %v6248_v31, 0.0  ;;  %v5730_v55 = vpop.f32.mrf.mxu0  ;;  %v5997_v31 = vadd.f32 %v5948_v11, %v5776_v28 }
 0x658   : > { %6312 = vst.msk [vmem:[%s9047_s11 + $0x78] sm:$0xff] %vm280_vm1, %v6280_v36  ;;  %v5511_v2 = vpop.f32.mrf.mxu3  ;;  %v5777_v36 = vadd.f32 %v5730_v55, %v5556_v34 }
 0x659   : > { %v6157_v38 = vpop.f32.mrf.mxu2 }
 0x65a   : > { %v6213_v35 = vadd.f32 %v6157_v38, %v5992_v60  ;;  %v5953_v57 = vpop.f32.mrf.mxu1  ;;  %v5557_v38 = vadd.f32 %v5511_v2, %v8989_v49  ;;  %v5998_v18 = vadd.f32 %v5951_v56, %v5777_v36 }
 0x65c   : > { %v6249_v53 = vadd.f32 %v9038_v40, %v6213_v35 }
 0x65e   : > { %v6281_v16 = vmax.f32 %v6249_v53, 0.0  ;;  %v5732_v33 = vpop.f32.mrf.mxu0 }
 0x660   : > { %6313 = vst.msk [vmem:[%s9047_s11 + $0x80] sm:$0xff] %vm280_vm1, %v6281_v16  ;;  %v5514_v24 = vpop.f32.mrf.mxu3  ;;  %v5778_v16 = vadd.f32 %v5732_v33, %v5557_v38 }
 0x661   : > { %v6159_v48 = vpop.f32.mrf.mxu2  ;;  %v5558_v13 = vadd.f32 %v5514_v24, %v8998_v62 }
 0x662   : > { %v6214_v26 = vadd.f32 %v6159_v48, %v5993_v19  ;;  %v5956_v35 = vpop.f32.mrf.mxu1  ;;  %v5999_v48 = vadd.f32 %v5953_v57, %v5778_v16 }
 0x664   : > { %v6250_v10 = vadd.f32 %v9038_v40, %v6214_v26 }
 0x666   : > { %v6282_v6 = vmax.f32 %v6250_v10, 0.0  ;;  %v5735_v27 = vpop.f32.mrf.mxu0 }
 0x668   : > { %6314 = vst.msk [vmem:[%s9047_s11 + $0x88] sm:$0xff] %vm280_vm1, %v6282_v6  ;;  %v5516_v53 = vpop.f32.mrf.mxu3  ;;  %v5779_v6 = vadd.f32 %v5735_v27, %v5558_v13 }
 0x669   : > { %v6162_v15 = vpop.f32.mrf.mxu2 }
 0x66a   : > { %v6215_v37 = vadd.f32 %v6162_v15, %v5994_v20  ;;  %v5958_v49 = vpop.f32.mrf.mxu1  ;;  %v5559_v20 = vadd.f32 %v5516_v53, %v9003_v7  ;;  %v6000_v15 = vadd.f32 %v5956_v35, %v5779_v6 }
 0x66c   : > { %v6251_v9 = vadd.f32 %v9038_v40, %v6215_v37 }
 0x66e   : > { %v6283_v30 = vmax.f32 %v6251_v9, 0.0  ;;  %v5737_v19 = vpop.f32.mrf.mxu0 }
 0x66f   : > { %v5780_v29 = vadd.f32 %v5737_v19, %v5559_v20 }
 0x670   : > { %6315 = vst.msk [vmem:[%s9047_s11 + $0x90] sm:$0xff] %vm280_vm1, %v6283_v30  ;;  %v5519_v10 = vpop.f32.mrf.mxu3 }
 0x671   : > { %v6164_v47 = vpop.f32.mrf.mxu2  ;;  %v6001_v55 = vadd.f32 %v5958_v49, %v5780_v29 }
 0x672   : > { %v6216_v12 = vadd.f32 %v6164_v47, %v5995_v58  ;;  %v5961_v52 = vpop.f32.mrf.mxu1  ;;  %v5560_v58 = vadd.f32 %v5519_v10, %v9010_v63 }
 0x674   : > { %v6252_v23 = vadd.f32 %v9038_v40, %v6216_v12 }
 0x676   : > { %v6284_v45 = vmax.f32 %v6252_v23, 0.0  ;;  %v5740_v11 = vpop.f32.mrf.mxu0 }
 0x677   : > { %v5781_v42 = vadd.f32 %v5740_v11, %v5560_v58 }
 0x678   : > { %6316 = vst.msk [vmem:[%s9047_s11 + $0x98] sm:$0xff] %vm280_vm1, %v6284_v45  ;;  %v5521_v30 = vpop.f32.mrf.mxu3 }
 0x679   : > { %v6167_v51 = vpop.f32.mrf.mxu2  ;;  %v5561_v22 = vadd.f32 %v5521_v30, %v9017_v61 }
 0x67a   : > { %v6217_v59 = vadd.f32 %v6167_v51, %v5996_v21  ;;  %v5963_v23 = vpop.f32.mrf.mxu1  ;;  %v6002_v21 = vadd.f32 %v5961_v52, %v5781_v42 }
 0x67c   : > { %v6253_v39 = vadd.f32 %v9038_v40, %v6217_v59 }
 0x67e   : > { %v6285_v0 = vmax.f32 %v6253_v39, 0.0  ;;  %v5742_v12 = vpop.f32.mrf.mxu0 }
 0x67f   : > { %v5782_v59 = vadd.f32 %v5742_v12, %v5561_v22 }
 0x680   : > { %6317 = vst.msk [vmem:[%s9047_s11 + $0xa0] sm:$0xff] %vm280_vm1, %v6285_v0  ;;  %v5524_v45 = vpop.f32.mrf.mxu3 }
 0x681   : > { %v6169_v46 = vpop.f32.mrf.mxu2  ;;  %v5562_v0 = vadd.f32 %v5524_v45, %v9022_v25  ;;  %v6003_v24 = vadd.f32 %v5963_v23, %v5782_v59 }
 0x682   : > { %v6218_v14 = vadd.f32 %v6169_v46, %v5997_v31  ;;  %v5966_v57 = vpop.f32.mrf.mxu1 }
 0x684   : > { %v6254_v5 = vadd.f32 %v9038_v40, %v6218_v14 }
 0x686   : > { %v6286_v60 = vmax.f32 %v6254_v5, 0.0  ;;  %v5745_v28 = vpop.f32.mrf.mxu0 }
 0x687   : > { %v5783_v46 = vadd.f32 %v5745_v28, %v5562_v0 }
 0x688   : > { %6318 = vst.msk [vmem:[%s9047_s11 + $0xa8] sm:$0xff] %vm280_vm1, %v6286_v60  ;;  %v5526_v34 = vpop.f32.mrf.mxu3 }
 0x689   : > { %v6172_v41 = vpop.f32.mrf.mxu2  ;;  %v5563_v27 = vadd.f32 %v5526_v34, %v9025_v8  ;;  %v6004_v60 = vadd.f32 %v5966_v57, %v5783_v46 }
 0x68a   : > { %v6219_v50 = vadd.f32 %v6172_v41, %v5998_v18  ;;  %v5968_v25 = vpop.f32.mrf.mxu1 }
 0x68c   : > { %v6255_v17 = vadd.f32 %v9038_v40, %v6219_v50 }
 0x68e   : > { %v6287_v1 = vmax.f32 %v6255_v17, 0.0  ;;  %v5747_v5 = vpop.f32.mrf.mxu0 }
 0x68f   : > { %v5784_v53 = vadd.f32 %v5747_v5, %v5563_v27 }
 0x690   : > { %6319 = vst.msk [vmem:[%s9047_s11 + $0xb0] sm:$0xff] %vm280_vm1, %v6287_v1  ;;  %v5529_v18 = vpop.f32.mrf.mxu3 }
 0x691   : > { %v6174_v26 = vpop.f32.mrf.mxu2  ;;  %v5564_v17 = vadd.f32 %v5529_v18, %v9029_v32  ;;  %v6005_v1 = vadd.f32 %v5968_v25, %v5784_v53 }
 0x692   : > { %v6220_v54 = vadd.f32 %v6174_v26, %v5999_v48  ;;  %v5971_v13 = vpop.f32.mrf.mxu1 }
 0x694   : > { %v6256_v44 = vadd.f32 %v9038_v40, %v6220_v54 }
 0x696   : > { %v6288_v4 = vmax.f32 %v6256_v44, 0.0  ;;  %v5750_v16 = vpop.f32.mrf.mxu0 }
 0x697   : > { %v5785_v48 = vadd.f32 %v5750_v16, %v5564_v17 }
 0x698   : > { %6320 = vst.msk [vmem:[%s9047_s11 + $0xb8] sm:$0xff] %vm280_vm1, %v6288_v4  ;;  %v5531_v49 = vpop.f32.mrf.mxu3 }
 0x699   : > { %v6177_v37 = vpop.f32.mrf.mxu2  ;;  %v6006_v10 = vadd.f32 %v5971_v13, %v5785_v48  ;;  %v5565_v6 = vadd.f32 %v5531_v49, %v9032_v43 }
 0x69a   : > { %v6221_v62 = vadd.f32 %v6177_v37, %v6000_v15  ;;  %v5973_v11 = vpop.f32.mrf.mxu1 }
 0x69c   : > { %v6257_v9 = vadd.f32 %v9038_v40, %v6221_v62 }
 0x69e   : > { %v6289_v3 = vmax.f32 %v6257_v9, 0.0  ;;  %v5752_v44 = vpop.f32.mrf.mxu0 }
 0x69f   : > { %v5786_v20 = vadd.f32 %v5752_v44, %v5565_v6 }
 0x6a0   : > { %6321 = vst.msk [vmem:[%s9047_s11 + $0xc0] sm:$0xff] %vm280_vm1, %v6289_v3 }
 0x6a1   : > { %v6179_v47 = vpop.f32.mrf.mxu2  ;;  %v6007_v62 = vadd.f32 %v5973_v11, %v5786_v20 }
 0x6a2   : > { %v6222_v7 = vadd.f32 %v6179_v47, %v6001_v55 }
 0x6a4   : > { %v6258_v56 = vadd.f32 %v9038_v40, %v6222_v7 }
 0x6a6   : > { %v6290_v2 = vmax.f32 %v6258_v56, 0.0 }
 0x6a8   : > { %6322 = vst.msk [vmem:[%s9047_s11 + $0xc8] sm:$0xff] %vm280_vm1, %v6290_v2 }
 0x6a9   : > { %v6182_v51 = vpop.f32.mrf.mxu2 }
 0x6aa   : > { %v6223_v63 = vadd.f32 %v6182_v51, %v6002_v21 }
 0x6ac   : > { %v6259_v33 = vadd.f32 %v9038_v40, %v6223_v63 }
 0x6ae   : > { %v6291_v39 = vmax.f32 %v6259_v33, 0.0 }
 0x6b0   : > { %6323 = vst.msk [vmem:[%s9047_s11 + $0xd0] sm:$0xff] %vm280_vm1, %v6291_v39 }
 0x6b1   : > { %v6184_v31 = vpop.f32.mrf.mxu2 }
 0x6b2   : > { %v6224_v61 = vadd.f32 %v6184_v31, %v6003_v24 }
 0x6b4   : > { %v6260_v14 = vadd.f32 %v9038_v40, %v6224_v61 }
 0x6b6   : > { %v6292_v36 = vmax.f32 %v6260_v14, 0.0 }
 0x6b8   : > { %6324 = vst.msk [vmem:[%s9047_s11 + $0xd8] sm:$0xff] %vm280_vm1, %v6292_v36 }
 0x6b9   : > { %v6187_v38 = vpop.f32.mrf.mxu2 }
 0x6ba   : > { %v6225_v35 = vadd.f32 %v6187_v38, %v6004_v60 }
 0x6bc   : > { %v6261_v41 = vadd.f32 %v9038_v40, %v6225_v35 }
 0x6be   : > { %v6293_v50 = vmax.f32 %v6261_v41, 0.0 }
 0x6c0   : > { %6325 = vst.msk [vmem:[%s9047_s11 + $0xe0] sm:$0xff] %vm280_vm1, %v6293_v50 }
 0x6c1   : > { %v6189_v19 = vpop.f32.mrf.mxu2 }
 0x6c2   : > { %v6226_v8 = vadd.f32 %v6189_v19, %v6005_v1 }
 0x6c4   : > { %v6262_v26 = vadd.f32 %v9038_v40, %v6226_v8 }
 0x6c6   : > { %v6294_v54 = vmax.f32 %v6262_v26, 0.0 }
 0x6c8   : > { %6326 = vst.msk [vmem:[%s9047_s11 + $0xe8] sm:$0xff] %vm280_vm1, %v6294_v54 }
 0x6c9   : > { %v6192_v32 = vpop.f32.mrf.mxu2 }
 0x6ca   : > { %v6227_v4 = vadd.f32 %v6192_v32, %v6006_v10 }
 0x6cc   : > { %v6263_v15 = vadd.f32 %v9038_v40, %v6227_v4 }
 0x6ce   : > { %v6295_v37 = vmax.f32 %v6263_v15, 0.0 }
 0x6d0   : > { %6327 = vst.msk [vmem:[%s9047_s11 + $0xf0] sm:$0xff] %vm280_vm1, %v6295_v37 }
 0x6d1   : > { %v6194_v29 = vpop.f32.mrf.mxu2 }
 0x6d2   : > { %v6228_v52 = vadd.f32 %v6194_v29, %v6007_v62 }
 0x6d4   : > { %v6264_v9 = vadd.f32 %v9038_v40, %v6228_v52 }
 0x6d6   : > { %v6296_v30 = vmax.f32 %v6264_v9, 0.0 }
 0x6d8   : > { %6328 = vst.msk [vmem:[%s9047_s11 + $0xf8] sm:$0xff] %vm280_vm1, %v6296_v30 }
 0x6d9 PF: > { %s17_s24 = sadd.s32 1, %s6967_s24  }
 0x6da   : > { %p14_p4 = scmp.ge.s32.totalorder %s17_s24, 4  }
 0x6dc   :  { %16 = sbr.rel (!%p14_p4) target bundleno = 1 (0x1), region = 91 }

</bundles_post_ra>
